<compile_context>
chip_gen: v6e
topology: v6e:2x2x1
jax: 0.10.0
libtpu: 0.0.40
codegen_flags: <defaults>
</compile_context>

<pallas_src>
import functools

import numpy as np

import jax
import jax.numpy as jnp
from jax.experimental import pallas as pl
from jax.experimental.pallas import tpu as pltpu

EPS = 1e-5                                   # BatchNorm2d default eps
_DILATIONS = (1, 2, 4, 8)                    # dilation rates used by the block
_D_IDX = {d: i for i, d in enumerate(_DILATIONS)}


# ---------------------------------------------------------------------------
# The single fused Pallas kernel
# ---------------------------------------------------------------------------
def _res_block_uf_kernel(x_ref, w9_ref, w18_ref, mask_ref, out_ref,
                         acts_ref, col_ref, *, width, flat_m, c_pad):
    """Whole ResBlockUF forward.

    x_ref:    (C_pad, M)            input, channel-major, M = N*H*W on the lane axis
    w9_ref:   (5, C_pad, 9*C_pad)   packed weights of the 5 single-input ConvReLUs
    w18_ref:  (3, C_pad, 18*C_pad)  packed weights of the 3 decoder ConvReLUs
    mask_ref: (36, M)               per-(dilation, tap) validity masks (f32 0/1)
    out_ref:  (C_pad, M)
    acts_ref: (4, C_pad, M)  VMEM   stash for long-lived skips x0..x3
    col_ref:  (18*C_pad, M)  VMEM   im2col scratch; row = (block*9 + tap)*C_pad + cin
    """
    k9 = 9 * c_pad
    inv_m = 1.0 / flat_m

    def fill_taps(src, dirate, block):
        # Write the 9 rolled+masked taps of `src` (C_pad, M) into
        # col_ref rows [block*k9 : (block+1)*k9] as full-width (C_pad, M) stores.
        d_base = _D_IDX[dirate] * 9
        for t in range(9):
            dy, dx = t // 3 - 1, t % 3 - 1
            s = (dy * width + dx) * dirate            # flat-index offset of this tap
            if s == 0:                                # centre tap: no roll, no mask
                tap = src
            else:
                tap = (pltpu.roll(src, shift=(-s) % flat_m, axis=1)
                       * mask_ref[pl.ds(d_base + t, 1), :])
            col_ref[pl.ds((block * 9 + t) * c_pad, c_pad), :] = tap

    def bn_celu(y):
        # BatchNorm2d (training-mode batch stats, biased variance): sum and
        # sum-of-squares fused into a single cross-lane reduce (one XLU launch).
        s = jnp.sum(jnp.concatenate([y, y * y], axis=0), axis=1, keepdims=True)
        mean = s[:c_pad] * inv_m
        var = jnp.maximum(s[c_pad:] * inv_m - mean * mean, 0.0)
        z = (y - mean) * jax.lax.rsqrt(var + EPS)
        # CELU(alpha=1); exp only ever sees non-positive arguments.
        return jnp.where(z > 0.0, z, jnp.exp(jnp.minimum(z, 0.0)) - 1.0)

    def layer1(slot, dirate, src, stash):
        # Single-input ConvReLU: one (C_pad, 9*C_pad) x (9*C_pad, M) matmul.
        fill_taps(src, dirate, 0)
        y = jnp.dot(w9_ref[slot], col_ref[pl.ds(0, k9), :],
                    preferred_element_type=jnp.float32)
        z = bn_celu(y)
        if stash is not None:
            acts_ref[stash] = z          # explicit VMEM stash of long-lived skips
        return z

    def layer2(slot, dirate, src_a, src_b):
        # Decoder ConvReLU over cat(a, b): one (C_pad, 18*C_pad) x (18*C_pad, M) matmul.
        fill_taps(src_a, dirate, 0)
        fill_taps(src_b, dirate, 1)
        y = jnp.dot(w18_ref[slot], col_ref[...], preferred_element_type=jnp.float32)
        return bn_celu(y)

    x0 = layer1(0, 1, x_ref[...], 0)          # conv_in   -> stash (residual)
    x1 = layer1(1, 1, x0, 1)                  # conv1     -> stash (skip for dec1)
    x2 = layer1(2, 2, x1, 2)                  # conv2     -> stash (skip for dec2)
    x3 = layer1(3, 4, x2, 3)                  # conv3     -> stash (skip for dec3)
    x4 = layer1(4, 8, x3, None)               # conv4     (consumed immediately)
    x3d = layer2(0, 4, x4, acts_ref[3])       # dec3(cat(x4, x3))
    x2d = layer2(1, 2, x3d, acts_ref[2])      # dec2(cat(x3d, x2))
    x1d = layer2(2, 1, x2d, acts_ref[1])      # dec1(cat(x2d, x1))
    out_ref[...] = x1d + acts_ref[0]          # residual: + conv_in output (lane-dense store)


# ---------------------------------------------------------------------------
# Host-side helpers (static constants / parameter prep)
# ---------------------------------------------------------------------------
def _tap_masks(n, h, w):
    """(4*9, M) f32 validity masks per (dilation, tap) over flat m = n*H*W + h*W + w."""
    m = n * h * w
    hh = (np.arange(m) // w) % h
    ww = np.arange(m) % w
    masks = np.zeros((len(_DILATIONS) * 9, m), np.float32)
    for di, d in enumerate(_DILATIONS):
        for t in range(9):
            dyo = (t // 3 - 1) * d
            dxo = (t % 3 - 1) * d
            masks[di * 9 + t] = ((hh + dyo >= 0) & (hh + dyo < h) &
                                 (ww + dxo >= 0) & (ww + dxo < w))
    return jnp.asarray(masks)


def _conv_weight(key, cin, cout):
    # nn.Conv2d-style init: U(-1/sqrt(fan_in), 1/sqrt(fan_in)), fan_in = 9*cin
    bound = 1.0 / float(cin * 9) ** 0.5
    return jax.random.uniform(key, (cout, cin, 3, 3), jnp.float32, -bound, bound)


def _pack(w_pt, c_pad):
    """PyTorch (Cout, Cin, 3, 3) -> (C_pad, 9*C_pad); K rows ordered tap-major then Cin,
    matching the kernel's im2col row layout. Zero-padded channels contribute nothing."""
    cout, cin = w_pt.shape[:2]
    w = jnp.transpose(w_pt.reshape(cout, cin, 9), (0, 2, 1))        # (Cout, 9, Cin)
    w = jnp.pad(w, ((0, c_pad - cout), (0, 0), (0, c_pad - cin)))   # (C_pad, 9, C_pad)
    return w.reshape(c_pad, 9 * c_pad)


def init_res_block_uf(key, in_channels=3, midden_channels=12, out_channels=3):
    mc = midden_channels
    c_pad = -(-max(in_channels, mc, out_channels) // 8) * 8   # channels -> sublane multiple
    keys = jax.random.split(key, 8)
    w_in = _conv_weight(keys[0], in_channels, out_channels)
    w1 = _conv_weight(keys[1], out_channels, mc)
    w2 = _conv_weight(keys[2], mc, mc)
    w3 = _conv_weight(keys[3], mc, mc)
    w4 = _conv_weight(keys[4], mc, mc)
    wd3 = _conv_weight(keys[5], 2 * mc, mc)
    wd2 = _conv_weight(keys[6], 2 * mc, mc)
    wd1 = _conv_weight(keys[7], 2 * mc, out_channels)

    # 5 single-input layers: (5, C_pad, 9*C_pad)
    w9 = jnp.stack([_pack(w_in, c_pad), _pack(w1, c_pad), _pack(w2, c_pad),
                    _pack(w3, c_pad), _pack(w4, c_pad)])
    # 3 decoder layers over cat(a, b): block 0 = first tensor of the concat, block 1 = skip.
    w18 = jnp.stack([jnp.concatenate([_pack(wd[:, :mc], c_pad),
                                      _pack(wd[:, mc:], c_pad)], axis=1)
                     for wd in (wd3, wd2, wd1)])              # (3, C_pad, 18*C_pad)
    # Conv bias is exactly cancelled by training-mode BN mean subtraction, and the BN
    # affine is identity at init (gamma=1, beta=0), so neither enters the kernel.
    return {"w9": w9, "w18": w18, "out_channels": out_channels}


# ---------------------------------------------------------------------------
# ResBlockUF.forward (public wrapper: NCHW in / NCHW out, like PyTorch)
# ---------------------------------------------------------------------------
def res_block_uf(x_nchw, params):
    n, c, h, w = x_nchw.shape
    m = n * h * w
    w9, w18 = params["w9"], params["w18"]
    c_pad = w9.shape[1]
    out_c = params["out_channels"]
    # TODO(synk): general shapes need lane padding of M plus masking of padded lanes
    # in the BN statistics; the test shape gives M = 512 (lane multiple) so it's exact.
    assert m % 128 == 0, "N*H*W must be a multiple of 128"

    # NCHW -> lane-dense channel-major (C_pad, M): M = N*H*W sits on the 128-lane axis.
    x_cm = jnp.transpose(x_nchw, (1, 0, 2, 3)).reshape(c, m)
    x_cm = jnp.pad(x_cm, ((0, c_pad - c), (0, 0)))

    masks = _tap_masks(n, h, w)                           # (36, M) static constants under jit

    vmem = pl.BlockSpec(memory_space=pltpu.MemorySpace.VMEM)
    out_cm = pl.pallas_call(
        functools.partial(_res_block_uf_kernel, width=w, flat_m=m, c_pad=c_pad),
        out_shape=jax.ShapeDtypeStruct((c_pad, m), jnp.float32),
        in_specs=[vmem, vmem, vmem, vmem],
        out_specs=vmem,
        scratch_shapes=[pltpu.VMEM((4, c_pad, m), jnp.float32),        # skip stash x0..x3
                        pltpu.VMEM((18 * c_pad, m), jnp.float32)],     # im2col columns
        compiler_params=pltpu.CompilerParams(
            vmem_limit_bytes=32 * 1024 * 1024),   # explicit guard; working set << 2 MiB here
    )(x_cm, w9, w18, masks)

    out = out_cm[:out_c].reshape(out_c, n, h, w)
    return jnp.transpose(out, (1, 0, 2, 3))               # back to NCHW


if __name__ == "__main__":
    key = jax.random.PRNGKey(0)
    k_param, k_x = jax.random.split(key)

    params = init_res_block_uf(k_param, in_channels=3, midden_channels=12, out_channels=3)
    x = jax.random.normal(k_x, (2, 3, 16, 16), dtype=jnp.float32)   # NCHW, like PyTorch

    fwd = jax.jit(functools.partial(res_block_uf, params=params))
    out = fwd(x)
    jax.block_until_ready(out)

    assert out.shape == (2, 3, 16, 16), out.shape
    assert out.dtype == jnp.float32
    assert bool(jnp.all(jnp.isfinite(out)))
    print("KERNEL_OK")
</pallas_src>

<mosaic_0001>
module attributes {stable_mosaic.version = 11 : i64} {
  func.func @_res_block_uf_kernel(%arg0: memref<16x512xf32, #tpu.memory_space<vmem>>, %arg1: memref<5x16x144xf32, #tpu.memory_space<vmem>>, %arg2: memref<3x16x288xf32, #tpu.memory_space<vmem>>, %arg3: memref<36x512xf32, #tpu.memory_space<vmem>>, %arg4: memref<16x512xf32, #tpu.memory_space<vmem>>, %arg5: memref<4x16x512xf32, #tpu.memory_space<vmem>>, %arg6: memref<288x512xf32, #tpu.memory_space<vmem>>) attributes {dimension_semantics = [], scalar_prefetch = 0 : i64, scratch_operands = 2 : i64, tpu.core_type = #tpu.core_type<tc>} {
    %c0 = arith.constant 0 : index
    %c0_0 = arith.constant 0 : index
    %0 = vector.load %arg0[%c0, %c0_0] : memref<16x512xf32, #tpu.memory_space<vmem>>, vector<16x512xf32>
    %c17_i32 = arith.constant 17 : i32
    %1 = tpu.dynamic_rotate %0 by %c17_i32 dim 1 : vector<16x512xf32>, i32 -> vector<16x512xf32>
    %c0_1 = arith.constant 0 : index
    %c0_2 = arith.constant 0 : index
    %2 = vector.load %arg3[%c0_1, %c0_2] : memref<36x512xf32, #tpu.memory_space<vmem>>, vector<1x512xf32>
    %3 = vector.broadcast %2 : vector<1x512xf32> to vector<16x512xf32>
    %4 = arith.mulf %1, %3 : vector<16x512xf32>
    %c0_3 = arith.constant 0 : index
    %c0_4 = arith.constant 0 : index
    %5 = vector.load %arg6[%c0_3, %c0_4] : memref<288x512xf32, #tpu.memory_space<vmem>>, vector<16x512xf32>
    tpu.vector_store %arg6[%c0_3, %c0_4], %4 {strides = array<i32>} : memref<288x512xf32, #tpu.memory_space<vmem>>, vector<16x512xf32>,
    %c16_i32 = arith.constant 16 : i32
    %6 = tpu.dynamic_rotate %0 by %c16_i32 dim 1 : vector<16x512xf32>, i32 -> vector<16x512xf32>
    %c1 = arith.constant 1 : index
    %c0_5 = arith.constant 0 : index
    %7 = vector.load %arg3[%c1, %c0_5] : memref<36x512xf32, #tpu.memory_space<vmem>>, vector<1x512xf32>
    %8 = vector.broadcast %7 : vector<1x512xf32> to vector<16x512xf32>
    %9 = arith.mulf %6, %8 : vector<16x512xf32>
    %c16 = arith.constant 16 : index
    %c0_6 = arith.constant 0 : index
    %10 = vector.load %arg6[%c16, %c0_6] : memref<288x512xf32, #tpu.memory_space<vmem>>, vector<16x512xf32>
    tpu.vector_store %arg6[%c16, %c0_6], %9 {strides = array<i32>} : memref<288x512xf32, #tpu.memory_space<vmem>>, vector<16x512xf32>,
    %c15_i32 = arith.constant 15 : i32
    %11 = tpu.dynamic_rotate %0 by %c15_i32 dim 1 : vector<16x512xf32>, i32 -> vector<16x512xf32>
    %c2 = arith.constant 2 : index
    %c0_7 = arith.constant 0 : index
    %12 = vector.load %arg3[%c2, %c0_7] : memref<36x512xf32, #tpu.memory_space<vmem>>, vector<1x512xf32>
    %13 = vector.broadcast %12 : vector<1x512xf32> to vector<16x512xf32>
    %14 = arith.mulf %11, %13 : vector<16x512xf32>
    %c32 = arith.constant 32 : index
    %c0_8 = arith.constant 0 : index
    %15 = vector.load %arg6[%c32, %c0_8] : memref<288x512xf32, #tpu.memory_space<vmem>>, vector<16x512xf32>
    tpu.vector_store %arg6[%c32, %c0_8], %14 {strides = array<i32>} : memref<288x512xf32, #tpu.memory_space<vmem>>, vector<16x512xf32>,
    %c1_i32 = arith.constant 1 : i32
    %16 = tpu.dynamic_rotate %0 by %c1_i32 dim 1 : vector<16x512xf32>, i32 -> vector<16x512xf32>
    %c3 = arith.constant 3 : index
    %c0_9 = arith.constant 0 : index
    %17 = vector.load %arg3[%c3, %c0_9] : memref<36x512xf32, #tpu.memory_space<vmem>>, vector<1x512xf32>
    %18 = vector.broadcast %17 : vector<1x512xf32> to vector<16x512xf32>
    %19 = arith.mulf %16, %18 : vector<16x512xf32>
    %c48 = arith.constant 48 : index
    %c0_10 = arith.constant 0 : index
    %20 = vector.load %arg6[%c48, %c0_10] : memref<288x512xf32, #tpu.memory_space<vmem>>, vector<16x512xf32>
    tpu.vector_store %arg6[%c48, %c0_10], %19 {strides = array<i32>} : memref<288x512xf32, #tpu.memory_space<vmem>>, vector<16x512xf32>,
    %c64 = arith.constant 64 : index
    %c0_11 = arith.constant 0 : index
    %21 = vector.load %arg6[%c64, %c0_11] : memref<288x512xf32, #tpu.memory_space<vmem>>, vector<16x512xf32>
    tpu.vector_store %arg6[%c64, %c0_11], %0 {strides = array<i32>} : memref<288x512xf32, #tpu.memory_space<vmem>>, vector<16x512xf32>,
    %c511_i32 = arith.constant 511 : i32
    %22 = tpu.dynamic_rotate %0 by %c511_i32 dim 1 : vector<16x512xf32>, i32 -> vector<16x512xf32>
    %c5 = arith.constant 5 : index
    %c0_12 = arith.constant 0 : index
    %23 = vector.load %arg3[%c5, %c0_12] : memref<36x512xf32, #tpu.memory_space<vmem>>, vector<1x512xf32>
    %24 = vector.broadcast %23 : vector<1x512xf32> to vector<16x512xf32>
    %25 = arith.mulf %22, %24 : vector<16x512xf32>
    %c80 = arith.constant 80 : index
    %c0_13 = arith.constant 0 : index
    %26 = vector.load %arg6[%c80, %c0_13] : memref<288x512xf32, #tpu.memory_space<vmem>>, vector<16x512xf32>
    tpu.vector_store %arg6[%c80, %c0_13], %25 {strides = array<i32>} : memref<288x512xf32, #tpu.memory_space<vmem>>, vector<16x512xf32>,
    %c497_i32 = arith.constant 497 : i32
    %27 = tpu.dynamic_rotate %0 by %c497_i32 dim 1 : vector<16x512xf32>, i32 -> vector<16x512xf32>
    %c6 = arith.constant 6 : index
    %c0_14 = arith.constant 0 : index
    %28 = vector.load %arg3[%c6, %c0_14] : memref<36x512xf32, #tpu.memory_space<vmem>>, vector<1x512xf32>
    %29 = vector.broadcast %28 : vector<1x512xf32> to vector<16x512xf32>
    %30 = arith.mulf %27, %29 : vector<16x512xf32>
    %c96 = arith.constant 96 : index
    %c0_15 = arith.constant 0 : index
    %31 = vector.load %arg6[%c96, %c0_15] : memref<288x512xf32, #tpu.memory_space<vmem>>, vector<16x512xf32>
    tpu.vector_store %arg6[%c96, %c0_15], %30 {strides = array<i32>} : memref<288x512xf32, #tpu.memory_space<vmem>>, vector<16x512xf32>,
    %c496_i32 = arith.constant 496 : i32
    %32 = tpu.dynamic_rotate %0 by %c496_i32 dim 1 : vector<16x512xf32>, i32 -> vector<16x512xf32>
    %c7 = arith.constant 7 : index
    %c0_16 = arith.constant 0 : index
    %33 = vector.load %arg3[%c7, %c0_16] : memref<36x512xf32, #tpu.memory_space<vmem>>, vector<1x512xf32>
    %34 = vector.broadcast %33 : vector<1x512xf32> to vector<16x512xf32>
    %35 = arith.mulf %32, %34 : vector<16x512xf32>
    %c112 = arith.constant 112 : index
    %c0_17 = arith.constant 0 : index
    %36 = vector.load %arg6[%c112, %c0_17] : memref<288x512xf32, #tpu.memory_space<vmem>>, vector<16x512xf32>
    tpu.vector_store %arg6[%c112, %c0_17], %35 {strides = array<i32>} : memref<288x512xf32, #tpu.memory_space<vmem>>, vector<16x512xf32>,
    %c495_i32 = arith.constant 495 : i32
    %37 = tpu.dynamic_rotate %0 by %c495_i32 dim 1 : vector<16x512xf32>, i32 -> vector<16x512xf32>
    %c8 = arith.constant 8 : index
    %c0_18 = arith.constant 0 : index
    %38 = vector.load %arg3[%c8, %c0_18] : memref<36x512xf32, #tpu.memory_space<vmem>>, vector<1x512xf32>
    %39 = vector.broadcast %38 : vector<1x512xf32> to vector<16x512xf32>
    %40 = arith.mulf %37, %39 : vector<16x512xf32>
    %c128 = arith.constant 128 : index
    %c0_19 = arith.constant 0 : index
    %41 = vector.load %arg6[%c128, %c0_19] : memref<288x512xf32, #tpu.memory_space<vmem>>, vector<16x512xf32>
    tpu.vector_store %arg6[%c128, %c0_19], %40 {strides = array<i32>} : memref<288x512xf32, #tpu.memory_space<vmem>>, vector<16x512xf32>,
    %c0_20 = arith.constant 0 : index
    %c0_21 = arith.constant 0 : index
    %c0_22 = arith.constant 0 : index
    %42 = vector.load %arg1[%c0_20, %c0_21, %c0_22] : memref<5x16x144xf32, #tpu.memory_space<vmem>>, vector<1x16x144xf32>
    %43 = vector.shape_cast %42 : vector<1x16x144xf32> to vector<16x144xf32>
    %c0_23 = arith.constant 0 : index
    %c0_24 = arith.constant 0 : index
    %44 = vector.load %arg6[%c0_23, %c0_24] : memref<288x512xf32, #tpu.memory_space<vmem>>, vector<144x512xf32>
    %cst = arith.constant dense<0.000000e+00> : vector<16x512xf32>
    %45 = tpu.matmul %43, %44, %cst {dimension_numbers = #tpu.dot_dimension_numbers<[1], [0], [0], [1], [0, 0, 1, 1], [], []>} : vector<16x144xf32>, vector<144x512xf32>, vector<16x512xf32> -> vector<16x512xf32>
    %46 = arith.mulf %45, %45 : vector<16x512xf32>
    %47 = tpu.concatenate %45, %46 in 0 : vector<16x512xf32>, vector<16x512xf32> -> vector<32x512xf32>
    %cst_25 = arith.constant dense<0.000000e+00> : vector<32xf32>
    %48 = vector.multi_reduction <add>, %47, %cst_25 [1] : vector<32x512xf32> to vector<32xf32>
    %49 = vector.shape_cast %48 : vector<32xf32> to vector<32x1xf32>
    %50 = vector.extract_strided_slice %49 {offsets = [0, 0], sizes = [16, 1], strides = [1, 1]} : vector<32x1xf32> to vector<16x1xf32>
    %cst_26 = arith.constant 0.001953125 : f32
    %51 = vector.broadcast %cst_26 : f32 to vector<16x1xf32>
    %52 = arith.mulf %50, %51 : vector<16x1xf32>
    %53 = vector.extract_strided_slice %49 {offsets = [16, 0], sizes = [16, 1], strides = [1, 1]} : vector<32x1xf32> to vector<16x1xf32>
    %cst_27 = arith.constant 0.001953125 : f32
    %54 = vector.broadcast %cst_27 : f32 to vector<16x1xf32>
    %55 = arith.mulf %53, %54 : vector<16x1xf32>
    %56 = arith.mulf %52, %52 : vector<16x1xf32>
    %57 = arith.subf %55, %56 : vector<16x1xf32>
    %cst_28 = arith.constant 0.000000e+00 : f32
    %58 = vector.broadcast %cst_28 : f32 to vector<16x1xf32>
    %59 = arith.maximumf %57, %58 : vector<16x1xf32>
    %60 = vector.broadcast %52 : vector<16x1xf32> to vector<16x512xf32>
    %61 = arith.subf %45, %60 : vector<16x512xf32>
    %cst_29 = arith.constant 9.99999974E-6 : f32
    %62 = vector.broadcast %cst_29 : f32 to vector<16x1xf32>
    %63 = arith.addf %59, %62 : vector<16x1xf32>
    %64 = math.rsqrt %63 : vector<16x1xf32>
    %65 = vector.broadcast %64 : vector<16x1xf32> to vector<16x512xf32>
    %66 = arith.mulf %61, %65 : vector<16x512xf32>
    %cst_30 = arith.constant 0.000000e+00 : f32
    %67 = vector.broadcast %cst_30 : f32 to vector<16x512xf32>
    %68 = arith.cmpf ogt, %66, %67 : vector<16x512xf32>
    %cst_31 = arith.constant 0.000000e+00 : f32
    %69 = vector.broadcast %cst_31 : f32 to vector<16x512xf32>
    %70 = arith.minimumf %66, %69 : vector<16x512xf32>
    %71 = math.exp %70 : vector<16x512xf32>
    %cst_32 = arith.constant 1.000000e+00 : f32
    %72 = vector.broadcast %cst_32 : f32 to vector<16x512xf32>
    %73 = arith.subf %71, %72 : vector<16x512xf32>
    %74 = arith.select %68, %66, %73 : vector<16x512xi1>, vector<16x512xf32>
    %c0_33 = arith.constant 0 : index
    %c0_34 = arith.constant 0 : index
    %c0_35 = arith.constant 0 : index
    %75 = vector.load %arg5[%c0_33, %c0_34, %c0_35] : memref<4x16x512xf32, #tpu.memory_space<vmem>>, vector<1x16x512xf32>
    %76 = vector.shape_cast %75 : vector<1x16x512xf32> to vector<16x512xf32>
    %77 = vector.shape_cast %74 : vector<16x512xf32> to vector<1x16x512xf32>
    tpu.vector_store %arg5[%c0_33, %c0_34, %c0_35], %77 {strides = array<i32>} : memref<4x16x512xf32, #tpu.memory_space<vmem>>, vector<1x16x512xf32>,
    %c17_i32_36 = arith.constant 17 : i32
    %78 = tpu.dynamic_rotate %74 by %c17_i32_36 dim 1 : vector<16x512xf32>, i32 -> vector<16x512xf32>
    %c0_37 = arith.constant 0 : index
    %c0_38 = arith.constant 0 : index
    %79 = vector.load %arg3[%c0_37, %c0_38] : memref<36x512xf32, #tpu.memory_space<vmem>>, vector<1x512xf32>
    %80 = vector.broadcast %79 : vector<1x512xf32> to vector<16x512xf32>
    %81 = arith.mulf %78, %80 : vector<16x512xf32>
    %c0_39 = arith.constant 0 : index
    %c0_40 = arith.constant 0 : index
    %82 = vector.load %arg6[%c0_39, %c0_40] : memref<288x512xf32, #tpu.memory_space<vmem>>, vector<16x512xf32>
    tpu.vector_store %arg6[%c0_39, %c0_40], %81 {strides = array<i32>} : memref<288x512xf32, #tpu.memory_space<vmem>>, vector<16x512xf32>,
    %c16_i32_41 = arith.constant 16 : i32
    %83 = tpu.dynamic_rotate %74 by %c16_i32_41 dim 1 : vector<16x512xf32>, i32 -> vector<16x512xf32>
    %c1_42 = arith.constant 1 : index
    %c0_43 = arith.constant 0 : index
    %84 = vector.load %arg3[%c1_42, %c0_43] : memref<36x512xf32, #tpu.memory_space<vmem>>, vector<1x512xf32>
    %85 = vector.broadcast %84 : vector<1x512xf32> to vector<16x512xf32>
    %86 = arith.mulf %83, %85 : vector<16x512xf32>
    %c16_44 = arith.constant 16 : index
    %c0_45 = arith.constant 0 : index
    %87 = vector.load %arg6[%c16_44, %c0_45] : memref<288x512xf32, #tpu.memory_space<vmem>>, vector<16x512xf32>
    tpu.vector_store %arg6[%c16_44, %c0_45], %86 {strides = array<i32>} : memref<288x512xf32, #tpu.memory_space<vmem>>, vector<16x512xf32>,
    %c15_i32_46 = arith.constant 15 : i32
    %88 = tpu.dynamic_rotate %74 by %c15_i32_46 dim 1 : vector<16x512xf32>, i32 -> vector<16x512xf32>
    %c2_47 = arith.constant 2 : index
    %c0_48 = arith.constant 0 : index
    %89 = vector.load %arg3[%c2_47, %c0_48] : memref<36x512xf32, #tpu.memory_space<vmem>>, vector<1x512xf32>
    %90 = vector.broadcast %89 : vector<1x512xf32> to vector<16x512xf32>
    %91 = arith.mulf %88, %90 : vector<16x512xf32>
    %c32_49 = arith.constant 32 : index
    %c0_50 = arith.constant 0 : index
    %92 = vector.load %arg6[%c32_49, %c0_50] : memref<288x512xf32, #tpu.memory_space<vmem>>, vector<16x512xf32>
    tpu.vector_store %arg6[%c32_49, %c0_50], %91 {strides = array<i32>} : memref<288x512xf32, #tpu.memory_space<vmem>>, vector<16x512xf32>,
    %c1_i32_51 = arith.constant 1 : i32
    %93 = tpu.dynamic_rotate %74 by %c1_i32_51 dim 1 : vector<16x512xf32>, i32 -> vector<16x512xf32>
    %c3_52 = arith.constant 3 : index
    %c0_53 = arith.constant 0 : index
    %94 = vector.load %arg3[%c3_52, %c0_53] : memref<36x512xf32, #tpu.memory_space<vmem>>, vector<1x512xf32>
    %95 = vector.broadcast %94 : vector<1x512xf32> to vector<16x512xf32>
    %96 = arith.mulf %93, %95 : vector<16x512xf32>
    %c48_54 = arith.constant 48 : index
    %c0_55 = arith.constant 0 : index
    %97 = vector.load %arg6[%c48_54, %c0_55] : memref<288x512xf32, #tpu.memory_space<vmem>>, vector<16x512xf32>
    tpu.vector_store %arg6[%c48_54, %c0_55], %96 {strides = array<i32>} : memref<288x512xf32, #tpu.memory_space<vmem>>, vector<16x512xf32>,
    %c64_56 = arith.constant 64 : index
    %c0_57 = arith.constant 0 : index
    %98 = vector.load %arg6[%c64_56, %c0_57] : memref<288x512xf32, #tpu.memory_space<vmem>>, vector<16x512xf32>
    tpu.vector_store %arg6[%c64_56, %c0_57], %74 {strides = array<i32>} : memref<288x512xf32, #tpu.memory_space<vmem>>, vector<16x512xf32>,
    %c511_i32_58 = arith.constant 511 : i32
    %99 = tpu.dynamic_rotate %74 by %c511_i32_58 dim 1 : vector<16x512xf32>, i32 -> vector<16x512xf32>
    %c5_59 = arith.constant 5 : index
    %c0_60 = arith.constant 0 : index
    %100 = vector.load %arg3[%c5_59, %c0_60] : memref<36x512xf32, #tpu.memory_space<vmem>>, vector<1x512xf32>
    %101 = vector.broadcast %100 : vector<1x512xf32> to vector<16x512xf32>
    %102 = arith.mulf %99, %101 : vector<16x512xf32>
    %c80_61 = arith.constant 80 : index
    %c0_62 = arith.constant 0 : index
    %103 = vector.load %arg6[%c80_61, %c0_62] : memref<288x512xf32, #tpu.memory_space<vmem>>, vector<16x512xf32>
    tpu.vector_store %arg6[%c80_61, %c0_62], %102 {strides = array<i32>} : memref<288x512xf32, #tpu.memory_space<vmem>>, vector<16x512xf32>,
    %c497_i32_63 = arith.constant 497 : i32
    %104 = tpu.dynamic_rotate %74 by %c497_i32_63 dim 1 : vector<16x512xf32>, i32 -> vector<16x512xf32>
    %c6_64 = arith.constant 6 : index
    %c0_65 = arith.constant 0 : index
    %105 = vector.load %arg3[%c6_64, %c0_65] : memref<36x512xf32, #tpu.memory_space<vmem>>, vector<1x512xf32>
    %106 = vector.broadcast %105 : vector<1x512xf32> to vector<16x512xf32>
    %107 = arith.mulf %104, %106 : vector<16x512xf32>
    %c96_66 = arith.constant 96 : index
    %c0_67 = arith.constant 0 : index
    %108 = vector.load %arg6[%c96_66, %c0_67] : memref<288x512xf32, #tpu.memory_space<vmem>>, vector<16x512xf32>
    tpu.vector_store %arg6[%c96_66, %c0_67], %107 {strides = array<i32>} : memref<288x512xf32, #tpu.memory_space<vmem>>, vector<16x512xf32>,
    %c496_i32_68 = arith.constant 496 : i32
    %109 = tpu.dynamic_rotate %74 by %c496_i32_68 dim 1 : vector<16x512xf32>, i32 -> vector<16x512xf32>
    %c7_69 = arith.constant 7 : index
    %c0_70 = arith.constant 0 : index
    %110 = vector.load %arg3[%c7_69, %c0_70] : memref<36x512xf32, #tpu.memory_space<vmem>>, vector<1x512xf32>
    %111 = vector.broadcast %110 : vector<1x512xf32> to vector<16x512xf32>
    %112 = arith.mulf %109, %111 : vector<16x512xf32>
    %c112_71 = arith.constant 112 : index
    %c0_72 = arith.constant 0 : index
    %113 = vector.load %arg6[%c112_71, %c0_72] : memref<288x512xf32, #tpu.memory_space<vmem>>, vector<16x512xf32>
    tpu.vector_store %arg6[%c112_71, %c0_72], %112 {strides = array<i32>} : memref<288x512xf32, #tpu.memory_space<vmem>>, vector<16x512xf32>,
    %c495_i32_73 = arith.constant 495 : i32
    %114 = tpu.dynamic_rotate %74 by %c495_i32_73 dim 1 : vector<16x512xf32>, i32 -> vector<16x512xf32>
    %c8_74 = arith.constant 8 : index
    %c0_75 = arith.constant 0 : index
    %115 = vector.load %arg3[%c8_74, %c0_75] : memref<36x512xf32, #tpu.memory_space<vmem>>, vector<1x512xf32>
    %116 = vector.broadcast %115 : vector<1x512xf32> to vector<16x512xf32>
    %117 = arith.mulf %114, %116 : vector<16x512xf32>
    %c128_76 = arith.constant 128 : index
    %c0_77 = arith.constant 0 : index
    %118 = vector.load %arg6[%c128_76, %c0_77] : memref<288x512xf32, #tpu.memory_space<vmem>>, vector<16x512xf32>
    tpu.vector_store %arg6[%c128_76, %c0_77], %117 {strides = array<i32>} : memref<288x512xf32, #tpu.memory_space<vmem>>, vector<16x512xf32>,
    %c1_78 = arith.constant 1 : index
    %c0_79 = arith.constant 0 : index
    %c0_80 = arith.constant 0 : index
    %119 = vector.load %arg1[%c1_78, %c0_79, %c0_80] : memref<5x16x144xf32, #tpu.memory_space<vmem>>, vector<1x16x144xf32>
    %120 = vector.shape_cast %119 : vector<1x16x144xf32> to vector<16x144xf32>
    %c0_81 = arith.constant 0 : index
    %c0_82 = arith.constant 0 : index
    %121 = vector.load %arg6[%c0_81, %c0_82] : memref<288x512xf32, #tpu.memory_space<vmem>>, vector<144x512xf32>
    %cst_83 = arith.constant dense<0.000000e+00> : vector<16x512xf32>
    %122 = tpu.matmul %120, %121, %cst_83 {dimension_numbers = #tpu.dot_dimension_numbers<[1], [0], [0], [1], [0, 0, 1, 1], [], []>} : vector<16x144xf32>, vector<144x512xf32>, vector<16x512xf32> -> vector<16x512xf32>
    %123 = arith.mulf %122, %122 : vector<16x512xf32>
    %124 = tpu.concatenate %122, %123 in 0 : vector<16x512xf32>, vector<16x512xf32> -> vector<32x512xf32>
    %cst_84 = arith.constant dense<0.000000e+00> : vector<32xf32>
    %125 = vector.multi_reduction <add>, %124, %cst_84 [1] : vector<32x512xf32> to vector<32xf32>
    %126 = vector.shape_cast %125 : vector<32xf32> to vector<32x1xf32>
    %127 = vector.extract_strided_slice %126 {offsets = [0, 0], sizes = [16, 1], strides = [1, 1]} : vector<32x1xf32> to vector<16x1xf32>
    %cst_85 = arith.constant 0.001953125 : f32
    %128 = vector.broadcast %cst_85 : f32 to vector<16x1xf32>
    %129 = arith.mulf %127, %128 : vector<16x1xf32>
    %130 = vector.extract_strided_slice %126 {offsets = [16, 0], sizes = [16, 1], strides = [1, 1]} : vector<32x1xf32> to vector<16x1xf32>
    %cst_86 = arith.constant 0.001953125 : f32
    %131 = vector.broadcast %cst_86 : f32 to vector<16x1xf32>
    %132 = arith.mulf %130, %131 : vector<16x1xf32>
    %133 = arith.mulf %129, %129 : vector<16x1xf32>
    %134 = arith.subf %132, %133 : vector<16x1xf32>
    %cst_87 = arith.constant 0.000000e+00 : f32
    %135 = vector.broadcast %cst_87 : f32 to vector<16x1xf32>
    %136 = arith.maximumf %134, %135 : vector<16x1xf32>
    %137 = vector.broadcast %129 : vector<16x1xf32> to vector<16x512xf32>
    %138 = arith.subf %122, %137 : vector<16x512xf32>
    %cst_88 = arith.constant 9.99999974E-6 : f32
    %139 = vector.broadcast %cst_88 : f32 to vector<16x1xf32>
    %140 = arith.addf %136, %139 : vector<16x1xf32>
    %141 = math.rsqrt %140 : vector<16x1xf32>
    %142 = vector.broadcast %141 : vector<16x1xf32> to vector<16x512xf32>
    %143 = arith.mulf %138, %142 : vector<16x512xf32>
    %cst_89 = arith.constant 0.000000e+00 : f32
    %144 = vector.broadcast %cst_89 : f32 to vector<16x512xf32>
    %145 = arith.cmpf ogt, %143, %144 : vector<16x512xf32>
    %cst_90 = arith.constant 0.000000e+00 : f32
    %146 = vector.broadcast %cst_90 : f32 to vector<16x512xf32>
    %147 = arith.minimumf %143, %146 : vector<16x512xf32>
    %148 = math.exp %147 : vector<16x512xf32>
    %cst_91 = arith.constant 1.000000e+00 : f32
    %149 = vector.broadcast %cst_91 : f32 to vector<16x512xf32>
    %150 = arith.subf %148, %149 : vector<16x512xf32>
    %151 = arith.select %145, %143, %150 : vector<16x512xi1>, vector<16x512xf32>
    %c1_92 = arith.constant 1 : index
    %c0_93 = arith.constant 0 : index
    %c0_94 = arith.constant 0 : index
    %152 = vector.load %arg5[%c1_92, %c0_93, %c0_94] : memref<4x16x512xf32, #tpu.memory_space<vmem>>, vector<1x16x512xf32>
    %153 = vector.shape_cast %152 : vector<1x16x512xf32> to vector<16x512xf32>
    %154 = vector.shape_cast %151 : vector<16x512xf32> to vector<1x16x512xf32>
    tpu.vector_store %arg5[%c1_92, %c0_93, %c0_94], %154 {strides = array<i32>} : memref<4x16x512xf32, #tpu.memory_space<vmem>>, vector<1x16x512xf32>,
    %c34_i32 = arith.constant 34 : i32
    %155 = tpu.dynamic_rotate %151 by %c34_i32 dim 1 : vector<16x512xf32>, i32 -> vector<16x512xf32>
    %c9 = arith.constant 9 : index
    %c0_95 = arith.constant 0 : index
    %156 = vector.load %arg3[%c9, %c0_95] : memref<36x512xf32, #tpu.memory_space<vmem>>, vector<1x512xf32>
    %157 = vector.broadcast %156 : vector<1x512xf32> to vector<16x512xf32>
    %158 = arith.mulf %155, %157 : vector<16x512xf32>
    %c0_96 = arith.constant 0 : index
    %c0_97 = arith.constant 0 : index
    %159 = vector.load %arg6[%c0_96, %c0_97] : memref<288x512xf32, #tpu.memory_space<vmem>>, vector<16x512xf32>
    tpu.vector_store %arg6[%c0_96, %c0_97], %158 {strides = array<i32>} : memref<288x512xf32, #tpu.memory_space<vmem>>, vector<16x512xf32>,
    %c32_i32 = arith.constant 32 : i32
    %160 = tpu.dynamic_rotate %151 by %c32_i32 dim 1 : vector<16x512xf32>, i32 -> vector<16x512xf32>
    %c10 = arith.constant 10 : index
    %c0_98 = arith.constant 0 : index
    %161 = vector.load %arg3[%c10, %c0_98] : memref<36x512xf32, #tpu.memory_space<vmem>>, vector<1x512xf32>
    %162 = vector.broadcast %161 : vector<1x512xf32> to vector<16x512xf32>
    %163 = arith.mulf %160, %162 : vector<16x512xf32>
    %c16_99 = arith.constant 16 : index
    %c0_100 = arith.constant 0 : index
    %164 = vector.load %arg6[%c16_99, %c0_100] : memref<288x512xf32, #tpu.memory_space<vmem>>, vector<16x512xf32>
    tpu.vector_store %arg6[%c16_99, %c0_100], %163 {strides = array<i32>} : memref<288x512xf32, #tpu.memory_space<vmem>>, vector<16x512xf32>,
    %c30_i32 = arith.constant 30 : i32
    %165 = tpu.dynamic_rotate %151 by %c30_i32 dim 1 : vector<16x512xf32>, i32 -> vector<16x512xf32>
    %c11 = arith.constant 11 : index
    %c0_101 = arith.constant 0 : index
    %166 = vector.load %arg3[%c11, %c0_101] : memref<36x512xf32, #tpu.memory_space<vmem>>, vector<1x512xf32>
    %167 = vector.broadcast %166 : vector<1x512xf32> to vector<16x512xf32>
    %168 = arith.mulf %165, %167 : vector<16x512xf32>
    %c32_102 = arith.constant 32 : index
    %c0_103 = arith.constant 0 : index
    %169 = vector.load %arg6[%c32_102, %c0_103] : memref<288x512xf32, #tpu.memory_space<vmem>>, vector<16x512xf32>
    tpu.vector_store %arg6[%c32_102, %c0_103], %168 {strides = array<i32>} : memref<288x512xf32, #tpu.memory_space<vmem>>, vector<16x512xf32>,
    %c2_i32 = arith.constant 2 : i32
    %170 = tpu.dynamic_rotate %151 by %c2_i32 dim 1 : vector<16x512xf32>, i32 -> vector<16x512xf32>
    %c12 = arith.constant 12 : index
    %c0_104 = arith.constant 0 : index
    %171 = vector.load %arg3[%c12, %c0_104] : memref<36x512xf32, #tpu.memory_space<vmem>>, vector<1x512xf32>
    %172 = vector.broadcast %171 : vector<1x512xf32> to vector<16x512xf32>
    %173 = arith.mulf %170, %172 : vector<16x512xf32>
    %c48_105 = arith.constant 48 : index
    %c0_106 = arith.constant 0 : index
    %174 = vector.load %arg6[%c48_105, %c0_106] : memref<288x512xf32, #tpu.memory_space<vmem>>, vector<16x512xf32>
    tpu.vector_store %arg6[%c48_105, %c0_106], %173 {strides = array<i32>} : memref<288x512xf32, #tpu.memory_space<vmem>>, vector<16x512xf32>,
    %c64_107 = arith.constant 64 : index
    %c0_108 = arith.constant 0 : index
    %175 = vector.load %arg6[%c64_107, %c0_108] : memref<288x512xf32, #tpu.memory_space<vmem>>, vector<16x512xf32>
    tpu.vector_store %arg6[%c64_107, %c0_108], %151 {strides = array<i32>} : memref<288x512xf32, #tpu.memory_space<vmem>>, vector<16x512xf32>,
    %c510_i32 = arith.constant 510 : i32
    %176 = tpu.dynamic_rotate %151 by %c510_i32 dim 1 : vector<16x512xf32>, i32 -> vector<16x512xf32>
    %c14 = arith.constant 14 : index
    %c0_109 = arith.constant 0 : index
    %177 = vector.load %arg3[%c14, %c0_109] : memref<36x512xf32, #tpu.memory_space<vmem>>, vector<1x512xf32>
    %178 = vector.broadcast %177 : vector<1x512xf32> to vector<16x512xf32>
    %179 = arith.mulf %176, %178 : vector<16x512xf32>
    %c80_110 = arith.constant 80 : index
    %c0_111 = arith.constant 0 : index
    %180 = vector.load %arg6[%c80_110, %c0_111] : memref<288x512xf32, #tpu.memory_space<vmem>>, vector<16x512xf32>
    tpu.vector_store %arg6[%c80_110, %c0_111], %179 {strides = array<i32>} : memref<288x512xf32, #tpu.memory_space<vmem>>, vector<16x512xf32>,
    %c482_i32 = arith.constant 482 : i32
    %181 = tpu.dynamic_rotate %151 by %c482_i32 dim 1 : vector<16x512xf32>, i32 -> vector<16x512xf32>
    %c15 = arith.constant 15 : index
    %c0_112 = arith.constant 0 : index
    %182 = vector.load %arg3[%c15, %c0_112] : memref<36x512xf32, #tpu.memory_space<vmem>>, vector<1x512xf32>
    %183 = vector.broadcast %182 : vector<1x512xf32> to vector<16x512xf32>
    %184 = arith.mulf %181, %183 : vector<16x512xf32>
    %c96_113 = arith.constant 96 : index
    %c0_114 = arith.constant 0 : index
    %185 = vector.load %arg6[%c96_113, %c0_114] : memref<288x512xf32, #tpu.memory_space<vmem>>, vector<16x512xf32>
    tpu.vector_store %arg6[%c96_113, %c0_114], %184 {strides = array<i32>} : memref<288x512xf32, #tpu.memory_space<vmem>>, vector<16x512xf32>,
    %c480_i32 = arith.constant 480 : i32
    %186 = tpu.dynamic_rotate %151 by %c480_i32 dim 1 : vector<16x512xf32>, i32 -> vector<16x512xf32>
    %c16_115 = arith.constant 16 : index
    %c0_116 = arith.constant 0 : index
    %187 = vector.load %arg3[%c16_115, %c0_116] : memref<36x512xf32, #tpu.memory_space<vmem>>, vector<1x512xf32>
    %188 = vector.broadcast %187 : vector<1x512xf32> to vector<16x512xf32>
    %189 = arith.mulf %186, %188 : vector<16x512xf32>
    %c112_117 = arith.constant 112 : index
    %c0_118 = arith.constant 0 : index
    %190 = vector.load %arg6[%c112_117, %c0_118] : memref<288x512xf32, #tpu.memory_space<vmem>>, vector<16x512xf32>
    tpu.vector_store %arg6[%c112_117, %c0_118], %189 {strides = array<i32>} : memref<288x512xf32, #tpu.memory_space<vmem>>, vector<16x512xf32>,
    %c478_i32 = arith.constant 478 : i32
    %191 = tpu.dynamic_rotate %151 by %c478_i32 dim 1 : vector<16x512xf32>, i32 -> vector<16x512xf32>
    %c17 = arith.constant 17 : index
    %c0_119 = arith.constant 0 : index
    %192 = vector.load %arg3[%c17, %c0_119] : memref<36x512xf32, #tpu.memory_space<vmem>>, vector<1x512xf32>
    %193 = vector.broadcast %192 : vector<1x512xf32> to vector<16x512xf32>
    %194 = arith.mulf %191, %193 : vector<16x512xf32>
    %c128_120 = arith.constant 128 : index
    %c0_121 = arith.constant 0 : index
    %195 = vector.load %arg6[%c128_120, %c0_121] : memref<288x512xf32, #tpu.memory_space<vmem>>, vector<16x512xf32>
    tpu.vector_store %arg6[%c128_120, %c0_121], %194 {strides = array<i32>} : memref<288x512xf32, #tpu.memory_space<vmem>>, vector<16x512xf32>,
    %c2_122 = arith.constant 2 : index
    %c0_123 = arith.constant 0 : index
    %c0_124 = arith.constant 0 : index
    %196 = vector.load %arg1[%c2_122, %c0_123, %c0_124] : memref<5x16x144xf32, #tpu.memory_space<vmem>>, vector<1x16x144xf32>
    %197 = vector.shape_cast %196 : vector<1x16x144xf32> to vector<16x144xf32>
    %c0_125 = arith.constant 0 : index
    %c0_126 = arith.constant 0 : index
    %198 = vector.load %arg6[%c0_125, %c0_126] : memref<288x512xf32, #tpu.memory_space<vmem>>, vector<144x512xf32>
    %cst_127 = arith.constant dense<0.000000e+00> : vector<16x512xf32>
    %199 = tpu.matmul %197, %198, %cst_127 {dimension_numbers = #tpu.dot_dimension_numbers<[1], [0], [0], [1], [0, 0, 1, 1], [], []>} : vector<16x144xf32>, vector<144x512xf32>, vector<16x512xf32> -> vector<16x512xf32>
    %200 = arith.mulf %199, %199 : vector<16x512xf32>
    %201 = tpu.concatenate %199, %200 in 0 : vector<16x512xf32>, vector<16x512xf32> -> vector<32x512xf32>
    %cst_128 = arith.constant dense<0.000000e+00> : vector<32xf32>
    %202 = vector.multi_reduction <add>, %201, %cst_128 [1] : vector<32x512xf32> to vector<32xf32>
    %203 = vector.shape_cast %202 : vector<32xf32> to vector<32x1xf32>
    %204 = vector.extract_strided_slice %203 {offsets = [0, 0], sizes = [16, 1], strides = [1, 1]} : vector<32x1xf32> to vector<16x1xf32>
    %cst_129 = arith.constant 0.001953125 : f32
    %205 = vector.broadcast %cst_129 : f32 to vector<16x1xf32>
    %206 = arith.mulf %204, %205 : vector<16x1xf32>
    %207 = vector.extract_strided_slice %203 {offsets = [16, 0], sizes = [16, 1], strides = [1, 1]} : vector<32x1xf32> to vector<16x1xf32>
    %cst_130 = arith.constant 0.001953125 : f32
    %208 = vector.broadcast %cst_130 : f32 to vector<16x1xf32>
    %209 = arith.mulf %207, %208 : vector<16x1xf32>
    %210 = arith.mulf %206, %206 : vector<16x1xf32>
    %211 = arith.subf %209, %210 : vector<16x1xf32>
    %cst_131 = arith.constant 0.000000e+00 : f32
    %212 = vector.broadcast %cst_131 : f32 to vector<16x1xf32>
    %213 = arith.maximumf %211, %212 : vector<16x1xf32>
    %214 = vector.broadcast %206 : vector<16x1xf32> to vector<16x512xf32>
    %215 = arith.subf %199, %214 : vector<16x512xf32>
    %cst_132 = arith.constant 9.99999974E-6 : f32
    %216 = vector.broadcast %cst_132 : f32 to vector<16x1xf32>
    %217 = arith.addf %213, %216 : vector<16x1xf32>
    %218 = math.rsqrt %217 : vector<16x1xf32>
    %219 = vector.broadcast %218 : vector<16x1xf32> to vector<16x512xf32>
    %220 = arith.mulf %215, %219 : vector<16x512xf32>
    %cst_133 = arith.constant 0.000000e+00 : f32
    %221 = vector.broadcast %cst_133 : f32 to vector<16x512xf32>
    %222 = arith.cmpf ogt, %220, %221 : vector<16x512xf32>
    %cst_134 = arith.constant 0.000000e+00 : f32
    %223 = vector.broadcast %cst_134 : f32 to vector<16x512xf32>
    %224 = arith.minimumf %220, %223 : vector<16x512xf32>
    %225 = math.exp %224 : vector<16x512xf32>
    %cst_135 = arith.constant 1.000000e+00 : f32
    %226 = vector.broadcast %cst_135 : f32 to vector<16x512xf32>
    %227 = arith.subf %225, %226 : vector<16x512xf32>
    %228 = arith.select %222, %220, %227 : vector<16x512xi1>, vector<16x512xf32>
    %c2_136 = arith.constant 2 : index
    %c0_137 = arith.constant 0 : index
    %c0_138 = arith.constant 0 : index
    %229 = vector.load %arg5[%c2_136, %c0_137, %c0_138] : memref<4x16x512xf32, #tpu.memory_space<vmem>>, vector<1x16x512xf32>
    %230 = vector.shape_cast %229 : vector<1x16x512xf32> to vector<16x512xf32>
    %231 = vector.shape_cast %228 : vector<16x512xf32> to vector<1x16x512xf32>
    tpu.vector_store %arg5[%c2_136, %c0_137, %c0_138], %231 {strides = array<i32>} : memref<4x16x512xf32, #tpu.memory_space<vmem>>, vector<1x16x512xf32>,
    %c68_i32 = arith.constant 68 : i32
    %232 = tpu.dynamic_rotate %228 by %c68_i32 dim 1 : vector<16x512xf32>, i32 -> vector<16x512xf32>
    %c18 = arith.constant 18 : index
    %c0_139 = arith.constant 0 : index
    %233 = vector.load %arg3[%c18, %c0_139] : memref<36x512xf32, #tpu.memory_space<vmem>>, vector<1x512xf32>
    %234 = vector.broadcast %233 : vector<1x512xf32> to vector<16x512xf32>
    %235 = arith.mulf %232, %234 : vector<16x512xf32>
    %c0_140 = arith.constant 0 : index
    %c0_141 = arith.constant 0 : index
    %236 = vector.load %arg6[%c0_140, %c0_141] : memref<288x512xf32, #tpu.memory_space<vmem>>, vector<16x512xf32>
    tpu.vector_store %arg6[%c0_140, %c0_141], %235 {strides = array<i32>} : memref<288x512xf32, #tpu.memory_space<vmem>>, vector<16x512xf32>,
    %c64_i32 = arith.constant 64 : i32
    %237 = tpu.dynamic_rotate %228 by %c64_i32 dim 1 : vector<16x512xf32>, i32 -> vector<16x512xf32>
    %c19 = arith.constant 19 : index
    %c0_142 = arith.constant 0 : index
    %238 = vector.load %arg3[%c19, %c0_142] : memref<36x512xf32, #tpu.memory_space<vmem>>, vector<1x512xf32>
    %239 = vector.broadcast %238 : vector<1x512xf32> to vector<16x512xf32>
    %240 = arith.mulf %237, %239 : vector<16x512xf32>
    %c16_143 = arith.constant 16 : index
    %c0_144 = arith.constant 0 : index
    %241 = vector.load %arg6[%c16_143, %c0_144] : memref<288x512xf32, #tpu.memory_space<vmem>>, vector<16x512xf32>
    tpu.vector_store %arg6[%c16_143, %c0_144], %240 {strides = array<i32>} : memref<288x512xf32, #tpu.memory_space<vmem>>, vector<16x512xf32>,
    %c60_i32 = arith.constant 60 : i32
    %242 = tpu.dynamic_rotate %228 by %c60_i32 dim 1 : vector<16x512xf32>, i32 -> vector<16x512xf32>
    %c20 = arith.constant 20 : index
    %c0_145 = arith.constant 0 : index
    %243 = vector.load %arg3[%c20, %c0_145] : memref<36x512xf32, #tpu.memory_space<vmem>>, vector<1x512xf32>
    %244 = vector.broadcast %243 : vector<1x512xf32> to vector<16x512xf32>
    %245 = arith.mulf %242, %244 : vector<16x512xf32>
    %c32_146 = arith.constant 32 : index
    %c0_147 = arith.constant 0 : index
    %246 = vector.load %arg6[%c32_146, %c0_147] : memref<288x512xf32, #tpu.memory_space<vmem>>, vector<16x512xf32>
    tpu.vector_store %arg6[%c32_146, %c0_147], %245 {strides = array<i32>} : memref<288x512xf32, #tpu.memory_space<vmem>>, vector<16x512xf32>,
    %c4_i32 = arith.constant 4 : i32
    %247 = tpu.dynamic_rotate %228 by %c4_i32 dim 1 : vector<16x512xf32>, i32 -> vector<16x512xf32>
    %c21 = arith.constant 21 : index
    %c0_148 = arith.constant 0 : index
    %248 = vector.load %arg3[%c21, %c0_148] : memref<36x512xf32, #tpu.memory_space<vmem>>, vector<1x512xf32>
    %249 = vector.broadcast %248 : vector<1x512xf32> to vector<16x512xf32>
    %250 = arith.mulf %247, %249 : vector<16x512xf32>
    %c48_149 = arith.constant 48 : index
    %c0_150 = arith.constant 0 : index
    %251 = vector.load %arg6[%c48_149, %c0_150] : memref<288x512xf32, #tpu.memory_space<vmem>>, vector<16x512xf32>
    tpu.vector_store %arg6[%c48_149, %c0_150], %250 {strides = array<i32>} : memref<288x512xf32, #tpu.memory_space<vmem>>, vector<16x512xf32>,
    %c64_151 = arith.constant 64 : index
    %c0_152 = arith.constant 0 : index
    %252 = vector.load %arg6[%c64_151, %c0_152] : memref<288x512xf32, #tpu.memory_space<vmem>>, vector<16x512xf32>
    tpu.vector_store %arg6[%c64_151, %c0_152], %228 {strides = array<i32>} : memref<288x512xf32, #tpu.memory_space<vmem>>, vector<16x512xf32>,
    %c508_i32 = arith.constant 508 : i32
    %253 = tpu.dynamic_rotate %228 by %c508_i32 dim 1 : vector<16x512xf32>, i32 -> vector<16x512xf32>
    %c23 = arith.constant 23 : index
    %c0_153 = arith.constant 0 : index
    %254 = vector.load %arg3[%c23, %c0_153] : memref<36x512xf32, #tpu.memory_space<vmem>>, vector<1x512xf32>
    %255 = vector.broadcast %254 : vector<1x512xf32> to vector<16x512xf32>
    %256 = arith.mulf %253, %255 : vector<16x512xf32>
    %c80_154 = arith.constant 80 : index
    %c0_155 = arith.constant 0 : index
    %257 = vector.load %arg6[%c80_154, %c0_155] : memref<288x512xf32, #tpu.memory_space<vmem>>, vector<16x512xf32>
    tpu.vector_store %arg6[%c80_154, %c0_155], %256 {strides = array<i32>} : memref<288x512xf32, #tpu.memory_space<vmem>>, vector<16x512xf32>,
    %c452_i32 = arith.constant 452 : i32
    %258 = tpu.dynamic_rotate %228 by %c452_i32 dim 1 : vector<16x512xf32>, i32 -> vector<16x512xf32>
    %c24 = arith.constant 24 : index
    %c0_156 = arith.constant 0 : index
    %259 = vector.load %arg3[%c24, %c0_156] : memref<36x512xf32, #tpu.memory_space<vmem>>, vector<1x512xf32>
    %260 = vector.broadcast %259 : vector<1x512xf32> to vector<16x512xf32>
    %261 = arith.mulf %258, %260 : vector<16x512xf32>
    %c96_157 = arith.constant 96 : index
    %c0_158 = arith.constant 0 : index
    %262 = vector.load %arg6[%c96_157, %c0_158] : memref<288x512xf32, #tpu.memory_space<vmem>>, vector<16x512xf32>
    tpu.vector_store %arg6[%c96_157, %c0_158], %261 {strides = array<i32>} : memref<288x512xf32, #tpu.memory_space<vmem>>, vector<16x512xf32>,
    %c448_i32 = arith.constant 448 : i32
    %263 = tpu.dynamic_rotate %228 by %c448_i32 dim 1 : vector<16x512xf32>, i32 -> vector<16x512xf32>
    %c25 = arith.constant 25 : index
    %c0_159 = arith.constant 0 : index
    %264 = vector.load %arg3[%c25, %c0_159] : memref<36x512xf32, #tpu.memory_space<vmem>>, vector<1x512xf32>
    %265 = vector.broadcast %264 : vector<1x512xf32> to vector<16x512xf32>
    %266 = arith.mulf %263, %265 : vector<16x512xf32>
    %c112_160 = arith.constant 112 : index
    %c0_161 = arith.constant 0 : index
    %267 = vector.load %arg6[%c112_160, %c0_161] : memref<288x512xf32, #tpu.memory_space<vmem>>, vector<16x512xf32>
    tpu.vector_store %arg6[%c112_160, %c0_161], %266 {strides = array<i32>} : memref<288x512xf32, #tpu.memory_space<vmem>>, vector<16x512xf32>,
    %c444_i32 = arith.constant 444 : i32
    %268 = tpu.dynamic_rotate %228 by %c444_i32 dim 1 : vector<16x512xf32>, i32 -> vector<16x512xf32>
    %c26 = arith.constant 26 : index
    %c0_162 = arith.constant 0 : index
    %269 = vector.load %arg3[%c26, %c0_162] : memref<36x512xf32, #tpu.memory_space<vmem>>, vector<1x512xf32>
    %270 = vector.broadcast %269 : vector<1x512xf32> to vector<16x512xf32>
    %271 = arith.mulf %268, %270 : vector<16x512xf32>
    %c128_163 = arith.constant 128 : index
    %c0_164 = arith.constant 0 : index
    %272 = vector.load %arg6[%c128_163, %c0_164] : memref<288x512xf32, #tpu.memory_space<vmem>>, vector<16x512xf32>
    tpu.vector_store %arg6[%c128_163, %c0_164], %271 {strides = array<i32>} : memref<288x512xf32, #tpu.memory_space<vmem>>, vector<16x512xf32>,
    %c3_165 = arith.constant 3 : index
    %c0_166 = arith.constant 0 : index
    %c0_167 = arith.constant 0 : index
    %273 = vector.load %arg1[%c3_165, %c0_166, %c0_167] : memref<5x16x144xf32, #tpu.memory_space<vmem>>, vector<1x16x144xf32>
    %274 = vector.shape_cast %273 : vector<1x16x144xf32> to vector<16x144xf32>
    %c0_168 = arith.constant 0 : index
    %c0_169 = arith.constant 0 : index
    %275 = vector.load %arg6[%c0_168, %c0_169] : memref<288x512xf32, #tpu.memory_space<vmem>>, vector<144x512xf32>
    %cst_170 = arith.constant dense<0.000000e+00> : vector<16x512xf32>
    %276 = tpu.matmul %274, %275, %cst_170 {dimension_numbers = #tpu.dot_dimension_numbers<[1], [0], [0], [1], [0, 0, 1, 1], [], []>} : vector<16x144xf32>, vector<144x512xf32>, vector<16x512xf32> -> vector<16x512xf32>
    %277 = arith.mulf %276, %276 : vector<16x512xf32>
    %278 = tpu.concatenate %276, %277 in 0 : vector<16x512xf32>, vector<16x512xf32> -> vector<32x512xf32>
    %cst_171 = arith.constant dense<0.000000e+00> : vector<32xf32>
    %279 = vector.multi_reduction <add>, %278, %cst_171 [1] : vector<32x512xf32> to vector<32xf32>
    %280 = vector.shape_cast %279 : vector<32xf32> to vector<32x1xf32>
    %281 = vector.extract_strided_slice %280 {offsets = [0, 0], sizes = [16, 1], strides = [1, 1]} : vector<32x1xf32> to vector<16x1xf32>
    %cst_172 = arith.constant 0.001953125 : f32
    %282 = vector.broadcast %cst_172 : f32 to vector<16x1xf32>
    %283 = arith.mulf %281, %282 : vector<16x1xf32>
    %284 = vector.extract_strided_slice %280 {offsets = [16, 0], sizes = [16, 1], strides = [1, 1]} : vector<32x1xf32> to vector<16x1xf32>
    %cst_173 = arith.constant 0.001953125 : f32
    %285 = vector.broadcast %cst_173 : f32 to vector<16x1xf32>
    %286 = arith.mulf %284, %285 : vector<16x1xf32>
    %287 = arith.mulf %283, %283 : vector<16x1xf32>
    %288 = arith.subf %286, %287 : vector<16x1xf32>
    %cst_174 = arith.constant 0.000000e+00 : f32
    %289 = vector.broadcast %cst_174 : f32 to vector<16x1xf32>
    %290 = arith.maximumf %288, %289 : vector<16x1xf32>
    %291 = vector.broadcast %283 : vector<16x1xf32> to vector<16x512xf32>
    %292 = arith.subf %276, %291 : vector<16x512xf32>
    %cst_175 = arith.constant 9.99999974E-6 : f32
    %293 = vector.broadcast %cst_175 : f32 to vector<16x1xf32>
    %294 = arith.addf %290, %293 : vector<16x1xf32>
    %295 = math.rsqrt %294 : vector<16x1xf32>
    %296 = vector.broadcast %295 : vector<16x1xf32> to vector<16x512xf32>
    %297 = arith.mulf %292, %296 : vector<16x512xf32>
    %cst_176 = arith.constant 0.000000e+00 : f32
    %298 = vector.broadcast %cst_176 : f32 to vector<16x512xf32>
    %299 = arith.cmpf ogt, %297, %298 : vector<16x512xf32>
    %cst_177 = arith.constant 0.000000e+00 : f32
    %300 = vector.broadcast %cst_177 : f32 to vector<16x512xf32>
    %301 = arith.minimumf %297, %300 : vector<16x512xf32>
    %302 = math.exp %301 : vector<16x512xf32>
    %cst_178 = arith.constant 1.000000e+00 : f32
    %303 = vector.broadcast %cst_178 : f32 to vector<16x512xf32>
    %304 = arith.subf %302, %303 : vector<16x512xf32>
    %305 = arith.select %299, %297, %304 : vector<16x512xi1>, vector<16x512xf32>
    %c3_179 = arith.constant 3 : index
    %c0_180 = arith.constant 0 : index
    %c0_181 = arith.constant 0 : index
    %306 = vector.load %arg5[%c3_179, %c0_180, %c0_181] : memref<4x16x512xf32, #tpu.memory_space<vmem>>, vector<1x16x512xf32>
    %307 = vector.shape_cast %306 : vector<1x16x512xf32> to vector<16x512xf32>
    %308 = vector.shape_cast %305 : vector<16x512xf32> to vector<1x16x512xf32>
    tpu.vector_store %arg5[%c3_179, %c0_180, %c0_181], %308 {strides = array<i32>} : memref<4x16x512xf32, #tpu.memory_space<vmem>>, vector<1x16x512xf32>,
    %c136_i32 = arith.constant 136 : i32
    %309 = tpu.dynamic_rotate %305 by %c136_i32 dim 1 : vector<16x512xf32>, i32 -> vector<16x512xf32>
    %c27 = arith.constant 27 : index
    %c0_182 = arith.constant 0 : index
    %310 = vector.load %arg3[%c27, %c0_182] : memref<36x512xf32, #tpu.memory_space<vmem>>, vector<1x512xf32>
    %311 = vector.broadcast %310 : vector<1x512xf32> to vector<16x512xf32>
    %312 = arith.mulf %309, %311 : vector<16x512xf32>
    %c0_183 = arith.constant 0 : index
    %c0_184 = arith.constant 0 : index
    %313 = vector.load %arg6[%c0_183, %c0_184] : memref<288x512xf32, #tpu.memory_space<vmem>>, vector<16x512xf32>
    tpu.vector_store %arg6[%c0_183, %c0_184], %312 {strides = array<i32>} : memref<288x512xf32, #tpu.memory_space<vmem>>, vector<16x512xf32>,
    %c128_i32 = arith.constant 128 : i32
    %314 = tpu.dynamic_rotate %305 by %c128_i32 dim 1 : vector<16x512xf32>, i32 -> vector<16x512xf32>
    %c28 = arith.constant 28 : index
    %c0_185 = arith.constant 0 : index
    %315 = vector.load %arg3[%c28, %c0_185] : memref<36x512xf32, #tpu.memory_space<vmem>>, vector<1x512xf32>
    %316 = vector.broadcast %315 : vector<1x512xf32> to vector<16x512xf32>
    %317 = arith.mulf %314, %316 : vector<16x512xf32>
    %c16_186 = arith.constant 16 : index
    %c0_187 = arith.constant 0 : index
    %318 = vector.load %arg6[%c16_186, %c0_187] : memref<288x512xf32, #tpu.memory_space<vmem>>, vector<16x512xf32>
    tpu.vector_store %arg6[%c16_186, %c0_187], %317 {strides = array<i32>} : memref<288x512xf32, #tpu.memory_space<vmem>>, vector<16x512xf32>,
    %c120_i32 = arith.constant 120 : i32
    %319 = tpu.dynamic_rotate %305 by %c120_i32 dim 1 : vector<16x512xf32>, i32 -> vector<16x512xf32>
    %c29 = arith.constant 29 : index
    %c0_188 = arith.constant 0 : index
    %320 = vector.load %arg3[%c29, %c0_188] : memref<36x512xf32, #tpu.memory_space<vmem>>, vector<1x512xf32>
    %321 = vector.broadcast %320 : vector<1x512xf32> to vector<16x512xf32>
    %322 = arith.mulf %319, %321 : vector<16x512xf32>
    %c32_189 = arith.constant 32 : index
    %c0_190 = arith.constant 0 : index
    %323 = vector.load %arg6[%c32_189, %c0_190] : memref<288x512xf32, #tpu.memory_space<vmem>>, vector<16x512xf32>
    tpu.vector_store %arg6[%c32_189, %c0_190], %322 {strides = array<i32>} : memref<288x512xf32, #tpu.memory_space<vmem>>, vector<16x512xf32>,
    %c8_i32 = arith.constant 8 : i32
    %324 = tpu.dynamic_rotate %305 by %c8_i32 dim 1 : vector<16x512xf32>, i32 -> vector<16x512xf32>
    %c30 = arith.constant 30 : index
    %c0_191 = arith.constant 0 : index
    %325 = vector.load %arg3[%c30, %c0_191] : memref<36x512xf32, #tpu.memory_space<vmem>>, vector<1x512xf32>
    %326 = vector.broadcast %325 : vector<1x512xf32> to vector<16x512xf32>
    %327 = arith.mulf %324, %326 : vector<16x512xf32>
    %c48_192 = arith.constant 48 : index
    %c0_193 = arith.constant 0 : index
    %328 = vector.load %arg6[%c48_192, %c0_193] : memref<288x512xf32, #tpu.memory_space<vmem>>, vector<16x512xf32>
    tpu.vector_store %arg6[%c48_192, %c0_193], %327 {strides = array<i32>} : memref<288x512xf32, #tpu.memory_space<vmem>>, vector<16x512xf32>,
    %c64_194 = arith.constant 64 : index
    %c0_195 = arith.constant 0 : index
    %329 = vector.load %arg6[%c64_194, %c0_195] : memref<288x512xf32, #tpu.memory_space<vmem>>, vector<16x512xf32>
    tpu.vector_store %arg6[%c64_194, %c0_195], %305 {strides = array<i32>} : memref<288x512xf32, #tpu.memory_space<vmem>>, vector<16x512xf32>,
    %c504_i32 = arith.constant 504 : i32
    %330 = tpu.dynamic_rotate %305 by %c504_i32 dim 1 : vector<16x512xf32>, i32 -> vector<16x512xf32>
    %c32_196 = arith.constant 32 : index
    %c0_197 = arith.constant 0 : index
    %331 = vector.load %arg3[%c32_196, %c0_197] : memref<36x512xf32, #tpu.memory_space<vmem>>, vector<1x512xf32>
    %332 = vector.broadcast %331 : vector<1x512xf32> to vector<16x512xf32>
    %333 = arith.mulf %330, %332 : vector<16x512xf32>
    %c80_198 = arith.constant 80 : index
    %c0_199 = arith.constant 0 : index
    %334 = vector.load %arg6[%c80_198, %c0_199] : memref<288x512xf32, #tpu.memory_space<vmem>>, vector<16x512xf32>
    tpu.vector_store %arg6[%c80_198, %c0_199], %333 {strides = array<i32>} : memref<288x512xf32, #tpu.memory_space<vmem>>, vector<16x512xf32>,
    %c392_i32 = arith.constant 392 : i32
    %335 = tpu.dynamic_rotate %305 by %c392_i32 dim 1 : vector<16x512xf32>, i32 -> vector<16x512xf32>
    %c33 = arith.constant 33 : index
    %c0_200 = arith.constant 0 : index
    %336 = vector.load %arg3[%c33, %c0_200] : memref<36x512xf32, #tpu.memory_space<vmem>>, vector<1x512xf32>
    %337 = vector.broadcast %336 : vector<1x512xf32> to vector<16x512xf32>
    %338 = arith.mulf %335, %337 : vector<16x512xf32>
    %c96_201 = arith.constant 96 : index
    %c0_202 = arith.constant 0 : index
    %339 = vector.load %arg6[%c96_201, %c0_202] : memref<288x512xf32, #tpu.memory_space<vmem>>, vector<16x512xf32>
    tpu.vector_store %arg6[%c96_201, %c0_202], %338 {strides = array<i32>} : memref<288x512xf32, #tpu.memory_space<vmem>>, vector<16x512xf32>,
    %c384_i32 = arith.constant 384 : i32
    %340 = tpu.dynamic_rotate %305 by %c384_i32 dim 1 : vector<16x512xf32>, i32 -> vector<16x512xf32>
    %c34 = arith.constant 34 : index
    %c0_203 = arith.constant 0 : index
    %341 = vector.load %arg3[%c34, %c0_203] : memref<36x512xf32, #tpu.memory_space<vmem>>, vector<1x512xf32>
    %342 = vector.broadcast %341 : vector<1x512xf32> to vector<16x512xf32>
    %343 = arith.mulf %340, %342 : vector<16x512xf32>
    %c112_204 = arith.constant 112 : index
    %c0_205 = arith.constant 0 : index
    %344 = vector.load %arg6[%c112_204, %c0_205] : memref<288x512xf32, #tpu.memory_space<vmem>>, vector<16x512xf32>
    tpu.vector_store %arg6[%c112_204, %c0_205], %343 {strides = array<i32>} : memref<288x512xf32, #tpu.memory_space<vmem>>, vector<16x512xf32>,
    %c376_i32 = arith.constant 376 : i32
    %345 = tpu.dynamic_rotate %305 by %c376_i32 dim 1 : vector<16x512xf32>, i32 -> vector<16x512xf32>
    %c35 = arith.constant 35 : index
    %c0_206 = arith.constant 0 : index
    %346 = vector.load %arg3[%c35, %c0_206] : memref<36x512xf32, #tpu.memory_space<vmem>>, vector<1x512xf32>
    %347 = vector.broadcast %346 : vector<1x512xf32> to vector<16x512xf32>
    %348 = arith.mulf %345, %347 : vector<16x512xf32>
    %c128_207 = arith.constant 128 : index
    %c0_208 = arith.constant 0 : index
    %349 = vector.load %arg6[%c128_207, %c0_208] : memref<288x512xf32, #tpu.memory_space<vmem>>, vector<16x512xf32>
    tpu.vector_store %arg6[%c128_207, %c0_208], %348 {strides = array<i32>} : memref<288x512xf32, #tpu.memory_space<vmem>>, vector<16x512xf32>,
    %c4 = arith.constant 4 : index
    %c0_209 = arith.constant 0 : index
    %c0_210 = arith.constant 0 : index
    %350 = vector.load %arg1[%c4, %c0_209, %c0_210] : memref<5x16x144xf32, #tpu.memory_space<vmem>>, vector<1x16x144xf32>
    %351 = vector.shape_cast %350 : vector<1x16x144xf32> to vector<16x144xf32>
    %c0_211 = arith.constant 0 : index
    %c0_212 = arith.constant 0 : index
    %352 = vector.load %arg6[%c0_211, %c0_212] : memref<288x512xf32, #tpu.memory_space<vmem>>, vector<144x512xf32>
    %cst_213 = arith.constant dense<0.000000e+00> : vector<16x512xf32>
    %353 = tpu.matmul %351, %352, %cst_213 {dimension_numbers = #tpu.dot_dimension_numbers<[1], [0], [0], [1], [0, 0, 1, 1], [], []>} : vector<16x144xf32>, vector<144x512xf32>, vector<16x512xf32> -> vector<16x512xf32>
    %354 = arith.mulf %353, %353 : vector<16x512xf32>
    %355 = tpu.concatenate %353, %354 in 0 : vector<16x512xf32>, vector<16x512xf32> -> vector<32x512xf32>
    %cst_214 = arith.constant dense<0.000000e+00> : vector<32xf32>
    %356 = vector.multi_reduction <add>, %355, %cst_214 [1] : vector<32x512xf32> to vector<32xf32>
    %357 = vector.shape_cast %356 : vector<32xf32> to vector<32x1xf32>
    %358 = vector.extract_strided_slice %357 {offsets = [0, 0], sizes = [16, 1], strides = [1, 1]} : vector<32x1xf32> to vector<16x1xf32>
    %cst_215 = arith.constant 0.001953125 : f32
    %359 = vector.broadcast %cst_215 : f32 to vector<16x1xf32>
    %360 = arith.mulf %358, %359 : vector<16x1xf32>
    %361 = vector.extract_strided_slice %357 {offsets = [16, 0], sizes = [16, 1], strides = [1, 1]} : vector<32x1xf32> to vector<16x1xf32>
    %cst_216 = arith.constant 0.001953125 : f32
    %362 = vector.broadcast %cst_216 : f32 to vector<16x1xf32>
    %363 = arith.mulf %361, %362 : vector<16x1xf32>
    %364 = arith.mulf %360, %360 : vector<16x1xf32>
    %365 = arith.subf %363, %364 : vector<16x1xf32>
    %cst_217 = arith.constant 0.000000e+00 : f32
    %366 = vector.broadcast %cst_217 : f32 to vector<16x1xf32>
    %367 = arith.maximumf %365, %366 : vector<16x1xf32>
    %368 = vector.broadcast %360 : vector<16x1xf32> to vector<16x512xf32>
    %369 = arith.subf %353, %368 : vector<16x512xf32>
    %cst_218 = arith.constant 9.99999974E-6 : f32
    %370 = vector.broadcast %cst_218 : f32 to vector<16x1xf32>
    %371 = arith.addf %367, %370 : vector<16x1xf32>
    %372 = math.rsqrt %371 : vector<16x1xf32>
    %373 = vector.broadcast %372 : vector<16x1xf32> to vector<16x512xf32>
    %374 = arith.mulf %369, %373 : vector<16x512xf32>
    %cst_219 = arith.constant 0.000000e+00 : f32
    %375 = vector.broadcast %cst_219 : f32 to vector<16x512xf32>
    %376 = arith.cmpf ogt, %374, %375 : vector<16x512xf32>
    %cst_220 = arith.constant 0.000000e+00 : f32
    %377 = vector.broadcast %cst_220 : f32 to vector<16x512xf32>
    %378 = arith.minimumf %374, %377 : vector<16x512xf32>
    %379 = math.exp %378 : vector<16x512xf32>
    %cst_221 = arith.constant 1.000000e+00 : f32
    %380 = vector.broadcast %cst_221 : f32 to vector<16x512xf32>
    %381 = arith.subf %379, %380 : vector<16x512xf32>
    %382 = arith.select %376, %374, %381 : vector<16x512xi1>, vector<16x512xf32>
    %c3_222 = arith.constant 3 : index
    %c0_223 = arith.constant 0 : index
    %c0_224 = arith.constant 0 : index
    %383 = vector.load %arg5[%c3_222, %c0_223, %c0_224] : memref<4x16x512xf32, #tpu.memory_space<vmem>>, vector<1x16x512xf32>
    %384 = vector.shape_cast %383 : vector<1x16x512xf32> to vector<16x512xf32>
    %c68_i32_225 = arith.constant 68 : i32
    %385 = tpu.dynamic_rotate %382 by %c68_i32_225 dim 1 : vector<16x512xf32>, i32 -> vector<16x512xf32>
    %c18_226 = arith.constant 18 : index
    %c0_227 = arith.constant 0 : index
    %386 = vector.load %arg3[%c18_226, %c0_227] : memref<36x512xf32, #tpu.memory_space<vmem>>, vector<1x512xf32>
    %387 = vector.broadcast %386 : vector<1x512xf32> to vector<16x512xf32>
    %388 = arith.mulf %385, %387 : vector<16x512xf32>
    %c0_228 = arith.constant 0 : index
    %c0_229 = arith.constant 0 : index
    %389 = vector.load %arg6[%c0_228, %c0_229] : memref<288x512xf32, #tpu.memory_space<vmem>>, vector<16x512xf32>
    tpu.vector_store %arg6[%c0_228, %c0_229], %388 {strides = array<i32>} : memref<288x512xf32, #tpu.memory_space<vmem>>, vector<16x512xf32>,
    %c64_i32_230 = arith.constant 64 : i32
    %390 = tpu.dynamic_rotate %382 by %c64_i32_230 dim 1 : vector<16x512xf32>, i32 -> vector<16x512xf32>
    %c19_231 = arith.constant 19 : index
    %c0_232 = arith.constant 0 : index
    %391 = vector.load %arg3[%c19_231, %c0_232] : memref<36x512xf32, #tpu.memory_space<vmem>>, vector<1x512xf32>
    %392 = vector.broadcast %391 : vector<1x512xf32> to vector<16x512xf32>
    %393 = arith.mulf %390, %392 : vector<16x512xf32>
    %c16_233 = arith.constant 16 : index
    %c0_234 = arith.constant 0 : index
    %394 = vector.load %arg6[%c16_233, %c0_234] : memref<288x512xf32, #tpu.memory_space<vmem>>, vector<16x512xf32>
    tpu.vector_store %arg6[%c16_233, %c0_234], %393 {strides = array<i32>} : memref<288x512xf32, #tpu.memory_space<vmem>>, vector<16x512xf32>,
    %c60_i32_235 = arith.constant 60 : i32
    %395 = tpu.dynamic_rotate %382 by %c60_i32_235 dim 1 : vector<16x512xf32>, i32 -> vector<16x512xf32>
    %c20_236 = arith.constant 20 : index
    %c0_237 = arith.constant 0 : index
    %396 = vector.load %arg3[%c20_236, %c0_237] : memref<36x512xf32, #tpu.memory_space<vmem>>, vector<1x512xf32>
    %397 = vector.broadcast %396 : vector<1x512xf32> to vector<16x512xf32>
    %398 = arith.mulf %395, %397 : vector<16x512xf32>
    %c32_238 = arith.constant 32 : index
    %c0_239 = arith.constant 0 : index
    %399 = vector.load %arg6[%c32_238, %c0_239] : memref<288x512xf32, #tpu.memory_space<vmem>>, vector<16x512xf32>
    tpu.vector_store %arg6[%c32_238, %c0_239], %398 {strides = array<i32>} : memref<288x512xf32, #tpu.memory_space<vmem>>, vector<16x512xf32>,
    %c4_i32_240 = arith.constant 4 : i32
    %400 = tpu.dynamic_rotate %382 by %c4_i32_240 dim 1 : vector<16x512xf32>, i32 -> vector<16x512xf32>
    %c21_241 = arith.constant 21 : index
    %c0_242 = arith.constant 0 : index
    %401 = vector.load %arg3[%c21_241, %c0_242] : memref<36x512xf32, #tpu.memory_space<vmem>>, vector<1x512xf32>
    %402 = vector.broadcast %401 : vector<1x512xf32> to vector<16x512xf32>
    %403 = arith.mulf %400, %402 : vector<16x512xf32>
    %c48_243 = arith.constant 48 : index
    %c0_244 = arith.constant 0 : index
    %404 = vector.load %arg6[%c48_243, %c0_244] : memref<288x512xf32, #tpu.memory_space<vmem>>, vector<16x512xf32>
    tpu.vector_store %arg6[%c48_243, %c0_244], %403 {strides = array<i32>} : memref<288x512xf32, #tpu.memory_space<vmem>>, vector<16x512xf32>,
    %c64_245 = arith.constant 64 : index
    %c0_246 = arith.constant 0 : index
    %405 = vector.load %arg6[%c64_245, %c0_246] : memref<288x512xf32, #tpu.memory_space<vmem>>, vector<16x512xf32>
    tpu.vector_store %arg6[%c64_245, %c0_246], %382 {strides = array<i32>} : memref<288x512xf32, #tpu.memory_space<vmem>>, vector<16x512xf32>,
    %c508_i32_247 = arith.constant 508 : i32
    %406 = tpu.dynamic_rotate %382 by %c508_i32_247 dim 1 : vector<16x512xf32>, i32 -> vector<16x512xf32>
    %c23_248 = arith.constant 23 : index
    %c0_249 = arith.constant 0 : index
    %407 = vector.load %arg3[%c23_248, %c0_249] : memref<36x512xf32, #tpu.memory_space<vmem>>, vector<1x512xf32>
    %408 = vector.broadcast %407 : vector<1x512xf32> to vector<16x512xf32>
    %409 = arith.mulf %406, %408 : vector<16x512xf32>
    %c80_250 = arith.constant 80 : index
    %c0_251 = arith.constant 0 : index
    %410 = vector.load %arg6[%c80_250, %c0_251] : memref<288x512xf32, #tpu.memory_space<vmem>>, vector<16x512xf32>
    tpu.vector_store %arg6[%c80_250, %c0_251], %409 {strides = array<i32>} : memref<288x512xf32, #tpu.memory_space<vmem>>, vector<16x512xf32>,
    %c452_i32_252 = arith.constant 452 : i32
    %411 = tpu.dynamic_rotate %382 by %c452_i32_252 dim 1 : vector<16x512xf32>, i32 -> vector<16x512xf32>
    %c24_253 = arith.constant 24 : index
    %c0_254 = arith.constant 0 : index
    %412 = vector.load %arg3[%c24_253, %c0_254] : memref<36x512xf32, #tpu.memory_space<vmem>>, vector<1x512xf32>
    %413 = vector.broadcast %412 : vector<1x512xf32> to vector<16x512xf32>
    %414 = arith.mulf %411, %413 : vector<16x512xf32>
    %c96_255 = arith.constant 96 : index
    %c0_256 = arith.constant 0 : index
    %415 = vector.load %arg6[%c96_255, %c0_256] : memref<288x512xf32, #tpu.memory_space<vmem>>, vector<16x512xf32>
    tpu.vector_store %arg6[%c96_255, %c0_256], %414 {strides = array<i32>} : memref<288x512xf32, #tpu.memory_space<vmem>>, vector<16x512xf32>,
    %c448_i32_257 = arith.constant 448 : i32
    %416 = tpu.dynamic_rotate %382 by %c448_i32_257 dim 1 : vector<16x512xf32>, i32 -> vector<16x512xf32>
    %c25_258 = arith.constant 25 : index
    %c0_259 = arith.constant 0 : index
    %417 = vector.load %arg3[%c25_258, %c0_259] : memref<36x512xf32, #tpu.memory_space<vmem>>, vector<1x512xf32>
    %418 = vector.broadcast %417 : vector<1x512xf32> to vector<16x512xf32>
    %419 = arith.mulf %416, %418 : vector<16x512xf32>
    %c112_260 = arith.constant 112 : index
    %c0_261 = arith.constant 0 : index
    %420 = vector.load %arg6[%c112_260, %c0_261] : memref<288x512xf32, #tpu.memory_space<vmem>>, vector<16x512xf32>
    tpu.vector_store %arg6[%c112_260, %c0_261], %419 {strides = array<i32>} : memref<288x512xf32, #tpu.memory_space<vmem>>, vector<16x512xf32>,
    %c444_i32_262 = arith.constant 444 : i32
    %421 = tpu.dynamic_rotate %382 by %c444_i32_262 dim 1 : vector<16x512xf32>, i32 -> vector<16x512xf32>
    %c26_263 = arith.constant 26 : index
    %c0_264 = arith.constant 0 : index
    %422 = vector.load %arg3[%c26_263, %c0_264] : memref<36x512xf32, #tpu.memory_space<vmem>>, vector<1x512xf32>
    %423 = vector.broadcast %422 : vector<1x512xf32> to vector<16x512xf32>
    %424 = arith.mulf %421, %423 : vector<16x512xf32>
    %c128_265 = arith.constant 128 : index
    %c0_266 = arith.constant 0 : index
    %425 = vector.load %arg6[%c128_265, %c0_266] : memref<288x512xf32, #tpu.memory_space<vmem>>, vector<16x512xf32>
    tpu.vector_store %arg6[%c128_265, %c0_266], %424 {strides = array<i32>} : memref<288x512xf32, #tpu.memory_space<vmem>>, vector<16x512xf32>,
    %c68_i32_267 = arith.constant 68 : i32
    %426 = tpu.dynamic_rotate %384 by %c68_i32_267 dim 1 : vector<16x512xf32>, i32 -> vector<16x512xf32>
    %c18_268 = arith.constant 18 : index
    %c0_269 = arith.constant 0 : index
    %427 = vector.load %arg3[%c18_268, %c0_269] : memref<36x512xf32, #tpu.memory_space<vmem>>, vector<1x512xf32>
    %428 = vector.broadcast %427 : vector<1x512xf32> to vector<16x512xf32>
    %429 = arith.mulf %426, %428 : vector<16x512xf32>
    %c144 = arith.constant 144 : index
    %c0_270 = arith.constant 0 : index
    %430 = vector.load %arg6[%c144, %c0_270] : memref<288x512xf32, #tpu.memory_space<vmem>>, vector<16x512xf32>
    tpu.vector_store %arg6[%c144, %c0_270], %429 {strides = array<i32>} : memref<288x512xf32, #tpu.memory_space<vmem>>, vector<16x512xf32>,
    %c64_i32_271 = arith.constant 64 : i32
    %431 = tpu.dynamic_rotate %384 by %c64_i32_271 dim 1 : vector<16x512xf32>, i32 -> vector<16x512xf32>
    %c19_272 = arith.constant 19 : index
    %c0_273 = arith.constant 0 : index
    %432 = vector.load %arg3[%c19_272, %c0_273] : memref<36x512xf32, #tpu.memory_space<vmem>>, vector<1x512xf32>
    %433 = vector.broadcast %432 : vector<1x512xf32> to vector<16x512xf32>
    %434 = arith.mulf %431, %433 : vector<16x512xf32>
    %c160 = arith.constant 160 : index
    %c0_274 = arith.constant 0 : index
    %435 = vector.load %arg6[%c160, %c0_274] : memref<288x512xf32, #tpu.memory_space<vmem>>, vector<16x512xf32>
    tpu.vector_store %arg6[%c160, %c0_274], %434 {strides = array<i32>} : memref<288x512xf32, #tpu.memory_space<vmem>>, vector<16x512xf32>,
    %c60_i32_275 = arith.constant 60 : i32
    %436 = tpu.dynamic_rotate %384 by %c60_i32_275 dim 1 : vector<16x512xf32>, i32 -> vector<16x512xf32>
    %c20_276 = arith.constant 20 : index
    %c0_277 = arith.constant 0 : index
    %437 = vector.load %arg3[%c20_276, %c0_277] : memref<36x512xf32, #tpu.memory_space<vmem>>, vector<1x512xf32>
    %438 = vector.broadcast %437 : vector<1x512xf32> to vector<16x512xf32>
    %439 = arith.mulf %436, %438 : vector<16x512xf32>
    %c176 = arith.constant 176 : index
    %c0_278 = arith.constant 0 : index
    %440 = vector.load %arg6[%c176, %c0_278] : memref<288x512xf32, #tpu.memory_space<vmem>>, vector<16x512xf32>
    tpu.vector_store %arg6[%c176, %c0_278], %439 {strides = array<i32>} : memref<288x512xf32, #tpu.memory_space<vmem>>, vector<16x512xf32>,
    %c4_i32_279 = arith.constant 4 : i32
    %441 = tpu.dynamic_rotate %384 by %c4_i32_279 dim 1 : vector<16x512xf32>, i32 -> vector<16x512xf32>
    %c21_280 = arith.constant 21 : index
    %c0_281 = arith.constant 0 : index
    %442 = vector.load %arg3[%c21_280, %c0_281] : memref<36x512xf32, #tpu.memory_space<vmem>>, vector<1x512xf32>
    %443 = vector.broadcast %442 : vector<1x512xf32> to vector<16x512xf32>
    %444 = arith.mulf %441, %443 : vector<16x512xf32>
    %c192 = arith.constant 192 : index
    %c0_282 = arith.constant 0 : index
    %445 = vector.load %arg6[%c192, %c0_282] : memref<288x512xf32, #tpu.memory_space<vmem>>, vector<16x512xf32>
    tpu.vector_store %arg6[%c192, %c0_282], %444 {strides = array<i32>} : memref<288x512xf32, #tpu.memory_space<vmem>>, vector<16x512xf32>,
    %c208 = arith.constant 208 : index
    %c0_283 = arith.constant 0 : index
    %446 = vector.load %arg6[%c208, %c0_283] : memref<288x512xf32, #tpu.memory_space<vmem>>, vector<16x512xf32>
    tpu.vector_store %arg6[%c208, %c0_283], %384 {strides = array<i32>} : memref<288x512xf32, #tpu.memory_space<vmem>>, vector<16x512xf32>,
    %c508_i32_284 = arith.constant 508 : i32
    %447 = tpu.dynamic_rotate %384 by %c508_i32_284 dim 1 : vector<16x512xf32>, i32 -> vector<16x512xf32>
    %c23_285 = arith.constant 23 : index
    %c0_286 = arith.constant 0 : index
    %448 = vector.load %arg3[%c23_285, %c0_286] : memref<36x512xf32, #tpu.memory_space<vmem>>, vector<1x512xf32>
    %449 = vector.broadcast %448 : vector<1x512xf32> to vector<16x512xf32>
    %450 = arith.mulf %447, %449 : vector<16x512xf32>
    %c224 = arith.constant 224 : index
    %c0_287 = arith.constant 0 : index
    %451 = vector.load %arg6[%c224, %c0_287] : memref<288x512xf32, #tpu.memory_space<vmem>>, vector<16x512xf32>
    tpu.vector_store %arg6[%c224, %c0_287], %450 {strides = array<i32>} : memref<288x512xf32, #tpu.memory_space<vmem>>, vector<16x512xf32>,
    %c452_i32_288 = arith.constant 452 : i32
    %452 = tpu.dynamic_rotate %384 by %c452_i32_288 dim 1 : vector<16x512xf32>, i32 -> vector<16x512xf32>
    %c24_289 = arith.constant 24 : index
    %c0_290 = arith.constant 0 : index
    %453 = vector.load %arg3[%c24_289, %c0_290] : memref<36x512xf32, #tpu.memory_space<vmem>>, vector<1x512xf32>
    %454 = vector.broadcast %453 : vector<1x512xf32> to vector<16x512xf32>
    %455 = arith.mulf %452, %454 : vector<16x512xf32>
    %c240 = arith.constant 240 : index
    %c0_291 = arith.constant 0 : index
    %456 = vector.load %arg6[%c240, %c0_291] : memref<288x512xf32, #tpu.memory_space<vmem>>, vector<16x512xf32>
    tpu.vector_store %arg6[%c240, %c0_291], %455 {strides = array<i32>} : memref<288x512xf32, #tpu.memory_space<vmem>>, vector<16x512xf32>,
    %c448_i32_292 = arith.constant 448 : i32
    %457 = tpu.dynamic_rotate %384 by %c448_i32_292 dim 1 : vector<16x512xf32>, i32 -> vector<16x512xf32>
    %c25_293 = arith.constant 25 : index
    %c0_294 = arith.constant 0 : index
    %458 = vector.load %arg3[%c25_293, %c0_294] : memref<36x512xf32, #tpu.memory_space<vmem>>, vector<1x512xf32>
    %459 = vector.broadcast %458 : vector<1x512xf32> to vector<16x512xf32>
    %460 = arith.mulf %457, %459 : vector<16x512xf32>
    %c256 = arith.constant 256 : index
    %c0_295 = arith.constant 0 : index
    %461 = vector.load %arg6[%c256, %c0_295] : memref<288x512xf32, #tpu.memory_space<vmem>>, vector<16x512xf32>
    tpu.vector_store %arg6[%c256, %c0_295], %460 {strides = array<i32>} : memref<288x512xf32, #tpu.memory_space<vmem>>, vector<16x512xf32>,
    %c444_i32_296 = arith.constant 444 : i32
    %462 = tpu.dynamic_rotate %384 by %c444_i32_296 dim 1 : vector<16x512xf32>, i32 -> vector<16x512xf32>
    %c26_297 = arith.constant 26 : index
    %c0_298 = arith.constant 0 : index
    %463 = vector.load %arg3[%c26_297, %c0_298] : memref<36x512xf32, #tpu.memory_space<vmem>>, vector<1x512xf32>
    %464 = vector.broadcast %463 : vector<1x512xf32> to vector<16x512xf32>
    %465 = arith.mulf %462, %464 : vector<16x512xf32>
    %c272 = arith.constant 272 : index
    %c0_299 = arith.constant 0 : index
    %466 = vector.load %arg6[%c272, %c0_299] : memref<288x512xf32, #tpu.memory_space<vmem>>, vector<16x512xf32>
    tpu.vector_store %arg6[%c272, %c0_299], %465 {strides = array<i32>} : memref<288x512xf32, #tpu.memory_space<vmem>>, vector<16x512xf32>,
    %c0_300 = arith.constant 0 : index
    %c0_301 = arith.constant 0 : index
    %c0_302 = arith.constant 0 : index
    %467 = vector.load %arg2[%c0_300, %c0_301, %c0_302] : memref<3x16x288xf32, #tpu.memory_space<vmem>>, vector<1x16x288xf32>
    %468 = vector.shape_cast %467 : vector<1x16x288xf32> to vector<16x288xf32>
    %c0_303 = arith.constant 0 : index
    %c0_304 = arith.constant 0 : index
    %469 = vector.load %arg6[%c0_303, %c0_304] : memref<288x512xf32, #tpu.memory_space<vmem>>, vector<288x512xf32>
    %cst_305 = arith.constant dense<0.000000e+00> : vector<16x512xf32>
    %470 = tpu.matmul %468, %469, %cst_305 {dimension_numbers = #tpu.dot_dimension_numbers<[1], [0], [0], [1], [0, 0, 1, 1], [], []>} : vector<16x288xf32>, vector<288x512xf32>, vector<16x512xf32> -> vector<16x512xf32>
    %471 = arith.mulf %470, %470 : vector<16x512xf32>
    %472 = tpu.concatenate %470, %471 in 0 : vector<16x512xf32>, vector<16x512xf32> -> vector<32x512xf32>
    %cst_306 = arith.constant dense<0.000000e+00> : vector<32xf32>
    %473 = vector.multi_reduction <add>, %472, %cst_306 [1] : vector<32x512xf32> to vector<32xf32>
    %474 = vector.shape_cast %473 : vector<32xf32> to vector<32x1xf32>
    %475 = vector.extract_strided_slice %474 {offsets = [0, 0], sizes = [16, 1], strides = [1, 1]} : vector<32x1xf32> to vector<16x1xf32>
    %cst_307 = arith.constant 0.001953125 : f32
    %476 = vector.broadcast %cst_307 : f32 to vector<16x1xf32>
    %477 = arith.mulf %475, %476 : vector<16x1xf32>
    %478 = vector.extract_strided_slice %474 {offsets = [16, 0], sizes = [16, 1], strides = [1, 1]} : vector<32x1xf32> to vector<16x1xf32>
    %cst_308 = arith.constant 0.001953125 : f32
    %479 = vector.broadcast %cst_308 : f32 to vector<16x1xf32>
    %480 = arith.mulf %478, %479 : vector<16x1xf32>
    %481 = arith.mulf %477, %477 : vector<16x1xf32>
    %482 = arith.subf %480, %481 : vector<16x1xf32>
    %cst_309 = arith.constant 0.000000e+00 : f32
    %483 = vector.broadcast %cst_309 : f32 to vector<16x1xf32>
    %484 = arith.maximumf %482, %483 : vector<16x1xf32>
    %485 = vector.broadcast %477 : vector<16x1xf32> to vector<16x512xf32>
    %486 = arith.subf %470, %485 : vector<16x512xf32>
    %cst_310 = arith.constant 9.99999974E-6 : f32
    %487 = vector.broadcast %cst_310 : f32 to vector<16x1xf32>
    %488 = arith.addf %484, %487 : vector<16x1xf32>
    %489 = math.rsqrt %488 : vector<16x1xf32>
    %490 = vector.broadcast %489 : vector<16x1xf32> to vector<16x512xf32>
    %491 = arith.mulf %486, %490 : vector<16x512xf32>
    %cst_311 = arith.constant 0.000000e+00 : f32
    %492 = vector.broadcast %cst_311 : f32 to vector<16x512xf32>
    %493 = arith.cmpf ogt, %491, %492 : vector<16x512xf32>
    %cst_312 = arith.constant 0.000000e+00 : f32
    %494 = vector.broadcast %cst_312 : f32 to vector<16x512xf32>
    %495 = arith.minimumf %491, %494 : vector<16x512xf32>
    %496 = math.exp %495 : vector<16x512xf32>
    %cst_313 = arith.constant 1.000000e+00 : f32
    %497 = vector.broadcast %cst_313 : f32 to vector<16x512xf32>
    %498 = arith.subf %496, %497 : vector<16x512xf32>
    %499 = arith.select %493, %491, %498 : vector<16x512xi1>, vector<16x512xf32>
    %c2_314 = arith.constant 2 : index
    %c0_315 = arith.constant 0 : index
    %c0_316 = arith.constant 0 : index
    %500 = vector.load %arg5[%c2_314, %c0_315, %c0_316] : memref<4x16x512xf32, #tpu.memory_space<vmem>>, vector<1x16x512xf32>
    %501 = vector.shape_cast %500 : vector<1x16x512xf32> to vector<16x512xf32>
    %c34_i32_317 = arith.constant 34 : i32
    %502 = tpu.dynamic_rotate %499 by %c34_i32_317 dim 1 : vector<16x512xf32>, i32 -> vector<16x512xf32>
    %c9_318 = arith.constant 9 : index
    %c0_319 = arith.constant 0 : index
    %503 = vector.load %arg3[%c9_318, %c0_319] : memref<36x512xf32, #tpu.memory_space<vmem>>, vector<1x512xf32>
    %504 = vector.broadcast %503 : vector<1x512xf32> to vector<16x512xf32>
    %505 = arith.mulf %502, %504 : vector<16x512xf32>
    %c0_320 = arith.constant 0 : index
    %c0_321 = arith.constant 0 : index
    %506 = vector.load %arg6[%c0_320, %c0_321] : memref<288x512xf32, #tpu.memory_space<vmem>>, vector<16x512xf32>
    tpu.vector_store %arg6[%c0_320, %c0_321], %505 {strides = array<i32>} : memref<288x512xf32, #tpu.memory_space<vmem>>, vector<16x512xf32>,
    %c32_i32_322 = arith.constant 32 : i32
    %507 = tpu.dynamic_rotate %499 by %c32_i32_322 dim 1 : vector<16x512xf32>, i32 -> vector<16x512xf32>
    %c10_323 = arith.constant 10 : index
    %c0_324 = arith.constant 0 : index
    %508 = vector.load %arg3[%c10_323, %c0_324] : memref<36x512xf32, #tpu.memory_space<vmem>>, vector<1x512xf32>
    %509 = vector.broadcast %508 : vector<1x512xf32> to vector<16x512xf32>
    %510 = arith.mulf %507, %509 : vector<16x512xf32>
    %c16_325 = arith.constant 16 : index
    %c0_326 = arith.constant 0 : index
    %511 = vector.load %arg6[%c16_325, %c0_326] : memref<288x512xf32, #tpu.memory_space<vmem>>, vector<16x512xf32>
    tpu.vector_store %arg6[%c16_325, %c0_326], %510 {strides = array<i32>} : memref<288x512xf32, #tpu.memory_space<vmem>>, vector<16x512xf32>,
    %c30_i32_327 = arith.constant 30 : i32
    %512 = tpu.dynamic_rotate %499 by %c30_i32_327 dim 1 : vector<16x512xf32>, i32 -> vector<16x512xf32>
    %c11_328 = arith.constant 11 : index
    %c0_329 = arith.constant 0 : index
    %513 = vector.load %arg3[%c11_328, %c0_329] : memref<36x512xf32, #tpu.memory_space<vmem>>, vector<1x512xf32>
    %514 = vector.broadcast %513 : vector<1x512xf32> to vector<16x512xf32>
    %515 = arith.mulf %512, %514 : vector<16x512xf32>
    %c32_330 = arith.constant 32 : index
    %c0_331 = arith.constant 0 : index
    %516 = vector.load %arg6[%c32_330, %c0_331] : memref<288x512xf32, #tpu.memory_space<vmem>>, vector<16x512xf32>
    tpu.vector_store %arg6[%c32_330, %c0_331], %515 {strides = array<i32>} : memref<288x512xf32, #tpu.memory_space<vmem>>, vector<16x512xf32>,
    %c2_i32_332 = arith.constant 2 : i32
    %517 = tpu.dynamic_rotate %499 by %c2_i32_332 dim 1 : vector<16x512xf32>, i32 -> vector<16x512xf32>
    %c12_333 = arith.constant 12 : index
    %c0_334 = arith.constant 0 : index
    %518 = vector.load %arg3[%c12_333, %c0_334] : memref<36x512xf32, #tpu.memory_space<vmem>>, vector<1x512xf32>
    %519 = vector.broadcast %518 : vector<1x512xf32> to vector<16x512xf32>
    %520 = arith.mulf %517, %519 : vector<16x512xf32>
    %c48_335 = arith.constant 48 : index
    %c0_336 = arith.constant 0 : index
    %521 = vector.load %arg6[%c48_335, %c0_336] : memref<288x512xf32, #tpu.memory_space<vmem>>, vector<16x512xf32>
    tpu.vector_store %arg6[%c48_335, %c0_336], %520 {strides = array<i32>} : memref<288x512xf32, #tpu.memory_space<vmem>>, vector<16x512xf32>,
    %c64_337 = arith.constant 64 : index
    %c0_338 = arith.constant 0 : index
    %522 = vector.load %arg6[%c64_337, %c0_338] : memref<288x512xf32, #tpu.memory_space<vmem>>, vector<16x512xf32>
    tpu.vector_store %arg6[%c64_337, %c0_338], %499 {strides = array<i32>} : memref<288x512xf32, #tpu.memory_space<vmem>>, vector<16x512xf32>,
    %c510_i32_339 = arith.constant 510 : i32
    %523 = tpu.dynamic_rotate %499 by %c510_i32_339 dim 1 : vector<16x512xf32>, i32 -> vector<16x512xf32>
    %c14_340 = arith.constant 14 : index
    %c0_341 = arith.constant 0 : index
    %524 = vector.load %arg3[%c14_340, %c0_341] : memref<36x512xf32, #tpu.memory_space<vmem>>, vector<1x512xf32>
    %525 = vector.broadcast %524 : vector<1x512xf32> to vector<16x512xf32>
    %526 = arith.mulf %523, %525 : vector<16x512xf32>
    %c80_342 = arith.constant 80 : index
    %c0_343 = arith.constant 0 : index
    %527 = vector.load %arg6[%c80_342, %c0_343] : memref<288x512xf32, #tpu.memory_space<vmem>>, vector<16x512xf32>
    tpu.vector_store %arg6[%c80_342, %c0_343], %526 {strides = array<i32>} : memref<288x512xf32, #tpu.memory_space<vmem>>, vector<16x512xf32>,
    %c482_i32_344 = arith.constant 482 : i32
    %528 = tpu.dynamic_rotate %499 by %c482_i32_344 dim 1 : vector<16x512xf32>, i32 -> vector<16x512xf32>
    %c15_345 = arith.constant 15 : index
    %c0_346 = arith.constant 0 : index
    %529 = vector.load %arg3[%c15_345, %c0_346] : memref<36x512xf32, #tpu.memory_space<vmem>>, vector<1x512xf32>
    %530 = vector.broadcast %529 : vector<1x512xf32> to vector<16x512xf32>
    %531 = arith.mulf %528, %530 : vector<16x512xf32>
    %c96_347 = arith.constant 96 : index
    %c0_348 = arith.constant 0 : index
    %532 = vector.load %arg6[%c96_347, %c0_348] : memref<288x512xf32, #tpu.memory_space<vmem>>, vector<16x512xf32>
    tpu.vector_store %arg6[%c96_347, %c0_348], %531 {strides = array<i32>} : memref<288x512xf32, #tpu.memory_space<vmem>>, vector<16x512xf32>,
    %c480_i32_349 = arith.constant 480 : i32
    %533 = tpu.dynamic_rotate %499 by %c480_i32_349 dim 1 : vector<16x512xf32>, i32 -> vector<16x512xf32>
    %c16_350 = arith.constant 16 : index
    %c0_351 = arith.constant 0 : index
    %534 = vector.load %arg3[%c16_350, %c0_351] : memref<36x512xf32, #tpu.memory_space<vmem>>, vector<1x512xf32>
    %535 = vector.broadcast %534 : vector<1x512xf32> to vector<16x512xf32>
    %536 = arith.mulf %533, %535 : vector<16x512xf32>
    %c112_352 = arith.constant 112 : index
    %c0_353 = arith.constant 0 : index
    %537 = vector.load %arg6[%c112_352, %c0_353] : memref<288x512xf32, #tpu.memory_space<vmem>>, vector<16x512xf32>
    tpu.vector_store %arg6[%c112_352, %c0_353], %536 {strides = array<i32>} : memref<288x512xf32, #tpu.memory_space<vmem>>, vector<16x512xf32>,
    %c478_i32_354 = arith.constant 478 : i32
    %538 = tpu.dynamic_rotate %499 by %c478_i32_354 dim 1 : vector<16x512xf32>, i32 -> vector<16x512xf32>
    %c17_355 = arith.constant 17 : index
    %c0_356 = arith.constant 0 : index
    %539 = vector.load %arg3[%c17_355, %c0_356] : memref<36x512xf32, #tpu.memory_space<vmem>>, vector<1x512xf32>
    %540 = vector.broadcast %539 : vector<1x512xf32> to vector<16x512xf32>
    %541 = arith.mulf %538, %540 : vector<16x512xf32>
    %c128_357 = arith.constant 128 : index
    %c0_358 = arith.constant 0 : index
    %542 = vector.load %arg6[%c128_357, %c0_358] : memref<288x512xf32, #tpu.memory_space<vmem>>, vector<16x512xf32>
    tpu.vector_store %arg6[%c128_357, %c0_358], %541 {strides = array<i32>} : memref<288x512xf32, #tpu.memory_space<vmem>>, vector<16x512xf32>,
    %c34_i32_359 = arith.constant 34 : i32
    %543 = tpu.dynamic_rotate %501 by %c34_i32_359 dim 1 : vector<16x512xf32>, i32 -> vector<16x512xf32>
    %c9_360 = arith.constant 9 : index
    %c0_361 = arith.constant 0 : index
    %544 = vector.load %arg3[%c9_360, %c0_361] : memref<36x512xf32, #tpu.memory_space<vmem>>, vector<1x512xf32>
    %545 = vector.broadcast %544 : vector<1x512xf32> to vector<16x512xf32>
    %546 = arith.mulf %543, %545 : vector<16x512xf32>
    %c144_362 = arith.constant 144 : index
    %c0_363 = arith.constant 0 : index
    %547 = vector.load %arg6[%c144_362, %c0_363] : memref<288x512xf32, #tpu.memory_space<vmem>>, vector<16x512xf32>
    tpu.vector_store %arg6[%c144_362, %c0_363], %546 {strides = array<i32>} : memref<288x512xf32, #tpu.memory_space<vmem>>, vector<16x512xf32>,
    %c32_i32_364 = arith.constant 32 : i32
    %548 = tpu.dynamic_rotate %501 by %c32_i32_364 dim 1 : vector<16x512xf32>, i32 -> vector<16x512xf32>
    %c10_365 = arith.constant 10 : index
    %c0_366 = arith.constant 0 : index
    %549 = vector.load %arg3[%c10_365, %c0_366] : memref<36x512xf32, #tpu.memory_space<vmem>>, vector<1x512xf32>
    %550 = vector.broadcast %549 : vector<1x512xf32> to vector<16x512xf32>
    %551 = arith.mulf %548, %550 : vector<16x512xf32>
    %c160_367 = arith.constant 160 : index
    %c0_368 = arith.constant 0 : index
    %552 = vector.load %arg6[%c160_367, %c0_368] : memref<288x512xf32, #tpu.memory_space<vmem>>, vector<16x512xf32>
    tpu.vector_store %arg6[%c160_367, %c0_368], %551 {strides = array<i32>} : memref<288x512xf32, #tpu.memory_space<vmem>>, vector<16x512xf32>,
    %c30_i32_369 = arith.constant 30 : i32
    %553 = tpu.dynamic_rotate %501 by %c30_i32_369 dim 1 : vector<16x512xf32>, i32 -> vector<16x512xf32>
    %c11_370 = arith.constant 11 : index
    %c0_371 = arith.constant 0 : index
    %554 = vector.load %arg3[%c11_370, %c0_371] : memref<36x512xf32, #tpu.memory_space<vmem>>, vector<1x512xf32>
    %555 = vector.broadcast %554 : vector<1x512xf32> to vector<16x512xf32>
    %556 = arith.mulf %553, %555 : vector<16x512xf32>
    %c176_372 = arith.constant 176 : index
    %c0_373 = arith.constant 0 : index
    %557 = vector.load %arg6[%c176_372, %c0_373] : memref<288x512xf32, #tpu.memory_space<vmem>>, vector<16x512xf32>
    tpu.vector_store %arg6[%c176_372, %c0_373], %556 {strides = array<i32>} : memref<288x512xf32, #tpu.memory_space<vmem>>, vector<16x512xf32>,
    %c2_i32_374 = arith.constant 2 : i32
    %558 = tpu.dynamic_rotate %501 by %c2_i32_374 dim 1 : vector<16x512xf32>, i32 -> vector<16x512xf32>
    %c12_375 = arith.constant 12 : index
    %c0_376 = arith.constant 0 : index
    %559 = vector.load %arg3[%c12_375, %c0_376] : memref<36x512xf32, #tpu.memory_space<vmem>>, vector<1x512xf32>
    %560 = vector.broadcast %559 : vector<1x512xf32> to vector<16x512xf32>
    %561 = arith.mulf %558, %560 : vector<16x512xf32>
    %c192_377 = arith.constant 192 : index
    %c0_378 = arith.constant 0 : index
    %562 = vector.load %arg6[%c192_377, %c0_378] : memref<288x512xf32, #tpu.memory_space<vmem>>, vector<16x512xf32>
    tpu.vector_store %arg6[%c192_377, %c0_378], %561 {strides = array<i32>} : memref<288x512xf32, #tpu.memory_space<vmem>>, vector<16x512xf32>,
    %c208_379 = arith.constant 208 : index
    %c0_380 = arith.constant 0 : index
    %563 = vector.load %arg6[%c208_379, %c0_380] : memref<288x512xf32, #tpu.memory_space<vmem>>, vector<16x512xf32>
    tpu.vector_store %arg6[%c208_379, %c0_380], %501 {strides = array<i32>} : memref<288x512xf32, #tpu.memory_space<vmem>>, vector<16x512xf32>,
    %c510_i32_381 = arith.constant 510 : i32
    %564 = tpu.dynamic_rotate %501 by %c510_i32_381 dim 1 : vector<16x512xf32>, i32 -> vector<16x512xf32>
    %c14_382 = arith.constant 14 : index
    %c0_383 = arith.constant 0 : index
    %565 = vector.load %arg3[%c14_382, %c0_383] : memref<36x512xf32, #tpu.memory_space<vmem>>, vector<1x512xf32>
    %566 = vector.broadcast %565 : vector<1x512xf32> to vector<16x512xf32>
    %567 = arith.mulf %564, %566 : vector<16x512xf32>
    %c224_384 = arith.constant 224 : index
    %c0_385 = arith.constant 0 : index
    %568 = vector.load %arg6[%c224_384, %c0_385] : memref<288x512xf32, #tpu.memory_space<vmem>>, vector<16x512xf32>
    tpu.vector_store %arg6[%c224_384, %c0_385], %567 {strides = array<i32>} : memref<288x512xf32, #tpu.memory_space<vmem>>, vector<16x512xf32>,
    %c482_i32_386 = arith.constant 482 : i32
    %569 = tpu.dynamic_rotate %501 by %c482_i32_386 dim 1 : vector<16x512xf32>, i32 -> vector<16x512xf32>
    %c15_387 = arith.constant 15 : index
    %c0_388 = arith.constant 0 : index
    %570 = vector.load %arg3[%c15_387, %c0_388] : memref<36x512xf32, #tpu.memory_space<vmem>>, vector<1x512xf32>
    %571 = vector.broadcast %570 : vector<1x512xf32> to vector<16x512xf32>
    %572 = arith.mulf %569, %571 : vector<16x512xf32>
    %c240_389 = arith.constant 240 : index
    %c0_390 = arith.constant 0 : index
    %573 = vector.load %arg6[%c240_389, %c0_390] : memref<288x512xf32, #tpu.memory_space<vmem>>, vector<16x512xf32>
    tpu.vector_store %arg6[%c240_389, %c0_390], %572 {strides = array<i32>} : memref<288x512xf32, #tpu.memory_space<vmem>>, vector<16x512xf32>,
    %c480_i32_391 = arith.constant 480 : i32
    %574 = tpu.dynamic_rotate %501 by %c480_i32_391 dim 1 : vector<16x512xf32>, i32 -> vector<16x512xf32>
    %c16_392 = arith.constant 16 : index
    %c0_393 = arith.constant 0 : index
    %575 = vector.load %arg3[%c16_392, %c0_393] : memref<36x512xf32, #tpu.memory_space<vmem>>, vector<1x512xf32>
    %576 = vector.broadcast %575 : vector<1x512xf32> to vector<16x512xf32>
    %577 = arith.mulf %574, %576 : vector<16x512xf32>
    %c256_394 = arith.constant 256 : index
    %c0_395 = arith.constant 0 : index
    %578 = vector.load %arg6[%c256_394, %c0_395] : memref<288x512xf32, #tpu.memory_space<vmem>>, vector<16x512xf32>
    tpu.vector_store %arg6[%c256_394, %c0_395], %577 {strides = array<i32>} : memref<288x512xf32, #tpu.memory_space<vmem>>, vector<16x512xf32>,
    %c478_i32_396 = arith.constant 478 : i32
    %579 = tpu.dynamic_rotate %501 by %c478_i32_396 dim 1 : vector<16x512xf32>, i32 -> vector<16x512xf32>
    %c17_397 = arith.constant 17 : index
    %c0_398 = arith.constant 0 : index
    %580 = vector.load %arg3[%c17_397, %c0_398] : memref<36x512xf32, #tpu.memory_space<vmem>>, vector<1x512xf32>
    %581 = vector.broadcast %580 : vector<1x512xf32> to vector<16x512xf32>
    %582 = arith.mulf %579, %581 : vector<16x512xf32>
    %c272_399 = arith.constant 272 : index
    %c0_400 = arith.constant 0 : index
    %583 = vector.load %arg6[%c272_399, %c0_400] : memref<288x512xf32, #tpu.memory_space<vmem>>, vector<16x512xf32>
    tpu.vector_store %arg6[%c272_399, %c0_400], %582 {strides = array<i32>} : memref<288x512xf32, #tpu.memory_space<vmem>>, vector<16x512xf32>,
    %c1_401 = arith.constant 1 : index
    %c0_402 = arith.constant 0 : index
    %c0_403 = arith.constant 0 : index
    %584 = vector.load %arg2[%c1_401, %c0_402, %c0_403] : memref<3x16x288xf32, #tpu.memory_space<vmem>>, vector<1x16x288xf32>
    %585 = vector.shape_cast %584 : vector<1x16x288xf32> to vector<16x288xf32>
    %c0_404 = arith.constant 0 : index
    %c0_405 = arith.constant 0 : index
    %586 = vector.load %arg6[%c0_404, %c0_405] : memref<288x512xf32, #tpu.memory_space<vmem>>, vector<288x512xf32>
    %cst_406 = arith.constant dense<0.000000e+00> : vector<16x512xf32>
    %587 = tpu.matmul %585, %586, %cst_406 {dimension_numbers = #tpu.dot_dimension_numbers<[1], [0], [0], [1], [0, 0, 1, 1], [], []>} : vector<16x288xf32>, vector<288x512xf32>, vector<16x512xf32> -> vector<16x512xf32>
    %588 = arith.mulf %587, %587 : vector<16x512xf32>
    %589 = tpu.concatenate %587, %588 in 0 : vector<16x512xf32>, vector<16x512xf32> -> vector<32x512xf32>
    %cst_407 = arith.constant dense<0.000000e+00> : vector<32xf32>
    %590 = vector.multi_reduction <add>, %589, %cst_407 [1] : vector<32x512xf32> to vector<32xf32>
    %591 = vector.shape_cast %590 : vector<32xf32> to vector<32x1xf32>
    %592 = vector.extract_strided_slice %591 {offsets = [0, 0], sizes = [16, 1], strides = [1, 1]} : vector<32x1xf32> to vector<16x1xf32>
    %cst_408 = arith.constant 0.001953125 : f32
    %593 = vector.broadcast %cst_408 : f32 to vector<16x1xf32>
    %594 = arith.mulf %592, %593 : vector<16x1xf32>
    %595 = vector.extract_strided_slice %591 {offsets = [16, 0], sizes = [16, 1], strides = [1, 1]} : vector<32x1xf32> to vector<16x1xf32>
    %cst_409 = arith.constant 0.001953125 : f32
    %596 = vector.broadcast %cst_409 : f32 to vector<16x1xf32>
    %597 = arith.mulf %595, %596 : vector<16x1xf32>
    %598 = arith.mulf %594, %594 : vector<16x1xf32>
    %599 = arith.subf %597, %598 : vector<16x1xf32>
    %cst_410 = arith.constant 0.000000e+00 : f32
    %600 = vector.broadcast %cst_410 : f32 to vector<16x1xf32>
    %601 = arith.maximumf %599, %600 : vector<16x1xf32>
    %602 = vector.broadcast %594 : vector<16x1xf32> to vector<16x512xf32>
    %603 = arith.subf %587, %602 : vector<16x512xf32>
    %cst_411 = arith.constant 9.99999974E-6 : f32
    %604 = vector.broadcast %cst_411 : f32 to vector<16x1xf32>
    %605 = arith.addf %601, %604 : vector<16x1xf32>
    %606 = math.rsqrt %605 : vector<16x1xf32>
    %607 = vector.broadcast %606 : vector<16x1xf32> to vector<16x512xf32>
    %608 = arith.mulf %603, %607 : vector<16x512xf32>
    %cst_412 = arith.constant 0.000000e+00 : f32
    %609 = vector.broadcast %cst_412 : f32 to vector<16x512xf32>
    %610 = arith.cmpf ogt, %608, %609 : vector<16x512xf32>
    %cst_413 = arith.constant 0.000000e+00 : f32
    %611 = vector.broadcast %cst_413 : f32 to vector<16x512xf32>
    %612 = arith.minimumf %608, %611 : vector<16x512xf32>
    %613 = math.exp %612 : vector<16x512xf32>
    %cst_414 = arith.constant 1.000000e+00 : f32
    %614 = vector.broadcast %cst_414 : f32 to vector<16x512xf32>
    %615 = arith.subf %613, %614 : vector<16x512xf32>
    %616 = arith.select %610, %608, %615 : vector<16x512xi1>, vector<16x512xf32>
    %c1_415 = arith.constant 1 : index
    %c0_416 = arith.constant 0 : index
    %c0_417 = arith.constant 0 : index
    %617 = vector.load %arg5[%c1_415, %c0_416, %c0_417] : memref<4x16x512xf32, #tpu.memory_space<vmem>>, vector<1x16x512xf32>
    %618 = vector.shape_cast %617 : vector<1x16x512xf32> to vector<16x512xf32>
    %c17_i32_418 = arith.constant 17 : i32
    %619 = tpu.dynamic_rotate %616 by %c17_i32_418 dim 1 : vector<16x512xf32>, i32 -> vector<16x512xf32>
    %c0_419 = arith.constant 0 : index
    %c0_420 = arith.constant 0 : index
    %620 = vector.load %arg3[%c0_419, %c0_420] : memref<36x512xf32, #tpu.memory_space<vmem>>, vector<1x512xf32>
    %621 = vector.broadcast %620 : vector<1x512xf32> to vector<16x512xf32>
    %622 = arith.mulf %619, %621 : vector<16x512xf32>
    %c0_421 = arith.constant 0 : index
    %c0_422 = arith.constant 0 : index
    %623 = vector.load %arg6[%c0_421, %c0_422] : memref<288x512xf32, #tpu.memory_space<vmem>>, vector<16x512xf32>
    tpu.vector_store %arg6[%c0_421, %c0_422], %622 {strides = array<i32>} : memref<288x512xf32, #tpu.memory_space<vmem>>, vector<16x512xf32>,
    %c16_i32_423 = arith.constant 16 : i32
    %624 = tpu.dynamic_rotate %616 by %c16_i32_423 dim 1 : vector<16x512xf32>, i32 -> vector<16x512xf32>
    %c1_424 = arith.constant 1 : index
    %c0_425 = arith.constant 0 : index
    %625 = vector.load %arg3[%c1_424, %c0_425] : memref<36x512xf32, #tpu.memory_space<vmem>>, vector<1x512xf32>
    %626 = vector.broadcast %625 : vector<1x512xf32> to vector<16x512xf32>
    %627 = arith.mulf %624, %626 : vector<16x512xf32>
    %c16_426 = arith.constant 16 : index
    %c0_427 = arith.constant 0 : index
    %628 = vector.load %arg6[%c16_426, %c0_427] : memref<288x512xf32, #tpu.memory_space<vmem>>, vector<16x512xf32>
    tpu.vector_store %arg6[%c16_426, %c0_427], %627 {strides = array<i32>} : memref<288x512xf32, #tpu.memory_space<vmem>>, vector<16x512xf32>,
    %c15_i32_428 = arith.constant 15 : i32
    %629 = tpu.dynamic_rotate %616 by %c15_i32_428 dim 1 : vector<16x512xf32>, i32 -> vector<16x512xf32>
    %c2_429 = arith.constant 2 : index
    %c0_430 = arith.constant 0 : index
    %630 = vector.load %arg3[%c2_429, %c0_430] : memref<36x512xf32, #tpu.memory_space<vmem>>, vector<1x512xf32>
    %631 = vector.broadcast %630 : vector<1x512xf32> to vector<16x512xf32>
    %632 = arith.mulf %629, %631 : vector<16x512xf32>
    %c32_431 = arith.constant 32 : index
    %c0_432 = arith.constant 0 : index
    %633 = vector.load %arg6[%c32_431, %c0_432] : memref<288x512xf32, #tpu.memory_space<vmem>>, vector<16x512xf32>
    tpu.vector_store %arg6[%c32_431, %c0_432], %632 {strides = array<i32>} : memref<288x512xf32, #tpu.memory_space<vmem>>, vector<16x512xf32>,
    %c1_i32_433 = arith.constant 1 : i32
    %634 = tpu.dynamic_rotate %616 by %c1_i32_433 dim 1 : vector<16x512xf32>, i32 -> vector<16x512xf32>
    %c3_434 = arith.constant 3 : index
    %c0_435 = arith.constant 0 : index
    %635 = vector.load %arg3[%c3_434, %c0_435] : memref<36x512xf32, #tpu.memory_space<vmem>>, vector<1x512xf32>
    %636 = vector.broadcast %635 : vector<1x512xf32> to vector<16x512xf32>
    %637 = arith.mulf %634, %636 : vector<16x512xf32>
    %c48_436 = arith.constant 48 : index
    %c0_437 = arith.constant 0 : index
    %638 = vector.load %arg6[%c48_436, %c0_437] : memref<288x512xf32, #tpu.memory_space<vmem>>, vector<16x512xf32>
    tpu.vector_store %arg6[%c48_436, %c0_437], %637 {strides = array<i32>} : memref<288x512xf32, #tpu.memory_space<vmem>>, vector<16x512xf32>,
    %c64_438 = arith.constant 64 : index
    %c0_439 = arith.constant 0 : index
    %639 = vector.load %arg6[%c64_438, %c0_439] : memref<288x512xf32, #tpu.memory_space<vmem>>, vector<16x512xf32>
    tpu.vector_store %arg6[%c64_438, %c0_439], %616 {strides = array<i32>} : memref<288x512xf32, #tpu.memory_space<vmem>>, vector<16x512xf32>,
    %c511_i32_440 = arith.constant 511 : i32
    %640 = tpu.dynamic_rotate %616 by %c511_i32_440 dim 1 : vector<16x512xf32>, i32 -> vector<16x512xf32>
    %c5_441 = arith.constant 5 : index
    %c0_442 = arith.constant 0 : index
    %641 = vector.load %arg3[%c5_441, %c0_442] : memref<36x512xf32, #tpu.memory_space<vmem>>, vector<1x512xf32>
    %642 = vector.broadcast %641 : vector<1x512xf32> to vector<16x512xf32>
    %643 = arith.mulf %640, %642 : vector<16x512xf32>
    %c80_443 = arith.constant 80 : index
    %c0_444 = arith.constant 0 : index
    %644 = vector.load %arg6[%c80_443, %c0_444] : memref<288x512xf32, #tpu.memory_space<vmem>>, vector<16x512xf32>
    tpu.vector_store %arg6[%c80_443, %c0_444], %643 {strides = array<i32>} : memref<288x512xf32, #tpu.memory_space<vmem>>, vector<16x512xf32>,
    %c497_i32_445 = arith.constant 497 : i32
    %645 = tpu.dynamic_rotate %616 by %c497_i32_445 dim 1 : vector<16x512xf32>, i32 -> vector<16x512xf32>
    %c6_446 = arith.constant 6 : index
    %c0_447 = arith.constant 0 : index
    %646 = vector.load %arg3[%c6_446, %c0_447] : memref<36x512xf32, #tpu.memory_space<vmem>>, vector<1x512xf32>
    %647 = vector.broadcast %646 : vector<1x512xf32> to vector<16x512xf32>
    %648 = arith.mulf %645, %647 : vector<16x512xf32>
    %c96_448 = arith.constant 96 : index
    %c0_449 = arith.constant 0 : index
    %649 = vector.load %arg6[%c96_448, %c0_449] : memref<288x512xf32, #tpu.memory_space<vmem>>, vector<16x512xf32>
    tpu.vector_store %arg6[%c96_448, %c0_449], %648 {strides = array<i32>} : memref<288x512xf32, #tpu.memory_space<vmem>>, vector<16x512xf32>,
    %c496_i32_450 = arith.constant 496 : i32
    %650 = tpu.dynamic_rotate %616 by %c496_i32_450 dim 1 : vector<16x512xf32>, i32 -> vector<16x512xf32>
    %c7_451 = arith.constant 7 : index
    %c0_452 = arith.constant 0 : index
    %651 = vector.load %arg3[%c7_451, %c0_452] : memref<36x512xf32, #tpu.memory_space<vmem>>, vector<1x512xf32>
    %652 = vector.broadcast %651 : vector<1x512xf32> to vector<16x512xf32>
    %653 = arith.mulf %650, %652 : vector<16x512xf32>
    %c112_453 = arith.constant 112 : index
    %c0_454 = arith.constant 0 : index
    %654 = vector.load %arg6[%c112_453, %c0_454] : memref<288x512xf32, #tpu.memory_space<vmem>>, vector<16x512xf32>
    tpu.vector_store %arg6[%c112_453, %c0_454], %653 {strides = array<i32>} : memref<288x512xf32, #tpu.memory_space<vmem>>, vector<16x512xf32>,
    %c495_i32_455 = arith.constant 495 : i32
    %655 = tpu.dynamic_rotate %616 by %c495_i32_455 dim 1 : vector<16x512xf32>, i32 -> vector<16x512xf32>
    %c8_456 = arith.constant 8 : index
    %c0_457 = arith.constant 0 : index
    %656 = vector.load %arg3[%c8_456, %c0_457] : memref<36x512xf32, #tpu.memory_space<vmem>>, vector<1x512xf32>
    %657 = vector.broadcast %656 : vector<1x512xf32> to vector<16x512xf32>
    %658 = arith.mulf %655, %657 : vector<16x512xf32>
    %c128_458 = arith.constant 128 : index
    %c0_459 = arith.constant 0 : index
    %659 = vector.load %arg6[%c128_458, %c0_459] : memref<288x512xf32, #tpu.memory_space<vmem>>, vector<16x512xf32>
    tpu.vector_store %arg6[%c128_458, %c0_459], %658 {strides = array<i32>} : memref<288x512xf32, #tpu.memory_space<vmem>>, vector<16x512xf32>,
    %c17_i32_460 = arith.constant 17 : i32
    %660 = tpu.dynamic_rotate %618 by %c17_i32_460 dim 1 : vector<16x512xf32>, i32 -> vector<16x512xf32>
    %c0_461 = arith.constant 0 : index
    %c0_462 = arith.constant 0 : index
    %661 = vector.load %arg3[%c0_461, %c0_462] : memref<36x512xf32, #tpu.memory_space<vmem>>, vector<1x512xf32>
    %662 = vector.broadcast %661 : vector<1x512xf32> to vector<16x512xf32>
    %663 = arith.mulf %660, %662 : vector<16x512xf32>
    %c144_463 = arith.constant 144 : index
    %c0_464 = arith.constant 0 : index
    %664 = vector.load %arg6[%c144_463, %c0_464] : memref<288x512xf32, #tpu.memory_space<vmem>>, vector<16x512xf32>
    tpu.vector_store %arg6[%c144_463, %c0_464], %663 {strides = array<i32>} : memref<288x512xf32, #tpu.memory_space<vmem>>, vector<16x512xf32>,
    %c16_i32_465 = arith.constant 16 : i32
    %665 = tpu.dynamic_rotate %618 by %c16_i32_465 dim 1 : vector<16x512xf32>, i32 -> vector<16x512xf32>
    %c1_466 = arith.constant 1 : index
    %c0_467 = arith.constant 0 : index
    %666 = vector.load %arg3[%c1_466, %c0_467] : memref<36x512xf32, #tpu.memory_space<vmem>>, vector<1x512xf32>
    %667 = vector.broadcast %666 : vector<1x512xf32> to vector<16x512xf32>
    %668 = arith.mulf %665, %667 : vector<16x512xf32>
    %c160_468 = arith.constant 160 : index
    %c0_469 = arith.constant 0 : index
    %669 = vector.load %arg6[%c160_468, %c0_469] : memref<288x512xf32, #tpu.memory_space<vmem>>, vector<16x512xf32>
    tpu.vector_store %arg6[%c160_468, %c0_469], %668 {strides = array<i32>} : memref<288x512xf32, #tpu.memory_space<vmem>>, vector<16x512xf32>,
    %c15_i32_470 = arith.constant 15 : i32
    %670 = tpu.dynamic_rotate %618 by %c15_i32_470 dim 1 : vector<16x512xf32>, i32 -> vector<16x512xf32>
    %c2_471 = arith.constant 2 : index
    %c0_472 = arith.constant 0 : index
    %671 = vector.load %arg3[%c2_471, %c0_472] : memref<36x512xf32, #tpu.memory_space<vmem>>, vector<1x512xf32>
    %672 = vector.broadcast %671 : vector<1x512xf32> to vector<16x512xf32>
    %673 = arith.mulf %670, %672 : vector<16x512xf32>
    %c176_473 = arith.constant 176 : index
    %c0_474 = arith.constant 0 : index
    %674 = vector.load %arg6[%c176_473, %c0_474] : memref<288x512xf32, #tpu.memory_space<vmem>>, vector<16x512xf32>
    tpu.vector_store %arg6[%c176_473, %c0_474], %673 {strides = array<i32>} : memref<288x512xf32, #tpu.memory_space<vmem>>, vector<16x512xf32>,
    %c1_i32_475 = arith.constant 1 : i32
    %675 = tpu.dynamic_rotate %618 by %c1_i32_475 dim 1 : vector<16x512xf32>, i32 -> vector<16x512xf32>
    %c3_476 = arith.constant 3 : index
    %c0_477 = arith.constant 0 : index
    %676 = vector.load %arg3[%c3_476, %c0_477] : memref<36x512xf32, #tpu.memory_space<vmem>>, vector<1x512xf32>
    %677 = vector.broadcast %676 : vector<1x512xf32> to vector<16x512xf32>
    %678 = arith.mulf %675, %677 : vector<16x512xf32>
    %c192_478 = arith.constant 192 : index
    %c0_479 = arith.constant 0 : index
    %679 = vector.load %arg6[%c192_478, %c0_479] : memref<288x512xf32, #tpu.memory_space<vmem>>, vector<16x512xf32>
    tpu.vector_store %arg6[%c192_478, %c0_479], %678 {strides = array<i32>} : memref<288x512xf32, #tpu.memory_space<vmem>>, vector<16x512xf32>,
    %c208_480 = arith.constant 208 : index
    %c0_481 = arith.constant 0 : index
    %680 = vector.load %arg6[%c208_480, %c0_481] : memref<288x512xf32, #tpu.memory_space<vmem>>, vector<16x512xf32>
    tpu.vector_store %arg6[%c208_480, %c0_481], %618 {strides = array<i32>} : memref<288x512xf32, #tpu.memory_space<vmem>>, vector<16x512xf32>,
    %c511_i32_482 = arith.constant 511 : i32
    %681 = tpu.dynamic_rotate %618 by %c511_i32_482 dim 1 : vector<16x512xf32>, i32 -> vector<16x512xf32>
    %c5_483 = arith.constant 5 : index
    %c0_484 = arith.constant 0 : index
    %682 = vector.load %arg3[%c5_483, %c0_484] : memref<36x512xf32, #tpu.memory_space<vmem>>, vector<1x512xf32>
    %683 = vector.broadcast %682 : vector<1x512xf32> to vector<16x512xf32>
    %684 = arith.mulf %681, %683 : vector<16x512xf32>
    %c224_485 = arith.constant 224 : index
    %c0_486 = arith.constant 0 : index
    %685 = vector.load %arg6[%c224_485, %c0_486] : memref<288x512xf32, #tpu.memory_space<vmem>>, vector<16x512xf32>
    tpu.vector_store %arg6[%c224_485, %c0_486], %684 {strides = array<i32>} : memref<288x512xf32, #tpu.memory_space<vmem>>, vector<16x512xf32>,
    %c497_i32_487 = arith.constant 497 : i32
    %686 = tpu.dynamic_rotate %618 by %c497_i32_487 dim 1 : vector<16x512xf32>, i32 -> vector<16x512xf32>
    %c6_488 = arith.constant 6 : index
    %c0_489 = arith.constant 0 : index
    %687 = vector.load %arg3[%c6_488, %c0_489] : memref<36x512xf32, #tpu.memory_space<vmem>>, vector<1x512xf32>
    %688 = vector.broadcast %687 : vector<1x512xf32> to vector<16x512xf32>
    %689 = arith.mulf %686, %688 : vector<16x512xf32>
    %c240_490 = arith.constant 240 : index
    %c0_491 = arith.constant 0 : index
    %690 = vector.load %arg6[%c240_490, %c0_491] : memref<288x512xf32, #tpu.memory_space<vmem>>, vector<16x512xf32>
    tpu.vector_store %arg6[%c240_490, %c0_491], %689 {strides = array<i32>} : memref<288x512xf32, #tpu.memory_space<vmem>>, vector<16x512xf32>,
    %c496_i32_492 = arith.constant 496 : i32
    %691 = tpu.dynamic_rotate %618 by %c496_i32_492 dim 1 : vector<16x512xf32>, i32 -> vector<16x512xf32>
    %c7_493 = arith.constant 7 : index
    %c0_494 = arith.constant 0 : index
    %692 = vector.load %arg3[%c7_493, %c0_494] : memref<36x512xf32, #tpu.memory_space<vmem>>, vector<1x512xf32>
    %693 = vector.broadcast %692 : vector<1x512xf32> to vector<16x512xf32>
    %694 = arith.mulf %691, %693 : vector<16x512xf32>
    %c256_495 = arith.constant 256 : index
    %c0_496 = arith.constant 0 : index
    %695 = vector.load %arg6[%c256_495, %c0_496] : memref<288x512xf32, #tpu.memory_space<vmem>>, vector<16x512xf32>
    tpu.vector_store %arg6[%c256_495, %c0_496], %694 {strides = array<i32>} : memref<288x512xf32, #tpu.memory_space<vmem>>, vector<16x512xf32>,
    %c495_i32_497 = arith.constant 495 : i32
    %696 = tpu.dynamic_rotate %618 by %c495_i32_497 dim 1 : vector<16x512xf32>, i32 -> vector<16x512xf32>
    %c8_498 = arith.constant 8 : index
    %c0_499 = arith.constant 0 : index
    %697 = vector.load %arg3[%c8_498, %c0_499] : memref<36x512xf32, #tpu.memory_space<vmem>>, vector<1x512xf32>
    %698 = vector.broadcast %697 : vector<1x512xf32> to vector<16x512xf32>
    %699 = arith.mulf %696, %698 : vector<16x512xf32>
    %c272_500 = arith.constant 272 : index
    %c0_501 = arith.constant 0 : index
    %700 = vector.load %arg6[%c272_500, %c0_501] : memref<288x512xf32, #tpu.memory_space<vmem>>, vector<16x512xf32>
    tpu.vector_store %arg6[%c272_500, %c0_501], %699 {strides = array<i32>} : memref<288x512xf32, #tpu.memory_space<vmem>>, vector<16x512xf32>,
    %c2_502 = arith.constant 2 : index
    %c0_503 = arith.constant 0 : index
    %c0_504 = arith.constant 0 : index
    %701 = vector.load %arg2[%c2_502, %c0_503, %c0_504] : memref<3x16x288xf32, #tpu.memory_space<vmem>>, vector<1x16x288xf32>
    %702 = vector.shape_cast %701 : vector<1x16x288xf32> to vector<16x288xf32>
    %c0_505 = arith.constant 0 : index
    %c0_506 = arith.constant 0 : index
    %703 = vector.load %arg6[%c0_505, %c0_506] : memref<288x512xf32, #tpu.memory_space<vmem>>, vector<288x512xf32>
    %cst_507 = arith.constant dense<0.000000e+00> : vector<16x512xf32>
    %704 = tpu.matmul %702, %703, %cst_507 {dimension_numbers = #tpu.dot_dimension_numbers<[1], [0], [0], [1], [0, 0, 1, 1], [], []>} : vector<16x288xf32>, vector<288x512xf32>, vector<16x512xf32> -> vector<16x512xf32>
    %705 = arith.mulf %704, %704 : vector<16x512xf32>
    %706 = tpu.concatenate %704, %705 in 0 : vector<16x512xf32>, vector<16x512xf32> -> vector<32x512xf32>
    %cst_508 = arith.constant dense<0.000000e+00> : vector<32xf32>
    %707 = vector.multi_reduction <add>, %706, %cst_508 [1] : vector<32x512xf32> to vector<32xf32>
    %708 = vector.shape_cast %707 : vector<32xf32> to vector<32x1xf32>
    %709 = vector.extract_strided_slice %708 {offsets = [0, 0], sizes = [16, 1], strides = [1, 1]} : vector<32x1xf32> to vector<16x1xf32>
    %cst_509 = arith.constant 0.001953125 : f32
    %710 = vector.broadcast %cst_509 : f32 to vector<16x1xf32>
    %711 = arith.mulf %709, %710 : vector<16x1xf32>
    %712 = vector.extract_strided_slice %708 {offsets = [16, 0], sizes = [16, 1], strides = [1, 1]} : vector<32x1xf32> to vector<16x1xf32>
    %cst_510 = arith.constant 0.001953125 : f32
    %713 = vector.broadcast %cst_510 : f32 to vector<16x1xf32>
    %714 = arith.mulf %712, %713 : vector<16x1xf32>
    %715 = arith.mulf %711, %711 : vector<16x1xf32>
    %716 = arith.subf %714, %715 : vector<16x1xf32>
    %cst_511 = arith.constant 0.000000e+00 : f32
    %717 = vector.broadcast %cst_511 : f32 to vector<16x1xf32>
    %718 = arith.maximumf %716, %717 : vector<16x1xf32>
    %719 = vector.broadcast %711 : vector<16x1xf32> to vector<16x512xf32>
    %720 = arith.subf %704, %719 : vector<16x512xf32>
    %cst_512 = arith.constant 9.99999974E-6 : f32
    %721 = vector.broadcast %cst_512 : f32 to vector<16x1xf32>
    %722 = arith.addf %718, %721 : vector<16x1xf32>
    %723 = math.rsqrt %722 : vector<16x1xf32>
    %724 = vector.broadcast %723 : vector<16x1xf32> to vector<16x512xf32>
    %725 = arith.mulf %720, %724 : vector<16x512xf32>
    %cst_513 = arith.constant 0.000000e+00 : f32
    %726 = vector.broadcast %cst_513 : f32 to vector<16x512xf32>
    %727 = arith.cmpf ogt, %725, %726 : vector<16x512xf32>
    %cst_514 = arith.constant 0.000000e+00 : f32
    %728 = vector.broadcast %cst_514 : f32 to vector<16x512xf32>
    %729 = arith.minimumf %725, %728 : vector<16x512xf32>
    %730 = math.exp %729 : vector<16x512xf32>
    %cst_515 = arith.constant 1.000000e+00 : f32
    %731 = vector.broadcast %cst_515 : f32 to vector<16x512xf32>
    %732 = arith.subf %730, %731 : vector<16x512xf32>
    %733 = arith.select %727, %725, %732 : vector<16x512xi1>, vector<16x512xf32>
    %c0_516 = arith.constant 0 : index
    %c0_517 = arith.constant 0 : index
    %c0_518 = arith.constant 0 : index
    %734 = vector.load %arg5[%c0_516, %c0_517, %c0_518] : memref<4x16x512xf32, #tpu.memory_space<vmem>>, vector<1x16x512xf32>
    %735 = vector.shape_cast %734 : vector<1x16x512xf32> to vector<16x512xf32>
    %736 = arith.addf %733, %735 : vector<16x512xf32>
    %c0_519 = arith.constant 0 : index
    %c0_520 = arith.constant 0 : index
    %737 = vector.load %arg4[%c0_519, %c0_520] : memref<16x512xf32, #tpu.memory_space<vmem>>, vector<16x512xf32>
    tpu.vector_store %arg4[%c0_519, %c0_520], %736 {strides = array<i32>} : memref<16x512xf32, #tpu.memory_space<vmem>>, vector<16x512xf32>,
    return
  }
}

</mosaic_0001>

<bundles_post_ra>
// kernel: res_block_uf.1
= control target key start
LH: loop header
LB: loop body
LE: loop exit
PB: predicated region body
PF: predicated region fallthrough
CT: control target
= control target key end

     0   :  { %9 = vsyncpa [#allocation5], 0  ;;  %s9212_s15 = smov [#allocation4]   ;;  %s15123_s0 = inlined_call_operand.vmem [shape: f32[16,512], index: 0, kind: input, shape index: {}]   ;;  %s15124_s1 = inlined_call_operand.vmem [shape: f32[5,16,144], index: 1, kind: input, shape index: {}]   ;;  %s15125_s2 = inlined_call_operand.hbm [shape: f32[3,16,288], index: 2, kind: input, shape index: {}]   ;;  %s15126_s3 = inlined_call_operand.vmem [shape: f32[36,512], index: 3, kind: input, shape index: {}]   ;;  %s15127_s4 = inlined_call_operand.vmem [shape: f32[16,512], index: 4, kind: output, shape index: {}]  }
   0x1   :  { %s19_s16 = sshll.u32 %s9212_s15, 4  ;;  %s20_s16 = int_to_ptr.vmem [resolvable:$true] %s19_s16 }
   0x2   :  { %s9198_s17 = scalar_lea.vmem %s20_s16, 2304  ;;  %p9203_p1 = scmp.lt.s32.totalorder %s20_s16, %s20_s16 }
   0x3   :  { %p9199_p0 = scmp.ne.s32.totalorder %s20_s16, %s9198_s17  ;;  %p9204_p2 = scmp.lt.s32.totalorder %s9198_s17, %s9198_s17 }
   0x5   :  { %p9205_p3 = por %p9204_p2, %p9203_p1 }
   0x7   :  { %p9206_p4 = pnand %p9205_p3, %p9199_p0 }
   0x9   :  { %9209 = shalt.err (!%p9206_p4)
}
   0xa   :  { %s9213_s18 = smov 384   ;;  %s9214_s19 = smov 24  }
   0xb   :  { %25 = dma.hbm_to_vmem [thread:$0]  %s15125_s2, 2304, %s20_s16, [#allocation5], %s9213_s18, %s9213_s18, %s9214_s19  }
   0xc   :  { %9210 = dma.done.wait [#allocation5], 2304  }
   0xd   :  { %9211 = vsyncadd [#allocation5], 4294964992  ;;  %v9270_v0 = vld [vmem:[%s15123_s0 + $0x28] sm:$0xff]  ;;  %v9275_v1 = vld [vmem:[%s15123_s0 + $0x20] sm:$0xff]  ;;  %s9215_s26 = smov 112   ;;  %s9216_s8 = smov 113   ;;  %v55_v8 = vlaneseq }
   0xe   :  { %438 = vrot.lane.b32.xlu0 %v9270_v0, %s9215_s26  ;;  %434 = vrot.lane.b32.xlu1 %v9275_v1, %s9215_s26  ;;  %v9284_v2 = vld [vmem:[%s15123_s0 + $0x30] sm:$0xff]  ;;  %v9289_v3 = vld [vmem:[%s15123_s0 + $0x8] sm:$0xff]  ;;  %s9217_s13 = smov 127   ;;  %s9219_s14 = smov 15   ;;  %vm636_vm0 = vcmask 130048  }
   0xf   :  { %v9298_v4 = vld [vmem:[%s15123_s0 + $0x10] sm:$0xff]  ;;  %v9303_v5 = vld [vmem:[%s15123_s0] sm:$0xff]  ;;  %v9316_v6 = vld [vmem:[%s15123_s0 + $0x38] sm:$0xff]  ;;  %s9220_s15 = smov 16   ;;  %s9221_s16 = smov 17   ;;  %v69_v9 = vshrl.u32 %v55_v8, 7 }
  0x10   :  { %v9329_v7 = vld [vmem:[%s15123_s0 + $0x18] sm:$0xff]  ;;  %s9218_s0 = smov 1   ;;  %s9222_s17 = smov 111   ;;  %v561_v10 = vld [vmem:[%s15124_s1 + $0x8] sm:$0xff]  ;;  %v9422_v11 = vand.u32 127, %v55_v8 }
  0x11   :  { %8802 = vmatprep.mubr.msk.f32.mxu0 %vm636_vm0, %v561_v10  ;;  %8804 = vmatprep.mubr.msk.f32.mxu1 %vm636_vm0, %v561_v10  ;;  %v9430_v12 = vsub.s32 1, %v69_v9  ;;  %v9432_v13 = vsub.s32 0, %v69_v9  ;;  %v8800_v16 = vld [vmem:[%s15126_s3 + $0x7] ss:$8 sm:$0xf]  ;;  %v9455_v28 = vsub.s32 2, %v69_v9 }
  0x12   :  { %442 = vrot.lane.b32.xlu0 %v9284_v2, %s9215_s26  ;;  %436 = vrot.lane.b32.xlu1 %v9289_v3, %s9215_s26  ;;  %vm15164_vm1 = vcmp.lt.s32.totalorder %v9422_v11, 112  ;;  %v8799_v25 = vld [vmem:[%s15126_s3 + $0x6] ss:$8 sm:$0xf]  ;;  %v9457_v29 = vsub.s32 3, %v69_v9  ;;  %vm15140_vm2 = vcmp.lt.s32.totalorder %v9422_v11, 113 }
  0x13   :  { %v467_v17 = vrot.slane %v8800_v16, %v9430_v12  ;;  %v463_v18 = vrot.slane %v8800_v16, %v9432_v13  ;;  %v403_v34 = vrot.slane %v8799_v25, %v9430_v12  ;;  %v399_v40 = vrot.slane %v8799_v25, %v9432_v13  ;;  %v8798_v54 = vld [vmem:[%s15126_s3 + $0x5] ss:$8 sm:$0xf]  ;;  %s9223_s2 = smov 96   ;;  %s9224_s27 = smov 98  }
  0x14   :  { %v475_v39 = vrot.slane %v8800_v16, %v9457_v29  ;;  %v471_v41 = vrot.slane %v8800_v16, %v9455_v28  ;;  %vm15163_vm3 = vcmp.lt.s32.totalorder %v9422_v11, 127  ;;  %v339_v63 = vrot.slane %v8798_v54, %v9430_v12  ;;  %s9225_s28 = smov 126   ;;  %s9226_s29 = smov 2  }
  0x15   :  { %v411_v16 = vrot.slane %v8799_v25, %v9457_v29  ;;  %vm15143_vm4 = vcmp.lt.s32.totalorder %v9422_v11, 1  ;;  %vm15146_vm5 = vcmp.lt.s32.totalorder %v9422_v11, 15  ;;  %vm15142_vm6 = vcmp.lt.s32.totalorder %v9422_v11, 16  ;;  %s9227_s30 = smov 30   ;;  %s9228_s5 = smov 32  }
  0x16   :  { %440 = vrot.lane.b32.xlu0 %v9298_v4, %s9215_s26  ;;  %432 = vrot.lane.b32.xlu1 %v9303_v5, %s9215_s26  ;;  %vm15141_vm7 = vcmp.lt.s32.totalorder %v9422_v11, 17  ;;  %vm15165_vm8 = vcmp.lt.s32.totalorder %v9422_v11, 111  ;;  %s9229_s6 = smov 34   ;;  %s9230_s7 = smov 94  }
  0x17   :  { %s9231_s9 = smov 64   ;;  %s9232_s10 = smov 68  }
  0x18   :  { %s9233_s11 = smov 124   ;;  %s9234_s12 = smov 4  }
  0x19   :  { %s9235_s18 = smov 60   ;;  %s9236_s24 = smov 8  }
  0x1a   :  { %374 = vrot.lane.b32.xlu0 %v9270_v0, %s9216_s8  ;;  %378 = vrot.lane.b32.xlu1 %v9284_v2, %s9216_s8  ;;  %s9237_s25 = smov 120  }
  0x1e   :  { %446 = vrot.lane.b32.xlu0 %v9316_v6, %s9215_s26  ;;  %370 = vrot.lane.b32.xlu1 %v9275_v1, %s9216_s8 }
  0x22   :  { %372 = vrot.lane.b32.xlu0 %v9289_v3, %s9216_s8  ;;  %376 = vrot.lane.b32.xlu1 %v9298_v4, %s9216_s8 }
  0x26   :  { %444 = vrot.lane.b32.xlu0 %v9329_v7, %s9215_s26  ;;  %368 = vrot.lane.b32.xlu1 %v9303_v5, %s9216_s8 }
  0x2a   :  { %310 = vrot.lane.b32.xlu0 %v9270_v0, %s9217_s13  ;;  %314 = vrot.lane.b32.xlu1 %v9284_v2, %s9217_s13 }
  0x2e   :  { %382 = vrot.lane.b32.xlu0 %v9316_v6, %s9216_s8  ;;  %306 = vrot.lane.b32.xlu1 %v9275_v1, %s9217_s13 }
  0x32   :  { %308 = vrot.lane.b32.xlu0 %v9289_v3, %s9217_s13  ;;  %312 = vrot.lane.b32.xlu1 %v9298_v4, %s9217_s13 }
  0x36   :  { %380 = vrot.lane.b32.xlu0 %v9329_v7, %s9216_s8  ;;  %304 = vrot.lane.b32.xlu1 %v9303_v5, %s9217_s13 }
  0x3a   :  { %318 = vrot.lane.b32.xlu0 %v9316_v6, %s9217_s13  ;;  %316 = vrot.lane.b32.xlu1 %v9329_v7, %s9217_s13 }
  0x3e   :  { %234 = vrot.lane.b32.xlu0 %v9275_v1, %s9218_s0  ;;  %238 = vrot.lane.b32.xlu1 %v9270_v0, %s9218_s0 }
  0x42   :  { %246 = vrot.lane.b32.xlu0 %v9316_v6, %s9218_s0  ;;  %232 = vrot.lane.b32.xlu1 %v9303_v5, %s9218_s0 }
  0x46   :  { %236 = vrot.lane.b32.xlu0 %v9289_v3, %s9218_s0  ;;  %244 = vrot.lane.b32.xlu1 %v9329_v7, %s9218_s0 }
  0x4a   :  { %170 = vrot.lane.b32.xlu0 %v9275_v1, %s9219_s14  ;;  %174 = vrot.lane.b32.xlu1 %v9270_v0, %s9219_s14 }
  0x4e   :  { %242 = vrot.lane.b32.xlu0 %v9284_v2, %s9218_s0  ;;  %182 = vrot.lane.b32.xlu1 %v9316_v6, %s9219_s14 }
  0x52   :  { %168 = vrot.lane.b32.xlu0 %v9303_v5, %s9219_s14  ;;  %172 = vrot.lane.b32.xlu1 %v9289_v3, %s9219_s14 }
  0x56   :  { %240 = vrot.lane.b32.xlu0 %v9298_v4, %s9218_s0  ;;  %180 = vrot.lane.b32.xlu1 %v9329_v7, %s9219_s14 }
  0x5a   :  { %106 = vrot.lane.b32.xlu0 %v9275_v1, %s9220_s15  ;;  %110 = vrot.lane.b32.xlu1 %v9270_v0, %s9220_s15 }
  0x5e   :  { %178 = vrot.lane.b32.xlu0 %v9284_v2, %s9219_s14  ;;  %118 = vrot.lane.b32.xlu1 %v9316_v6, %s9220_s15 }
  0x62   :  { %104 = vrot.lane.b32.xlu0 %v9303_v5, %s9220_s15  ;;  %108 = vrot.lane.b32.xlu1 %v9289_v3, %s9220_s15 }
  0x66   :  { %176 = vrot.lane.b32.xlu0 %v9298_v4, %s9219_s14  ;;  %116 = vrot.lane.b32.xlu1 %v9329_v7, %s9220_s15 }
  0x6a   :  { %41 = vrot.lane.b32.xlu0 %v9275_v1, %s9221_s16  ;;  %45 = vrot.lane.b32.xlu1 %v9270_v0, %s9221_s16 }
  0x6e   :  { %114 = vrot.lane.b32.xlu0 %v9284_v2, %s9220_s15  ;;  %53 = vrot.lane.b32.xlu1 %v9316_v6, %s9221_s16 }
  0x72   :  { %39 = vrot.lane.b32.xlu0 %v9303_v5, %s9221_s16  ;;  %43 = vrot.lane.b32.xlu1 %v9289_v3, %s9221_s16 }
  0x76   :  { %112 = vrot.lane.b32.xlu0 %v9298_v4, %s9220_s15  ;;  %51 = vrot.lane.b32.xlu1 %v9329_v7, %s9221_s16 }
  0x7a   :  { %49 = vrot.lane.b32.xlu0 %v9284_v2, %s9221_s16  ;;  %502 = vrot.lane.b32.xlu1 %v9270_v0, %s9222_s17 }
  0x7e   :  { %506 = vrot.lane.b32.xlu0 %v9284_v2, %s9222_s17  ;;  %498 = vrot.lane.b32.xlu1 %v9275_v1, %s9222_s17 }
  0x80   :  { %v439_v14 = vpop.permute.xlu0 %438  ;;  %v435_v15 = vpop.permute.xlu1 %434 }
  0x81   :  { %v454_v21 = vsel %vm15164_vm1, %v435_v15, %v439_v14 }
  0x82   :  { %47 = vrot.lane.b32.xlu0 %v9298_v4, %s9221_s16  ;;  %500 = vrot.lane.b32.xlu1 %v9289_v3, %s9222_s17  ;;  %v484_v24 = vmul.f32 %v463_v18, %v454_v21 }
  0x84   :  { %v443_v19 = vpop.permute.xlu0 %442  ;;  %v437_v20 = vpop.permute.xlu1 %436 }
  0x85   :  { %v452_v22 = vsel %vm15164_vm1, %v439_v14, %v443_v19 }
  0x86   :  { %504 = vrot.lane.b32.xlu0 %v9298_v4, %s9222_s17  ;;  %496 = vrot.lane.b32.xlu1 %v9303_v5, %s9222_s17  ;;  %v485_v23 = vmul.f32 %v467_v17, %v452_v22 }
  0x88   :  { %643 = vmatprep.subr.mxu0 %v485_v23  ;;  %v441_v26 = vpop.permute.xlu0 %440  ;;  %v433_v27 = vpop.permute.xlu1 %432 }
  0x89   :  { %v451_v30 = vsel %vm15164_vm1, %v437_v20, %v441_v26  ;;  %v453_v31 = vsel %vm15164_vm1, %v433_v27, %v437_v20  ;;  %644 = vmatpush1.msra.mxu0 %v484_v24 }
  0x8a   :  { %510 = vrot.lane.b32.xlu0 %v9316_v6, %s9222_s17  ;;  %508 = vrot.lane.b32.xlu1 %v9329_v7, %s9222_s17  ;;  %v481_v32 = vmul.f32 %v467_v17, %v451_v30  ;;  %v480_v33 = vmul.f32 %v463_v18, %v453_v31  ;;  %v407_v17 = vrot.slane %v8799_v25, %v9455_v28 }
  0x8c   :  { %v375_v35 = vpop.permute.xlu0 %374  ;;  %645 = vmatprep.subr.mxu0 %v481_v32  ;;  %v379_v36 = vpop.permute.xlu1 %378 }
  0x8d   :  { %v388_v37 = vsel %vm15140_vm2, %v375_v35, %v379_v36  ;;  %646 = vmatpush1.msra.mxu0 %v480_v33 }
  0x8e   :  { %v421_v38 = vmul.f32 %v403_v34, %v388_v37  ;;  %v347_v37 = vrot.slane %v8798_v54, %v9457_v29 }
  0x90   :  { %v447_v42 = vpop.permute.xlu0 %446  ;;  %647 = vmatprep.subr.mxu0 %v421_v38  ;;  %v371_v43 = vpop.permute.xlu1 %370 }
  0x91   :  { %v390_v44 = vsel %vm15140_vm2, %v371_v43, %v375_v35  ;;  %v456_v45 = vsel %vm15164_vm1, %v447_v42, %v435_v15  ;;  %v450_v46 = vsel %vm15164_vm1, %v443_v19, %v447_v42  ;;  %v335_v15 = vrot.slane %v8798_v54, %v9432_v13  ;;  %v8797_v42 = vld [vmem:[%s15126_s3 + $0x3] ss:$8 sm:$0xf] }
  0x92   :  { %v487_v47 = vmul.f32 %v475_v39, %v456_v45  ;;  %v420_v48 = vmul.f32 %v399_v40, %v390_v44  ;;  %v486_v49 = vmul.f32 %v471_v41, %v450_v46 }
  0x94   :  { %720 = vmatprep.subr.mxu1 %v487_v47  ;;  %v373_v50 = vpop.permute.xlu0 %372  ;;  %648 = vmatpush1.msra.mxu0 %v420_v48  ;;  %v377_v51 = vpop.permute.xlu1 %376 }
  0x95   :  { %v387_v52 = vsel %vm15140_vm2, %v373_v50, %v377_v51  ;;  %721 = vmatpush1.msra.mxu1 %v486_v49 }
  0x96   :  { %v417_v53 = vmul.f32 %v403_v34, %v387_v52 }
  0x98   :  { %v445_v55 = vpop.permute.xlu0 %444  ;;  %649 = vmatprep.subr.mxu0 %v417_v53  ;;  %v369_v56 = vpop.permute.xlu1 %368 }
  0x99   :  { %v449_v57 = vsel %vm15164_vm1, %v441_v26, %v445_v55  ;;  %v455_v58 = vsel %vm15164_vm1, %v445_v55, %v433_v27  ;;  %v389_v59 = vsel %vm15140_vm2, %v369_v56, %v373_v50 }
  0x9a   :  { %v416_v60 = vmul.f32 %v399_v40, %v389_v59  ;;  %v483_v61 = vmul.f32 %v475_v39, %v455_v58  ;;  %v482_v62 = vmul.f32 %v471_v41, %v449_v57  ;;  %v343_v41 = vrot.slane %v8798_v54, %v9455_v28 }
  0x9b   :  { %v263_v57 = vrot.slane %v8797_v42, %v9432_v13 }
  0x9c   :  { %v311_v8 = vpop.permute.xlu0 %310  ;;  %650 = vmatpush1.msra.mxu0 %v416_v60  ;;  %722 = vmatprep.subr.mxu1 %v483_v61  ;;  %v315_v9 = vpop.permute.xlu1 %314 }
  0x9d   :  { %v324_v10 = vsel %vm15163_vm3, %v311_v8, %v315_v9  ;;  %723 = vmatpush1.msra.mxu1 %v482_v62 }
  0x9e   :  { %v357_v14 = vmul.f32 %v339_v63, %v324_v10 }
  0xa0   :  { %v383_v18 = vpop.permute.xlu0 %382  ;;  %651 = vmatprep.subr.mxu0 %v357_v14  ;;  %v307_v19 = vpop.permute.xlu1 %306 }
  0xa1   :  { %v386_v20 = vsel %vm15140_vm2, %v379_v36, %v383_v18  ;;  %v392_v21 = vsel %vm15140_vm2, %v383_v18, %v371_v43  ;;  %v326_v22 = vsel %vm15163_vm3, %v307_v19, %v311_v8 }
  0xa2   :  { %v356_v23 = vmul.f32 %v335_v15, %v326_v22  ;;  %v423_v24 = vmul.f32 %v411_v16, %v392_v21  ;;  %v422_v26 = vmul.f32 %v407_v17, %v386_v20 }
  0xa4   :  { %v309_v27 = vpop.permute.xlu0 %308  ;;  %652 = vmatpush1.msra.mxu0 %v356_v23  ;;  %724 = vmatprep.subr.mxu1 %v423_v24  ;;  %v313_v30 = vpop.permute.xlu1 %312 }
  0xa5   :  { %v323_v25 = vsel %vm15163_vm3, %v309_v27, %v313_v30  ;;  %725 = vmatpush1.msra.mxu1 %v422_v26 }
  0xa6   :  { %v353_v31 = vmul.f32 %v339_v63, %v323_v25 }
  0xa8   :  { %v381_v32 = vpop.permute.xlu0 %380  ;;  %653 = vmatprep.subr.mxu0 %v353_v31  ;;  %v305_v33 = vpop.permute.xlu1 %304  ;;  %v8795_v31 = vld [vmem:[%s15126_s3 + $0x1] ss:$8 sm:$0xf] }
  0xa9   :  { %v385_v34 = vsel %vm15140_vm2, %v377_v51, %v381_v32  ;;  %v391_v35 = vsel %vm15140_vm2, %v381_v32, %v369_v56  ;;  %v325_v36 = vsel %vm15163_vm3, %v305_v33, %v309_v27  ;;  %v267_v51 = vrot.slane %v8797_v42, %v9430_v12 }
  0xaa   :  { %v352_v38 = vmul.f32 %v335_v15, %v325_v36  ;;  %v419_v39 = vmul.f32 %v411_v16, %v391_v35  ;;  %v418_v40 = vmul.f32 %v407_v17, %v385_v34  ;;  %v275_v15 = vrot.slane %v8797_v42, %v9457_v29 }
  0xab   :  { %v271_v16 = vrot.slane %v8797_v42, %v9455_v28 }
  0xac   :  { %v319_v43 = vpop.permute.xlu0 %318  ;;  %654 = vmatpush1.msra.mxu0 %v352_v38  ;;  %726 = vmatprep.subr.mxu1 %v419_v39  ;;  %v317_v44 = vpop.permute.xlu1 %316 }
  0xad   :  { %v322_v45 = vsel %vm15163_vm3, %v315_v9, %v319_v43  ;;  %v328_v46 = vsel %vm15163_vm3, %v319_v43, %v307_v19  ;;  %v327_v47 = vsel %vm15163_vm3, %v317_v44, %v305_v33  ;;  %727 = vmatpush1.msra.mxu1 %v418_v40  ;;  %v321_v48 = vsel %vm15163_vm3, %v313_v30, %v317_v44 }
  0xae   :  { %655 = vmatprep.subr.mxu0 %v9270_v0  ;;  %v359_v49 = vmul.f32 %v347_v37, %v328_v46  ;;  %v358_v50 = vmul.f32 %v343_v41, %v322_v45  ;;  %v355_v54 = vmul.f32 %v347_v37, %v327_v47  ;;  %v354_v56 = vmul.f32 %v343_v41, %v321_v48 }
  0xaf   :  { %656 = vmatpush1.msra.mxu0 %v9275_v1  ;;  %v139_v40 = vrot.slane %v8795_v31, %v9430_v12  ;;  %v135_v45 = vrot.slane %v8795_v31, %v9432_v13 }
  0xb0   :  { %v235_v52 = vpop.permute.xlu0 %234  ;;  %728 = vmatprep.subr.mxu1 %v359_v49  ;;  %v239_v53 = vpop.permute.xlu1 %238  ;;  %657 = vmatprep.subr.mxu0 %v9289_v3 }
  0xb1   :  { %v254_v55 = vsel %vm15143_vm4, %v235_v52, %v239_v53  ;;  %729 = vmatpush1.msra.mxu1 %v358_v50  ;;  %658 = vmatpush1.msra.mxu0 %v9303_v5  ;;  %v8796_v5 = vld [vmem:[%s15126_s3 + $0x2] ss:$8 sm:$0xf] }
  0xb2   :  { %730 = vmatprep.subr.mxu1 %v355_v54  ;;  %v285_v0 = vmul.f32 %v267_v51, %v254_v55  ;;  %v199_v14 = vrot.slane %v8796_v5, %v9432_v13  ;;  %v211_v46 = vrot.slane %v8796_v5, %v9457_v29  ;;  %v207_v47 = vrot.slane %v8796_v5, %v9455_v28 }
  0xb3   :  { %731 = vmatpush1.msra.mxu1 %v354_v56 }
  0xb4   :  { %v247_v58 = vpop.permute.xlu0 %246  ;;  %659 = vmatprep.subr.mxu0 %v285_v0  ;;  %v233_v1 = vpop.permute.xlu1 %232  ;;  %732 = vmatprep.subr.mxu1 %v9316_v6 }
  0xb5   :  { %v256_v3 = vsel %vm15143_vm4, %v247_v58, %v235_v52  ;;  %733 = vmatpush1.msra.mxu1 %v9284_v2 }
  0xb6   :  { %v284_v59 = vmul.f32 %v263_v57, %v256_v3  ;;  %734 = vmatprep.subr.mxu1 %v9329_v7  ;;  %v203_v7 = vrot.slane %v8796_v5, %v9430_v12 }
  0xb7   :  { %735 = vmatpush1.msra.mxu1 %v9298_v4 }
  0xb8   :  { %v237_v60 = vpop.permute.xlu0 %236  ;;  %660 = vmatpush1.msra.mxu0 %v284_v59  ;;  %v245_v61 = vpop.permute.xlu1 %244 }
  0xb9   :  { %v253_v6 = vsel %vm15143_vm4, %v233_v1, %v237_v60  ;;  %v255_v62 = vsel %vm15143_vm4, %v245_v61, %v233_v1  ;;  %v66_v1 = vld [vmem:[%s15126_s3] ss:$8 sm:$0xf] }
  0xba   :  { %v281_v63 = vmul.f32 %v267_v51, %v253_v6  ;;  %v280_v2 = vmul.f32 %v263_v57, %v255_v62 }
  0xbc   :  { %v171_v8 = vpop.permute.xlu0 %170  ;;  %661 = vmatprep.subr.mxu0 %v281_v63  ;;  %v175_v9 = vpop.permute.xlu1 %174 }
  0xbd   :  { %v190_v4 = vsel %vm15146_vm5, %v171_v8, %v175_v9  ;;  %662 = vmatpush1.msra.mxu0 %v280_v2  ;;  %v75_v2 = vrot.slane %v66_v1, %v9430_v12 }
  0xbe   :  { %v221_v10 = vmul.f32 %v203_v7, %v190_v4 }
  0xc0   :  { %v243_v17 = vpop.permute.xlu0 %242  ;;  %663 = vmatprep.subr.mxu0 %v221_v10  ;;  %v183_v18 = vpop.permute.xlu1 %182  ;;  %v71_v10 = vrot.slane %v66_v1, %v9432_v13 }
  0xc1   :  { %v250_v19 = vsel %vm15143_vm4, %v243_v17, %v247_v58  ;;  %v252_v20 = vsel %vm15143_vm4, %v239_v53, %v243_v17  ;;  %v192_v21 = vsel %vm15146_vm5, %v183_v18, %v171_v8 }
  0xc2   :  { %v220_v22 = vmul.f32 %v199_v14, %v192_v21  ;;  %v287_v23 = vmul.f32 %v275_v15, %v250_v19  ;;  %v286_v24 = vmul.f32 %v271_v16, %v252_v20 }
  0xc4   :  { %v169_v26 = vpop.permute.xlu0 %168  ;;  %664 = vmatpush1.msra.mxu0 %v220_v22  ;;  %736 = vmatprep.subr.mxu1 %v287_v23  ;;  %v173_v27 = vpop.permute.xlu1 %172 }
  0xc5   :  { %v189_v30 = vsel %vm15146_vm5, %v169_v26, %v173_v27  ;;  %737 = vmatpush1.msra.mxu1 %v286_v24 }
  0xc6   :  { %v217_v25 = vmul.f32 %v203_v7, %v189_v30 }
  0xc8   :  { %v241_v32 = vpop.permute.xlu0 %240  ;;  %665 = vmatprep.subr.mxu0 %v217_v25  ;;  %v181_v33 = vpop.permute.xlu1 %180 }
  0xc9   :  { %v249_v34 = vsel %vm15143_vm4, %v241_v32, %v245_v61  ;;  %v251_v35 = vsel %vm15143_vm4, %v237_v60, %v241_v32  ;;  %v191_v36 = vsel %vm15146_vm5, %v181_v33, %v169_v26 }
  0xca   :  { %v216_v37 = vmul.f32 %v199_v14, %v191_v36  ;;  %v283_v38 = vmul.f32 %v275_v15, %v249_v34  ;;  %v282_v39 = vmul.f32 %v271_v16, %v251_v35  ;;  %v147_v14 = vrot.slane %v8795_v31, %v9457_v29 }
  0xcb   :  { %v143_v15 = vrot.slane %v8795_v31, %v9455_v28  ;;  %v83_v35 = vrot.slane %v66_v1, %v9457_v29 }
  0xcc   :  { %v107_v41 = vpop.permute.xlu0 %106  ;;  %666 = vmatpush1.msra.mxu0 %v216_v37  ;;  %738 = vmatprep.subr.mxu1 %v283_v38  ;;  %v111_v42 = vpop.permute.xlu1 %110 }
  0xcd   :  { %v126_v43 = vsel %vm15142_vm6, %v107_v41, %v111_v42  ;;  %739 = vmatpush1.msra.mxu1 %v282_v39  ;;  %v79_v39 = vrot.slane %v66_v1, %v9455_v28 }
  0xce   :  { %v157_v44 = vmul.f32 %v139_v40, %v126_v43 }
  0xd0   :  { %v179_v48 = vpop.permute.xlu0 %178  ;;  %667 = vmatprep.subr.mxu0 %v157_v44  ;;  %v119_v49 = vpop.permute.xlu1 %118 }
  0xd1   :  { %v186_v50 = vsel %vm15146_vm5, %v179_v48, %v183_v18  ;;  %v188_v51 = vsel %vm15146_vm5, %v175_v9, %v179_v48  ;;  %v128_v52 = vsel %vm15142_vm6, %v119_v49, %v107_v41 }
  0xd2   :  { %v156_v53 = vmul.f32 %v135_v45, %v128_v52  ;;  %v223_v54 = vmul.f32 %v211_v46, %v186_v50  ;;  %v222_v55 = vmul.f32 %v207_v47, %v188_v51 }
  0xd4   :  { %v105_v56 = vpop.permute.xlu0 %104  ;;  %668 = vmatpush1.msra.mxu0 %v156_v53  ;;  %740 = vmatprep.subr.mxu1 %v223_v54  ;;  %v109_v0 = vpop.permute.xlu1 %108 }
  0xd5   :  { %v125_v57 = vsel %vm15142_vm6, %v105_v56, %v109_v0  ;;  %741 = vmatpush1.msra.mxu1 %v222_v55 }
  0xd6   :  { %v153_v58 = vmul.f32 %v139_v40, %v125_v57  ;;  %v8801_v40 = vld [vmem:[%s15126_s3 + $0x20] ss:$8 sm:$0xf] }
  0xd7   :  { %v527_v48 = vrot.slane %v8801_v40, %v9432_v13 }
  0xd8   :  { %v177_v3 = vpop.permute.xlu0 %176  ;;  %669 = vmatprep.subr.mxu0 %v153_v58  ;;  %v117_v59 = vpop.permute.xlu1 %116 }
  0xd9   :  { %v185_v5 = vsel %vm15146_vm5, %v177_v3, %v181_v33  ;;  %v187_v60 = vsel %vm15146_vm5, %v173_v27, %v177_v3  ;;  %v127_v61 = vsel %vm15142_vm6, %v117_v59, %v105_v56 }
  0xda   :  { %v152_v6 = vmul.f32 %v135_v45, %v127_v61  ;;  %v219_v62 = vmul.f32 %v211_v46, %v185_v5  ;;  %v218_v63 = vmul.f32 %v207_v47, %v187_v60  ;;  %v531_v47 = vrot.slane %v8801_v40, %v9430_v12 }
  0xdc   :  { %v42_v7 = vpop.permute.xlu0 %41  ;;  %670 = vmatpush1.msra.mxu0 %v152_v6  ;;  %742 = vmatprep.subr.mxu1 %v219_v62  ;;  %v46_v8 = vpop.permute.xlu1 %45  ;;  %v539_v62 = vrot.slane %v8801_v40, %v9457_v29 }
  0xdd   :  { %v63_v9 = vsel %vm15141_vm7, %v42_v7, %v46_v8  ;;  %743 = vmatpush1.msra.mxu1 %v218_v63  ;;  %v535_v63 = vrot.slane %v8801_v40, %v9455_v28 }
  0xde   :  { %v93_v4 = vmul.f32 %v75_v2, %v63_v9  ;;  %v563_v9 = vld [vmem:[%s15124_s1 + $0x18] sm:$0xff] }
  0xe0   :  { %v115_v16 = vpop.permute.xlu0 %114  ;;  %671 = vmatprep.subr.mxu0 %v93_v4  ;;  %v54_v17 = vpop.permute.xlu1 %53 }
  0xe1   :  { %v122_v18 = vsel %vm15142_vm6, %v115_v16, %v119_v49  ;;  %v124_v19 = vsel %vm15142_vm6, %v111_v42, %v115_v16  ;;  %v65_v20 = vsel %vm15141_vm7, %v54_v17, %v42_v7 }
  0xe2   :  { %v92_v21 = vmul.f32 %v71_v10, %v65_v20  ;;  %v159_v22 = vmul.f32 %v147_v14, %v122_v18  ;;  %v158_v23 = vmul.f32 %v143_v15, %v124_v19  ;;  %v562_v18 = vld [vmem:[%s15124_s1 + $0x10] sm:$0xff] }
  0xe4   :  { %v40_v24 = vpop.permute.xlu0 %39  ;;  %672 = vmatpush1.msra.mxu0 %v92_v21  ;;  %744 = vmatprep.subr.mxu1 %v159_v22  ;;  %v44_v26 = vpop.permute.xlu1 %43 }
  0xe5   :  { %v62_v27 = vsel %vm15141_vm7, %v40_v24, %v44_v26  ;;  %745 = vmatpush1.msra.mxu1 %v158_v23 }
  0xe6   :  { %v89_v30 = vmul.f32 %v75_v2, %v62_v27  ;;  %v560_v2 = vld [vmem:[%s15124_s1] sm:$0xff] }
  0xe8   :  { %v113_v25 = vpop.permute.xlu0 %112  ;;  %673 = vmatprep.subr.mxu0 %v89_v30  ;;  %v52_v31 = vpop.permute.xlu1 %51 }
  0xe9   :  { %v121_v32 = vsel %vm15142_vm6, %v113_v25, %v117_v59  ;;  %v123_v33 = vsel %vm15142_vm6, %v109_v0, %v113_v25  ;;  %v64_v34 = vsel %vm15141_vm7, %v52_v31, %v40_v24 }
  0xea   :  { %v88_v36 = vmul.f32 %v71_v10, %v64_v34  ;;  %v155_v37 = vmul.f32 %v147_v14, %v121_v32  ;;  %v154_v38 = vmul.f32 %v143_v15, %v123_v33 }
  0xec   :  { %v50_v41 = vpop.permute.xlu0 %49  ;;  %674 = vmatpush1.msra.mxu0 %v88_v36  ;;  %746 = vmatprep.subr.mxu1 %v155_v37  ;;  %v503_v42 = vpop.permute.xlu1 %502 }
  0xed   :  { %v59_v43 = vsel %vm15141_vm7, %v50_v41, %v54_v17  ;;  %v61_v44 = vsel %vm15141_vm7, %v46_v8, %v50_v41  ;;  %747 = vmatpush1.msra.mxu1 %v154_v38 }
  0xee   :  { %v95_v45 = vmul.f32 %v83_v35, %v59_v43  ;;  %v94_v46 = vmul.f32 %v79_v39, %v61_v44 }
  0xf0   :  { %v507_v49 = vpop.permute.xlu0 %506  ;;  %748 = vmatprep.subr.mxu1 %v95_v45  ;;  %v499_v50 = vpop.permute.xlu1 %498 }
  0xf1   :  { %v516_v51 = vsel %vm15165_vm8, %v503_v42, %v507_v49  ;;  %v518_v52 = vsel %vm15165_vm8, %v499_v50, %v503_v42  ;;  %749 = vmatpush1.msra.mxu1 %v94_v46 }
  0xf2   :  { %v549_v53 = vmul.f32 %v531_v47, %v516_v51  ;;  %v548_v54 = vmul.f32 %v527_v48, %v518_v52 }
  0xf4   :  { %v48_v55 = vpop.permute.xlu0 %47  ;;  %703 = vmatprep.subr.mxu0 %v549_v53  ;;  %v501_v56 = vpop.permute.xlu1 %500 }
  0xf5   :  { %v58_v0 = vsel %vm15141_vm7, %v48_v55, %v52_v31  ;;  %v60_v57 = vsel %vm15141_vm7, %v44_v26, %v48_v55  ;;  %704 = vmatpush2.msra.mxu0 %v548_v54 }
  0xf6   :  { %v91_v58 = vmul.f32 %v83_v35, %v58_v0  ;;  %v90_v1 = vmul.f32 %v79_v39, %v60_v57 }
  0xf8   :  { %v505_v3 = vpop.permute.xlu0 %504  ;;  %750 = vmatprep.subr.mxu1 %v91_v58  ;;  %v497_v59 = vpop.permute.xlu1 %496 }
  0xf9   :  { %v515_v5 = vsel %vm15165_vm8, %v501_v56, %v505_v3  ;;  %v517_v60 = vsel %vm15165_vm8, %v497_v59, %v501_v56  ;;  %751 = vmatpush1.msra.mxu1 %v90_v1 }
  0xfa   :  { %v545_v61 = vmul.f32 %v531_v47, %v515_v5  ;;  %v544_v6 = vmul.f32 %v527_v48, %v517_v60 }
  0xfc   :  { %v511_v7 = vpop.permute.xlu0 %510  ;;  %705 = vmatprep.subr.mxu0 %v545_v61  ;;  %v509_v8 = vpop.permute.xlu1 %508 }
  0xfd   :  { %v514_v4 = vsel %vm15165_vm8, %v507_v49, %v511_v7  ;;  %v520_v10 = vsel %vm15165_vm8, %v511_v7, %v499_v50  ;;  %v519_v14 = vsel %vm15165_vm8, %v509_v8, %v497_v59  ;;  %706 = vmatpush2.msra.mxu0 %v544_v6  ;;  %v513_v15 = vsel %vm15165_vm8, %v505_v3, %v509_v8 }
  0xfe   :  { %708 = vmatmul.mubr.f32.vlgmr.msra.gmra.mxu0 %v560_v2  ;;  %v551_v16 = vmul.f32 %v539_v62, %v520_v10  ;;  %v550_v17 = vmul.f32 %v535_v63, %v514_v4  ;;  %v547_v19 = vmul.f32 %v539_v62, %v519_v14  ;;  %v546_v20 = vmul.f32 %v535_v63, %v513_v15 }
  0xff   :  { %8803 = vmatprep.mubr.msk.f32.mxu0 %vm636_vm0, %v563_v9 }
 0x100   :  { %780 = vmatprep.subr.mxu1 %v551_v16 }
 0x101   :  { %781 = vmatpush2.msra.mxu1 %v550_v17 }
 0x102   :  { %782 = vmatprep.subr.mxu1 %v547_v19  ;;  %714 = vmatmul.mubr.f32.gmra.mxu0 %v562_v18 }
 0x103   :  { %783 = vmatpush2.msra.mxu1 %v546_v20 }
 0x104   :  { %785 = vmatmul.mubr.f32.vlgmr.msra.gmra.mxu1 %v560_v2 }
 0x105   :  { %8805 = vmatprep.mubr.msk.f32.mxu1 %vm636_vm0, %v563_v9 }
 0x108   :  { %791 = vmatmul.mubr.f32.gmra.mxu1 %v562_v18 }
 0x1be   :  { %v709_v21 = vpop.f32.mrf.mxu0 }
 0x1bf   :  { %v797_v22 = vmul.f32 %v709_v21, %v709_v21 }
 0x1c0   :  { %v711_v23 = vpop.f32.mrf.mxu0 }
 0x1c1   :  { %v798_v24 = vmul.f32 %v711_v23, %v711_v23  ;;  %v805_v27 = vadd.f32 %v711_v23, %v709_v21 }
 0x1c2   :  { %v9661_v26 = vpop.f32.mrf.mxu0 }
 0x1c3   :  { %v801_v30 = vmul.f32 %v9661_v26, %v9661_v26  ;;  %v815_v32 = vadd.f32 %v798_v24, %v797_v22 }
 0x1c4   :  { %v786_v25 = vpop.f32.mrf.mxu1  ;;  %v9665_v31 = vpop.f32.mrf.mxu0 }
 0x1c5   :  { %v799_v33 = vmul.f32 %v786_v25, %v786_v25  ;;  %v802_v34 = vmul.f32 %v9665_v31, %v9665_v31  ;;  %v810_v35 = vadd.f32 %v9665_v31, %v9661_v26  ;;  %v806_v36 = vadd.f32 %v805_v27, %v786_v25 }
 0x1c6   :  { %v788_v37 = vpop.f32.mrf.mxu1 }
 0x1c7   :  { %v807_v38 = vadd.f32 %v806_v36, %v788_v37  ;;  %v800_v39 = vmul.f32 %v788_v37, %v788_v37  ;;  %v816_v40 = vadd.f32 %v815_v32, %v799_v33  ;;  %v820_v41 = vadd.f32 %v802_v34, %v801_v30 }
 0x1c8   :  { %v9671_v42 = vpop.f32.mrf.mxu1 }
 0x1c9   :  { %808 = vadd.xlane.f32.xlu1 %v807_v38  ;;  %v803_v43 = vmul.f32 %v9671_v42, %v9671_v42  ;;  %v817_v44 = vadd.f32 %v816_v40, %v800_v39  ;;  %v811_v45 = vadd.f32 %v810_v35, %v9671_v42 }
 0x1ca   :  { %v9676_v46 = vpop.f32.mrf.mxu1 }
 0x1cb   :  { %818 = vadd.xlane.f32.xlu0 %v817_v44  ;;  %v812_v47 = vadd.f32 %v811_v45, %v9676_v46  ;;  %v804_v48 = vmul.f32 %v9676_v46, %v9676_v46  ;;  %v821_v49 = vadd.f32 %v820_v41, %v803_v43 }
 0x1cd   :  { %v822_v50 = vadd.f32 %v821_v49, %v804_v48 }
 0x1cf   :  { %813 = vadd.xlane.f32.xlu0 %v812_v47 }
 0x1d3   :  { %823 = vadd.xlane.f32.xlu0 %v822_v50 }
 0x252   :  { %v809_v51 = vpop.xlane.xlu1 %808 }
 0x253   :  { %v825_v52 = vmul.f32 0.001953125, %v809_v51 }
 0x254   :  { %v819_v53 = vpop.xlane.xlu0 %818 }
 0x255   :  { %v829_v54 = vmul.f32 %v825_v52, %v825_v52  ;;  %v827_v55 = vmul.f32 0.001953125, %v819_v53  ;;  %v835_v58 = vsub.f32 %v709_v21, %v825_v52  ;;  %v836_v1 = vsub.f32 %v711_v23, %v825_v52 }
 0x256   :  { %v837_v3 = vsub.f32 %v786_v25, %v825_v52  ;;  %v838_v59 = vsub.f32 %v788_v37, %v825_v52 }
 0x257   :  { %v831_v56 = vsub.f32 %v827_v55, %v829_v54 }
 0x258   :  { %v814_v14 = vpop.xlane.xlu0 %813 }
 0x259   :  { %v833_v0 = vmax.f32 %v831_v56, 0.0  ;;  %v826_v17 = vmul.f32 0.001953125, %v814_v14 }
 0x25b   :  { %v843_v57 = vadd.f32 1e-05, %v833_v0  ;;  %v830_v18 = vmul.f32 %v826_v17, %v826_v17  ;;  %v841_v40 = vsub.f32 %v9671_v42, %v826_v17  ;;  %v840_v43 = vsub.f32 %v9665_v31, %v826_v17 }
 0x25c   :  { %v824_v16 = vpop.xlane.xlu0 %823  ;;  %v842_v47 = vsub.f32 %v9676_v46, %v826_v17  ;;  %v839_v50 = vsub.f32 %v9661_v26, %v826_v17 }
 0x25d   :  { %9018 = vrsqrt.f32 %v843_v57  ;;  %v828_v19 = vmul.f32 0.001953125, %v824_v16 }
 0x25f   :  { %v832_v21 = vsub.f32 %v828_v19, %v830_v18 }
 0x261   :  { %v834_v32 = vmax.f32 %v832_v21, 0.0 }
 0x263   :  { %v844_v36 = vadd.f32 1e-05, %v834_v32 }
 0x26a   :  { %v9019_v5 = vpop.eup %9018 }
 0x26b   :  { %v848_v60 = vmul.f32 %v9019_v5, %v836_v1  ;;  %v849_v61 = vmul.f32 %v9019_v5, %v837_v3  ;;  %v847_v6 = vmul.f32 %v9019_v5, %v835_v58  ;;  %v850_v62 = vmul.f32 %v9019_v5, %v838_v59 }
 0x26d   :  { %v864_v63 = vmin.f32 %v848_v60, 0.0  ;;  %v865_v2 = vmin.f32 %v849_v61, 0.0  ;;  %v863_v7 = vmin.f32 %v847_v6, 0.0  ;;  %v866_v8 = vmin.f32 %v850_v62, 0.0 }
 0x26e   :  { %vm856_vm9 = vcmp.gt.f32.partialorder %v848_v60, 0.0  ;;  %vm857_vm10 = vcmp.gt.f32.partialorder %v849_v61, 0.0  ;;  %vm855_vm11 = vcmp.gt.f32.partialorder %v847_v6, 0.0  ;;  %vm858_vm12 = vcmp.gt.f32.partialorder %v850_v62, 0.0 }
 0x26f   :  { %v873_v9 = vmul.f32 1.442695, %v864_v63  ;;  %v875_v4 = vmul.f32 1.442695, %v865_v2  ;;  %v871_v10 = vmul.f32 1.442695, %v863_v7 }
 0x270   :  { %v877_v15 = vmul.f32 1.442695, %v866_v8 }
 0x271   :  { %9020 = vpow2.f32 %v873_v9 }
 0x272   :  { %9022 = vpow2.f32 %v875_v4 }
 0x273   :  { %9024 = vpow2.f32 %v871_v10 }
 0x274   :  { %9026 = vpow2.f32 %v877_v15 }
 0x275   :  { %9028 = vrsqrt.f32 %v844_v36 }
 0x27e   :  { %v9021_v20 = vpop.eup %9020 }
 0x27f   :  { %v9023_v22 = vpop.eup %9022  ;;  %v8807_v23 = vadd.f32 -1.0, %v9021_v20 }
 0x280   :  { %v9025_v24 = vpop.eup %9024  ;;  %v8808_v27 = vadd.f32 -1.0, %v9023_v22 }
 0x281   :  { %v9681_v30 = vsel %vm856_vm9, %v848_v60, %v8807_v23  ;;  %v8806_v25 = vadd.f32 -1.0, %v9025_v24  ;;  %v9027_v34 = vpop.eup %9026 }
 0x282   :  { %15363 = vst [vmem:[#allocation7_spill] sm:$0xff] %v9681_v30  ;;  %1295 = vrot.lane.b32.xlu1 %v9681_v30, %s9215_s26  ;;  %v9685_v33 = vsel %vm857_vm10, %v849_v61, %v8808_v27  ;;  %v8809_v37 = vadd.f32 -1.0, %v9027_v34  ;;  %v9029_v39 = vpop.eup %9028 }
 0x283   :  { %15364 = vst [vmem:[#allocation8_spill] sm:$0xff] %v9685_v33  ;;  %1299 = vrot.lane.b32.xlu0 %v9685_v33, %s9215_s26  ;;  %v9689_v35 = vsel %vm855_vm11, %v847_v6, %v8806_v25  ;;  %v853_v41 = vmul.f32 %v9029_v39, %v841_v40  ;;  %v852_v45 = vmul.f32 %v9029_v39, %v840_v43  ;;  %v8822_v6 = vld [vmem:[%s15124_s1 + $0x28] sm:$0xff] }
 0x284   :  { %15365 = vst [vmem:[#allocation9_spill] sm:$0xff] %v9689_v35  ;;  %v9697_v38 = vsel %vm858_vm12, %v850_v62, %v8809_v37  ;;  %v854_v49 = vmul.f32 %v9029_v39, %v842_v47  ;;  %v851_v31 = vmul.f32 %v9029_v39, %v839_v50  ;;  %8825 = vmatprep.mubr.msk.f32.mxu0 %vm636_vm0, %v8822_v6  ;;  %v8819_v47 = vld [vmem:[%s15126_s3 + $0x7] ss:$8 sm:$0xf] }
 0x285   :  { %15366 = vst [vmem:[#allocation10_spill] sm:$0xff] %v9697_v38  ;;  %v869_v44 = vmin.f32 %v853_v41, 0.0  ;;  %v868_v48 = vmin.f32 %v852_v45, 0.0  ;;  %vm861_vm13 = vcmp.gt.f32.partialorder %v853_v41, 0.0  ;;  %vm860_vm14 = vcmp.gt.f32.partialorder %v852_v45, 0.0  ;;  %8827 = vmatprep.mubr.msk.f32.mxu1 %vm636_vm0, %v8822_v6 }
 0x286   :  { %1291 = vrot.lane.b32.xlu1 %v9689_v35, %s9215_s26  ;;  %v870_v52 = vmin.f32 %v854_v49, 0.0  ;;  %v867_v46 = vmin.f32 %v851_v31, 0.0  ;;  %vm862_vm15 = vcmp.gt.f32.partialorder %v854_v49, 0.0  ;;  %vm859_vm9 = vcmp.gt.f32.partialorder %v851_v31, 0.0 }
 0x287   :  { %1233 = vrot.lane.b32.xlu0 %v9681_v30, %s9216_s8  ;;  %v883_v42 = vmul.f32 1.442695, %v869_v44  ;;  %v881_v51 = vmul.f32 1.442695, %v868_v48 }
 0x288   :  { %v885_v53 = vmul.f32 1.442695, %v870_v52  ;;  %v879_v26 = vmul.f32 1.442695, %v867_v46  ;;  %v1320_v52 = vrot.slane %v8819_v47, %v9432_v13 }
 0x289   :  { %9030 = vpow2.f32 %v883_v42 }
 0x28a   :  { %1237 = vrot.lane.b32.xlu1 %v9685_v33, %s9216_s8  ;;  %9032 = vpow2.f32 %v881_v51 }
 0x28b   :  { %1303 = vrot.lane.b32.xlu0 %v9697_v38, %s9215_s26  ;;  %9034 = vpow2.f32 %v885_v53  ;;  %v1328_v53 = vrot.slane %v8819_v47, %v9455_v28 }
 0x28c   :  { %9036 = vpow2.f32 %v879_v26 }
 0x28e   :  { %1229 = vrot.lane.b32.xlu1 %v9689_v35, %s9216_s8 }
 0x28f   :  { %1171 = vrot.lane.b32.xlu0 %v9681_v30, %s9217_s13 }
 0x292   :  { %1175 = vrot.lane.b32.xlu1 %v9685_v33, %s9217_s13 }
 0x293   :  { %1241 = vrot.lane.b32.xlu0 %v9697_v38, %s9216_s8 }
 0x296   :  { %1167 = vrot.lane.b32.xlu1 %v9689_v35, %s9217_s13  ;;  %v9031_v54 = vpop.eup %9030 }
 0x297   :  { %1101 = vrot.lane.b32.xlu0 %v9681_v30, %s9218_s0  ;;  %v8812_v55 = vadd.f32 -1.0, %v9031_v54  ;;  %v9033_v56 = vpop.eup %9032 }
 0x298   :  { %v8811_v57 = vadd.f32 -1.0, %v9033_v56  ;;  %v9035_v58 = vpop.eup %9034 }
 0x299   :  { %v9751_v0 = vsel %vm861_vm13, %v853_v41, %v8812_v55  ;;  %v9037_v1 = vpop.eup %9036  ;;  %v8813_v59 = vadd.f32 -1.0, %v9035_v58  ;;  %v1332_v55 = vrot.slane %v8819_v47, %v9457_v29  ;;  %v8818_v58 = vld [vmem:[%s15126_s3 + $0x6] ss:$8 sm:$0xf] }
 0x29a   :  { %1179 = vrot.lane.b32.xlu1 %v9697_v38, %s9217_s13  ;;  %15367 = vst [vmem:[#allocation11_spill] sm:$0xff] %v9751_v0  ;;  %v9757_v3 = vsel %vm860_vm14, %v852_v45, %v8811_v57  ;;  %v8810_v5 = vadd.f32 -1.0, %v9037_v1 }
 0x29b   :  { %1035 = vrot.lane.b32.xlu0 %v9689_v35, %s9219_s14  ;;  %15368 = vst [vmem:[#allocation12_spill] sm:$0xff] %v9757_v3  ;;  %v9761_v60 = vsel %vm862_vm15, %v854_v49, %v8813_v59  ;;  %v1324_v49 = vrot.slane %v8819_v47, %v9430_v12 }
 0x29c   :  { %15369 = vst [vmem:[#allocation13_spill] sm:$0xff] %v9761_v60  ;;  %v9767_v61 = vsel %vm859_vm9, %v851_v31, %v8810_v5 }
 0x29d   :  { %15370 = vst [vmem:[#allocation14_spill] sm:$0xff] %v9767_v61 }
 0x29e   :  { %1097 = vrot.lane.b32.xlu1 %v9689_v35, %s9218_s0 }
 0x29f   :  { %1105 = vrot.lane.b32.xlu0 %v9685_v33, %s9218_s0 }
 0x2a2   :  { %1109 = vrot.lane.b32.xlu1 %v9697_v38, %s9218_s0 }
 0x2a3   :  { %973 = vrot.lane.b32.xlu0 %v9689_v35, %s9220_s15 }
 0x2a6   :  { %1039 = vrot.lane.b32.xlu1 %v9681_v30, %s9219_s14 }
 0x2a7   :  { %1043 = vrot.lane.b32.xlu0 %v9685_v33, %s9219_s14 }
 0x2aa   :  { %1047 = vrot.lane.b32.xlu1 %v9697_v38, %s9219_s14 }
 0x2ab   :  { %911 = vrot.lane.b32.xlu0 %v9689_v35, %s9221_s16 }
 0x2ae   :  { %977 = vrot.lane.b32.xlu1 %v9681_v30, %s9220_s15 }
 0x2af   :  { %981 = vrot.lane.b32.xlu0 %v9685_v33, %s9220_s15 }
 0x2b2   :  { %985 = vrot.lane.b32.xlu1 %v9697_v38, %s9220_s15 }
 0x2b3   :  { %919 = vrot.lane.b32.xlu0 %v9685_v33, %s9221_s16 }
 0x2b6   :  { %915 = vrot.lane.b32.xlu1 %v9681_v30, %s9221_s16 }
 0x2b7   :  { %1361 = vrot.lane.b32.xlu0 %v9685_v33, %s9222_s17 }
 0x2ba   :  { %923 = vrot.lane.b32.xlu1 %v9697_v38, %s9221_s16 }
 0x2bb   :  { %1301 = vrot.lane.b32.xlu0 %v9751_v0, %s9215_s26 }
 0x2be   :  { %1357 = vrot.lane.b32.xlu1 %v9681_v30, %s9222_s17 }
 0x2bf   :  { %1235 = vrot.lane.b32.xlu0 %v9757_v3, %s9216_s8 }
 0x2c2   :  { %1297 = vrot.lane.b32.xlu1 %v9757_v3, %s9215_s26 }
 0x2c3   :  { %1305 = vrot.lane.b32.xlu0 %v9761_v60, %s9215_s26 }
 0x2c6   :  { %1293 = vrot.lane.b32.xlu1 %v9767_v61, %s9215_s26 }
 0x2c7   :  { %1173 = vrot.lane.b32.xlu0 %v9757_v3, %s9217_s13 }
 0x2ca   :  { %1239 = vrot.lane.b32.xlu1 %v9751_v0, %s9216_s8 }
 0x2cb   :  { %1243 = vrot.lane.b32.xlu0 %v9761_v60, %s9216_s8 }
 0x2ce   :  { %1231 = vrot.lane.b32.xlu1 %v9767_v61, %s9216_s8 }
 0x2cf   :  { %1181 = vrot.lane.b32.xlu0 %v9761_v60, %s9217_s13 }
 0x2d2   :  { %1177 = vrot.lane.b32.xlu1 %v9751_v0, %s9217_s13 }
 0x2d3   :  { %1099 = vrot.lane.b32.xlu0 %v9767_v61, %s9218_s0 }
 0x2d6   :  { %1169 = vrot.lane.b32.xlu1 %v9767_v61, %s9217_s13 }
 0x2d7   :  { %1111 = vrot.lane.b32.xlu0 %v9761_v60, %s9218_s0 }
 0x2da   :  { %1103 = vrot.lane.b32.xlu1 %v9757_v3, %s9218_s0 }
 0x2db   :  { %1037 = vrot.lane.b32.xlu0 %v9767_v61, %s9219_s14 }
 0x2de   :  { %1041 = vrot.lane.b32.xlu1 %v9757_v3, %s9219_s14 }
 0x2df   :  { %1107 = vrot.lane.b32.xlu0 %v9751_v0, %s9218_s0 }
 0x2e2   :  { %1049 = vrot.lane.b32.xlu1 %v9761_v60, %s9219_s14 }
 0x2e3   :  { %975 = vrot.lane.b32.xlu0 %v9767_v61, %s9220_s15 }
 0x2e6   :  { %979 = vrot.lane.b32.xlu1 %v9757_v3, %s9220_s15 }
 0x2e7   :  { %1045 = vrot.lane.b32.xlu0 %v9751_v0, %s9219_s14 }
 0x2ea   :  { %987 = vrot.lane.b32.xlu1 %v9761_v60, %s9220_s15 }
 0x2eb   :  { %913 = vrot.lane.b32.xlu0 %v9767_v61, %s9221_s16 }
 0x2ee   :  { %917 = vrot.lane.b32.xlu1 %v9757_v3, %s9221_s16 }
 0x2ef   :  { %983 = vrot.lane.b32.xlu0 %v9751_v0, %s9220_s15 }
 0x2f2   :  { %925 = vrot.lane.b32.xlu1 %v9761_v60, %s9221_s16 }
 0x2f3   :  { %921 = vrot.lane.b32.xlu0 %v9751_v0, %s9221_s16 }
 0x2f4   :  { %v1296_v62 = vpop.permute.xlu1 %1295 }
 0x2f5   :  { %v1300_v63 = vpop.permute.xlu0 %1299 }
 0x2f6   :  { %1359 = vrot.lane.b32.xlu1 %v9757_v3, %s9222_s17  ;;  %v1309_v46 = vsel %vm15164_vm1, %v1296_v62, %v1300_v63 }
 0x2f7   :  { %1363 = vrot.lane.b32.xlu0 %v9751_v0, %s9222_s17 }
 0x2f8   :  { %v1292_v2 = vpop.permute.xlu1 %1291 }
 0x2f9   :  { %v9826_v7 = vpop.permute.xlu0 %1233  ;;  %v1311_v56 = vsel %vm15164_vm1, %v1292_v2, %v1296_v62 }
 0x2fa   :  { %1355 = vrot.lane.b32.xlu1 %v9767_v61, %s9222_s17 }
 0x2fb   :  { %1367 = vrot.lane.b32.xlu0 %v9761_v60, %s9222_s17 }
 0x2fc   :  { %v9832_v8 = vpop.permute.xlu1 %1237 }
 0x2fd   :  { %v1304_v9 = vpop.permute.xlu0 %1303 }
 0x2fe   :  { %1353 = vrot.lane.b32.xlu1 %v9689_v35, %s9222_s17  ;;  %v1313_v57 = vsel %vm15164_vm1, %v1304_v9, %v1292_v2  ;;  %v1307_v6 = vsel %vm15164_vm1, %v1300_v63, %v1304_v9  ;;  %v1337_v2 = vmul.f32 %v1320_v52, %v1311_v56  ;;  %v1258_v9 = vrot.slane %v8818_v58, %v9432_v13  ;;  %v8817_v56 = vld [vmem:[%s15126_s3 + $0x5] ss:$8 sm:$0xf] }
 0x300   :  { %v9836_v4 = vpop.permute.xlu1 %1229 }
 0x301   :  { %v9838_v10 = vpop.permute.xlu0 %1171 }
 0x302   :  { %1365 = vrot.lane.b32.xlu1 %v9697_v38, %s9222_s17 }
 0x304   :  { %v9842_v14 = vpop.permute.xlu1 %1175 }
 0x305   :  { %v9844_v15 = vpop.permute.xlu0 %1241 }
 0x308   :  { %v9846_v16 = vpop.permute.xlu1 %1167 }
 0x309   :  { %v9848_v17 = vpop.permute.xlu0 %1101 }
 0x30c   :  { %v9850_v18 = vpop.permute.xlu1 %1179 }
 0x30d   :  { %v9852_v19 = vpop.permute.xlu0 %1035 }
 0x310   :  { %v9854_v20 = vpop.permute.xlu1 %1097 }
 0x311   :  { %v9856_v21 = vpop.permute.xlu0 %1105 }
 0x314   :  { %v9858_v22 = vpop.permute.xlu1 %1109 }
 0x315   :  { %v9860_v23 = vpop.permute.xlu0 %973 }
 0x318   :  { %v9862_v24 = vpop.permute.xlu1 %1039 }
 0x319   :  { %v9864_v27 = vpop.permute.xlu0 %1043 }
 0x31c   :  { %v9866_v25 = vpop.permute.xlu1 %1047 }
 0x31d   :  { %v9868_v32 = vpop.permute.xlu0 %911 }
 0x320   :  { %v9870_v34 = vpop.permute.xlu1 %977 }
 0x321   :  { %v9872_v36 = vpop.permute.xlu0 %981 }
 0x324   :  { %v9874_v37 = vpop.permute.xlu1 %985 }
 0x325   :  { %v9876_v39 = vpop.permute.xlu0 %919 }
 0x328   :  { %v9878_v40 = vpop.permute.xlu1 %915 }
 0x329   :  { %v9880_v41 = vpop.permute.xlu0 %1361 }
 0x32a   :  { %15371 = vst [vmem:[#allocation15_spill] sm:$0xff] %v9880_v41  ;;  %v1262_v41 = vrot.slane %v8818_v58, %v9430_v12 }
 0x32c   :  { %v9882_v43 = vpop.permute.xlu1 %923 }
 0x32d   :  { %v1302_v44 = vpop.permute.xlu0 %1301 }
 0x330   :  { %v9884_v45 = vpop.permute.xlu1 %1357 }
 0x331   :  { %15372 = vst [vmem:[#allocation16_spill] sm:$0xff] %v9884_v45  ;;  %v1236_v42 = vpop.permute.xlu0 %1235  ;;  %v1340_v45 = vmul.f32 %v1332_v55, %v1313_v57 }
 0x334   :  { %v1298_v48 = vpop.permute.xlu1 %1297 }
 0x335   :  { %v1310_v50 = vsel %vm15164_vm1, %v1298_v48, %v1302_v44  ;;  %v1306_v31 = vpop.permute.xlu0 %1305 }
 0x336   :  { %v1342_v51 = vmul.f32 %v1324_v49, %v1310_v50  ;;  %v1308_v26 = vsel %vm15164_vm1, %v1302_v44, %v1306_v31  ;;  %v1338_v50 = vmul.f32 %v1324_v49, %v1309_v46  ;;  %v1247_v49 = vsel %vm15140_vm2, %v9826_v7, %v9832_v8 }
 0x337   :  { %v1343_v47 = vmul.f32 %v1328_v53, %v1308_v26  ;;  %v1270_v26 = vrot.slane %v8818_v58, %v9457_v29 }
 0x338   :  { %v1294_v54 = vpop.permute.xlu1 %1293  ;;  %1498 = vmatprep.subr.mxu0 %v1342_v51 }
 0x339   :  { %v1312_v1 = vsel %vm15164_vm1, %v1294_v54, %v1298_v48  ;;  %v1314_v59 = vsel %vm15164_vm1, %v1306_v31, %v1294_v54  ;;  %v9910_v5 = vpop.permute.xlu0 %1173  ;;  %v1339_v48 = vmul.f32 %v1328_v53, %v1307_v6 }
 0x33a   :  { %v1341_v44 = vmul.f32 %v1320_v52, %v1312_v1  ;;  %v1344_v62 = vmul.f32 %v1332_v55, %v1314_v59  ;;  %v1266_v52 = vrot.slane %v8818_v58, %v9455_v28  ;;  %v1251_v55 = vsel %vm15140_vm2, %v9844_v15, %v9836_v4 }
 0x33c   :  { %v1240_v51 = vpop.permute.xlu1 %1239  ;;  %1499 = vmatpush1.msra.mxu0 %v1341_v44  ;;  %1575 = vmatprep.subr.mxu1 %v1344_v62 }
 0x33d   :  { %v1248_v31 = vsel %vm15140_vm2, %v1236_v42, %v1240_v51  ;;  %v1244_v54 = vpop.permute.xlu0 %1243  ;;  %1500 = vmatprep.subr.mxu0 %v1338_v50  ;;  %1576 = vmatpush1.msra.mxu1 %v1343_v47  ;;  %v1278_v50 = vmul.f32 %v1270_v26, %v1251_v55 }
 0x33e   :  { %1501 = vmatpush1.msra.mxu0 %v1337_v2  ;;  %1577 = vmatprep.subr.mxu1 %v1340_v45  ;;  %v1280_v63 = vmul.f32 %v1262_v41, %v1248_v31  ;;  %v1246_v46 = vsel %vm15140_vm2, %v1240_v51, %v1244_v54  ;;  %v1249_v45 = vsel %vm15140_vm2, %v9836_v4, %v9826_v7 }
 0x33f   :  { %1578 = vmatpush1.msra.mxu1 %v1339_v48  ;;  %v1245_v7 = vsel %vm15140_vm2, %v9832_v8, %v9844_v15  ;;  %v1281_v44 = vmul.f32 %v1266_v52, %v1246_v46  ;;  %v1276_v4 = vmul.f32 %v1262_v41, %v1247_v49  ;;  %v1275_v62 = vmul.f32 %v1258_v9, %v1249_v45 }
 0x340   :  { %v1232_v53 = vpop.permute.xlu1 %1231  ;;  %1502 = vmatprep.subr.mxu0 %v1280_v63  ;;  %v1277_v2 = vmul.f32 %v1266_v52, %v1245_v7  ;;  %v1196_v15 = vrot.slane %v8817_v56, %v9432_v13  ;;  %v1185_v41 = vsel %vm15163_vm3, %v9838_v10, %v9842_v14  ;;  %v1204_v31 = vrot.slane %v8817_v56, %v9455_v28 }
 0x341   :  { %v1250_v57 = vsel %vm15140_vm2, %v1232_v53, %v1236_v42  ;;  %v1252_v58 = vsel %vm15140_vm2, %v1244_v54, %v1232_v53  ;;  %v1182_v1 = vpop.permute.xlu0 %1181  ;;  %v1200_v42 = vrot.slane %v8817_v56, %v9430_v12  ;;  %v1187_v49 = vsel %vm15163_vm3, %v9846_v16, %v9838_v10  ;;  %v8816_v10 = vld [vmem:[%s15126_s3 + $0x3] ss:$8 sm:$0xf] }
 0x342   :  { %v1279_v59 = vmul.f32 %v1258_v9, %v1250_v57  ;;  %v1282_v6 = vmul.f32 %v1270_v26, %v1252_v58  ;;  %v1208_v9 = vrot.slane %v8817_v56, %v9457_v29  ;;  %v1189_v52 = vsel %vm15163_vm3, %v9850_v18, %v9846_v16 }
 0x343   :  { %v1183_v45 = vsel %vm15163_vm3, %v9842_v14, %v9850_v18  ;;  %v1214_v57 = vmul.f32 %v1200_v42, %v1185_v41  ;;  %v1213_v58 = vmul.f32 %v1196_v15, %v1187_v49  ;;  %v1134_v14 = vrot.slane %v8816_v10, %v9455_v28 }
 0x344   :  { %v1178_v47 = vpop.permute.xlu1 %1177  ;;  %1503 = vmatpush1.msra.mxu0 %v1279_v59  ;;  %1579 = vmatprep.subr.mxu1 %v1282_v6  ;;  %v1216_v7 = vmul.f32 %v1208_v9, %v1189_v52  ;;  %v1215_v59 = vmul.f32 %v1204_v31, %v1183_v45  ;;  %v1126_v6 = vrot.slane %v8816_v10, %v9432_v13  ;;  %v8814_v45 = vld [vmem:[%s15126_s3 + $0x1] ss:$8 sm:$0xf]  ;;  %vm2239_vm2 = vcmp.lt.s32.totalorder %v9422_v11, 94 }
 0x345   :  { %v1186_v51 = vsel %vm15163_vm3, %v9910_v5, %v1178_v47  ;;  %v1100_v48 = vpop.permute.xlu0 %1099  ;;  %1504 = vmatprep.subr.mxu0 %v1276_v4  ;;  %1580 = vmatpush1.msra.mxu1 %v1281_v44  ;;  %v1184_v54 = vsel %vm15163_vm3, %v1178_v47, %v1182_v1  ;;  %v1138_v47 = vrot.slane %v8816_v10, %v9457_v29 }
 0x346   :  { %1505 = vmatpush1.msra.mxu0 %v1275_v62  ;;  %1581 = vmatprep.subr.mxu1 %v1278_v50  ;;  %v1218_v8 = vmul.f32 %v1200_v42, %v1186_v51  ;;  %v1219_v16 = vmul.f32 %v1204_v31, %v1184_v54  ;;  %v1130_v62 = vrot.slane %v8816_v10, %v9430_v12 }
 0x347   :  { %1582 = vmatpush1.msra.mxu1 %v1277_v2  ;;  %v1117_v42 = vsel %vm15143_vm4, %v9854_v20, %v9848_v17  ;;  %v1115_v2 = vsel %vm15143_vm4, %v9848_v17, %v9856_v21  ;;  %v1113_v51 = vsel %vm15143_vm4, %v9856_v21, %v9858_v22  ;;  %v1055_v49 = vsel %vm15146_vm5, %v9852_v19, %v9862_v24 }
 0x348   :  { %v1170_v63 = vpop.permute.xlu1 %1169  ;;  %1506 = vmatprep.subr.mxu0 %v1218_v8  ;;  %v1119_v8 = vsel %vm15143_vm4, %v9858_v22, %v9854_v20 }
 0x349   :  { %v1188_v46 = vsel %vm15163_vm3, %v1170_v63, %v9910_v5  ;;  %v1190_v53 = vsel %vm15163_vm3, %v1182_v1, %v1170_v63  ;;  %v1112_v26 = vpop.permute.xlu0 %1111  ;;  %v9981_v5 = vld [vmem:[%s15126_s3 + $0x2] ss:$8 sm:$0xf]  ;;  %v1144_v63 = vmul.f32 %v1130_v62, %v1117_v42  ;;  %vm2783_vm3 = vcmp.lt.s32.totalorder %v9422_v11, 60 }
 0x34a   :  { %v1217_v55 = vmul.f32 %v1196_v15, %v1188_v46  ;;  %v1220_v56 = vmul.f32 %v1208_v9, %v1190_v53  ;;  %v1120_v44 = vsel %vm15143_vm4, %v1112_v26, %v1100_v48  ;;  %v1068_v50 = vrot.slane %v9981_v5, %v9430_v12 }
 0x34b   :  { %v1147_v15 = vmul.f32 %v1126_v6, %v1120_v44  ;;  %v1143_v9 = vmul.f32 %v1126_v6, %v1119_v8  ;;  %v1064_v52 = vrot.slane %v9981_v5, %v9432_v13  ;;  %v1146_v53 = vmul.f32 %v1138_v47, %v1113_v51 }
 0x34c   :  { %v1104_v1 = vpop.permute.xlu1 %1103  ;;  %1507 = vmatpush1.msra.mxu0 %v1217_v55  ;;  %1583 = vmatprep.subr.mxu1 %v1220_v56  ;;  %v1051_v44 = vsel %vm15146_vm5, %v9864_v27, %v9866_v25 }
 0x34d   :  { %v1038_v18 = vpop.permute.xlu0 %1037  ;;  %1508 = vmatprep.subr.mxu0 %v1214_v57  ;;  %1584 = vmatpush1.msra.mxu1 %v1219_v16  ;;  %v1118_v4 = vsel %vm15143_vm4, %v1100_v48, %v1104_v1  ;;  %v1145_v16 = vmul.f32 %v1134_v14, %v1115_v2  ;;  %v1002_v2 = vrot.slane %v8814_v45, %v9432_v13 }
 0x34e   :  { %1509 = vmatpush1.msra.mxu0 %v1213_v58  ;;  %1585 = vmatprep.subr.mxu1 %v1216_v7  ;;  %v1148_v17 = vmul.f32 %v1130_v62, %v1118_v4  ;;  %v1082_v58 = vmul.f32 %v1068_v50, %v1055_v49  ;;  %v1006_v7 = vrot.slane %v8814_v45, %v9430_v12 }
 0x34f   :  { %1510 = vmatprep.subr.mxu0 %v9757_v3  ;;  %1586 = vmatpush1.msra.mxu1 %v1215_v59  ;;  %v1072_v59 = vrot.slane %v9981_v5, %v9455_v28  ;;  %v1014_v49 = vrot.slane %v8814_v45, %v9457_v29  ;;  %v8842_v3 = vld [vmem:[%s15126_s3 + $0x27] ss:$8 sm:$0xf] }
 0x350   :  { %v1042_v48 = vpop.permute.xlu1 %1041  ;;  %1511 = vmatpush1.msra.mxu0 %v9767_v61  ;;  %1587 = vmatprep.subr.mxu1 %v9761_v60 }
 0x351   :  { %v1108_v41 = vpop.permute.xlu0 %1107  ;;  %1512 = vmatprep.subr.mxu0 %v9681_v30  ;;  %1588 = vmatpush1.msra.mxu1 %v9751_v0  ;;  %v1056_v21 = vsel %vm15146_vm5, %v1038_v18, %v1042_v48 }
 0x352   :  { %v1114_v31 = vsel %vm15143_vm4, %v1108_v41, %v1112_v26  ;;  %v1116_v54 = vsel %vm15143_vm4, %v1104_v1, %v1108_v41  ;;  %1513 = vmatpush1.msra.mxu0 %v9689_v35  ;;  %1589 = vmatprep.subr.mxu1 %v9697_v38  ;;  %v1057_v26 = vsel %vm15146_vm5, %v9866_v25, %v9852_v19 }
 0x353   :  { %v1149_v20 = vmul.f32 %v1134_v14, %v1116_v54  ;;  %1514 = vmatprep.subr.mxu0 %v1148_v17  ;;  %1590 = vmatpush1.msra.mxu1 %v9685_v33  ;;  %v1150_v22 = vmul.f32 %v1138_v47, %v1114_v31  ;;  %v1086_v56 = vmul.f32 %v1068_v50, %v1056_v21 }
 0x354   :  { %v1050_v46 = vpop.permute.xlu1 %1049  ;;  %1515 = vmatpush1.msra.mxu0 %v1147_v15  ;;  %v1081_v1 = vmul.f32 %v1064_v52, %v1057_v26  ;;  %v1076_v14 = vrot.slane %v9981_v5, %v9457_v29  ;;  %v1053_v50 = vsel %vm15146_vm5, %v9862_v24, %v9864_v27  ;;  %v993_v25 = vsel %vm15142_vm6, %v9860_v23, %v9870_v34  ;;  %v935_v24 = vld [vmem:[%s15126_s3] ss:$8 sm:$0xf] }
 0x355   :  { %v1058_v10 = vsel %vm15146_vm5, %v1050_v46, %v1038_v18  ;;  %1591 = vmatprep.subr.mxu1 %v1150_v22  ;;  %v976_v55 = vpop.permute.xlu0 %975  ;;  %1516 = vmatprep.subr.mxu0 %v1144_v63  ;;  %v1083_v41 = vmul.f32 %v1072_v59, %v1053_v50  ;;  %v1020_v21 = vmul.f32 %v1006_v7, %v993_v25 }
 0x356   :  { %v1085_v57 = vmul.f32 %v1064_v52, %v1058_v10  ;;  %1592 = vmatpush1.msra.mxu1 %v1149_v20  ;;  %1517 = vmatpush1.msra.mxu0 %v1143_v9  ;;  %v1084_v15 = vmul.f32 %v1076_v14, %v1051_v44  ;;  %v1010_v20 = vrot.slane %v8814_v45, %v9455_v28 }
 0x357   :  { %1593 = vmatprep.subr.mxu1 %v1146_v53  ;;  %1518 = vmatprep.subr.mxu0 %v1086_v56  ;;  %v991_v22 = vsel %vm15142_vm6, %v9870_v34, %v9872_v36  ;;  %v989_v52 = vsel %vm15142_vm6, %v9872_v36, %v9874_v37  ;;  %v931_v45 = vsel %vm15141_vm7, %v9868_v32, %v9878_v40 }
 0x358   :  { %1594 = vmatpush1.msra.mxu1 %v1145_v16  ;;  %v980_v19 = vpop.permute.xlu1 %979  ;;  %1519 = vmatpush1.msra.mxu0 %v1085_v57  ;;  %v940_v56 = vrot.slane %v935_v24, %v9432_v13  ;;  %v1021_v16 = vmul.f32 %v1010_v20, %v991_v22  ;;  %v933_v57 = vsel %vm15141_vm7, %v9882_v43, %v9868_v32  ;;  %v8820_v32 = vld [vmem:[%s15126_s3 + $0x20] ss:$8 sm:$0xf] }
 0x359   :  { %v994_v18 = vsel %vm15142_vm6, %v976_v55, %v980_v19  ;;  %v1046_v6 = vpop.permute.xlu0 %1045  ;;  %1520 = vmatprep.subr.mxu0 %v1082_v58 }
 0x35a   :  { %v1052_v4 = vsel %vm15146_vm5, %v1046_v6, %v1050_v46  ;;  %v1054_v62 = vsel %vm15146_vm5, %v1042_v48, %v1046_v6  ;;  %1521 = vmatpush1.msra.mxu0 %v1081_v1  ;;  %v1024_v47 = vmul.f32 %v1006_v7, %v994_v18  ;;  %v995_v48 = vsel %vm15142_vm6, %v9874_v37, %v9860_v23 }
 0x35b   :  { %v1087_v42 = vmul.f32 %v1072_v59, %v1054_v62  ;;  %v1088_v5 = vmul.f32 %v1076_v14, %v1052_v4  ;;  %v1019_v31 = vmul.f32 %v1002_v2, %v995_v48  ;;  %v944_v23 = vrot.slane %v935_v24, %v9430_v12 }
 0x35c   :  { %v988_v51 = vpop.permute.xlu1 %987  ;;  %1522 = vmatprep.subr.mxu0 %v1024_v47  ;;  %v952_v37 = vrot.slane %v935_v24, %v9457_v29  ;;  %v927_v7 = vsel %vm15141_vm7, %v9876_v39, %v9882_v43  ;;  %v929_v14 = vsel %vm15141_vm7, %v9878_v40, %v9876_v39  ;;  %v957_v62 = vmul.f32 %v940_v56, %v933_v57 }
 0x35d   :  { %v996_v27 = vsel %vm15142_vm6, %v988_v51, %v976_v55  ;;  %1595 = vmatprep.subr.mxu1 %v1088_v5  ;;  %v914_v8 = vpop.permute.xlu0 %913  ;;  %v948_v55 = vrot.slane %v935_v24, %v9455_v28  ;;  %v958_v4 = vmul.f32 %v944_v23, %v931_v45  ;;  %v1386_v5 = vrot.slane %v8820_v32, %v9430_v12  ;;  %v15373_v24 = vld [vmem:[#allocation15_spill] sm:$0xff] }
 0x35e   :  { %v1023_v17 = vmul.f32 %v1002_v2, %v996_v27  ;;  %1596 = vmatpush1.msra.mxu1 %v1087_v42  ;;  %v960_v42 = vmul.f32 %v952_v37, %v927_v7  ;;  %v1382_v39 = vrot.slane %v8820_v32, %v9432_v13  ;;  %v1394_v48 = vrot.slane %v8820_v32, %v9457_v29  ;;  %v15374_v27 = vld [vmem:[#allocation16_spill] sm:$0xff]  ;;  %v8823_v45 = vld [vmem:[%s15124_s1 + $0x30] sm:$0xff] }
 0x35f   :  { %1597 = vmatprep.subr.mxu1 %v1084_v15  ;;  %v959_v25 = vmul.f32 %v948_v55, %v929_v14  ;;  %vm2847_vm5 = vcmp.lt.s32.totalorder %v9422_v11, 4 }
 0x360   :  { %1598 = vmatpush1.msra.mxu1 %v1083_v41  ;;  %v918_v54 = vpop.permute.xlu1 %917  ;;  %1523 = vmatpush1.msra.mxu0 %v1023_v17 }
 0x361   :  { %v932_v63 = vsel %vm15141_vm7, %v914_v8, %v918_v54  ;;  %v984_v9 = vpop.permute.xlu0 %983  ;;  %1524 = vmatprep.subr.mxu0 %v1020_v21 }
 0x362   :  { %v990_v46 = vsel %vm15142_vm6, %v984_v9, %v988_v51  ;;  %v992_v53 = vsel %vm15142_vm6, %v980_v19, %v984_v9  ;;  %1525 = vmatpush1.msra.mxu0 %v1019_v31  ;;  %v962_v34 = vmul.f32 %v944_v23, %v932_v63  ;;  %v1022_v19 = vmul.f32 %v1014_v49, %v989_v52  ;;  %v8821_v52 = vld [vmem:[%s15124_s1 + $0x20] sm:$0xff] }
 0x363   :  { %v1025_v26 = vmul.f32 %v1010_v20, %v992_v53  ;;  %v1026_v10 = vmul.f32 %v1014_v49, %v990_v46  ;;  %v1390_v51 = vrot.slane %v8820_v32, %v9455_v28  ;;  %v8824_v46 = vld [vmem:[%s15124_s1 + $0x38] sm:$0xff] }
 0x364   :  { %v926_v36 = vpop.permute.xlu1 %925  ;;  %1526 = vmatprep.subr.mxu0 %v962_v34 }
 0x365   :  { %v934_v58 = vsel %vm15141_vm7, %v926_v36, %v914_v8  ;;  %1599 = vmatprep.subr.mxu1 %v1026_v10  ;;  %v922_v1 = vpop.permute.xlu0 %921  ;;  %v1371_v8 = vsel %vm15165_vm8, %v15374_v27, %v15373_v24 }
 0x366   :  { %v961_v59 = vmul.f32 %v940_v56, %v934_v58  ;;  %v928_v18 = vsel %vm15141_vm7, %v922_v1, %v926_v36  ;;  %v930_v6 = vsel %vm15141_vm7, %v918_v54, %v922_v1  ;;  %1600 = vmatpush1.msra.mxu1 %v1025_v26  ;;  %v1400_v22 = vmul.f32 %v1386_v5, %v1371_v8 }
 0x367   :  { %v963_v44 = vmul.f32 %v948_v55, %v930_v6  ;;  %1601 = vmatprep.subr.mxu1 %v1022_v19  ;;  %v964_v43 = vmul.f32 %v952_v37, %v928_v18 }
 0x368   :  { %1602 = vmatpush1.msra.mxu1 %v1021_v16  ;;  %v1360_v47 = vpop.permute.xlu1 %1359  ;;  %1527 = vmatpush1.msra.mxu0 %v961_v59 }
 0x369   :  { %1603 = vmatprep.subr.mxu1 %v964_v43  ;;  %v1364_v50 = vpop.permute.xlu0 %1363  ;;  %1528 = vmatprep.subr.mxu0 %v958_v4 }
 0x36a   :  { %v1372_v2 = vsel %vm15165_vm8, %v1360_v47, %v1364_v50  ;;  %1604 = vmatpush1.msra.mxu1 %v963_v44  ;;  %1529 = vmatpush1.msra.mxu0 %v957_v62 }
 0x36b   :  { %1605 = vmatprep.subr.mxu1 %v960_v42  ;;  %v1404_v40 = vmul.f32 %v1386_v5, %v1372_v2 }
 0x36c   :  { %1606 = vmatpush1.msra.mxu1 %v959_v25  ;;  %v1356_v15 = vpop.permute.xlu1 %1355 }
 0x36d   :  { %v1374_v41 = vsel %vm15165_vm8, %v1356_v15, %v1360_v47  ;;  %1558 = vmatprep.subr.mxu0 %v1404_v40  ;;  %v1368_v17 = vpop.permute.xlu0 %1367 }
 0x36e   :  { %v1403_v21 = vmul.f32 %v1382_v39, %v1374_v41  ;;  %v1370_v31 = vsel %vm15165_vm8, %v1364_v50, %v1368_v17  ;;  %v1376_v54 = vsel %vm15165_vm8, %v1368_v17, %v1356_v15 }
 0x36f   :  { %v1405_v23 = vmul.f32 %v1390_v51, %v1370_v31  ;;  %v1406_v20 = vmul.f32 %v1394_v48, %v1376_v54 }
 0x370   :  { %v1354_v63 = vpop.permute.xlu1 %1353  ;;  %1559 = vmatpush2.msra.mxu0 %v1403_v21 }
 0x371   :  { %v1373_v9 = vsel %vm15165_vm8, %v1354_v63, %v15374_v27  ;;  %1635 = vmatprep.subr.mxu1 %v1406_v20  ;;  %1560 = vmatprep.subr.mxu0 %v1400_v22 }
 0x372   :  { %v1399_v49 = vmul.f32 %v1382_v39, %v1373_v9  ;;  %1636 = vmatpush2.msra.mxu1 %v1405_v23 }
 0x374   :  { %v1366_v53 = vpop.permute.xlu1 %1365  ;;  %1561 = vmatpush2.msra.mxu0 %v1399_v49 }
 0x375   :  { %v1369_v34 = vsel %vm15165_vm8, %v15373_v24, %v1366_v53  ;;  %v1375_v26 = vsel %vm15165_vm8, %v1366_v53, %v1354_v63  ;;  %1563 = vmatmul.mubr.f32.vlgmr.msra.gmra.mxu0 %v8821_v52 }
 0x376   :  { %v1401_v10 = vmul.f32 %v1390_v51, %v1369_v34  ;;  %v1402_v55 = vmul.f32 %v1394_v48, %v1375_v26  ;;  %8826 = vmatprep.mubr.msk.f32.mxu0 %vm636_vm0, %v8824_v46 }
 0x378   :  { %1637 = vmatprep.subr.mxu1 %v1402_v55 }
 0x379   :  { %1638 = vmatpush2.msra.mxu1 %v1401_v10  ;;  %1569 = vmatmul.mubr.f32.gmra.mxu0 %v8823_v45 }
 0x37a   :  { %1640 = vmatmul.mubr.f32.vlgmr.msra.gmra.mxu1 %v8821_v52 }
 0x37b   :  { %8828 = vmatprep.mubr.msk.f32.mxu1 %vm636_vm0, %v8824_v46 }
 0x37e   :  { %1646 = vmatmul.mubr.f32.gmra.mxu1 %v8823_v45 }
 0x435   :  { %v1564_v56 = vpop.f32.mrf.mxu0 }
 0x436   :  { %v1652_v36 = vmul.f32 %v1564_v56, %v1564_v56 }
 0x437   :  { %v1566_v37 = vpop.f32.mrf.mxu0 }
 0x438   :  { %v1653_v16 = vmul.f32 %v1566_v37, %v1566_v37  ;;  %v1660_v57 = vadd.f32 %v1566_v37, %v1564_v56 }
 0x439   :  { %v10151_v58 = vpop.f32.mrf.mxu0 }
 0x43a   :  { %v1670_v1 = vadd.f32 %v1653_v16, %v1652_v36  ;;  %v1641_v19 = vpop.f32.mrf.mxu1  ;;  %v1656_v7 = vmul.f32 %v10151_v58, %v10151_v58 }
 0x43b   :  { %v1654_v59 = vmul.f32 %v1641_v19, %v1641_v19  ;;  %v1661_v18 = vadd.f32 %v1660_v57, %v1641_v19  ;;  %v10155_v6 = vpop.f32.mrf.mxu0 }
 0x43c   :  { %v1643_v32 = vpop.f32.mrf.mxu1  ;;  %v1657_v14 = vmul.f32 %v10155_v6, %v10155_v6  ;;  %v1665_v44 = vadd.f32 %v10155_v6, %v10151_v58 }
 0x43d   :  { %v1671_v43 = vadd.f32 %v1670_v1, %v1654_v59  ;;  %v1655_v4 = vmul.f32 %v1643_v32, %v1643_v32  ;;  %v1662_v62 = vadd.f32 %v1661_v18, %v1643_v32 }
 0x43e   :  { %v1675_v47 = vadd.f32 %v1657_v14, %v1656_v7  ;;  %v10161_v50 = vpop.f32.mrf.mxu1 }
 0x43f   :  { %1663 = vadd.xlane.f32.xlu1 %v1662_v62  ;;  %v1658_v42 = vmul.f32 %v10161_v50, %v10161_v50  ;;  %v1666_v5 = vadd.f32 %v1665_v44, %v10161_v50  ;;  %v1672_v25 = vadd.f32 %v1671_v43, %v1655_v4 }
 0x440   :  { %v10166_v2 = vpop.f32.mrf.mxu1 }
 0x441   :  { %v1676_v39 = vadd.f32 %v1675_v47, %v1658_v42  ;;  %1673 = vadd.xlane.f32.xlu0 %v1672_v25  ;;  %v1659_v40 = vmul.f32 %v10166_v2, %v10166_v2  ;;  %v1667_v51 = vadd.f32 %v1666_v5, %v10166_v2 }
 0x443   :  { %v1677_v48 = vadd.f32 %v1676_v39, %v1659_v40 }
 0x445   :  { %1668 = vadd.xlane.f32.xlu0 %v1667_v51 }
 0x449   :  { %1678 = vadd.xlane.f32.xlu0 %v1677_v48 }
 0x4c8   :  { %v1664_v24 = vpop.xlane.xlu1 %1663 }
 0x4c9   :  { %v1680_v27 = vmul.f32 0.001953125, %v1664_v24 }
 0x4ca   :  { %v1674_v8 = vpop.xlane.xlu0 %1673 }
 0x4cb   :  { %v1684_v15 = vmul.f32 %v1680_v27, %v1680_v27  ;;  %v1682_v41 = vmul.f32 0.001953125, %v1674_v8  ;;  %v1690_v54 = vsub.f32 %v1564_v56, %v1680_v27  ;;  %v1691_v23 = vsub.f32 %v1566_v37, %v1680_v27 }
 0x4cc   :  { %v1692_v20 = vsub.f32 %v1641_v19, %v1680_v27  ;;  %v1693_v22 = vsub.f32 %v1643_v32, %v1680_v27 }
 0x4cd   :  { %v1686_v17 = vsub.f32 %v1682_v41, %v1684_v15 }
 0x4ce   :  { %v1669_v16 = vpop.xlane.xlu0 %1668 }
 0x4cf   :  { %v1688_v21 = vmax.f32 %v1686_v17, 0.0  ;;  %v1681_v57 = vmul.f32 0.001953125, %v1669_v16 }
 0x4d1   :  { %v1698_v31 = vadd.f32 1e-05, %v1688_v21  ;;  %v1685_v1 = vmul.f32 %v1681_v57, %v1681_v57  ;;  %v1696_v48 = vsub.f32 %v10161_v50, %v1681_v57  ;;  %v1695_v27 = vsub.f32 %v10155_v6, %v1681_v57 }
 0x4d2   :  { %v1679_v37 = vpop.xlane.xlu0 %1678  ;;  %v1697_v50 = vsub.f32 %v10166_v2, %v1681_v57 }
 0x4d3   :  { %9038 = vrsqrt.f32 %v1698_v31  ;;  %v1683_v19 = vmul.f32 0.001953125, %v1679_v37  ;;  %v1694_v31 = vsub.f32 %v10151_v58, %v1681_v57 }
 0x4d5   :  { %v1687_v18 = vsub.f32 %v1683_v19, %v1685_v1 }
 0x4d7   :  { %v1689_v47 = vmax.f32 %v1687_v18, 0.0 }
 0x4d9   :  { %v1699_v39 = vadd.f32 1e-05, %v1689_v47 }
 0x4e0   :  { %v9039_v63 = vpop.eup %9038 }
 0x4e1   :  { %v1702_v9 = vmul.f32 %v9039_v63, %v1690_v54  ;;  %v1703_v49 = vmul.f32 %v9039_v63, %v1691_v23  ;;  %v1704_v52 = vmul.f32 %v9039_v63, %v1692_v20  ;;  %v1705_v46 = vmul.f32 %v9039_v63, %v1693_v22 }
 0x4e3   :  { %v1718_v53 = vmin.f32 %v1702_v9, 0.0  ;;  %v1719_v34 = vmin.f32 %v1703_v49, 0.0  ;;  %v1720_v26 = vmin.f32 %v1704_v52, 0.0  ;;  %v1721_v10 = vmin.f32 %v1705_v46, 0.0 }
 0x4e4   :  { %vm1711_vm10 = vcmp.gt.f32.partialorder %v1703_v49, 0.0  ;;  %vm1712_vm11 = vcmp.gt.f32.partialorder %v1704_v52, 0.0  ;;  %vm1710_vm12 = vcmp.gt.f32.partialorder %v1702_v9, 0.0  ;;  %vm1713_vm13 = vcmp.gt.f32.partialorder %v1705_v46, 0.0 }
 0x4e5   :  { %v1726_v55 = vmul.f32 1.442695, %v1718_v53  ;;  %v1728_v45 = vmul.f32 1.442695, %v1719_v34  ;;  %v1730_v36 = vmul.f32 1.442695, %v1720_v26 }
 0x4e6   :  { %v1732_v56 = vmul.f32 1.442695, %v1721_v10 }
 0x4e7   :  { %9040 = vpow2.f32 %v1726_v55 }
 0x4e8   :  { %9042 = vpow2.f32 %v1728_v45 }
 0x4e9   :  { %9044 = vpow2.f32 %v1730_v36  ;;  %v8846_v36 = vld [vmem:[%s15124_s1 + $0x48] sm:$0xff] }
 0x4ea   :  { %9046 = vpow2.f32 %v1732_v56  ;;  %8849 = vmatprep.mubr.msk.f32.mxu0 %vm636_vm0, %v8846_v36  ;;  %8851 = vmatprep.mubr.msk.f32.mxu1 %vm636_vm0, %v8846_v36 }
 0x4eb   :  { %9048 = vrsqrt.f32 %v1699_v39 }
 0x4f4   :  { %v9041_v7 = vpop.eup %9040 }
 0x4f5   :  { %v9043_v59 = vpop.eup %9042  ;;  %v8829_v43 = vadd.f32 -1.0, %v9041_v7 }
 0x4f6   :  { %v9045_v32 = vpop.eup %9044  ;;  %v8830_v14 = vadd.f32 -1.0, %v9043_v59 }
 0x4f7   :  { %v8831_v44 = vadd.f32 -1.0, %v9045_v32  ;;  %v9047_v42 = vpop.eup %9046  ;;  %v10179_v5 = vsel %vm1710_vm12, %v1702_v9, %v8829_v43  ;;  %vm2111_vm12 = vcmp.lt.s32.totalorder %v9422_v11, 98 }
 0x4f8   :  { %v10171_v4 = vsel %vm1711_vm10, %v1703_v49, %v8830_v14  ;;  %15377 = vst [vmem:[#allocation17_spill] sm:$0xff] %v10179_v5  ;;  %v8832_v25 = vadd.f32 -1.0, %v9047_v42  ;;  %v9049_v51 = vpop.eup %9048 }
 0x4f9   :  { %15375 = vst [vmem:[#allocation15_spill] sm:$0xff] %v10171_v4  ;;  %v10173_v62 = vsel %vm1712_vm11, %v1704_v52, %v8831_v44  ;;  %2163 = vrot.lane.b32.xlu1 %v10171_v4, %s9223_s2  ;;  %v1708_v24 = vmul.f32 %v9049_v51, %v1696_v48  ;;  %v1707_v8 = vmul.f32 %v9049_v51, %v1695_v27  ;;  %vm2175_vm11 = vcmp.lt.s32.totalorder %v9422_v11, 96 }
 0x4fa   :  { %15376 = vst [vmem:[#allocation16_spill] sm:$0xff] %v10173_v62  ;;  %2167 = vrot.lane.b32.xlu0 %v10173_v62, %s9223_s2  ;;  %v10185_v40 = vsel %vm1713_vm13, %v1705_v46, %v8832_v25  ;;  %v1709_v41 = vmul.f32 %v9049_v51, %v1697_v50  ;;  %v1706_v6 = vmul.f32 %v9049_v51, %v1694_v31  ;;  %vm2047_vm13 = vcmp.lt.s32.totalorder %v9422_v11, 126 }
 0x4fb   :  { %15378 = vst [vmem:[#allocation18_spill] sm:$0xff] %v10185_v40  ;;  %v1724_v15 = vmin.f32 %v1708_v24, 0.0  ;;  %v1723_v17 = vmin.f32 %v1707_v8, 0.0  ;;  %vm1716_vm14 = vcmp.gt.f32.partialorder %v1708_v24, 0.0  ;;  %vm1715_vm15 = vcmp.gt.f32.partialorder %v1707_v8, 0.0 }
 0x4fc   :  { %v1725_v54 = vmin.f32 %v1709_v41, 0.0  ;;  %v1722_v2 = vmin.f32 %v1706_v6, 0.0  ;;  %vm1717_vm9 = vcmp.gt.f32.partialorder %v1709_v41, 0.0  ;;  %vm1714_vm10 = vcmp.gt.f32.partialorder %v1706_v6, 0.0 }
 0x4fd   :  { %2159 = vrot.lane.b32.xlu1 %v10179_v5, %s9223_s2  ;;  %v1738_v21 = vmul.f32 1.442695, %v1724_v15  ;;  %v1736_v23 = vmul.f32 1.442695, %v1723_v17 }
 0x4fe   :  { %2099 = vrot.lane.b32.xlu0 %v10171_v4, %s9224_s27  ;;  %v1740_v20 = vmul.f32 1.442695, %v1725_v54  ;;  %v1734_v58 = vmul.f32 1.442695, %v1722_v2 }
 0x4ff   :  { %9050 = vpow2.f32 %v1738_v21  ;;  %v8843_v2 = vld [vmem:[%s15126_s3 + $0x40] ss:$8 sm:$0xf] }
 0x500   :  { %9052 = vpow2.f32 %v1736_v23  ;;  %v2202_v60 = vrot.slane %v8843_v2, %v9457_v29 }
 0x501   :  { %2103 = vrot.lane.b32.xlu1 %v10173_v62, %s9224_s27  ;;  %9054 = vpow2.f32 %v1740_v20 }
 0x502   :  { %2171 = vrot.lane.b32.xlu0 %v10185_v40, %s9223_s2  ;;  %9056 = vpow2.f32 %v1734_v58 }
 0x505   :  { %2095 = vrot.lane.b32.xlu1 %v10179_v5, %s9224_s27 }
 0x506   :  { %2035 = vrot.lane.b32.xlu0 %v10171_v4, %s9225_s28 }
 0x509   :  { %2039 = vrot.lane.b32.xlu1 %v10173_v62, %s9225_s28 }
 0x50a   :  { %2107 = vrot.lane.b32.xlu0 %v10185_v40, %s9224_s27 }
 0x50c   :  { %v9051_v22 = vpop.eup %9050 }
 0x50d   :  { %2031 = vrot.lane.b32.xlu1 %v10179_v5, %s9225_s28  ;;  %v8835_v63 = vadd.f32 -1.0, %v9051_v22  ;;  %v9053_v9 = vpop.eup %9052  ;;  %v2194_v22 = vrot.slane %v8843_v2, %v9430_v12 }
 0x50e   :  { %1963 = vrot.lane.b32.xlu0 %v10171_v4, %s9226_s29  ;;  %v8834_v49 = vadd.f32 -1.0, %v9053_v9  ;;  %v9055_v46 = vpop.eup %9054 }
 0x50f   :  { %v10239_v52 = vsel %vm1716_vm14, %v1708_v24, %v8835_v63  ;;  %v9057_v53 = vpop.eup %9056  ;;  %v8836_v34 = vadd.f32 -1.0, %v9055_v46  ;;  %v2190_v46 = vrot.slane %v8843_v2, %v9432_v13  ;;  %vm1975_vm14 = vcmp.lt.s32.totalorder %v9422_v11, 2 }
 0x510   :  { %15379 = vst [vmem:[#allocation19_spill] sm:$0xff] %v10239_v52  ;;  %v10245_v26 = vsel %vm1715_vm15, %v1707_v8, %v8834_v49  ;;  %v8833_v10 = vadd.f32 -1.0, %v9057_v53  ;;  %vm1911_vm15 = vcmp.lt.s32.totalorder %v9422_v11, 30 }
 0x511   :  { %2043 = vrot.lane.b32.xlu1 %v10185_v40, %s9225_s28  ;;  %15380 = vst [vmem:[#allocation20_spill] sm:$0xff] %v10245_v26  ;;  %v10251_v55 = vsel %vm1717_vm9, %v1709_v41, %v8836_v34  ;;  %v2198_v34 = vrot.slane %v8843_v2, %v9455_v28  ;;  %vm15167_vm9 = vcmp.lt.s32.totalorder %v9422_v11, 32 }
 0x512   :  { %1895 = vrot.lane.b32.xlu0 %v10179_v5, %s9227_s30  ;;  %15381 = vst [vmem:[#allocation21_spill] sm:$0xff] %v10251_v55  ;;  %v10257_v45 = vsel %vm1714_vm10, %v1706_v6, %v8833_v10  ;;  %vm15166_vm10 = vcmp.lt.s32.totalorder %v9422_v11, 34 }
 0x513   :  { %15382 = vst [vmem:[#allocation22_spill] sm:$0xff] %v10257_v45 }
 0x515   :  { %1959 = vrot.lane.b32.xlu1 %v10179_v5, %s9226_s29 }
 0x516   :  { %1967 = vrot.lane.b32.xlu0 %v10173_v62, %s9226_s29 }
 0x519   :  { %1971 = vrot.lane.b32.xlu1 %v10185_v40, %s9226_s29 }
 0x51a   :  { %1831 = vrot.lane.b32.xlu0 %v10179_v5, %s9228_s5 }
 0x51d   :  { %1899 = vrot.lane.b32.xlu1 %v10171_v4, %s9227_s30 }
 0x51e   :  { %1903 = vrot.lane.b32.xlu0 %v10173_v62, %s9227_s30 }
 0x521   :  { %1907 = vrot.lane.b32.xlu1 %v10185_v40, %s9227_s30 }
 0x522   :  { %1767 = vrot.lane.b32.xlu0 %v10179_v5, %s9229_s6 }
 0x525   :  { %1835 = vrot.lane.b32.xlu1 %v10171_v4, %s9228_s5 }
 0x526   :  { %1839 = vrot.lane.b32.xlu0 %v10173_v62, %s9228_s5 }
 0x529   :  { %1843 = vrot.lane.b32.xlu1 %v10185_v40, %s9228_s5 }
 0x52a   :  { %1775 = vrot.lane.b32.xlu0 %v10173_v62, %s9229_s6 }
 0x52d   :  { %1771 = vrot.lane.b32.xlu1 %v10171_v4, %s9229_s6 }
 0x52e   :  { %2231 = vrot.lane.b32.xlu0 %v10173_v62, %s9230_s7 }
 0x531   :  { %1779 = vrot.lane.b32.xlu1 %v10185_v40, %s9229_s6 }
 0x532   :  { %2169 = vrot.lane.b32.xlu0 %v10239_v52, %s9223_s2 }
 0x535   :  { %2227 = vrot.lane.b32.xlu1 %v10171_v4, %s9230_s7 }
 0x536   :  { %2101 = vrot.lane.b32.xlu0 %v10245_v26, %s9224_s27 }
 0x539   :  { %2165 = vrot.lane.b32.xlu1 %v10245_v26, %s9223_s2 }
 0x53a   :  { %2173 = vrot.lane.b32.xlu0 %v10251_v55, %s9223_s2 }
 0x53d   :  { %2161 = vrot.lane.b32.xlu1 %v10257_v45, %s9223_s2 }
 0x53e   :  { %2037 = vrot.lane.b32.xlu0 %v10245_v26, %s9225_s28 }
 0x541   :  { %2105 = vrot.lane.b32.xlu1 %v10239_v52, %s9224_s27 }
 0x542   :  { %2109 = vrot.lane.b32.xlu0 %v10251_v55, %s9224_s27 }
 0x545   :  { %2097 = vrot.lane.b32.xlu1 %v10257_v45, %s9224_s27 }
 0x546   :  { %2045 = vrot.lane.b32.xlu0 %v10251_v55, %s9225_s28 }
 0x549   :  { %2041 = vrot.lane.b32.xlu1 %v10239_v52, %s9225_s28 }
 0x54a   :  { %1961 = vrot.lane.b32.xlu0 %v10257_v45, %s9226_s29 }
 0x54d   :  { %2033 = vrot.lane.b32.xlu1 %v10257_v45, %s9225_s28 }
 0x54e   :  { %1973 = vrot.lane.b32.xlu0 %v10251_v55, %s9226_s29 }
 0x551   :  { %1965 = vrot.lane.b32.xlu1 %v10245_v26, %s9226_s29 }
 0x552   :  { %1897 = vrot.lane.b32.xlu0 %v10257_v45, %s9227_s30 }
 0x555   :  { %1901 = vrot.lane.b32.xlu1 %v10245_v26, %s9227_s30 }
 0x556   :  { %1969 = vrot.lane.b32.xlu0 %v10239_v52, %s9226_s29 }
 0x559   :  { %1909 = vrot.lane.b32.xlu1 %v10251_v55, %s9227_s30 }
 0x55a   :  { %1833 = vrot.lane.b32.xlu0 %v10257_v45, %s9228_s5 }
 0x55d   :  { %1837 = vrot.lane.b32.xlu1 %v10245_v26, %s9228_s5 }
 0x55e   :  { %1905 = vrot.lane.b32.xlu0 %v10239_v52, %s9227_s30 }
 0x561   :  { %1845 = vrot.lane.b32.xlu1 %v10251_v55, %s9228_s5 }
 0x562   :  { %1769 = vrot.lane.b32.xlu0 %v10257_v45, %s9229_s6 }
 0x565   :  { %1773 = vrot.lane.b32.xlu1 %v10245_v26, %s9229_s6 }
 0x566   :  { %1841 = vrot.lane.b32.xlu0 %v10239_v52, %s9228_s5 }
 0x569   :  { %1781 = vrot.lane.b32.xlu1 %v10251_v55, %s9229_s6 }
 0x56a   :  { %1777 = vrot.lane.b32.xlu0 %v10239_v52, %s9229_s6 }
 0x56b   :  { %v2164_v16 = vpop.permute.xlu1 %2163 }
 0x56c   :  { %v2168_v56 = vpop.permute.xlu0 %2167 }
 0x56d   :  { %2229 = vrot.lane.b32.xlu1 %v10245_v26, %s9230_s7  ;;  %v2178_v53 = vsel %vm2175_vm11, %v2164_v16, %v2168_v56 }
 0x56e   :  { %2233 = vrot.lane.b32.xlu0 %v10239_v52, %s9230_s7  ;;  %v2208_v30 = vmul.f32 %v2194_v22, %v2178_v53 }
 0x56f   :  { %v2160_v37 = vpop.permute.xlu1 %2159 }
 0x570   :  { %v10316_v57 = vpop.permute.xlu0 %2099  ;;  %v2180_v0 = vsel %vm2175_vm11, %v2160_v37, %v2164_v16 }
 0x571   :  { %2225 = vrot.lane.b32.xlu1 %v10257_v45, %s9230_s7 }
 0x572   :  { %2237 = vrot.lane.b32.xlu0 %v10251_v55, %s9230_s7 }
 0x573   :  { %v10322_v1 = vpop.permute.xlu1 %2103 }
 0x574   :  { %v2172_v19 = vpop.permute.xlu0 %2171 }
 0x575   :  { %2223 = vrot.lane.b32.xlu1 %v10179_v5, %s9230_s7  ;;  %v2176_v2 = vsel %vm2175_vm11, %v2168_v56, %v2172_v19  ;;  %v2134_v56 = vrot.slane %v8842_v3, %v9455_v28 }
 0x577   :  { %v10326_v7 = vpop.permute.xlu1 %2095 }
 0x578   :  { %v10328_v59 = vpop.permute.xlu0 %2035 }
 0x579   :  { %2235 = vrot.lane.b32.xlu1 %v10185_v40, %s9230_s7 }
 0x57b   :  { %v10332_v18 = vpop.permute.xlu1 %2039 }
 0x57c   :  { %v10334_v32 = vpop.permute.xlu0 %2107 }
 0x57f   :  { %v10336_v14 = vpop.permute.xlu1 %2031 }
 0x580   :  { %v10338_v44 = vpop.permute.xlu0 %1963 }
 0x583   :  { %v10340_v43 = vpop.permute.xlu1 %2043 }
 0x584   :  { %v10342_v47 = vpop.permute.xlu0 %1895 }
 0x587   :  { %v10344_v42 = vpop.permute.xlu1 %1959 }
 0x588   :  { %v10346_v25 = vpop.permute.xlu0 %1967 }
 0x58b   :  { %v10348_v39 = vpop.permute.xlu1 %1971 }
 0x58c   :  { %v10350_v51 = vpop.permute.xlu0 %1831 }
 0x58f   :  { %v10352_v48 = vpop.permute.xlu1 %1899 }
 0x590   :  { %v10354_v24 = vpop.permute.xlu0 %1903 }
 0x593   :  { %v10356_v27 = vpop.permute.xlu1 %1907 }
 0x594   :  { %v10358_v8 = vpop.permute.xlu0 %1767 }
 0x597   :  { %v10360_v15 = vpop.permute.xlu1 %1835 }
 0x598   :  { %v10362_v50 = vpop.permute.xlu0 %1839 }
 0x59b   :  { %v10364_v41 = vpop.permute.xlu1 %1843 }
 0x59c   :  { %v10366_v17 = vpop.permute.xlu0 %1775 }
 0x59f   :  { %v10368_v21 = vpop.permute.xlu1 %1771 }
 0x5a0   :  { %v10370_v31 = vpop.permute.xlu0 %2231 }
 0x5a1   :  { %15383 = vst [vmem:[#allocation23_spill] sm:$0xff] %v10370_v31  ;;  %v2209_v31 = vmul.f32 %v2198_v34, %v2176_v2 }
 0x5a3   :  { %v10372_v6 = vpop.permute.xlu1 %1779 }
 0x5a4   :  { %v2170_v54 = vpop.permute.xlu0 %2169 }
 0x5a7   :  { %v10374_v23 = vpop.permute.xlu1 %2227 }
 0x5a8   :  { %15384 = vst [vmem:[#allocation24_spill] sm:$0xff] %v10374_v23  ;;  %v2102_v20 = vpop.permute.xlu0 %2101 }
 0x5ab   :  { %v2166_v58 = vpop.permute.xlu1 %2165 }
 0x5ac   :  { %v2179_v63 = vsel %vm2175_vm11, %v2166_v58, %v2170_v54  ;;  %v2174_v9 = vpop.permute.xlu0 %2173 }
 0x5ad   :  { %v2212_v49 = vmul.f32 %v2194_v22, %v2179_v63  ;;  %v2177_v10 = vsel %vm2175_vm11, %v2170_v54, %v2174_v9  ;;  %v2182_v63 = vsel %vm2175_vm11, %v2172_v19, %v2160_v37  ;;  %v2207_v37 = vmul.f32 %v2190_v46, %v2180_v0 }
 0x5ae   :  { %v2213_v33 = vmul.f32 %v2198_v34, %v2177_v10  ;;  %v2210_v23 = vmul.f32 %v2202_v60, %v2182_v63  ;;  %v2126_v0 = vrot.slane %v8842_v3, %v9432_v13 }
 0x5af   :  { %v2162_v36 = vpop.permute.xlu1 %2161  ;;  %2370 = vmatprep.subr.mxu0 %v2212_v49 }
 0x5b0   :  { %v2181_v61 = vsel %vm2175_vm11, %v2162_v36, %v2166_v58  ;;  %v2183_v54 = vsel %vm2175_vm11, %v2174_v9, %v2162_v36  ;;  %v10401_v38 = vpop.permute.xlu0 %2037  ;;  %v2130_v58 = vrot.slane %v8842_v3, %v9430_v12 }
 0x5b1   :  { %v2211_v49 = vmul.f32 %v2190_v46, %v2181_v61  ;;  %v2214_v16 = vmul.f32 %v2202_v60, %v2183_v54  ;;  %v2114_v60 = vsel %vm2111_vm12, %v10316_v57, %v10322_v1 }
 0x5b3   :  { %v2106_v35 = vpop.permute.xlu1 %2105  ;;  %2371 = vmatpush1.msra.mxu0 %v2211_v49  ;;  %2447 = vmatprep.subr.mxu1 %v2214_v16 }
 0x5b4   :  { %v2115_v9 = vsel %vm2111_vm12, %v2102_v20, %v2106_v35  ;;  %v2110_v36 = vpop.permute.xlu0 %2109  ;;  %2372 = vmatprep.subr.mxu0 %v2208_v30  ;;  %2448 = vmatpush1.msra.mxu1 %v2213_v33  ;;  %v2138_v30 = vrot.slane %v8842_v3, %v9457_v29  ;;  %v2116_v33 = vsel %vm2111_vm12, %v10326_v7, %v10316_v57 }
 0x5b5   :  { %2373 = vmatpush1.msra.mxu0 %v2207_v37  ;;  %2449 = vmatprep.subr.mxu1 %v2210_v23  ;;  %v2148_v61 = vmul.f32 %v2130_v58, %v2115_v9  ;;  %v2113_v19 = vsel %vm2111_vm12, %v2106_v35, %v2110_v36  ;;  %v8841_v23 = vld [vmem:[%s15126_s3 + $0x26] ss:$8 sm:$0xf]  ;;  %v2112_v57 = vsel %vm2111_vm12, %v10322_v1, %v10334_v32 }
 0x5b6   :  { %2450 = vmatpush1.msra.mxu1 %v2209_v31  ;;  %v2118_v31 = vsel %vm2111_vm12, %v10334_v32, %v10326_v7  ;;  %v2149_v10 = vmul.f32 %v2134_v56, %v2113_v19  ;;  %v2144_v7 = vmul.f32 %v2130_v58, %v2114_v60  ;;  %v2143_v63 = vmul.f32 %v2126_v0, %v2116_v33 }
 0x5b7   :  { %v2098_v22 = vpop.permute.xlu1 %2097  ;;  %2374 = vmatprep.subr.mxu0 %v2148_v61  ;;  %v2066_v2 = vrot.slane %v8841_v23, %v9430_v12  ;;  %v2145_v49 = vmul.f32 %v2134_v56, %v2112_v57  ;;  %v2062_v32 = vrot.slane %v8841_v23, %v9432_v13  ;;  %v2050_v58 = vsel %vm2047_vm13, %v10328_v59, %v10332_v18 }
 0x5b8   :  { %v2117_v35 = vsel %vm2111_vm12, %v2098_v22, %v2102_v20  ;;  %v2119_v3 = vsel %vm2111_vm12, %v2110_v36, %v2098_v22  ;;  %v2046_v46 = vpop.permute.xlu0 %2045  ;;  %v2146_v20 = vmul.f32 %v2138_v30, %v2118_v31  ;;  %v2070_v9 = vrot.slane %v8841_v23, %v9455_v28 }
 0x5b9   :  { %v2147_v53 = vmul.f32 %v2126_v0, %v2117_v35  ;;  %v2150_v34 = vmul.f32 %v2138_v30, %v2119_v3  ;;  %v2074_v0 = vrot.slane %v8841_v23, %v9457_v29  ;;  %v2052_v60 = vsel %vm2047_vm13, %v10336_v14, %v10328_v59  ;;  %v8840_v59 = vld [vmem:[%s15126_s3 + $0x24] ss:$8 sm:$0xf] }
 0x5ba   :  { %v2054_v56 = vsel %vm2047_vm13, %v10340_v43, %v10336_v14  ;;  %v2048_v33 = vsel %vm2047_vm13, %v10332_v18, %v10340_v43  ;;  %v2080_v35 = vmul.f32 %v2066_v2, %v2050_v58  ;;  %v2079_v3 = vmul.f32 %v2062_v32, %v2052_v60 }
 0x5bb   :  { %v2042_v54 = vpop.permute.xlu1 %2041  ;;  %2375 = vmatpush1.msra.mxu0 %v2147_v53  ;;  %2451 = vmatprep.subr.mxu1 %v2150_v34  ;;  %v2082_v57 = vmul.f32 %v2074_v0, %v2054_v56  ;;  %v2081_v53 = vmul.f32 %v2070_v9, %v2048_v33  ;;  %v1998_v18 = vrot.slane %v8840_v59, %v9455_v28  ;;  %v8838_v33 = vld [vmem:[%s15126_s3 + $0x22] ss:$8 sm:$0xf] }
 0x5bc   :  { %v2051_v16 = vsel %vm2047_vm13, %v10401_v38, %v2042_v54  ;;  %v1962_v37 = vpop.permute.xlu0 %1961  ;;  %2376 = vmatprep.subr.mxu0 %v2144_v7  ;;  %2452 = vmatpush1.msra.mxu1 %v2149_v10  ;;  %v2049_v36 = vsel %vm2047_vm13, %v2042_v54, %v2046_v46  ;;  %v1994_v7 = vrot.slane %v8840_v59, %v9430_v12 }
 0x5bd   :  { %2377 = vmatpush1.msra.mxu0 %v2143_v63  ;;  %2453 = vmatprep.subr.mxu1 %v2146_v20  ;;  %v2084_v1 = vmul.f32 %v2066_v2, %v2051_v16  ;;  %v2085_v14 = vmul.f32 %v2070_v9, %v2049_v36  ;;  %v1990_v63 = vrot.slane %v8840_v59, %v9432_v13 }
 0x5be   :  { %2454 = vmatpush1.msra.mxu1 %v2145_v49  ;;  %v2002_v54 = vrot.slane %v8840_v59, %v9457_v29  ;;  %v1980_v2 = vsel %vm1975_vm14, %v10344_v42, %v10338_v44  ;;  %v1978_v49 = vsel %vm1975_vm14, %v10338_v44, %v10346_v25  ;;  %v1976_v16 = vsel %vm1975_vm14, %v10346_v25, %v10348_v39 }
 0x5bf   :  { %v2034_v61 = vpop.permute.xlu1 %2033  ;;  %2378 = vmatprep.subr.mxu0 %v2084_v1  ;;  %v1982_v1 = vsel %vm1975_vm14, %v10348_v39, %v10344_v42  ;;  %v1916_v60 = vsel %vm1911_vm15, %v10342_v47, %v10352_v48 }
 0x5c0   :  { %v2053_v19 = vsel %vm2047_vm13, %v2034_v61, %v10401_v38  ;;  %v2055_v22 = vsel %vm2047_vm13, %v2046_v46, %v2034_v61  ;;  %v1974_v30 = vpop.permute.xlu0 %1973  ;;  %v10474_v38 = vld [vmem:[%s15126_s3 + $0x23] ss:$8 sm:$0xf]  ;;  %v2008_v61 = vmul.f32 %v1994_v7, %v1980_v2 }
 0x5c1   :  { %v2083_v31 = vmul.f32 %v2062_v32, %v2053_v19  ;;  %v2086_v23 = vmul.f32 %v2074_v0, %v2055_v22  ;;  %v1983_v34 = vsel %vm1975_vm14, %v1974_v30, %v1962_v37  ;;  %v1930_v20 = vrot.slane %v10474_v38, %v9430_v12 }
 0x5c2   :  { %v2011_v32 = vmul.f32 %v1990_v63, %v1983_v34  ;;  %v2007_v0 = vmul.f32 %v1990_v63, %v1982_v1  ;;  %v1926_v56 = vrot.slane %v10474_v38, %v9432_v13  ;;  %v2010_v22 = vmul.f32 %v2002_v54, %v1976_v16 }
 0x5c3   :  { %v1966_v46 = vpop.permute.xlu1 %1965  ;;  %2379 = vmatpush1.msra.mxu0 %v2083_v31  ;;  %2455 = vmatprep.subr.mxu1 %v2086_v23  ;;  %v1938_v34 = vrot.slane %v10474_v38, %v9457_v29 }
 0x5c4   :  { %v1898_v43 = vpop.permute.xlu0 %1897  ;;  %2380 = vmatprep.subr.mxu0 %v2080_v35  ;;  %2456 = vmatpush1.msra.mxu1 %v2085_v14  ;;  %v1981_v10 = vsel %vm1975_vm14, %v1962_v37, %v1966_v46  ;;  %v2009_v14 = vmul.f32 %v1998_v18, %v1978_v49  ;;  %v1862_v49 = vrot.slane %v8838_v33, %v9432_v13 }
 0x5c5   :  { %2381 = vmatpush1.msra.mxu0 %v2079_v3  ;;  %2457 = vmatprep.subr.mxu1 %v2082_v57  ;;  %v2012_v44 = vmul.f32 %v1994_v7, %v1981_v10  ;;  %v1944_v3 = vmul.f32 %v1930_v20, %v1916_v60  ;;  %v1866_v57 = vrot.slane %v8838_v33, %v9430_v12 }
 0x5c6   :  { %2382 = vmatprep.subr.mxu0 %v10245_v26  ;;  %2458 = vmatpush1.msra.mxu1 %v2081_v53  ;;  %v1934_v53 = vrot.slane %v10474_v38, %v9455_v28  ;;  %v1912_v10 = vsel %vm1911_vm15, %v10354_v24, %v10356_v27  ;;  %v1874_v60 = vrot.slane %v8838_v33, %v9457_v29 }
 0x5c7   :  { %v1902_v37 = vpop.permute.xlu1 %1901  ;;  %2383 = vmatpush1.msra.mxu0 %v10257_v45  ;;  %2459 = vmatprep.subr.mxu1 %v10251_v55 }
 0x5c8   :  { %v1970_v58 = vpop.permute.xlu0 %1969  ;;  %2384 = vmatprep.subr.mxu0 %v10171_v4  ;;  %2460 = vmatpush1.msra.mxu1 %v10239_v52  ;;  %v1917_v25 = vsel %vm1911_vm15, %v1898_v43, %v1902_v37 }
 0x5c9   :  { %v1977_v9 = vsel %vm1975_vm14, %v1970_v58, %v1974_v30  ;;  %v1979_v36 = vsel %vm1975_vm14, %v1966_v46, %v1970_v58  ;;  %2385 = vmatpush1.msra.mxu0 %v10179_v5  ;;  %2461 = vmatprep.subr.mxu1 %v10185_v40  ;;  %v1918_v30 = vsel %vm1911_vm15, %v10356_v27, %v10342_v47  ;;  %v8864_v40 = vld [vmem:[%s15126_s3 + $0x45] ss:$8 sm:$0xf] }
 0x5ca   :  { %v2013_v42 = vmul.f32 %v1998_v18, %v1979_v36  ;;  %2386 = vmatprep.subr.mxu0 %v2012_v44  ;;  %2462 = vmatpush1.msra.mxu1 %v10173_v62  ;;  %v2014_v39 = vmul.f32 %v2002_v54, %v1977_v9  ;;  %v1948_v23 = vmul.f32 %v1930_v20, %v1917_v25 }
 0x5cb   :  { %v1910_v19 = vpop.permute.xlu1 %1909  ;;  %2387 = vmatpush1.msra.mxu0 %v2011_v32  ;;  %v1943_v46 = vmul.f32 %v1926_v56, %v1918_v30  ;;  %v1914_v20 = vsel %vm1911_vm15, %v10352_v48, %v10354_v24  ;;  %v1852_v27 = vsel %vm15167_vm9, %v10350_v51, %v10360_v15  ;;  %v8837_v48 = vld [vmem:[%s15126_s3 + $0x21] ss:$8 sm:$0xf]  ;;  %v1946_v32 = vmul.f32 %v1938_v34, %v1912_v10 }
 0x5cc   :  { %v1919_v59 = vsel %vm1911_vm15, %v1910_v19, %v1898_v43  ;;  %2463 = vmatprep.subr.mxu1 %v2014_v39  ;;  %v1834_v31 = vpop.permute.xlu0 %1833  ;;  %2388 = vmatprep.subr.mxu0 %v2008_v61  ;;  %v1945_v58 = vmul.f32 %v1934_v53, %v1914_v20  ;;  %v1880_v25 = vmul.f32 %v1866_v57, %v1852_v27 }
 0x5cd   :  { %v1947_v35 = vmul.f32 %v1926_v56, %v1919_v59  ;;  %2464 = vmatpush1.msra.mxu1 %v2013_v42  ;;  %2389 = vmatpush1.msra.mxu0 %v2007_v0  ;;  %v1802_v36 = vrot.slane %v8837_v48, %v9430_v12  ;;  %v1870_v42 = vrot.slane %v8838_v33, %v9455_v28 }
 0x5ce   :  { %2465 = vmatprep.subr.mxu1 %v2010_v22  ;;  %2390 = vmatprep.subr.mxu0 %v1948_v23  ;;  %v1850_v39 = vsel %vm15167_vm9, %v10360_v15, %v10362_v50  ;;  %v1848_v56 = vsel %vm15167_vm9, %v10362_v50, %v10364_v41  ;;  %v1788_v33 = vsel %vm15166_vm10, %v10358_v8, %v10368_v21 }
 0x5cf   :  { %2466 = vmatpush1.msra.mxu1 %v2009_v14  ;;  %v1838_v47 = vpop.permute.xlu1 %1837  ;;  %2391 = vmatpush1.msra.mxu0 %v1947_v35  ;;  %v1798_v23 = vrot.slane %v8837_v48, %v9432_v13  ;;  %v1881_v14 = vmul.f32 %v1870_v42, %v1850_v39  ;;  %v1790_v35 = vsel %vm15166_vm10, %v10372_v6, %v10358_v8  ;;  %v8844_v8 = vld [vmem:[%s15126_s3 + $0x41] ss:$8 sm:$0xf] }
 0x5d0   :  { %v1853_v18 = vsel %vm15167_vm9, %v1834_v31, %v1838_v47  ;;  %v1906_v43 = vpop.permute.xlu0 %1905  ;;  %2392 = vmatprep.subr.mxu0 %v1944_v3  ;;  %v2870_v55 = vrot.slane %v8864_v40, %v9455_v28 }
 0x5d1   :  { %v1913_v7 = vsel %vm1911_vm15, %v1906_v43, %v1910_v19  ;;  %v1915_v63 = vsel %vm1911_vm15, %v1902_v37, %v1906_v43  ;;  %2393 = vmatpush1.msra.mxu0 %v1943_v46  ;;  %v1884_v54 = vmul.f32 %v1866_v57, %v1853_v18  ;;  %v1854_v37 = vsel %vm15167_vm9, %v10364_v41, %v10350_v51 }
 0x5d2   :  { %v1949_v2 = vmul.f32 %v1934_v53, %v1915_v63  ;;  %v1950_v38 = vmul.f32 %v1938_v34, %v1913_v7  ;;  %v1879_v9 = vmul.f32 %v1862_v49, %v1854_v37  ;;  %v1810_v41 = vrot.slane %v8837_v48, %v9457_v29 }
 0x5d3   :  { %v1846_v16 = vpop.permute.xlu1 %1845  ;;  %2394 = vmatprep.subr.mxu0 %v1884_v54  ;;  %v1784_v57 = vsel %vm15166_vm10, %v10366_v17, %v10372_v6  ;;  %v1786_v34 = vsel %vm15166_vm10, %v10368_v21, %v10366_v17  ;;  %v1816_v7 = vmul.f32 %v1802_v36, %v1788_v33  ;;  %v1815_v63 = vmul.f32 %v1798_v23, %v1790_v35  ;;  %v8847_v33 = vld [vmem:[%s15124_s1 + $0x50] sm:$0xff] }
 0x5d4   :  { %v1855_v24 = vsel %vm15167_vm9, %v1846_v16, %v1834_v31  ;;  %2467 = vmatprep.subr.mxu1 %v1950_v38  ;;  %v1770_v1 = vpop.permute.xlu0 %1769  ;;  %v1806_v31 = vrot.slane %v8837_v48, %v9455_v28  ;;  %v2258_v38 = vrot.slane %v8844_v8, %v9430_v12  ;;  %v2254_v21 = vrot.slane %v8844_v8, %v9432_v13  ;;  %v15385_v48 = vld [vmem:[#allocation23_spill] sm:$0xff] }
 0x5d5   :  { %v1883_v44 = vmul.f32 %v1862_v49, %v1855_v24  ;;  %2468 = vmatpush1.msra.mxu1 %v1949_v2  ;;  %v1818_v2 = vmul.f32 %v1810_v41, %v1784_v57  ;;  %v2266_v37 = vrot.slane %v8844_v8, %v9457_v29  ;;  %v15386_v24 = vld [vmem:[#allocation24_spill] sm:$0xff] }
 0x5d6   :  { %2469 = vmatprep.subr.mxu1 %v1946_v32  ;;  %v1817_v27 = vmul.f32 %v1806_v31, %v1786_v34 }
 0x5d7   :  { %2470 = vmatpush1.msra.mxu1 %v1945_v58  ;;  %v1774_v51 = vpop.permute.xlu1 %1773  ;;  %2395 = vmatpush1.msra.mxu0 %v1883_v44 }
 0x5d8   :  { %v1789_v61 = vsel %vm15166_vm10, %v1770_v1, %v1774_v51  ;;  %v1842_v0 = vpop.permute.xlu0 %1841  ;;  %2396 = vmatprep.subr.mxu0 %v1880_v25 }
 0x5d9   :  { %v1849_v19 = vsel %vm15167_vm9, %v1842_v0, %v1846_v16  ;;  %v1851_v22 = vsel %vm15167_vm9, %v1838_v47, %v1842_v0  ;;  %2397 = vmatpush1.msra.mxu0 %v1879_v9  ;;  %v1820_v15 = vmul.f32 %v1802_v36, %v1789_v61  ;;  %v1882_v47 = vmul.f32 %v1874_v60, %v1848_v56  ;;  %v8845_v56 = vld [vmem:[%s15124_s1 + $0x40] sm:$0xff] }
 0x5da   :  { %v1885_v30 = vmul.f32 %v1870_v42, %v1851_v22  ;;  %v1886_v59 = vmul.f32 %v1874_v60, %v1849_v19  ;;  %v2262_v16 = vrot.slane %v8844_v8, %v9455_v28  ;;  %v8848_v19 = vld [vmem:[%s15124_s1 + $0x58] sm:$0xff] }
 0x5db   :  { %v1782_v50 = vpop.permute.xlu1 %1781  ;;  %2398 = vmatprep.subr.mxu0 %v1820_v15 }
 0x5dc   :  { %v1791_v3 = vsel %vm15166_vm10, %v1782_v50, %v1770_v1  ;;  %2471 = vmatprep.subr.mxu1 %v1886_v59  ;;  %v1778_v46 = vpop.permute.xlu0 %1777  ;;  %v2242_v1 = vsel %vm2239_vm2, %v15386_v24, %v15385_v48 }
 0x5dd   :  { %v1819_v53 = vmul.f32 %v1798_v23, %v1791_v3  ;;  %v1785_v18 = vsel %vm15166_vm10, %v1778_v46, %v1782_v50  ;;  %v1787_v43 = vsel %vm15166_vm10, %v1774_v51, %v1778_v46  ;;  %2472 = vmatpush1.msra.mxu1 %v1885_v30  ;;  %v2272_v39 = vmul.f32 %v2258_v38, %v2242_v1 }
 0x5de   :  { %v1821_v10 = vmul.f32 %v1806_v31, %v1787_v43  ;;  %2473 = vmatprep.subr.mxu1 %v1882_v47  ;;  %v1822_v6 = vmul.f32 %v1810_v41, %v1785_v18 }
 0x5df   :  { %2474 = vmatpush1.msra.mxu1 %v1881_v14  ;;  %v2230_v54 = vpop.permute.xlu1 %2229  ;;  %2399 = vmatpush1.msra.mxu0 %v1819_v53 }
 0x5e0   :  { %2475 = vmatprep.subr.mxu1 %v1822_v6  ;;  %v2234_v20 = vpop.permute.xlu0 %2233  ;;  %2400 = vmatprep.subr.mxu0 %v1816_v7 }
 0x5e1   :  { %v2243_v17 = vsel %vm2239_vm2, %v2230_v54, %v2234_v20  ;;  %2476 = vmatpush1.msra.mxu1 %v1821_v10  ;;  %2401 = vmatpush1.msra.mxu0 %v1815_v63 }
 0x5e2   :  { %2477 = vmatprep.subr.mxu1 %v1818_v2  ;;  %v2276_v49 = vmul.f32 %v2258_v38, %v2243_v17 }
 0x5e3   :  { %2478 = vmatpush1.msra.mxu1 %v1817_v27  ;;  %v2226_v32 = vpop.permute.xlu1 %2225 }
 0x5e4   :  { %v2245_v58 = vsel %vm2239_vm2, %v2226_v32, %v2230_v54  ;;  %2430 = vmatprep.subr.mxu0 %v2276_v49  ;;  %v2238_v44 = vpop.permute.xlu0 %2237 }
 0x5e5   :  { %v2275_v25 = vmul.f32 %v2254_v21, %v2245_v58  ;;  %v2241_v9 = vsel %vm2239_vm2, %v2234_v20, %v2238_v44  ;;  %v2247_v51 = vsel %vm2239_vm2, %v2238_v44, %v2226_v32 }
 0x5e6   :  { %v2277_v36 = vmul.f32 %v2262_v16, %v2241_v9  ;;  %v2278_v42 = vmul.f32 %v2266_v37, %v2247_v51 }
 0x5e7   :  { %v2224_v61 = vpop.permute.xlu1 %2223  ;;  %2431 = vmatpush2.msra.mxu0 %v2275_v25 }
 0x5e8   :  { %v2244_v0 = vsel %vm2239_vm2, %v2224_v61, %v15386_v24  ;;  %2507 = vmatprep.subr.mxu1 %v2278_v42  ;;  %2432 = vmatprep.subr.mxu0 %v2272_v39 }
 0x5e9   :  { %v2271_v60 = vmul.f32 %v2254_v21, %v2244_v0  ;;  %2508 = vmatpush2.msra.mxu1 %v2277_v36 }
 0x5eb   :  { %v2236_v22 = vpop.permute.xlu1 %2235  ;;  %2433 = vmatpush2.msra.mxu0 %v2271_v60 }
 0x5ec   :  { %v2240_v15 = vsel %vm2239_vm2, %v15385_v48, %v2236_v22  ;;  %v2246_v30 = vsel %vm2239_vm2, %v2236_v22, %v2224_v61  ;;  %2435 = vmatmul.mubr.f32.vlgmr.msra.gmra.mxu0 %v8845_v56 }
 0x5ed   :  { %v2273_v59 = vmul.f32 %v2262_v16, %v2240_v15  ;;  %8850 = vmatprep.mubr.msk.f32.mxu0 %vm636_vm0, %v8848_v19  ;;  %v2274_v31 = vmul.f32 %v2266_v37, %v2246_v30 }
 0x5ef   :  { %2509 = vmatprep.subr.mxu1 %v2274_v31 }
 0x5f0   :  { %2441 = vmatmul.mubr.f32.gmra.mxu0 %v8847_v33  ;;  %2510 = vmatpush2.msra.mxu1 %v2273_v59 }
 0x5f1   :  { %2512 = vmatmul.mubr.f32.vlgmr.msra.gmra.mxu1 %v8845_v56 }
 0x5f2   :  { %8852 = vmatprep.mubr.msk.f32.mxu1 %vm636_vm0, %v8848_v19 }
 0x5f5   :  { %2518 = vmatmul.mubr.f32.gmra.mxu1 %v8847_v33 }
 0x6ac   :  { %v2436_v23 = vpop.f32.mrf.mxu0 }
 0x6ad   :  { %v2524_v57 = vmul.f32 %v2436_v23, %v2436_v23 }
 0x6ae   :  { %v2438_v50 = vpop.f32.mrf.mxu0 }
 0x6af   :  { %v2532_v41 = vadd.f32 %v2438_v50, %v2436_v23  ;;  %v2525_v53 = vmul.f32 %v2438_v50, %v2438_v50 }
 0x6b0   :  { %v10649_v14 = vpop.f32.mrf.mxu0 }
 0x6b1   :  { %v2528_v35 = vmul.f32 %v10649_v14, %v10649_v14  ;;  %v2513_v3 = vpop.f32.mrf.mxu1  ;;  %v2542_v54 = vadd.f32 %v2525_v53, %v2524_v57 }
 0x6b2   :  { %v2533_v46 = vadd.f32 %v2532_v41, %v2513_v3  ;;  %v10653_v47 = vpop.f32.mrf.mxu0  ;;  %v2526_v2 = vmul.f32 %v2513_v3, %v2513_v3 }
 0x6b3   :  { %v2529_v18 = vmul.f32 %v10653_v47, %v10653_v47  ;;  %v2537_v43 = vadd.f32 %v10653_v47, %v10649_v14  ;;  %v2515_v8 = vpop.f32.mrf.mxu1 }
 0x6b4   :  { %v2534_v34 = vadd.f32 %v2533_v46, %v2515_v8  ;;  %v2543_v21 = vadd.f32 %v2542_v54, %v2526_v2  ;;  %v2527_v49 = vmul.f32 %v2515_v8, %v2515_v8 }
 0x6b5   :  { %v2547_v10 = vadd.f32 %v2529_v18, %v2528_v35  ;;  %v10659_v6 = vpop.f32.mrf.mxu1 }
 0x6b6   :  { %v2530_v7 = vmul.f32 %v10659_v6, %v10659_v6  ;;  %v2538_v63 = vadd.f32 %v2537_v43, %v10659_v6  ;;  %2535 = vadd.xlane.f32.xlu1 %v2534_v34  ;;  %v2544_v37 = vadd.f32 %v2543_v21, %v2527_v49 }
 0x6b7   :  { %v10664_v20 = vpop.f32.mrf.mxu1 }
 0x6b8   :  { %v2548_v38 = vadd.f32 %v2547_v10, %v2530_v7  ;;  %v2531_v27 = vmul.f32 %v10664_v20, %v10664_v20  ;;  %v2539_v17 = vadd.f32 %v2538_v63, %v10664_v20 }
 0x6ba   :  { %2540 = vadd.xlane.f32.xlu0 %v2539_v17  ;;  %v2549_v16 = vadd.f32 %v2548_v38, %v2531_v27 }
 0x6be   :  { %2550 = vadd.xlane.f32.xlu0 %v2549_v16 }
 0x6c2   :  { %2545 = vadd.xlane.f32.xlu0 %v2544_v37 }
 0x73f   :  { %v2536_v24 = vpop.xlane.xlu1 %2535 }
 0x740   :  { %v2552_v32 = vmul.f32 0.001953125, %v2536_v24 }
 0x742   :  { %v2556_v44 = vmul.f32 %v2552_v32, %v2552_v32  ;;  %v2562_v56 = vsub.f32 %v2436_v23, %v2552_v32  ;;  %v2563_v19 = vsub.f32 %v2438_v50, %v2552_v32  ;;  %v2564_v22 = vsub.f32 %v2513_v3, %v2552_v32 }
 0x743   :  { %v2541_v48 = vpop.xlane.xlu0 %2540  ;;  %v2565_v15 = vsub.f32 %v2515_v8, %v2552_v32 }
 0x744   :  { %v10669_v42 = vmul.f32 0.001953125, %v2541_v48 }
 0x746   :  { %v2557_v61 = vmul.f32 %v10669_v42, %v10669_v42  ;;  %v2568_v8 = vsub.f32 %v10659_v6, %v10669_v42  ;;  %v2567_v16 = vsub.f32 %v10653_v47, %v10669_v42 }
 0x747   :  { %v2551_v1 = vpop.xlane.xlu0 %2550 }
 0x748   :  { %v2555_v39 = vmul.f32 0.001953125, %v2551_v1  ;;  %v2569_v1 = vsub.f32 %v10664_v20, %v10669_v42 }
 0x74a   :  { %v2559_v0 = vsub.f32 %v2555_v39, %v2557_v61 }
 0x74b   :  { %v2546_v58 = vpop.xlane.xlu0 %2545 }
 0x74c   :  { %v2554_v25 = vmul.f32 0.001953125, %v2546_v58  ;;  %v2561_v60 = vmax.f32 %v2559_v0, 0.0 }
 0x74e   :  { %v2558_v9 = vsub.f32 %v2554_v25, %v2556_v44  ;;  %v2571_v35 = vadd.f32 1e-05, %v2561_v60  ;;  %v2566_v25 = vsub.f32 %v10649_v14, %v10669_v42 }
 0x750   :  { %v2560_v51 = vmax.f32 %v2558_v9, 0.0 }
 0x752   :  { %v2570_v36 = vadd.f32 1e-05, %v2560_v51 }
 0x754   :  { %9058 = vrsqrt.f32 %v2570_v36 }
 0x755   :  { %9060 = vrsqrt.f32 %v2571_v35 }
 0x761   :  { %v9059_v30 = vpop.eup %9058 }
 0x762   :  { %v2576_v59 = vmul.f32 %v9059_v30, %v2564_v22  ;;  %v2575_v31 = vmul.f32 %v9059_v30, %v2563_v19  ;;  %v2574_v33 = vmul.f32 %v9059_v30, %v2562_v56  ;;  %v2577_v41 = vmul.f32 %v9059_v30, %v2565_v15  ;;  %v9061_v23 = vpop.eup %9060 }
 0x763   :  { %v2580_v27 = vmul.f32 %v9061_v23, %v2568_v8  ;;  %v2579_v48 = vmul.f32 %v9061_v23, %v2567_v16  ;;  %v2581_v44 = vmul.f32 %v9061_v23, %v2569_v1  ;;  %v2578_v51 = vmul.f32 %v9061_v23, %v2566_v25 }
 0x764   :  { %v2592_v46 = vmin.f32 %v2576_v59, 0.0  ;;  %v2591_v57 = vmin.f32 %v2575_v31, 0.0  ;;  %v2590_v53 = vmin.f32 %v2574_v33, 0.0  ;;  %v2593_v18 = vmin.f32 %v2577_v41, 0.0 }
 0x765   :  { %vm2584_vm7 = vcmp.gt.f32.partialorder %v2576_v59, 0.0  ;;  %vm2583_vm6 = vcmp.gt.f32.partialorder %v2575_v31, 0.0  ;;  %vm2582_vm4 = vcmp.gt.f32.partialorder %v2574_v33, 0.0  ;;  %v2596_v37 = vmin.f32 %v2580_v27, 0.0 }
 0x766   :  { %v2602_v43 = vmul.f32 1.442695, %v2592_v46  ;;  %v2600_v34 = vmul.f32 1.442695, %v2591_v57  ;;  %v2598_v10 = vmul.f32 1.442695, %v2590_v53 }
 0x767   :  { %v2604_v7 = vmul.f32 1.442695, %v2593_v18  ;;  %v2610_v32 = vmul.f32 1.442695, %v2596_v37  ;;  %v2595_v58 = vmin.f32 %v2579_v48, 0.0  ;;  %v2597_v9 = vmin.f32 %v2581_v44, 0.0 }
 0x768   :  { %9062 = vpow2.f32 %v2602_v43  ;;  %v2594_v39 = vmin.f32 %v2578_v51, 0.0 }
 0x769   :  { %9064 = vpow2.f32 %v2600_v34  ;;  %v2608_v20 = vmul.f32 1.442695, %v2595_v58  ;;  %v2612_v36 = vmul.f32 1.442695, %v2597_v9 }
 0x76a   :  { %9066 = vpow2.f32 %v2598_v10  ;;  %v2606_v14 = vmul.f32 1.442695, %v2594_v39 }
 0x76b   :  { %9068 = vpow2.f32 %v2604_v7 }
 0x76c   :  { %9070 = vpow2.f32 %v2610_v32 }
 0x76d   :  { %9072 = vpow2.f32 %v2608_v20 }
 0x76e   :  { %9074 = vpow2.f32 %v2612_v36 }
 0x76f   :  { %9076 = vpow2.f32 %v2606_v14 }
 0x775   :  { %v9063_v50 = vpop.eup %9062 }
 0x776   :  { %v9065_v3 = vpop.eup %9064  ;;  %v8855_v63 = vadd.f32 -1.0, %v9063_v50 }
 0x777   :  { %v9067_v54 = vpop.eup %9066  ;;  %v8854_v2 = vadd.f32 -1.0, %v9065_v3 }
 0x778   :  { %v10675_v38 = vsel %vm2584_vm7, %v2576_v59, %v8855_v63  ;;  %v9069_v17 = vpop.eup %9068  ;;  %v8853_v49 = vadd.f32 -1.0, %v9067_v54  ;;  %vm2587_vm7 = vcmp.gt.f32.partialorder %v2579_v48, 0.0 }
 0x779   :  { %15387 = vst [vmem:[#allocation23_spill] sm:$0xff] %v10675_v38  ;;  %2711 = vrot.lane.b32.xlu0 %v10675_v38, %s9231_s9  ;;  %v10679_v21 = vsel %vm2583_vm6, %v2575_v31, %v8854_v2  ;;  %v8856_v6 = vadd.f32 -1.0, %v9069_v17  ;;  %vm2585_vm6 = vcmp.gt.f32.partialorder %v2577_v41, 0.0  ;;  %v9071_v42 = vpop.eup %9070 }
 0x77a   :  { %15388 = vst [vmem:[#allocation24_spill] sm:$0xff] %v10679_v21  ;;  %2707 = vrot.lane.b32.xlu1 %v10679_v21, %s9231_s9  ;;  %v10687_v24 = vsel %vm2582_vm4, %v2574_v33, %v8853_v49  ;;  %v8859_v61 = vadd.f32 -1.0, %v9071_v42  ;;  %v9073_v0 = vpop.eup %9072  ;;  %vm2588_vm4 = vcmp.gt.f32.partialorder %v2580_v27, 0.0 }
 0x77b   :  { %15389 = vst [vmem:[#allocation25_spill] sm:$0xff] %v10687_v24  ;;  %v10693_v47 = vsel %vm2585_vm6, %v2577_v41, %v8856_v6  ;;  %v8858_v56 = vadd.f32 -1.0, %v9073_v0  ;;  %v9075_v19 = vpop.eup %9074  ;;  %vm2589_vm6 = vcmp.gt.f32.partialorder %v2581_v44, 0.0  ;;  %v8870_v41 = vld [vmem:[%s15124_s1 + $0x68] sm:$0xff] }
 0x77c   :  { %15390 = vst [vmem:[#allocation26_spill] sm:$0xff] %v10693_v47  ;;  %v10721_v60 = vsel %vm2588_vm4, %v2580_v27, %v8859_v61  ;;  %v8860_v15 = vadd.f32 -1.0, %v9075_v19  ;;  %v9077_v30 = vpop.eup %9076  ;;  %vm2586_vm4 = vcmp.gt.f32.partialorder %v2578_v51, 0.0  ;;  %8873 = vmatprep.mubr.msk.f32.mxu0 %vm636_vm0, %v8870_v41  ;;  %8875 = vmatprep.mubr.msk.f32.mxu1 %vm636_vm0, %v8870_v41  ;;  %v8867_v6 = vld [vmem:[%s15126_s3 + $0x61] ss:$8 sm:$0xf] }
 0x77d   :  { %2643 = vrot.lane.b32.xlu0 %v10679_v21, %s9232_s10  ;;  %15391 = vst [vmem:[#allocation27_spill] sm:$0xff] %v10721_v60  ;;  %v10727_v22 = vsel %vm2587_vm7, %v2579_v48, %v8858_v56  ;;  %v8857_v31 = vadd.f32 -1.0, %v9077_v30  ;;  %vm2719_vm7 = vcmp.lt.s32.totalorder %v9422_v11, 64  ;;  %v3016_v1 = vrot.slane %v8867_v6, %v9430_v12  ;;  %v8866_v61 = vld [vmem:[%s15126_s3 + $0x60] ss:$8 sm:$0xf] }
 0x77e   :  { %2703 = vrot.lane.b32.xlu1 %v10687_v24, %s9231_s9  ;;  %15392 = vst [vmem:[#allocation28_spill] sm:$0xff] %v10727_v22  ;;  %v10733_v59 = vsel %vm2589_vm6, %v2581_v44, %v8860_v15  ;;  %v3012_v44 = vrot.slane %v8867_v6, %v9432_v13  ;;  %v3020_v9 = vrot.slane %v8867_v6, %v9455_v28  ;;  %vm2655_vm6 = vcmp.lt.s32.totalorder %v9422_v11, 68 }
 0x77f   :  { %15393 = vst [vmem:[#allocation29_spill] sm:$0xff] %v10733_v59  ;;  %v10741_v33 = vsel %vm2586_vm4, %v2578_v51, %v8857_v31  ;;  %v3024_v39 = vrot.slane %v8867_v6, %v9457_v29  ;;  %vm2919_vm4 = vcmp.lt.s32.totalorder %v9422_v11, 124 }
 0x780   :  { %15394 = vst [vmem:[#allocation30_spill] sm:$0xff] %v10741_v33 }
 0x781   :  { %2715 = vrot.lane.b32.xlu0 %v10693_v47, %s9231_s9 }
 0x782   :  { %2647 = vrot.lane.b32.xlu1 %v10675_v38, %s9232_s10 }
 0x785   :  { %2651 = vrot.lane.b32.xlu0 %v10693_v47, %s9232_s10 }
 0x786   :  { %2639 = vrot.lane.b32.xlu1 %v10687_v24, %s9232_s10 }
 0x789   :  { %2911 = vrot.lane.b32.xlu0 %v10675_v38, %s9233_s11 }
 0x78a   :  { %2907 = vrot.lane.b32.xlu1 %v10679_v21, %s9233_s11 }
 0x78d   :  { %2835 = vrot.lane.b32.xlu0 %v10679_v21, %s9234_s12 }
 0x78e   :  { %2903 = vrot.lane.b32.xlu1 %v10687_v24, %s9233_s11 }
 0x791   :  { %2767 = vrot.lane.b32.xlu0 %v10687_v24, %s9235_s18 }
 0x792   :  { %2915 = vrot.lane.b32.xlu1 %v10693_v47, %s9233_s11 }
 0x795   :  { %2839 = vrot.lane.b32.xlu0 %v10675_v38, %s9234_s12 }
 0x796   :  { %2831 = vrot.lane.b32.xlu1 %v10687_v24, %s9234_s12 }
 0x799   :  { %2713 = vrot.lane.b32.xlu0 %v10721_v60, %s9231_s9 }
 0x79a   :  { %2843 = vrot.lane.b32.xlu1 %v10693_v47, %s9234_s12 }
 0x79d   :  { %2645 = vrot.lane.b32.xlu0 %v10727_v22, %s9232_s10 }
 0x79e   :  { %2771 = vrot.lane.b32.xlu1 %v10679_v21, %s9235_s18 }
 0x7a1   :  { %2717 = vrot.lane.b32.xlu0 %v10733_v59, %s9231_s9 }
 0x7a2   :  { %2709 = vrot.lane.b32.xlu1 %v10727_v22, %s9231_s9 }
 0x7a5   :  { %2653 = vrot.lane.b32.xlu0 %v10733_v59, %s9232_s10 }
 0x7a6   :  { %2705 = vrot.lane.b32.xlu1 %v10741_v33, %s9231_s9 }
 0x7a9   :  { %2913 = vrot.lane.b32.xlu0 %v10721_v60, %s9233_s11 }
 0x7aa   :  { %2649 = vrot.lane.b32.xlu1 %v10721_v60, %s9232_s10 }
 0x7ad   :  { %2917 = vrot.lane.b32.xlu0 %v10733_v59, %s9233_s11 }
 0x7ae   :  { %2641 = vrot.lane.b32.xlu1 %v10741_v33, %s9232_s10 }
 0x7b1   :  { %2833 = vrot.lane.b32.xlu0 %v10741_v33, %s9234_s12 }
 0x7b2   :  { %2909 = vrot.lane.b32.xlu1 %v10727_v22, %s9233_s11 }
 0x7b5   :  { %2845 = vrot.lane.b32.xlu0 %v10733_v59, %s9234_s12 }
 0x7b6   :  { %2905 = vrot.lane.b32.xlu1 %v10741_v33, %s9233_s11 }
 0x7b9   :  { %2769 = vrot.lane.b32.xlu0 %v10741_v33, %s9235_s18 }
 0x7ba   :  { %2837 = vrot.lane.b32.xlu1 %v10727_v22, %s9234_s12 }
 0x7bd   :  { %2841 = vrot.lane.b32.xlu0 %v10721_v60, %s9234_s12 }
 0x7be   :  { %2773 = vrot.lane.b32.xlu1 %v10727_v22, %s9235_s18 }
 0x7c1   :  { %2777 = vrot.lane.b32.xlu0 %v10721_v60, %s9235_s18 }
 0x7c2   :  { %2781 = vrot.lane.b32.xlu1 %v10733_v59, %s9235_s18 }
 0x7c6   :  { %2779 = vrot.lane.b32.xlu1 %v10693_v47, %s9235_s18 }
 0x7ca   :  { %2775 = vrot.lane.b32.xlu1 %v10675_v38, %s9235_s18 }
 0x7eb   :  { %v2712_v35 = vpop.permute.xlu0 %2711 }
 0x7ec   :  { %v2708_v46 = vpop.permute.xlu1 %2707 }
 0x7ed   :  { %v10823_v20 = vsel %vm2719_vm7, %v2708_v46, %v2712_v35 }
 0x7ef   :  { %v10782_v57 = vpop.permute.xlu0 %2643 }
 0x7f0   :  { %v2704_v53 = vpop.permute.xlu1 %2703 }
 0x7f1   :  { %v10833_v14 = vsel %vm2719_vm7, %v2704_v53, %v2708_v46  ;;  %v3030_v46 = vmul.f32 %v3016_v1, %v10823_v20 }
 0x7f3   :  { %v2716_v18 = vpop.permute.xlu0 %2715 }
 0x7f4   :  { %v10784_v43 = vpop.permute.xlu1 %2647  ;;  %v10837_v42 = vsel %vm2719_vm7, %v2716_v18, %v2704_v53  ;;  %v10852_v19 = vsel %vm2719_vm7, %v2712_v35, %v2716_v18  ;;  %v3029_v53 = vmul.f32 %v3012_v44, %v10833_v14  ;;  %v2977_v35 = vrot.slane %v8866_v61, %v9430_v12 }
 0x7f5   :  { %v3032_v6 = vmul.f32 %v3024_v39, %v10837_v42  ;;  %v3031_v18 = vmul.f32 %v3020_v9, %v10852_v19 }
 0x7f7   :  { %v10786_v34 = vpop.permute.xlu0 %2651 }
 0x7f8   :  { %v10788_v10 = vpop.permute.xlu1 %2639 }
 0x7fb   :  { %v10790_v7 = vpop.permute.xlu0 %2911 }
 0x7fc   :  { %v10792_v23 = vpop.permute.xlu1 %2907 }
 0x7ff   :  { %v10794_v50 = vpop.permute.xlu0 %2835 }
 0x800   :  { %v10796_v3 = vpop.permute.xlu1 %2903 }
 0x803   :  { %v10798_v8 = vpop.permute.xlu0 %2767 }
 0x804   :  { %v10800_v63 = vpop.permute.xlu1 %2915 }
 0x807   :  { %v10802_v54 = vpop.permute.xlu0 %2839 }
 0x808   :  { %v10804_v2 = vpop.permute.xlu1 %2831 }
 0x80b   :  { %v2714_v27 = vpop.permute.xlu0 %2713 }
 0x80c   :  { %v10806_v17 = vpop.permute.xlu1 %2843 }
 0x80f   :  { %v2646_v49 = vpop.permute.xlu0 %2645 }
 0x810   :  { %v10808_v16 = vpop.permute.xlu1 %2771 }
 0x813   :  { %v2718_v37 = vpop.permute.xlu0 %2717 }
 0x814   :  { %v2710_v48 = vpop.permute.xlu1 %2709  ;;  %v10828_v51 = vsel %vm2719_vm7, %v2714_v27, %v2718_v37 }
 0x815   :  { %v10817_v32 = vsel %vm2719_vm7, %v2710_v48, %v2714_v27  ;;  %v3035_v31 = vmul.f32 %v3020_v9, %v10828_v51  ;;  %v2973_v9 = vrot.slane %v8866_v61, %v9432_v13 }
 0x816   :  { %v3034_v58 = vmul.f32 %v3016_v1, %v10817_v32  ;;  %v2981_v1 = vrot.slane %v8866_v61, %v9455_v28 }
 0x817   :  { %v2654_v25 = vpop.permute.xlu0 %2653 }
 0x818   :  { %3167 = vmatprep.subr.mxu0 %v3034_v58  ;;  %v2706_v36 = vpop.permute.xlu1 %2705 }
 0x819   :  { %v10844_v0 = vsel %vm2719_vm7, %v2706_v36, %v2710_v48  ;;  %v10848_v56 = vsel %vm2719_vm7, %v2718_v37, %v2706_v36 }
 0x81a   :  { %v3033_v15 = vmul.f32 %v3012_v44, %v10844_v0  ;;  %v3036_v30 = vmul.f32 %v3024_v39, %v10848_v56  ;;  %v10873_v44 = vsel %vm2655_vm6, %v10782_v57, %v10784_v43 }
 0x81b   :  { %v2914_v41 = vpop.permute.xlu0 %2913  ;;  %15395 = vst [vmem:[#allocation31_spill] sm:$0xff] %v10873_v44 }
 0x81c   :  { %3168 = vmatpush1.msra.mxu0 %v3033_v15  ;;  %3244 = vmatprep.subr.mxu1 %v3036_v30  ;;  %v2650_v27 = vpop.permute.xlu1 %2649  ;;  %v2985_v15 = vrot.slane %v8866_v61, %v9457_v29  ;;  %v10885_v30 = vsel %vm2655_vm6, %v10788_v10, %v10782_v57  ;;  %v10908_v57 = vsel %vm2655_vm6, %v10784_v43, %v10786_v34 }
 0x81d   :  { %v10865_v37 = vsel %vm2655_vm6, %v2646_v49, %v2650_v27  ;;  %3169 = vmatprep.subr.mxu0 %v3030_v46  ;;  %3245 = vmatpush1.msra.mxu1 %v3035_v31  ;;  %v10878_v36 = vsel %vm2655_vm6, %v2650_v27, %v2654_v25  ;;  %v10891_v31 = vsel %vm2655_vm6, %v10786_v34, %v10788_v10  ;;  %v8865_v46 = vld [vmem:[%s15126_s3 + $0x47] ss:$8 sm:$0xf] }
 0x81e   :  { %3170 = vmatpush1.msra.mxu0 %v3029_v53  ;;  %3246 = vmatprep.subr.mxu1 %v3032_v6  ;;  %v2995_v48 = vmul.f32 %v2977_v35, %v10865_v37  ;;  %15396 = vst [vmem:[#allocation32_spill] sm:$0xff] %v10908_v57  ;;  %v2996_v6 = vmul.f32 %v2981_v1, %v10878_v36 }
 0x81f   :  { %3247 = vmatpush1.msra.mxu1 %v3031_v18  ;;  %v2918_v58 = vpop.permute.xlu0 %2917  ;;  %v2938_v43 = vrot.slane %v8865_v46, %v9430_v12  ;;  %v2992_v34 = vmul.f32 %v2981_v1, %v10908_v57 }
 0x820   :  { %3171 = vmatprep.subr.mxu0 %v2995_v48  ;;  %v2642_v39 = vpop.permute.xlu1 %2641  ;;  %v2990_v48 = vmul.f32 %v2973_v9, %v10885_v30 }
 0x821   :  { %v10898_v53 = vsel %vm2655_vm6, %v2642_v39, %v2646_v49  ;;  %v10902_v61 = vsel %vm2655_vm6, %v2654_v25, %v2642_v39  ;;  %v2991_v49 = vmul.f32 %v2977_v35, %v10873_v44  ;;  %v2993_v39 = vmul.f32 %v2985_v15, %v10891_v31 }
 0x822   :  { %v2994_v10 = vmul.f32 %v2973_v9, %v10898_v53  ;;  %v2997_v27 = vmul.f32 %v2985_v15, %v10902_v61  ;;  %v2942_v15 = vrot.slane %v8865_v46, %v9455_v28 }
 0x823   :  { %v2834_v18 = vpop.permute.xlu0 %2833 }
 0x824   :  { %3172 = vmatpush1.msra.mxu0 %v2994_v10  ;;  %3248 = vmatprep.subr.mxu1 %v2997_v27  ;;  %v2910_v25 = vpop.permute.xlu1 %2909  ;;  %v2934_v10 = vrot.slane %v8865_v46, %v9432_v13  ;;  %v2922_v27 = vsel %vm2919_vm4, %v10792_v23, %v10790_v7 }
 0x825   :  { %v2923_v35 = vsel %vm2919_vm4, %v2910_v25, %v2914_v41  ;;  %3173 = vmatprep.subr.mxu0 %v2991_v49  ;;  %3249 = vmatpush1.msra.mxu1 %v2996_v6  ;;  %v2921_v6 = vsel %vm2919_vm4, %v2914_v41, %v2918_v58  ;;  %v2952_v45 = vmul.f32 %v2938_v43, %v2922_v27 }
 0x826   :  { %3174 = vmatpush1.msra.mxu0 %v2990_v48  ;;  %3250 = vmatprep.subr.mxu1 %v2993_v39  ;;  %v2956_v9 = vmul.f32 %v2938_v43, %v2923_v35  ;;  %v2946_v48 = vrot.slane %v8865_v46, %v9457_v29  ;;  %v2924_v39 = vsel %vm2919_vm4, %v10796_v3, %v10792_v23  ;;  %v8863_v46 = vld [vmem:[%s15126_s3 + $0x44] ss:$8 sm:$0xf] }
 0x827   :  { %3251 = vmatpush1.msra.mxu1 %v2992_v34  ;;  %v2846_v1 = vpop.permute.xlu0 %2845  ;;  %v2926_v34 = vsel %vm2919_vm4, %v10800_v63, %v10796_v3  ;;  %v2920_v23 = vsel %vm2919_vm4, %v10790_v7, %v10800_v63  ;;  %v2957_v3 = vmul.f32 %v2942_v15, %v2921_v6  ;;  %v2802_v44 = vrot.slane %v8863_v46, %v9430_v12 }
 0x828   :  { %3175 = vmatprep.subr.mxu0 %v2956_v9  ;;  %v2906_v49 = vpop.permute.xlu1 %2905  ;;  %v2862_v9 = vrot.slane %v8864_v40, %v9432_v13  ;;  %v2954_v26 = vmul.f32 %v2946_v48, %v2926_v34  ;;  %v2953_v57 = vmul.f32 %v2942_v15, %v2920_v23  ;;  %v10961_v63 = vrot.slane %v8863_v46, %v9455_v28 }
 0x829   :  { %v2925_v35 = vsel %vm2919_vm4, %v2906_v49, %v2910_v25  ;;  %v2927_v41 = vsel %vm2919_vm4, %v2918_v58, %v2906_v49  ;;  %v2866_v25 = vrot.slane %v8864_v40, %v9430_v12  ;;  %v2874_v58 = vrot.slane %v8864_v40, %v9457_v29 }
 0x82a   :  { %v2955_v4 = vmul.f32 %v2934_v10, %v2925_v35  ;;  %v2958_v5 = vmul.f32 %v2946_v48, %v2927_v41  ;;  %v2951_v49 = vmul.f32 %v2934_v10, %v2924_v39  ;;  %v2850_v40 = vsel %vm2847_vm5, %v10794_v50, %v10802_v54 }
 0x82b   :  { %v2770_v62 = vpop.permute.xlu0 %2769  ;;  %v2854_v43 = vsel %vm2847_vm5, %v10806_v17, %v10804_v2  ;;  %v2855_v10 = vsel %vm2847_vm5, %v2846_v1, %v2834_v18  ;;  %v11004_v35 = vsel %vm2783_vm3, %v10798_v8, %v10808_v16 }
 0x82c   :  { %3176 = vmatpush1.msra.mxu0 %v2955_v4  ;;  %3252 = vmatprep.subr.mxu1 %v2958_v5  ;;  %v2838_v52 = vpop.permute.xlu1 %2837  ;;  %v2852_v4 = vsel %vm2847_vm5, %v10804_v2, %v10794_v50  ;;  %v2798_v5 = vrot.slane %v8863_v46, %v9432_v13  ;;  %v2883_v27 = vmul.f32 %v2862_v9, %v2855_v10 }
 0x82d   :  { %v2853_v7 = vsel %vm2847_vm5, %v2834_v18, %v2838_v52  ;;  %3177 = vmatprep.subr.mxu0 %v2952_v45  ;;  %3253 = vmatpush1.msra.mxu1 %v2957_v3  ;;  %v2848_v45 = vsel %vm2847_vm5, %v10802_v54, %v10806_v17  ;;  %v2879_v6 = vmul.f32 %v2862_v9, %v2854_v43  ;;  %v8861_v43 = vld [vmem:[%s15126_s3 + $0x42] ss:$8 sm:$0xf] }
 0x82e   :  { %3178 = vmatpush1.msra.mxu0 %v2951_v49  ;;  %3254 = vmatprep.subr.mxu1 %v2954_v26  ;;  %v2884_v17 = vmul.f32 %v2866_v25, %v2853_v7  ;;  %v2880_v39 = vmul.f32 %v2866_v25, %v2852_v4  ;;  %v2882_v34 = vmul.f32 %v2874_v58, %v2848_v45  ;;  %v8862_v7 = vld [vmem:[%s15126_s3 + $0x43] ss:$8 sm:$0xf] }
 0x82f   :  { %3179 = vmatprep.subr.mxu0 %v10727_v22  ;;  %3255 = vmatpush1.msra.mxu1 %v2953_v57  ;;  %v2842_v50 = vpop.permute.xlu0 %2841  ;;  %v2816_v49 = vmul.f32 %v2802_v44, %v11004_v35  ;;  %v2738_v4 = vrot.slane %v8862_v7, %v9430_v12  ;;  %v2734_v45 = vrot.slane %v8862_v7, %v9432_v13 }
 0x830   :  { %v2849_v26 = vsel %vm2847_vm5, %v2842_v50, %v2846_v1  ;;  %v2851_v54 = vsel %vm2847_vm5, %v2838_v52, %v2842_v50  ;;  %3180 = vmatpush1.msra.mxu0 %v10741_v33  ;;  %3256 = vmatprep.subr.mxu1 %v10733_v59  ;;  %v2774_v2 = vpop.permute.xlu1 %2773  ;;  %v2881_v1 = vmul.f32 %v2870_v55, %v2850_v40 }
 0x831   :  { %v2885_v15 = vmul.f32 %v2870_v55, %v2851_v54  ;;  %v10992_v18 = vsel %vm2783_vm3, %v2770_v62, %v2774_v2  ;;  %3181 = vmatprep.subr.mxu0 %v10679_v21  ;;  %3257 = vmatpush1.msra.mxu1 %v10721_v60  ;;  %v2886_v57 = vmul.f32 %v2874_v58, %v2849_v26 }
 0x832   :  { %3182 = vmatpush1.msra.mxu0 %v10687_v24  ;;  %3258 = vmatprep.subr.mxu1 %v10693_v47  ;;  %v2810_v52 = vrot.slane %v8863_v46, %v9457_v29  ;;  %v2820_v46 = vmul.f32 %v2802_v44, %v10992_v18  ;;  %v2756_v10 = vmul.f32 %v2738_v4, %v10844_v0 }
 0x833   :  { %3183 = vmatprep.subr.mxu0 %v2884_v17  ;;  %3259 = vmatpush1.msra.mxu1 %v10675_v38  ;;  %v2778_v48 = vpop.permute.xlu0 %2777  ;;  %v2670_v50 = vrot.slane %v8861_v43, %v9432_v13  ;;  %v2755_v26 = vmul.f32 %v2734_v45, %v10848_v56  ;;  %v2674_v17 = vrot.slane %v8861_v43, %v9430_v12  ;;  %v8868_v56 = vld [vmem:[%s15126_s3 + $0x62] ss:$8 sm:$0xf] }
 0x834   :  { %v11008_v55 = vsel %vm2783_vm3, %v2774_v2, %v2778_v48  ;;  %3184 = vmatpush1.msra.mxu0 %v2883_v27  ;;  %3260 = vmatprep.subr.mxu1 %v2886_v57  ;;  %v2782_v41 = vpop.permute.xlu1 %2781  ;;  %v2752_v2 = vmul.f32 %v2738_v4, %v10833_v14  ;;  %v2751_v0 = vmul.f32 %v2734_v45, %v10837_v42 }
 0x835   :  { %v2821_v23 = vmul.f32 %v10961_v63, %v11008_v55  ;;  %v11015_v9 = vsel %vm2783_vm3, %v2778_v48, %v2782_v41  ;;  %v11019_v3 = vsel %vm2783_vm3, %v2782_v41, %v2770_v62  ;;  %3185 = vmatprep.subr.mxu0 %v2880_v39  ;;  %3261 = vmatpush1.msra.mxu1 %v2885_v15 }
 0x836   :  { %v2819_v25 = vmul.f32 %v2798_v5, %v11019_v3  ;;  %3186 = vmatpush1.msra.mxu0 %v2879_v6  ;;  %3262 = vmatprep.subr.mxu1 %v2882_v34  ;;  %v2822_v58 = vmul.f32 %v2810_v52, %v11015_v9  ;;  %v2692_v14 = vmul.f32 %v2674_v17, %v10898_v53 }
 0x837   :  { %3187 = vmatprep.subr.mxu0 %v2820_v46  ;;  %3263 = vmatpush1.msra.mxu1 %v2881_v1  ;;  %v2746_v1 = vrot.slane %v8862_v7, %v9457_v29  ;;  %v3055_v27 = vrot.slane %v8868_v56, %v9430_v12  ;;  %v2691_v42 = vmul.f32 %v2670_v50, %v10902_v61 }
 0x838   :  { %3188 = vmatpush1.msra.mxu0 %v2819_v25  ;;  %3264 = vmatprep.subr.mxu1 %v2822_v58  ;;  %v2780_v62 = vpop.permute.xlu1 %2779  ;;  %v2682_v48 = vrot.slane %v8861_v43, %v9457_v29  ;;  %v2687_v39 = vmul.f32 %v2670_v50, %v10891_v31  ;;  %v3051_v53 = vrot.slane %v8868_v56, %v9432_v13 }
 0x839   :  { %v11030_v40 = vsel %vm2783_vm3, %v2780_v62, %v10798_v8  ;;  %3189 = vmatprep.subr.mxu0 %v2816_v49  ;;  %3265 = vmatpush1.msra.mxu1 %v2821_v23  ;;  %v2758_v6 = vmul.f32 %v2746_v1, %v10828_v51  ;;  %v2754_v61 = vmul.f32 %v2746_v1, %v10852_v19 }
 0x83a   :  { %v2815_v44 = vmul.f32 %v2798_v5, %v11030_v40  ;;  %v2678_v51 = vrot.slane %v8861_v43, %v9455_v28  ;;  %v2694_v31 = vmul.f32 %v2682_v48, %v10878_v36  ;;  %v3063_v41 = vrot.slane %v8868_v56, %v9457_v29  ;;  %v15398_v36 = vld [vmem:[#allocation31_spill] sm:$0xff] }
 0x83b   :  { %v3059_v19 = vrot.slane %v8868_v56, %v9455_v28  ;;  %v3068_v23 = vmul.f32 %v3051_v53, %v11004_v35 }
 0x83c   :  { %3190 = vmatpush1.msra.mxu0 %v2815_v44  ;;  %v2776_v8 = vpop.permute.xlu1 %2775  ;;  %v2693_v46 = vmul.f32 %v2678_v51, %v10865_v37  ;;  %v2689_v58 = vmul.f32 %v2678_v51, %v15398_v36  ;;  %v8872_v37 = vld [vmem:[%s15124_s1 + $0x78] sm:$0xff]  ;;  %v3075_v35 = vmul.f32 %v3063_v41, %v11019_v3 }
 0x83d   :  { %v11043_v54 = vsel %vm2783_vm3, %v2776_v8, %v2780_v62  ;;  %v2786_v5 = vsel %vm2783_vm3, %v10808_v16, %v2776_v8  ;;  %3191 = vmatprep.subr.mxu0 %v2756_v10  ;;  %v2742_v16 = vrot.slane %v8862_v7, %v9455_v28  ;;  %v3074_v49 = vmul.f32 %v3059_v19, %v11015_v9  ;;  %v8871_v62 = vld [vmem:[%s15124_s1 + $0x70] sm:$0xff] }
 0x83e   :  { %v2817_v15 = vmul.f32 %v10961_v63, %v2786_v5  ;;  %3192 = vmatpush1.msra.mxu0 %v2755_v26  ;;  %v2818_v57 = vmul.f32 %v2810_v52, %v11043_v54  ;;  %v2688_v52 = vmul.f32 %v2674_v17, %v10885_v30  ;;  %v3072_v30 = vmul.f32 %v3051_v53, %v10992_v18  ;;  %v8869_v18 = vld [vmem:[%s15124_s1 + $0x60] sm:$0xff] }
 0x83f   :  { %3193 = vmatprep.subr.mxu0 %v2752_v2  ;;  %v2757_v63 = vmul.f32 %v2742_v16, %v10817_v32  ;;  %v2753_v34 = vmul.f32 %v2742_v16, %v10823_v20  ;;  %v3073_v32 = vmul.f32 %v3055_v27, %v11008_v55  ;;  %v3069_v20 = vmul.f32 %v3055_v27, %v2786_v5  ;;  %v15397_v55 = vld [vmem:[#allocation32_spill] sm:$0xff] }
 0x840   :  { %3194 = vmatpush1.msra.mxu0 %v2751_v0  ;;  %3266 = vmatprep.subr.mxu1 %v2818_v57  ;;  %v2690_v25 = vmul.f32 %v2682_v48, %v15397_v55  ;;  %v3071_v7 = vmul.f32 %v3063_v41, %v11030_v40  ;;  %v3070_v4 = vmul.f32 %v3059_v19, %v11043_v54 }
 0x841   :  { %3195 = vmatprep.subr.mxu0 %v2692_v14  ;;  %3267 = vmatpush1.msra.mxu1 %v2817_v15 }
 0x842   :  { %3196 = vmatpush1.msra.mxu0 %v2691_v42  ;;  %3268 = vmatprep.subr.mxu1 %v2758_v6 }
 0x843   :  { %3197 = vmatprep.subr.mxu0 %v2688_v52  ;;  %3269 = vmatpush1.msra.mxu1 %v2757_v63 }
 0x844   :  { %3198 = vmatpush1.msra.mxu0 %v2687_v39  ;;  %3270 = vmatprep.subr.mxu1 %v2754_v61 }
 0x845   :  { %3227 = vmatprep.subr.mxu0 %v3073_v32  ;;  %3271 = vmatpush1.msra.mxu1 %v2753_v34 }
 0x846   :  { %3228 = vmatpush2.msra.mxu0 %v3072_v30  ;;  %3272 = vmatprep.subr.mxu1 %v2694_v31 }
 0x847   :  { %3229 = vmatprep.subr.mxu0 %v3069_v20  ;;  %3273 = vmatpush1.msra.mxu1 %v2693_v46 }
 0x848   :  { %3230 = vmatpush2.msra.mxu0 %v3068_v23  ;;  %3274 = vmatprep.subr.mxu1 %v2690_v25 }
 0x849   :  { %3232 = vmatmul.mubr.f32.vlgmr.msra.gmra.mxu0 %v8869_v18  ;;  %3275 = vmatpush1.msra.mxu1 %v2689_v58 }
 0x84a   :  { %3304 = vmatprep.subr.mxu1 %v3075_v35  ;;  %8874 = vmatprep.mubr.msk.f32.mxu0 %vm636_vm0, %v8872_v37 }
 0x84b   :  { %3305 = vmatpush2.msra.mxu1 %v3074_v49 }
 0x84c   :  { %3306 = vmatprep.subr.mxu1 %v3071_v7 }
 0x84d   :  { %3238 = vmatmul.mubr.f32.gmra.mxu0 %v8871_v62  ;;  %3307 = vmatpush2.msra.mxu1 %v3070_v4 }
 0x84e   :  { %3309 = vmatmul.mubr.f32.vlgmr.msra.gmra.mxu1 %v8869_v18 }
 0x84f   :  { %8876 = vmatprep.mubr.msk.f32.mxu1 %vm636_vm0, %v8872_v37 }
 0x852   :  { %3315 = vmatmul.mubr.f32.gmra.mxu1 %v8871_v62 }
 0x909   :  { %v11094_v9 = vpop.f32.mrf.mxu0 }
 0x90a   :  { %v3321_v26 = vmul.f32 %v11094_v9, %v11094_v9 }
 0x90b   :  { %v11096_v3 = vpop.f32.mrf.mxu0 }
 0x90c   :  { %v3329_v40 = vadd.f32 %v11096_v3, %v11094_v9  ;;  %v3322_v8 = vmul.f32 %v11096_v3, %v11096_v3 }
 0x90d   :  { %v3239_v45 = vpop.f32.mrf.mxu0 }
 0x90e   :  { %v3325_v44 = vmul.f32 %v3239_v45, %v3239_v45  ;;  %v11100_v43 = vpop.f32.mrf.mxu1  ;;  %v3339_v1 = vadd.f32 %v3322_v8, %v3321_v26 }
 0x90f   :  { %v3330_v10 = vadd.f32 %v3329_v40, %v11100_v43  ;;  %v3241_v50 = vpop.f32.mrf.mxu0  ;;  %v3323_v14 = vmul.f32 %v11100_v43, %v11100_v43 }
 0x910   :  { %v3326_v54 = vmul.f32 %v3241_v50, %v3241_v50  ;;  %v3334_v5 = vadd.f32 %v3241_v50, %v3239_v45  ;;  %v11107_v2 = vpop.f32.mrf.mxu1 }
 0x911   :  { %v3331_v17 = vadd.f32 %v3330_v10, %v11107_v2  ;;  %v3340_v63 = vadd.f32 %v3339_v1, %v3323_v14  ;;  %v3324_v52 = vmul.f32 %v11107_v2, %v11107_v2 }
 0x912   :  { %v3344_v0 = vadd.f32 %v3326_v54, %v3325_v44  ;;  %v3316_v56 = vpop.f32.mrf.mxu1 }
 0x913   :  { %v3327_v15 = vmul.f32 %v3316_v56, %v3316_v56  ;;  %v3335_v57 = vadd.f32 %v3334_v5, %v3316_v56  ;;  %3332 = vadd.xlane.f32.xlu1 %v3331_v17  ;;  %v3341_v39 = vadd.f32 %v3340_v63, %v3324_v52 }
 0x914   :  { %v3318_v16 = vpop.f32.mrf.mxu1 }
 0x915   :  { %v3345_v27 = vadd.f32 %v3344_v0, %v3327_v15  ;;  %v3328_v42 = vmul.f32 %v3318_v16, %v3318_v16  ;;  %v3336_v6 = vadd.f32 %v3335_v57, %v3318_v16 }
 0x917   :  { %3337 = vadd.xlane.f32.xlu0 %v3336_v6  ;;  %v3346_v48 = vadd.f32 %v3345_v27, %v3328_v42 }
 0x91b   :  { %3347 = vadd.xlane.f32.xlu0 %v3346_v48 }
 0x91f   :  { %3342 = vadd.xlane.f32.xlu0 %v3341_v39  ;;  %v8891_v39 = vld [vmem:[%s15126_s3 + $0x82] ss:$8 sm:$0xf] }
 0x99c   :  { %v3333_v34 = vpop.xlane.xlu1 %3332 }
 0x99d   :  { %v3349_v32 = vmul.f32 0.001953125, %v3333_v34 }
 0x99f   :  { %v3353_v20 = vmul.f32 %v3349_v32, %v3349_v32  ;;  %v3360_v10 = vsub.f32 %v11096_v3, %v3349_v32  ;;  %v3361_v26 = vsub.f32 %v11100_v43, %v3349_v32  ;;  %v3359_v17 = vsub.f32 %v11094_v9, %v3349_v32 }
 0x9a0   :  { %v3338_v53 = vpop.xlane.xlu0 %3337 }
 0x9a1   :  { %v3350_v61 = vmul.f32 0.001953125, %v3338_v53 }
 0x9a3   :  { %v3354_v30 = vmul.f32 %v3350_v61, %v3350_v61  ;;  %v3363_v58 = vsub.f32 %v3239_v45, %v3350_v61  ;;  %v3364_v37 = vsub.f32 %v3241_v50, %v3350_v61  ;;  %v3365_v35 = vsub.f32 %v3316_v56, %v3350_v61 }
 0x9a4   :  { %v3348_v51 = vpop.xlane.xlu0 %3347  ;;  %v3366_v49 = vsub.f32 %v3318_v16, %v3350_v61  ;;  %v3362_v45 = vsub.f32 %v11107_v2, %v3349_v32  ;;  %v3738_v61 = vrot.slane %v8891_v39, %v9430_v12  ;;  %v3746_v32 = vrot.slane %v8891_v39, %v9457_v29 }
 0x9a5   :  { %v3352_v31 = vmul.f32 0.001953125, %v3348_v51 }
 0x9a7   :  { %v3356_v41 = vsub.f32 %v3352_v31, %v3354_v30 }
 0x9a8   :  { %v3343_v46 = vpop.xlane.xlu0 %3342 }
 0x9a9   :  { %v3358_v19 = vmax.f32 %v3356_v41, 0.0  ;;  %v3351_v23 = vmul.f32 0.001953125, %v3343_v46  ;;  %v3734_v41 = vrot.slane %v8891_v39, %v9432_v13 }
 0x9ab   :  { %v3368_v55 = vadd.f32 1e-05, %v3358_v19  ;;  %v3355_v25 = vsub.f32 %v3351_v23, %v3353_v20  ;;  %v3742_v23 = vrot.slane %v8891_v39, %v9455_v28 }
 0x9ad   :  { %9078 = vrsqrt.f32 %v3368_v55  ;;  %v3357_v18 = vmax.f32 %v3355_v25, 0.0 }
 0x9af   :  { %v3367_v36 = vadd.f32 1e-05, %v3357_v18 }
 0x9b1   :  { %9080 = vrsqrt.f32 %v3367_v36 }
 0x9ba   :  { %v9079_v7 = vpop.eup %9078 }
 0x9bb   :  { %v3377_v62 = vmul.f32 %v9079_v7, %v3365_v35  ;;  %v3375_v4 = vmul.f32 %v9079_v7, %v3363_v58  ;;  %v3376_v40 = vmul.f32 %v9079_v7, %v3364_v37  ;;  %v11114_v44 = vmul.f32 %v9079_v7, %v3366_v49 }
 0x9bd   :  { %v3393_v8 = vmin.f32 %v3377_v62, 0.0  ;;  %v3391_v54 = vmin.f32 %v3375_v4, 0.0  ;;  %v3392_v50 = vmin.f32 %v3376_v40, 0.0  ;;  %v3394_v0 = vmin.f32 %v11114_v44, 0.0 }
 0x9be   :  { %v9081_v5 = vpop.eup %9080  ;;  %vm3385_vm1 = vcmp.gt.f32.partialorder %v3377_v62, 0.0  ;;  %vm3383_vm8 = vcmp.gt.f32.partialorder %v3375_v4, 0.0  ;;  %vm3384_vm10 = vcmp.gt.f32.partialorder %v3376_v40, 0.0  ;;  %vm3386_vm9 = vcmp.gt.f32.partialorder %v11114_v44, 0.0 }
 0x9bf   :  { %v3407_v56 = vmul.f32 1.442695, %v3393_v8  ;;  %v3403_v15 = vmul.f32 1.442695, %v3391_v54  ;;  %v3373_v57 = vmul.f32 %v9081_v5, %v3361_v26  ;;  %v3372_v1 = vmul.f32 %v9081_v5, %v3360_v10 }
 0x9c0   :  { %v3405_v16 = vmul.f32 1.442695, %v3392_v50  ;;  %v3409_v14 = vmul.f32 1.442695, %v3394_v0  ;;  %v11121_v27 = vmul.f32 %v9081_v5, %v3359_v17  ;;  %v11123_v3 = vmul.f32 %v9081_v5, %v3362_v45 }
 0x9c1   :  { %9082 = vpow2.f32 %v3407_v56  ;;  %v3389_v43 = vmin.f32 %v3373_v57, 0.0  ;;  %v3388_v42 = vmin.f32 %v3372_v1, 0.0 }
 0x9c2   :  { %9084 = vpow2.f32 %v3403_v15  ;;  %v3387_v9 = vmin.f32 %v11121_v27, 0.0  ;;  %v3390_v6 = vmin.f32 %v11123_v3, 0.0 }
 0x9c3   :  { %9086 = vpow2.f32 %v3405_v16  ;;  %v3399_v2 = vmul.f32 1.442695, %v3389_v43  ;;  %v3397_v63 = vmul.f32 1.442695, %v3388_v42 }
 0x9c4   :  { %9088 = vpow2.f32 %v3409_v14  ;;  %v3395_v52 = vmul.f32 1.442695, %v3387_v9  ;;  %v3401_v48 = vmul.f32 1.442695, %v3390_v6 }
 0x9c5   :  { %9090 = vpow2.f32 %v3399_v2  ;;  %v8890_v42 = vld [vmem:[%s15126_s3 + $0x81] ss:$8 sm:$0xf] }
 0x9c6   :  { %9092 = vpow2.f32 %v3397_v63  ;;  %v3699_v6 = vrot.slane %v8890_v42, %v9430_v12  ;;  %v3695_v39 = vrot.slane %v8890_v42, %v9432_v13 }
 0x9c7   :  { %9094 = vpow2.f32 %v3395_v52 }
 0x9c8   :  { %9096 = vpow2.f32 %v3401_v48  ;;  %v3703_v48 = vrot.slane %v8890_v42, %v9455_v28 }
 0x9ce   :  { %v9083_v53 = vpop.eup %9082 }
 0x9cf   :  { %v9085_v34 = vpop.eup %9084  ;;  %v8883_v51 = vadd.f32 -1.0, %v9083_v53 }
 0x9d0   :  { %v9087_v30 = vpop.eup %9086  ;;  %v8881_v31 = vadd.f32 -1.0, %v9085_v34 }
 0x9d1   :  { %v9089_v46 = vpop.eup %9088  ;;  %v11133_v19 = vsel %vm3385_vm1, %v3377_v62, %v8883_v51  ;;  %v8882_v20 = vadd.f32 -1.0, %v9087_v30  ;;  %vm3381_vm1 = vcmp.gt.f32.partialorder %v3373_v57, 0.0  ;;  %v3707_v30 = vrot.slane %v8890_v42, %v9457_v29 }
 0x9d2   :  { %15399 = vst [vmem:[#allocation32_spill] sm:$0xff] %v11133_v19  ;;  %v9091_v55 = vpop.eup %9090  ;;  %v3756_v25 = vmul.f32 %v3738_v61, %v11133_v19  ;;  %v11137_v18 = vsel %vm3383_vm8, %v3375_v4, %v8881_v31  ;;  %v8884_v36 = vadd.f32 -1.0, %v9089_v46  ;;  %vm3380_vm8 = vcmp.gt.f32.partialorder %v3372_v1, 0.0 }
 0x9d3   :  { %15400 = vst [vmem:[#allocation31_spill] sm:$0xff] %v11137_v18  ;;  %v9093_v58 = vpop.eup %9092  ;;  %v3758_v37 = vmul.f32 %v3746_v32, %v11137_v18  ;;  %v11140_v35 = vsel %vm3384_vm10, %v3376_v40, %v8882_v20  ;;  %v8879_v49 = vadd.f32 -1.0, %v9091_v55  ;;  %vm3382_vm10 = vcmp.gt.f32.partialorder %v11123_v3, 0.0 }
 0x9d4   :  { %15401 = vst [vmem:[#allocation33_spill] sm:$0xff] %v11140_v35  ;;  %v9095_v7 = vpop.eup %9094  ;;  %3889 = vmatprep.subr.mxu0 %v3756_v25  ;;  %v3755_v62 = vmul.f32 %v3734_v41, %v11140_v35  ;;  %v11145_v10 = vsel %vm3386_vm9, %v11114_v44, %v8884_v36  ;;  %v8878_v4 = vadd.f32 -1.0, %v9093_v58  ;;  %vm3379_vm9 = vcmp.gt.f32.partialorder %v11121_v27, 0.0 }
 0x9d5   :  { %15402 = vst [vmem:[#allocation34_spill] sm:$0xff] %v11145_v10  ;;  %v9097_v26 = vpop.eup %9096  ;;  %3966 = vmatprep.subr.mxu1 %v3758_v37  ;;  %v3757_v8 = vmul.f32 %v3742_v23, %v11145_v10  ;;  %v11148_v54 = vsel %vm3381_vm1, %v3373_v57, %v8879_v49  ;;  %v8877_v40 = vadd.f32 -1.0, %v9095_v7  ;;  %v8894_v57 = vld [vmem:[%s15124_s1 + $0x88] sm:$0xff]  ;;  %vm3452_vm1 = vcmp.lt.s32.totalorder %v9422_v11, 8 }
 0x9d6   :  { %15403 = vst [vmem:[#allocation35_spill] sm:$0xff] %v11148_v54  ;;  %3890 = vmatpush1.msra.mxu0 %v3755_v62  ;;  %3444 = vrot.lane.b32.xlu0 %v11148_v54, %s9236_s24  ;;  %v11151_v5 = vsel %vm3380_vm8, %v3372_v1, %v8878_v4  ;;  %v3752_v17 = vmul.f32 %v3738_v61, %v11148_v54  ;;  %v8880_v44 = vadd.f32 -1.0, %v9097_v26  ;;  %vm3555_vm8 = vcmp.lt.s32.totalorder %v9422_v11, 120 }
 0x9d7   :  { %15404 = vst [vmem:[#allocation36_spill] sm:$0xff] %v11151_v5  ;;  %3967 = vmatpush1.msra.mxu1 %v3757_v8  ;;  %3440 = vrot.lane.b32.xlu1 %v11151_v5, %s9236_s24  ;;  %v11157_v45 = vsel %vm3379_vm9, %v11121_v27, %v8877_v40  ;;  %v3751_v50 = vmul.f32 %v3734_v41, %v11151_v5 }
 0x9d8   :  { %15405 = vst [vmem:[#allocation37_spill] sm:$0xff] %v11157_v45  ;;  %3891 = vmatprep.subr.mxu0 %v3752_v17  ;;  %v3754_v0 = vmul.f32 %v3746_v32, %v11157_v45  ;;  %v11163_v56 = vsel %vm3382_vm10, %v11123_v3, %v8880_v44  ;;  %8897 = vmatprep.mubr.msk.f32.mxu0 %vm636_vm0, %v8894_v57 }
 0x9d9   :  { %15406 = vst [vmem:[#allocation38_spill] sm:$0xff] %v11163_v56  ;;  %3892 = vmatpush1.msra.mxu0 %v3751_v50  ;;  %v3753_v15 = vmul.f32 %v3742_v23, %v11163_v56  ;;  %8899 = vmatprep.mubr.msk.f32.mxu1 %vm636_vm0, %v8894_v57  ;;  %v8889_v23 = vld [vmem:[%s15126_s3 + $0x80] ss:$8 sm:$0xf] }
 0x9da   :  { %3968 = vmatprep.subr.mxu1 %v3754_v0  ;;  %3448 = vrot.lane.b32.xlu0 %v11163_v56, %s9236_s24  ;;  %v3660_v4 = vrot.slane %v8889_v23, %v9430_v12  ;;  %v3664_v40 = vrot.slane %v8889_v23, %v9455_v28  ;;  %v3656_v44 = vrot.slane %v8889_v23, %v9432_v13 }
 0x9db   :  { %3969 = vmatpush1.msra.mxu1 %v3753_v15  ;;  %3436 = vrot.lane.b32.xlu1 %v11157_v45, %s9236_s24  ;;  %v3668_v50 = vrot.slane %v8889_v23, %v9457_v29  ;;  %v8887_v23 = vld [vmem:[%s15126_s3 + $0x65] ss:$8 sm:$0xf] }
 0x9de   :  { %3547 = vrot.lane.b32.xlu0 %v11148_v54, %s9237_s25 }
 0x9df   :  { %3543 = vrot.lane.b32.xlu1 %v11151_v5, %s9237_s25 }
 0x9e2   :  { %3446 = vrot.lane.b32.xlu0 %v11133_v19, %s9236_s24 }
 0x9e3   :  { %3442 = vrot.lane.b32.xlu1 %v11140_v35, %s9236_s24 }
 0x9e6   :  { %3450 = vrot.lane.b32.xlu0 %v11145_v10, %s9236_s24 }
 0x9e7   :  { %3438 = vrot.lane.b32.xlu1 %v11137_v18, %s9236_s24 }
 0x9ea   :  { %3549 = vrot.lane.b32.xlu0 %v11133_v19, %s9237_s25 }
 0x9eb   :  { %3545 = vrot.lane.b32.xlu1 %v11140_v35, %s9237_s25 }
 0x9ee   :  { %3553 = vrot.lane.b32.xlu0 %v11145_v10, %s9237_s25 }
 0x9ef   :  { %3541 = vrot.lane.b32.xlu1 %v11137_v18, %s9237_s25 }
 0x9f2   :  { %4717 = vrot.lane.b32.xlu0 %v11151_v5, %s9235_s18 }
 0x9f3   :  { %3539 = vrot.lane.b32.xlu1 %v11157_v45, %s9237_s25 }
 0x9f6   :  { %4657 = vrot.lane.b32.xlu0 %v11140_v35, %s9231_s9 }
 0x9f7   :  { %3551 = vrot.lane.b32.xlu1 %v11163_v56, %s9237_s25 }
 0x9fa   :  { %4655 = vrot.lane.b32.xlu0 %v11151_v5, %s9231_s9 }
 0x9fb   :  { %4721 = vrot.lane.b32.xlu1 %v11148_v54, %s9235_s18 }
 0x9ff   :  { %4713 = vrot.lane.b32.xlu1 %v11157_v45, %s9235_s18 }
 0xa03   :  { %4719 = vrot.lane.b32.xlu1 %v11140_v35, %s9235_s18 }
 0xa07   :  { %4723 = vrot.lane.b32.xlu1 %v11133_v19, %s9235_s18 }
 0xa0b   :  { %4715 = vrot.lane.b32.xlu1 %v11137_v18, %s9235_s18 }
 0xa0f   :  { %4661 = vrot.lane.b32.xlu1 %v11133_v19, %s9231_s9 }
 0xa48   :  { %v3445_v1 = vpop.permute.xlu0 %3444 }
 0xa49   :  { %v3441_v16 = vpop.permute.xlu1 %3440 }
 0xa4a   :  { %v11219_v61 = vsel %vm3452_vm1, %v3441_v16, %v3445_v1 }
 0xa4b   :  { %v3713_v37 = vmul.f32 %v3699_v6, %v11219_v61 }
 0xa4c   :  { %v3449_v14 = vpop.permute.xlu0 %3448 }
 0xa4d   :  { %v3437_v27 = vpop.permute.xlu1 %3436  ;;  %v11248_v55 = vsel %vm3452_vm1, %v3445_v1, %v3449_v14 }
 0xa4e   :  { %v11223_v34 = vsel %vm3452_vm1, %v3437_v27, %v3441_v16  ;;  %v11232_v31 = vsel %vm3452_vm1, %v3449_v14, %v3437_v27  ;;  %v3714_v26 = vmul.f32 %v3703_v48, %v11248_v55 }
 0xa4f   :  { %v3712_v49 = vmul.f32 %v3695_v39, %v11223_v34  ;;  %v3715_v62 = vmul.f32 %v3707_v30, %v11232_v31 }
 0xa50   :  { %v11203_v3 = vpop.permute.xlu0 %3547 }
 0xa51   :  { %v3544_v43 = vpop.permute.xlu1 %3543 }
 0xa52   :  { %v11269_v15 = vsel %vm3555_vm8, %v3544_v43, %v11203_v3 }
 0xa54   :  { %v3447_v9 = vpop.permute.xlu0 %3446 }
 0xa55   :  { %v3443_v2 = vpop.permute.xlu1 %3442 }
 0xa56   :  { %v11212_v63 = vsel %vm3452_vm1, %v3443_v2, %v3447_v9 }
 0xa57   :  { %v3717_v52 = vmul.f32 %v3699_v6, %v11212_v63 }
 0xa58   :  { %v3451_v53 = vpop.permute.xlu0 %3450 }
 0xa59   :  { %v11227_v51 = vsel %vm3452_vm1, %v3447_v9, %v3451_v53  ;;  %3893 = vmatprep.subr.mxu0 %v3717_v52  ;;  %v3439_v32 = vpop.permute.xlu1 %3438 }
 0xa5a   :  { %v3718_v41 = vmul.f32 %v3703_v48, %v11227_v51  ;;  %v11237_v46 = vsel %vm3452_vm1, %v3439_v32, %v3443_v2  ;;  %v11241_v20 = vsel %vm3452_vm1, %v3451_v53, %v3439_v32  ;;  %v3674_v2 = vmul.f32 %v3660_v4, %v11269_v15 }
 0xa5b   :  { %v3716_v25 = vmul.f32 %v3695_v39, %v11237_v46  ;;  %v3719_v36 = vmul.f32 %v3707_v30, %v11241_v20  ;;  %v8888_v39 = vld [vmem:[%s15126_s3 + $0x66] ss:$8 sm:$0xf] }
 0xa5c   :  { %v3550_v58 = vpop.permute.xlu0 %3549 }
 0xa5d   :  { %3894 = vmatpush1.msra.mxu0 %v3716_v25  ;;  %v3546_v7 = vpop.permute.xlu1 %3545  ;;  %3970 = vmatprep.subr.mxu1 %v3719_v36 }
 0xa5e   :  { %v11260_v8 = vsel %vm3555_vm8, %v3546_v7, %v3550_v58  ;;  %3895 = vmatprep.subr.mxu0 %v3713_v37  ;;  %3971 = vmatpush1.msra.mxu1 %v3718_v41  ;;  %v3609_v41 = vrot.slane %v8888_v39, %v9432_v13  ;;  %v8886_v37 = vld [vmem:[%s15126_s3 + $0x64] ss:$8 sm:$0xf] }
 0xa5f   :  { %3896 = vmatpush1.msra.mxu0 %v3712_v49  ;;  %3972 = vmatprep.subr.mxu1 %v3715_v62  ;;  %v3678_v17 = vmul.f32 %v3660_v4, %v11260_v8 }
 0xa60   :  { %3973 = vmatpush1.msra.mxu1 %v3714_v26  ;;  %v3554_v0 = vpop.permute.xlu0 %3553  ;;  %v3630_v49 = vmul.f32 %v3609_v41, %v11241_v20  ;;  %v3626_v26 = vmul.f32 %v3609_v41, %v11232_v31  ;;  %v3578_v41 = vrot.slane %v8887_v23, %v9455_v28 }
 0xa61   :  { %v11273_v57 = vsel %vm3555_vm8, %v3550_v58, %v3554_v0  ;;  %3897 = vmatprep.subr.mxu0 %v3678_v17  ;;  %v3542_v1 = vpop.permute.xlu1 %3541  ;;  %v3574_v58 = vrot.slane %v8887_v23, %v9430_v12  ;;  %v3510_v17 = vrot.slane %v8886_v37, %v9430_v12 }
 0xa62   :  { %v3679_v16 = vmul.f32 %v3664_v40, %v11273_v57  ;;  %v11278_v14 = vsel %vm3555_vm8, %v3542_v1, %v3546_v7  ;;  %v11282_v27 = vsel %vm3555_vm8, %v3554_v0, %v3542_v1  ;;  %v3570_v7 = vrot.slane %v8887_v23, %v9432_v13 }
 0xa63   :  { %v3677_v42 = vmul.f32 %v3656_v44, %v11278_v14  ;;  %v3680_v9 = vmul.f32 %v3668_v50, %v11282_v27  ;;  %v3506_v0 = vrot.slane %v8886_v37, %v9432_v13 }
 0xa64   :  { %v3591_v1 = vmul.f32 %v3570_v7, %v11282_v27 }
 0xa65   :  { %3898 = vmatpush1.msra.mxu0 %v3677_v42  ;;  %v3540_v6 = vpop.permute.xlu1 %3539  ;;  %3974 = vmatprep.subr.mxu1 %v3680_v9  ;;  %v3582_v9 = vrot.slane %v8887_v23, %v9457_v29  ;;  %v3593_v23 = vmul.f32 %v3578_v41, %v11260_v8 }
 0xa66   :  { %v11289_v52 = vsel %vm3555_vm8, %v3540_v6, %v3544_v43  ;;  %3899 = vmatprep.subr.mxu0 %v3674_v2  ;;  %3975 = vmatpush1.msra.mxu1 %v3679_v16  ;;  %v3613_v43 = vrot.slane %v8888_v39, %v9430_v12 }
 0xa67   :  { %v3673_v48 = vmul.f32 %v3656_v44, %v11289_v52  ;;  %v3617_v44 = vrot.slane %v8888_v39, %v9455_v28 }
 0xa68   :  { %v3631_v36 = vmul.f32 %v3613_v43, %v11237_v46  ;;  %v3627_v4 = vmul.f32 %v3613_v43, %v11223_v34 }
 0xa69   :  { %3900 = vmatpush1.msra.mxu0 %v3673_v48  ;;  %v3552_v53 = vpop.permute.xlu1 %3551  ;;  %v3632_v2 = vmul.f32 %v3617_v44, %v11212_v63  ;;  %v3628_v43 = vmul.f32 %v3617_v44, %v11219_v61  ;;  %v8892_v44 = vld [vmem:[%s15126_s3 + $0x83] ss:$8 sm:$0xf] }
 0xa6a   :  { %v11298_v32 = vsel %vm3555_vm8, %v11203_v3, %v3552_v53  ;;  %v11302_v30 = vsel %vm3555_vm8, %v3552_v53, %v3540_v6  ;;  %3901 = vmatprep.subr.mxu0 %v11140_v35  ;;  %v3588_v6 = vmul.f32 %v3574_v58, %v11289_v52  ;;  %v3518_v53 = vrot.slane %v8886_v37, %v9457_v29 }
 0xa6b   :  { %v3675_v25 = vmul.f32 %v3664_v40, %v11298_v32  ;;  %3902 = vmatpush1.msra.mxu0 %v11137_v18  ;;  %v3676_v3 = vmul.f32 %v3668_v50, %v11302_v30  ;;  %v3621_v40 = vrot.slane %v8888_v39, %v9457_v29  ;;  %v3592_v50 = vmul.f32 %v3574_v58, %v11278_v14 }
 0xa6c   :  { %3903 = vmatprep.subr.mxu0 %v11151_v5  ;;  %v3587_v48 = vmul.f32 %v3570_v7, %v11302_v30  ;;  %v3527_v58 = vmul.f32 %v3506_v0, %v11145_v10  ;;  %v3514_v7 = vrot.slane %v8886_v37, %v9455_v28  ;;  %v3590_v37 = vmul.f32 %v3582_v9, %v11298_v32 }
 0xa6d   :  { %3904 = vmatpush1.msra.mxu0 %v11157_v45  ;;  %v11322_v62 = vpop.permute.xlu1 %4721  ;;  %3976 = vmatprep.subr.mxu1 %v3676_v3  ;;  %v3633_v42 = vmul.f32 %v3621_v40, %v11227_v51  ;;  %v3629_v39 = vmul.f32 %v3621_v40, %v11248_v55  ;;  %v8885_v3 = vld [vmem:[%s15126_s3 + $0x63] ss:$8 sm:$0xf] }
 0xa6e   :  { %15407 = vst [vmem:[#allocation39_spill] sm:$0xff] %v11322_v62  ;;  %3905 = vmatprep.subr.mxu0 %v3631_v36  ;;  %3977 = vmatpush1.msra.mxu1 %v3675_v25  ;;  %v3528_v25 = vmul.f32 %v3510_v17, %v11137_v18  ;;  %v3467_v40 = vrot.slane %v8885_v3, %v9432_v13 }
 0xa6f   :  { %3906 = vmatpush1.msra.mxu0 %v3630_v49  ;;  %3978 = vmatprep.subr.mxu1 %v11145_v10  ;;  %v3594_v49 = vmul.f32 %v3582_v9, %v11273_v57  ;;  %v3529_v9 = vmul.f32 %v3514_v7, %v11140_v35 }
 0xa70   :  { %3907 = vmatprep.subr.mxu0 %v3627_v4  ;;  %3979 = vmatpush1.msra.mxu1 %v11133_v19  ;;  %v3524_v4 = vmul.f32 %v3510_v17, %v11157_v45 }
 0xa71   :  { %3908 = vmatpush1.msra.mxu0 %v3626_v26  ;;  %v11334_v16 = vpop.permute.xlu1 %4713  ;;  %3980 = vmatprep.subr.mxu1 %v11163_v56  ;;  %v3471_v26 = vrot.slane %v8885_v3, %v9430_v12 }
 0xa72   :  { %15408 = vst [vmem:[#allocation40_spill] sm:$0xff] %v11334_v16  ;;  %3909 = vmatprep.subr.mxu0 %v3592_v50  ;;  %3981 = vmatpush1.msra.mxu1 %v11148_v54  ;;  %v3523_v50 = vmul.f32 %v3506_v0, %v11163_v56 }
 0xa73   :  { %3910 = vmatpush1.msra.mxu0 %v3591_v1  ;;  %3982 = vmatprep.subr.mxu1 %v3633_v42  ;;  %v3589_v1 = vmul.f32 %v3578_v41, %v11269_v15  ;;  %v3489_v17 = vmul.f32 %v3471_v26, %v11241_v20  ;;  %v3777_v42 = vrot.slane %v8892_v44, %v9430_v12 }
 0xa74   :  { %3911 = vmatprep.subr.mxu0 %v3588_v6  ;;  %3983 = vmatpush1.msra.mxu1 %v3632_v2  ;;  %v3488_v2 = vmul.f32 %v3467_v40, %v11227_v51  ;;  %v3485_v0 = vmul.f32 %v3471_v26, %v11232_v31  ;;  %v3484_v20 = vmul.f32 %v3467_v40, %v11248_v55  ;;  %v11412_v40 = vld [vmem:[%s15126_s3 + $0x61] ss:$8 sm:$0xf] }
 0xa75   :  { %3912 = vmatpush1.msra.mxu0 %v3587_v48  ;;  %v11351_v36 = vpop.permute.xlu1 %4719  ;;  %3984 = vmatprep.subr.mxu1 %v3629_v39  ;;  %v3530_v48 = vmul.f32 %v3518_v53, %v11133_v19  ;;  %v3479_v39 = vrot.slane %v8885_v3, %v9457_v29  ;;  %v3526_v51 = vmul.f32 %v3518_v53, %v11148_v54 }
 0xa76   :  { %3913 = vmatprep.subr.mxu0 %v3528_v25  ;;  %3985 = vmatpush1.msra.mxu1 %v3628_v43  ;;  %v3773_v43 = vrot.slane %v8892_v44, %v9432_v13  ;;  %v3475_v41 = vrot.slane %v8885_v3, %v9455_v28  ;;  %v3795_v25 = vmul.f32 %v3777_v42, %v11273_v57 }
 0xa77   :  { %3914 = vmatpush1.msra.mxu0 %v3527_v58  ;;  %3986 = vmatprep.subr.mxu1 %v3594_v49  ;;  %v3525_v31 = vmul.f32 %v3514_v7, %v11151_v5  ;;  %v3491_v55 = vmul.f32 %v3479_v39, %v11212_v63  ;;  %v3781_v3 = vrot.slane %v8892_v44, %v9455_v28  ;;  %v8893_v63 = vld [vmem:[%s15124_s1 + $0x80] sm:$0xff] }
 0xa78   :  { %3915 = vmatprep.subr.mxu0 %v3524_v4  ;;  %3987 = vmatpush1.msra.mxu1 %v3593_v23  ;;  %v3794_v58 = vmul.f32 %v3773_v43, %v11260_v8  ;;  %v3785_v23 = vrot.slane %v8892_v44, %v9457_v29  ;;  %v3490_v53 = vmul.f32 %v3475_v41, %v11237_v46  ;;  %v4718_v4 = vpop.permute.xlu0 %4717  ;;  %v8924_v46 = vld [vmem:[%s15126_s3 + $0x62] ss:$8 sm:$0xf] }
 0xa79   :  { %v11369_v6 = vpop.permute.xlu1 %4723  ;;  %3916 = vmatpush1.msra.mxu0 %v3523_v50  ;;  %3988 = vmatprep.subr.mxu1 %v3590_v37  ;;  %v3791_v57 = vmul.f32 %v3777_v42, %v11298_v32  ;;  %v3790_v7 = vmul.f32 %v3773_v43, %v11269_v15  ;;  %v3487_v8 = vmul.f32 %v3479_v39, %v11219_v61  ;;  %v8896_v15 = vld [vmem:[%s15124_s1 + $0x98] sm:$0xff]  ;;  %v8895_v37 = vld [vmem:[%s15124_s1 + $0x90] sm:$0xff] }
 0xa7a   :  { %15409 = vst [vmem:[#allocation41_spill] sm:$0xff] %v11369_v6  ;;  %3917 = vmatprep.subr.mxu0 %v3489_v17  ;;  %3989 = vmatpush1.msra.mxu1 %v3589_v1  ;;  %v3486_v26 = vmul.f32 %v3475_v41, %v11223_v34  ;;  %v3797_v61 = vmul.f32 %v3785_v23, %v11278_v14 }
 0xa7b   :  { %3918 = vmatpush1.msra.mxu0 %v3488_v2  ;;  %3990 = vmatprep.subr.mxu1 %v3530_v48  ;;  %v3796_v32 = vmul.f32 %v3781_v3, %v11282_v27  ;;  %v11407_v34 = vsel %vm2783_vm3, %v11351_v36, %v11369_v6  ;;  %v3793_v44 = vmul.f32 %v3785_v23, %v11289_v52 }
 0xa7c   :  { %3919 = vmatprep.subr.mxu0 %v3485_v0  ;;  %3991 = vmatpush1.msra.mxu1 %v3529_v9  ;;  %15411 = vst [vmem:[#allocation43_spill] sm:$0xff] %v11407_v34  ;;  %v4992_v50 = vrot.slane %v8924_v46, %v9430_v12  ;;  %v3792_v1 = vmul.f32 %v3781_v3, %v11302_v30  ;;  %v11435_v42 = vpop.permute.xlu0 %4657 }
 0xa7d   :  { %v11382_v49 = vpop.permute.xlu1 %4715  ;;  %3920 = vmatpush1.msra.mxu0 %v3484_v20  ;;  %3992 = vmatprep.subr.mxu1 %v3526_v51  ;;  %v4988_v17 = vrot.slane %v8924_v46, %v9432_v13  ;;  %v11440_v52 = vsel %vm2783_vm3, %v11334_v16, %v4718_v4  ;;  %v11445_v30 = vrot.slane %v11412_v40, %v9430_v12 }
 0xa7e   :  { %15410 = vst [vmem:[#allocation42_spill] sm:$0xff] %v11382_v49  ;;  %3949 = vmatprep.subr.mxu0 %v3795_v25  ;;  %3993 = vmatpush1.msra.mxu1 %v3525_v31  ;;  %v11418_v14 = vsel %vm2783_vm3, %v11382_v49, %v11351_v36  ;;  %v11432_v36 = vsel %vm2783_vm3, %v4718_v4, %v11322_v62  ;;  %15414 = vst [vmem:[#allocation46_spill] sm:$0xff] %v11440_v52 }
 0xa7f   :  { %3950 = vmatpush2.msra.mxu0 %v3794_v58  ;;  %3994 = vmatprep.subr.mxu1 %v3491_v55  ;;  %15413 = vst [vmem:[#allocation45_spill] sm:$0xff] %v11432_v36  ;;  %v5010_v2 = vmul.f32 %v4992_v50, %v11407_v34  ;;  %v5009_v48 = vmul.f32 %v4988_v17, %v11418_v14 }
 0xa80   :  { %3951 = vmatprep.subr.mxu0 %v3791_v57  ;;  %3995 = vmatpush1.msra.mxu1 %v3490_v53  ;;  %v5006_v9 = vmul.f32 %v4992_v50, %v11432_v36  ;;  %v5005_v39 = vmul.f32 %v4988_v17, %v11440_v52 }
 0xa81   :  { %3952 = vmatpush2.msra.mxu0 %v3790_v7  ;;  %3996 = vmatprep.subr.mxu1 %v3487_v8  ;;  %v11420_v27 = vpop.permute.xlu1 %4661 }
 0xa82   :  { %3954 = vmatmul.mubr.f32.vlgmr.msra.gmra.mxu0 %v8893_v63  ;;  %3997 = vmatpush1.msra.mxu1 %v3486_v26  ;;  %15412 = vst [vmem:[#allocation44_spill] sm:$0xff] %v11420_v27  ;;  %v11452_v0 = vsel %vm2719_vm7, %v11435_v42, %v11420_v27 }
 0xa83   :  { %4026 = vmatprep.subr.mxu1 %v3797_v61  ;;  %8898 = vmatprep.mubr.msk.f32.mxu0 %vm636_vm0, %v8896_v15  ;;  %15415 = vst [vmem:[#allocation47_spill] sm:$0xff] %v11452_v0  ;;  %v4972_v20 = vmul.f32 %v11445_v30, %v11452_v0 }
 0xa84   :  { %4027 = vmatpush2.msra.mxu1 %v3796_v32 }
 0xa85   :  { %4028 = vmatprep.subr.mxu1 %v3793_v44 }
 0xa86   :  { %4029 = vmatpush2.msra.mxu1 %v3792_v1  ;;  %3960 = vmatmul.mubr.f32.gmra.mxu0 %v8895_v37 }
 0xa87   :  { %4031 = vmatmul.mubr.f32.vlgmr.msra.gmra.mxu1 %v8893_v63  ;;  %5279 = vmatprep.subr.mxu1 %v5010_v2 }
 0xa88   :  { %5280 = vmatpush1.msra.mxu1 %v5009_v48  ;;  %8900 = vmatprep.mubr.msk.f32.mxu1 %vm636_vm0, %v8896_v15 }
 0xa89   :  { %5281 = vmatprep.subr.mxu1 %v5006_v9 }
 0xa8a   :  { %5282 = vmatpush1.msra.mxu1 %v5005_v39  ;;  %v4656_v39 = vpop.permute.xlu0 %4655 }
 0xa8b   :  { %5283 = vmatprep.subr.mxu1 %v4972_v20  ;;  %4037 = vmatmul.mubr.f32.gmra.mxu1 %v8895_v37 }
 0xb42   :  { %v11459_v43 = vpop.f32.mrf.mxu0 }
 0xb43   :  { %v4043_v51 = vmul.f32 %v11459_v43, %v11459_v43 }
 0xb44   :  { %v11463_v41 = vpop.f32.mrf.mxu0 }
 0xb45   :  { %v4044_v25 = vmul.f32 %v11463_v41, %v11463_v41  ;;  %v4051_v31 = vadd.f32 %v11463_v41, %v11459_v43 }
 0xb46   :  { %v11469_v58 = vpop.f32.mrf.mxu0 }
 0xb47   :  { %v4061_v55 = vadd.f32 %v4044_v25, %v4043_v51  ;;  %v11471_v23 = vpop.f32.mrf.mxu1  ;;  %v4047_v53 = vmul.f32 %v11469_v58, %v11469_v58 }
 0xb48   :  { %v4045_v3 = vmul.f32 %v11471_v23, %v11471_v23  ;;  %v4052_v57 = vadd.f32 %v4051_v31, %v11471_v23  ;;  %v11478_v7 = vpop.f32.mrf.mxu0  ;;  %v4950_v31 = vrot.slane %v11412_v40, %v9432_v13 }
 0xb49   :  { %v11480_v4 = vpop.f32.mrf.mxu1  ;;  %v4048_v8 = vmul.f32 %v11478_v7, %v11478_v7  ;;  %v4056_v63 = vadd.f32 %v11478_v7, %v11469_v58 }
 0xb4a   :  { %v4062_v26 = vadd.f32 %v4061_v55, %v4045_v3  ;;  %v4046_v46 = vmul.f32 %v11480_v4, %v11480_v4  ;;  %v4053_v15 = vadd.f32 %v4052_v57, %v11480_v4 }
 0xb4b   :  { %v4066_v61 = vadd.f32 %v4048_v8, %v4047_v53  ;;  %v11489_v32 = vpop.f32.mrf.mxu1 }
 0xb4c   :  { %4054 = vadd.xlane.f32.xlu1 %v4053_v15  ;;  %v4049_v44 = vmul.f32 %v11489_v32, %v11489_v32  ;;  %v4057_v50 = vadd.f32 %v4056_v63, %v11489_v32  ;;  %v4063_v37 = vadd.f32 %v4062_v26, %v4046_v46 }
 0xb4d   :  { %v11494_v1 = vpop.f32.mrf.mxu1 }
 0xb4e   :  { %v4067_v17 = vadd.f32 %v4066_v61, %v4049_v44  ;;  %4064 = vadd.xlane.f32.xlu0 %v4063_v37  ;;  %v4050_v2 = vmul.f32 %v11494_v1, %v11494_v1  ;;  %v4058_v48 = vadd.f32 %v4057_v50, %v11494_v1 }
 0xb50   :  { %v4068_v9 = vadd.f32 %v4067_v17, %v4050_v2 }
 0xb52   :  { %4059 = vadd.xlane.f32.xlu0 %v4058_v48 }
 0xb56   :  { %4069 = vadd.xlane.f32.xlu0 %v4068_v9 }
 0xb5d   :  { %4653 = vrot.lane.b32.xlu1 %v11137_v18, %s9231_s9 }
 0xb61   :  { %4659 = vrot.lane.b32.xlu1 %v11148_v54, %s9231_s9 }
 0xb65   :  { %4651 = vrot.lane.b32.xlu1 %v11157_v45, %s9231_s9 }
 0xb69   :  { %4599 = vrot.lane.b32.xlu1 %v11133_v19, %s9232_s10 }
 0xb6c   :  { %4595 = vrot.lane.b32.xlu0 %v11140_v35, %s9232_s10 }
 0xb6d   :  { %4593 = vrot.lane.b32.xlu1 %v11151_v5, %s9232_s10 }
 0xb70   :  { %4591 = vrot.lane.b32.xlu0 %v11137_v18, %s9232_s10 }
 0xb71   :  { %4589 = vrot.lane.b32.xlu1 %v11157_v45, %s9232_s10 }
 0xb74   :  { %4597 = vrot.lane.b32.xlu0 %v11148_v54, %s9232_s10 }
 0xb75   :  { %4855 = vrot.lane.b32.xlu1 %v11133_v19, %s9233_s11 }
 0xb78   :  { %4851 = vrot.lane.b32.xlu0 %v11140_v35, %s9233_s11 }
 0xb79   :  { %4849 = vrot.lane.b32.xlu1 %v11151_v5, %s9233_s11 }
 0xb7c   :  { %4847 = vrot.lane.b32.xlu0 %v11137_v18, %s9233_s11 }
 0xb80   :  { %4853 = vrot.lane.b32.xlu0 %v11148_v54, %s9233_s11 }
 0xbd5   :  { %v4055_v20 = vpop.xlane.xlu1 %4054 }
 0xbd6   :  { %v4071_v51 = vmul.f32 0.001953125, %v4055_v20 }
 0xbd7   :  { %v4065_v25 = vpop.xlane.xlu0 %4064 }
 0xbd8   :  { %v4075_v55 = vmul.f32 %v4071_v51, %v4071_v51  ;;  %v4073_v53 = vmul.f32 0.001953125, %v4065_v25  ;;  %v4081_v9 = vsub.f32 %v11459_v43, %v4071_v51  ;;  %v4082_v20 = vsub.f32 %v11463_v41, %v4071_v51 }
 0xbd9   :  { %v11529_v3 = vpop.permute.xlu1 %4653  ;;  %v4083_v25 = vsub.f32 %v11471_v23, %v4071_v51 }
 0xbda   :  { %15416 = vst [vmem:[#allocation48_spill] sm:$0xff] %v11529_v3  ;;  %v11535_v57 = vsel %vm2719_vm7, %v11529_v3, %v11435_v42  ;;  %v4077_v8 = vsub.f32 %v4073_v53, %v4075_v55 }
 0xbdb   :  { %15417 = vst [vmem:[#allocation49_spill] sm:$0xff] %v11535_v57  ;;  %v4971_v63 = vmul.f32 %v4950_v31, %v11535_v57  ;;  %v4060_v44 = vpop.xlane.xlu0 %4059 }
 0xbdc   :  { %v4079_v26 = vmax.f32 %v4077_v8, 0.0  ;;  %v11555_v2 = vmul.f32 0.001953125, %v4060_v44  ;;  %v4084_v44 = vsub.f32 %v11480_v4, %v4071_v51 }
 0xbdd   :  { %5284 = vmatpush1.msra.mxu1 %v4971_v63  ;;  %v11538_v46 = vpop.permute.xlu1 %4659 }
 0xbde   :  { %15418 = vst [vmem:[#allocation50_spill] sm:$0xff] %v11538_v46  ;;  %v4089_v15 = vadd.f32 1e-05, %v4079_v26  ;;  %v11543_v40 = vsel %vm2719_vm7, %v4656_v39, %v11538_v46  ;;  %v4076_v48 = vmul.f32 %v11555_v2, %v11555_v2 }
 0xbdf   :  { %15419 = vst [vmem:[#allocation51_spill] sm:$0xff] %v11543_v40  ;;  %v4968_v61 = vmul.f32 %v11445_v30, %v11543_v40  ;;  %v4070_v17 = vpop.xlane.xlu0 %4069 }
 0xbe0   :  { %9098 = vrsqrt.f32 %v4089_v15  ;;  %v4074_v30 = vmul.f32 0.001953125, %v4070_v17 }
 0xbe1   :  { %v11547_v42 = vpop.permute.xlu1 %4651  ;;  %5285 = vmatprep.subr.mxu1 %v4968_v61 }
 0xbe2   :  { %15420 = vst [vmem:[#allocation52_spill] sm:$0xff] %v11547_v42  ;;  %v11552_v50 = vsel %vm2719_vm7, %v11547_v42, %v4656_v39  ;;  %v4078_v53 = vsub.f32 %v4074_v30, %v4076_v48 }
 0xbe3   :  { %15421 = vst [vmem:[#allocation53_spill] sm:$0xff] %v11552_v50  ;;  %v4967_v37 = vmul.f32 %v4950_v31, %v11552_v50 }
 0xbe4   :  { %v4080_v15 = vmax.f32 %v4078_v53, 0.0 }
 0xbe5   :  { %5286 = vmatpush1.msra.mxu1 %v4967_v37 }
 0xbe6   :  { %v4090_v46 = vadd.f32 1e-05, %v4080_v15 }
 0xbed   :  { %v9099_v55 = vpop.eup %9098 }
 0xbee   :  { %v4095_v39 = vmul.f32 %v9099_v55, %v4083_v25  ;;  %v4094_v8 = vmul.f32 %v9099_v55, %v4082_v20  ;;  %v4093_v63 = vmul.f32 %v9099_v55, %v4081_v9  ;;  %v4096_v43 = vmul.f32 %v9099_v55, %v4084_v44 }
 0xbf0   :  { %v4111_v31 = vmin.f32 %v4095_v39, 0.0  ;;  %v4110_v26 = vmin.f32 %v4094_v8, 0.0  ;;  %v4109_v61 = vmin.f32 %v4093_v63, 0.0  ;;  %v4112_v41 = vmin.f32 %v4096_v43, 0.0 }
 0xbf1   :  { %vm4103_vm0 = vcmp.gt.f32.partialorder %v4095_v39, 0.0  ;;  %vm4102_vm9 = vcmp.gt.f32.partialorder %v4094_v8, 0.0  ;;  %vm4101_vm10 = vcmp.gt.f32.partialorder %v4093_v63, 0.0  ;;  %vm4104_vm1 = vcmp.gt.f32.partialorder %v4096_v43, 0.0 }
 0xbf2   :  { %v4121_v37 = vmul.f32 1.442695, %v4111_v31  ;;  %v4119_v40 = vmul.f32 1.442695, %v4110_v26  ;;  %v4117_v17 = vmul.f32 1.442695, %v4109_v61 }
 0xbf3   :  { %v4123_v23 = vmul.f32 1.442695, %v4112_v41  ;;  %v4088_v41 = vsub.f32 %v11494_v1, %v11555_v2 }
 0xbf4   :  { %9100 = vpow2.f32 %v4121_v37 }
 0xbf5   :  { %9102 = vpow2.f32 %v4119_v40 }
 0xbf6   :  { %9104 = vpow2.f32 %v4117_v17 }
 0xbf7   :  { %9106 = vrsqrt.f32 %v4090_v46  ;;  %v4087_v46 = vsub.f32 %v11489_v32, %v11555_v2  ;;  %v4086_v32 = vsub.f32 %v11478_v7, %v11555_v2 }
 0xbf8   :  { %9108 = vpow2.f32 %v4123_v23 }
 0xc01   :  { %v9101_v48 = vpop.eup %9100 }
 0xc02   :  { %v9103_v30 = vpop.eup %9102  ;;  %v8903_v9 = vadd.f32 -1.0, %v9101_v48 }
 0xc03   :  { %v9105_v20 = vpop.eup %9104  ;;  %v8902_v25 = vadd.f32 -1.0, %v9103_v30 }
 0xc04   :  { %v11563_v53 = vsel %vm4103_vm0, %v4095_v39, %v8903_v9  ;;  %v8901_v51 = vadd.f32 -1.0, %v9105_v20  ;;  %v9107_v40 = vpop.eup %9106 }
 0xc05   :  { %4227 = vrot.lane.b32.xlu1 %v11563_v53, %s9231_s9  ;;  %v11567_v4 = vsel %vm4102_vm9, %v4094_v8, %v8902_v25  ;;  %v4099_v39 = vmul.f32 %v9107_v40, %v4087_v46  ;;  %v4085_v8 = vsub.f32 %v11469_v58, %v11555_v2  ;;  %v9109_v31 = vpop.eup %9108  ;;  %v4098_v61 = vmul.f32 %v9107_v40, %v4086_v32 }
 0xc06   :  { %4223 = vrot.lane.b32.xlu0 %v11567_v4, %s9231_s9  ;;  %v11575_v55 = vsel %vm4101_vm10, %v4093_v63, %v8901_v51  ;;  %v8904_v63 = vadd.f32 -1.0, %v9109_v31  ;;  %v4100_v48 = vmul.f32 %v9107_v40, %v4088_v41  ;;  %v5023_v31 = vld [vmem:[#allocation4 + $0x10] sm:$0xff]  ;;  %vm5171_vm10 = vcmask 261120  }
 0xc07   :  { %v4115_v26 = vmin.f32 %v4099_v39, 0.0  ;;  %v4097_v15 = vmul.f32 %v9107_v40, %v4085_v8  ;;  %v4114_v17 = vmin.f32 %v4098_v61, 0.0  ;;  %vm4107_vm8 = vcmp.gt.f32.partialorder %v4099_v39, 0.0 }
 0xc08   :  { %v11591_v58 = vsel %vm4104_vm1, %v4096_v43, %v8904_v63  ;;  %v4116_v43 = vmin.f32 %v4100_v48, 0.0  ;;  %vm4106_vm9 = vcmp.gt.f32.partialorder %v4098_v61, 0.0  ;;  %v15170_v8 = vmov 0.0   ;;  %v11672_v63 = vpop.permute.xlu0 %4595 }
 0xc09   :  { %4165 = vrot.lane.b32.xlu1 %v11563_v53, %s9232_s10  ;;  %v4129_v44 = vmul.f32 1.442695, %v4115_v26  ;;  %v4113_v37 = vmin.f32 %v4097_v15, 0.0  ;;  %v4127_v23 = vmul.f32 1.442695, %v4114_v17  ;;  %vm4105_vm0 = vcmp.gt.f32.partialorder %v4097_v15, 0.0  ;;  %5319 = vmatprep.mubr.f32.mxu1 %v15170_v8 }
 0xc0a   :  { %4219 = vrot.lane.b32.xlu0 %v11575_v55, %s9231_s9  ;;  %v4131_v1 = vmul.f32 1.442695, %v4116_v43  ;;  %8925 = vmatmul.mubr.msk.f32.vlgmr.msra.gmra.mxu1 %vm5171_vm10, %v5023_v31  ;;  %vm4108_vm1 = vcmp.gt.f32.partialorder %v4100_v48, 0.0 }
 0xc0b   :  { %9110 = vpow2.f32 %v4129_v44  ;;  %v4125_v7 = vmul.f32 1.442695, %v4113_v37  ;;  %5325 = vmatprep.mubr.f32.mxu1 %v15170_v8 }
 0xc0c   :  { %v11682_v44 = vpop.permute.xlu0 %4591 }
 0xc0d   :  { %4417 = vrot.lane.b32.xlu1 %v11567_v4, %s9233_s11  ;;  %9112 = vpow2.f32 %v4125_v7 }
 0xc0e   :  { %4161 = vrot.lane.b32.xlu0 %v11567_v4, %s9232_s10  ;;  %9114 = vpow2.f32 %v4127_v23 }
 0xc0f   :  { %9116 = vpow2.f32 %v4131_v1 }
 0xc10   :  { %v11692_v17 = vpop.permute.xlu0 %4597 }
 0xc11   :  { %4413 = vrot.lane.b32.xlu1 %v11575_v55, %s9233_s11 }
 0xc12   :  { %4157 = vrot.lane.b32.xlu0 %v11575_v55, %s9232_s10 }
 0xc14   :  { %v11702_v41 = vpop.permute.xlu0 %4851 }
 0xc15   :  { %4169 = vrot.lane.b32.xlu1 %v11591_v58, %s9232_s10  ;;  %15423 = vst [vmem:[#allocation55_spill] sm:$0xff] %v11702_v41 }
 0xc16   :  { %4231 = vrot.lane.b32.xlu0 %v11591_v58, %s9231_s9 }
 0xc18   :  { %v9111_v2 = vpop.eup %9110 }
 0xc19   :  { %4347 = vrot.lane.b32.xlu1 %v11567_v4, %s9234_s12  ;;  %v8907_v30 = vadd.f32 -1.0, %v9111_v2 }
 0xc1a   :  { %4421 = vrot.lane.b32.xlu0 %v11563_v53, %s9233_s11  ;;  %v9113_v9 = vpop.eup %9112 }
 0xc1b   :  { %v9115_v20 = vpop.eup %9114  ;;  %v11617_v25 = vsel %vm4107_vm8, %v4099_v39, %v8907_v30  ;;  %v8905_v51 = vadd.f32 -1.0, %v9113_v9  ;;  %v5022_v30 = vld [vmem:[#allocation4 + $0x8] sm:$0xff] }
 0xc1c   :  { %v8906_v40 = vadd.f32 -1.0, %v9115_v20  ;;  %v9117_v26 = vpop.eup %9116  ;;  %5242 = vmatprep.mubr.f32.mxu0 %v5022_v30 }
 0xc1d   :  { %4355 = vrot.lane.b32.xlu1 %v11591_v58, %s9234_s12  ;;  %v11623_v46 = vsel %vm4105_vm0, %v4097_v15, %v8905_v51  ;;  %v8908_v15 = vadd.f32 -1.0, %v9117_v26 }
 0xc1e   :  { %4343 = vrot.lane.b32.xlu0 %v11575_v55, %s9234_s12  ;;  %v11628_v39 = vsel %vm4106_vm9, %v4098_v61, %v8906_v40  ;;  %v11680_v61 = vpop.permute.xlu1 %4599  ;;  %v5026_v40 = vld [vmem:[#allocation4 + $0x28] sm:$0xff] }
 0xc1f   :  { %v11642_v32 = vsel %vm4108_vm1, %v4100_v48, %v8908_v15  ;;  %v11712_v48 = vpop.permute.xlu0 %4847  ;;  %8926 = vmatmul.mubr.msk.f32.gmra.mxu1 %vm5171_vm10, %v5026_v40  ;;  %vm15581_vm1 = vcmp.lt.s32.totalorder %v9422_v11, 32 }
 0xc20   :  { %15425 = vst [vmem:[#allocation57_spill] sm:$0xff] %v11712_v48  ;;  %5396 = vmatprep.mubr.f32.mxu1 %v5022_v30 }
 0xc21   :  { %4281 = vrot.lane.b32.xlu1 %v11575_v55, %s9235_s18 }
 0xc22   :  { %4425 = vrot.lane.b32.xlu0 %v11591_v58, %s9233_s11  ;;  %v11688_v37 = vpop.permute.xlu1 %4593 }
 0xc23   :  { %v11722_v1 = vpop.permute.xlu0 %4853 }
 0xc24   :  { %15427 = vst [vmem:[#allocation59_spill] sm:$0xff] %v11722_v1 }
 0xc25   :  { %4293 = vrot.lane.b32.xlu1 %v11591_v58, %s9235_s18 }
 0xc26   :  { %4285 = vrot.lane.b32.xlu0 %v11567_v4, %s9235_s18  ;;  %v11700_v7 = vpop.permute.xlu1 %4589 }
 0xc27   :  { %15422 = vst [vmem:[#allocation54_spill] sm:$0xff] %v11700_v7 }
 0xc29   :  { %4351 = vrot.lane.b32.xlu1 %v11563_v53, %s9234_s12 }
 0xc2a   :  { %4229 = vrot.lane.b32.xlu0 %v11617_v25, %s9231_s9  ;;  %v11708_v23 = vpop.permute.xlu1 %4855 }
 0xc2b   :  { %15424 = vst [vmem:[#allocation56_spill] sm:$0xff] %v11708_v23 }
 0xc2d   :  { %4289 = vrot.lane.b32.xlu1 %v11563_v53, %s9235_s18 }
 0xc2e   :  { %4221 = vrot.lane.b32.xlu0 %v11623_v46, %s9231_s9  ;;  %v11720_v43 = vpop.permute.xlu1 %4849 }
 0xc2f   :  { %15426 = vst [vmem:[#allocation58_spill] sm:$0xff] %v11720_v43 }
 0xc31   :  { %4225 = vrot.lane.b32.xlu1 %v11628_v39, %s9231_s9 }
 0xc32   :  { %4163 = vrot.lane.b32.xlu0 %v11628_v39, %s9232_s10 }
 0xc35   :  { %4167 = vrot.lane.b32.xlu1 %v11617_v25, %s9232_s10 }
 0xc36   :  { %4159 = vrot.lane.b32.xlu0 %v11623_v46, %s9232_s10 }
 0xc39   :  { %4419 = vrot.lane.b32.xlu1 %v11628_v39, %s9233_s11 }
 0xc3a   :  { %4233 = vrot.lane.b32.xlu0 %v11642_v32, %s9231_s9 }
 0xc3d   :  { %4415 = vrot.lane.b32.xlu1 %v11623_v46, %s9233_s11 }
 0xc3e   :  { %4423 = vrot.lane.b32.xlu0 %v11617_v25, %s9233_s11 }
 0xc41   :  { %4349 = vrot.lane.b32.xlu1 %v11628_v39, %s9234_s12 }
 0xc42   :  { %4171 = vrot.lane.b32.xlu0 %v11642_v32, %s9232_s10 }
 0xc45   :  { %4357 = vrot.lane.b32.xlu1 %v11642_v32, %s9234_s12 }
 0xc46   :  { %4345 = vrot.lane.b32.xlu0 %v11623_v46, %s9234_s12 }
 0xc49   :  { %4287 = vrot.lane.b32.xlu1 %v11628_v39, %s9235_s18 }
 0xc4a   :  { %4427 = vrot.lane.b32.xlu0 %v11642_v32, %s9233_s11 }
 0xc4d   :  { %4845 = vrot.lane.b32.xlu1 %v11157_v45, %s9233_s11 }
 0xc4e   :  { %4283 = vrot.lane.b32.xlu0 %v11623_v46, %s9235_s18 }
 0xc51   :  { %4601 = vrot.lane.b32.xlu1 %v11163_v56, %s9232_s10 }
 0xc52   :  { %4603 = vrot.lane.b32.xlu0 %v11145_v10, %s9232_s10 }
 0xc55   :  { %4781 = vrot.lane.b32.xlu1 %v11140_v35, %s9234_s12 }
 0xc56   :  { %4295 = vrot.lane.b32.xlu0 %v11642_v32, %s9235_s18 }
 0xc59   :  { %4789 = vrot.lane.b32.xlu1 %v11145_v10, %s9234_s12 }
 0xc5a   :  { %4353 = vrot.lane.b32.xlu0 %v11617_v25, %s9234_s12 }
 0xc5d   :  { %4779 = vrot.lane.b32.xlu1 %v11151_v5, %s9234_s12 }
 0xc5e   :  { %4291 = vrot.lane.b32.xlu0 %v11617_v25, %s9235_s18 }
 0xc61   :  { %4787 = vrot.lane.b32.xlu1 %v11163_v56, %s9234_s12 }
 0xc62   :  { %4777 = vrot.lane.b32.xlu0 %v11137_v18, %s9234_s12 }
 0xc65   :  { %4725 = vrot.lane.b32.xlu1 %v11163_v56, %s9235_s18 }
 0xc66   :  { %4859 = vrot.lane.b32.xlu0 %v11145_v10, %s9233_s11 }
 0xc69   :  { %4665 = vrot.lane.b32.xlu1 %v11145_v10, %s9231_s9 }
 0xc6a   :  { %4775 = vrot.lane.b32.xlu0 %v11157_v45, %s9234_s12  ;;  %v11822_v45 = vld [vmem:[%s15126_s3 + $0x60] ss:$8 sm:$0xf] }
 0xc6b   :  { %v4484_v48 = vrot.slane %v11822_v45, %v9430_v12 }
 0xc6d   :  { %4663 = vrot.lane.b32.xlu1 %v11163_v56, %s9231_s9 }
 0xc6e   :  { %4857 = vrot.lane.b32.xlu0 %v11163_v56, %s9233_s11 }
 0xc71   :  { %6552 = vrot.lane.b32.xlu1 %v10727_v22, %s9230_s7 }
 0xc72   :  { %4727 = vrot.lane.b32.xlu0 %v11145_v10, %s9235_s18  ;;  %v8915_v10 = vld [vmem:[%s15126_s3 + $0x61] ss:$8 sm:$0xf] }
 0xc73   :  { %v4518_v3 = vrot.slane %v8915_v10, %v9432_v13  ;;  %v4522_v49 = vrot.slane %v8915_v10, %v9430_v12 }
 0xc75   :  { %6556 = vrot.lane.b32.xlu1 %v10721_v60, %s9230_s7 }
 0xc76   :  { %4785 = vrot.lane.b32.xlu0 %v11133_v19, %s9234_s12 }
 0xc77   :  { %v11728_v2 = vpop.permute.xlu1 %4227 }
 0xc78   :  { %v4224_v9 = vpop.permute.xlu0 %4223 }
 0xc79   :  { %6548 = vrot.lane.b32.xlu1 %v10741_v33, %s9230_s7  ;;  %v11817_v16 = vsel %vm2719_vm7, %v4224_v9, %v11728_v2 }
 0xc7a   :  { %4783 = vrot.lane.b32.xlu0 %v11148_v54, %s9234_s12  ;;  %15431 = vst [vmem:[#allocation63_spill] sm:$0xff] %v11817_v16 }
 0xc7b   :  { %v11734_v20 = vpop.permute.xlu1 %4165 }
 0xc7c   :  { %v11736_v51 = vpop.permute.xlu0 %4219 }
 0xc7d   :  { %6554 = vrot.lane.b32.xlu1 %v10675_v38, %s9230_s7  ;;  %v11835_v43 = vsel %vm2719_vm7, %v11736_v51, %v4224_v9 }
 0xc7e   :  { %6550 = vrot.lane.b32.xlu0 %v10679_v21, %s9230_s7  ;;  %15434 = vst [vmem:[#allocation66_spill] sm:$0xff] %v11835_v43  ;;  %v4535_v9 = vmul.f32 %v4518_v3, %v11835_v43 }
 0xc7f   :  { %v11743_v31 = vpop.permute.xlu1 %4417 }
 0xc80   :  { %v4162_v26 = vpop.permute.xlu0 %4161 }
 0xc81   :  { %6546 = vrot.lane.b32.xlu1 %v10687_v24, %s9230_s7 }
 0xc82   :  { %6490 = vrot.lane.b32.xlu0 %v10727_v22, %s9223_s2 }
 0xc83   :  { %v11749_v15 = vpop.permute.xlu1 %4413 }
 0xc84   :  { %v11751_v8 = vpop.permute.xlu0 %4157 }
 0xc85   :  { %6494 = vrot.lane.b32.xlu1 %v10721_v60, %s9223_s2 }
 0xc86   :  { %6488 = vrot.lane.b32.xlu0 %v10679_v21, %s9223_s2 }
 0xc87   :  { %v11757_v40 = vpop.permute.xlu1 %4169 }
 0xc88   :  { %v11759_v30 = vpop.permute.xlu0 %4231 }
 0xc89   :  { %6486 = vrot.lane.b32.xlu1 %v10741_v33, %s9223_s2 }
 0xc8a   :  { %6432 = vrot.lane.b32.xlu0 %v10721_v60, %s9224_s27 }
 0xc8b   :  { %v11765_v0 = vpop.permute.xlu1 %4347 }
 0xc8c   :  { %v11767_v36 = vpop.permute.xlu0 %4421 }
 0xc8d   :  { %6492 = vrot.lane.b32.xlu1 %v10675_v38, %s9223_s2 }
 0xc8e   :  { %6430 = vrot.lane.b32.xlu0 %v10675_v38, %s9224_s27 }
 0xc8f   :  { %v11773_v27 = vpop.permute.xlu1 %4355 }
 0xc90   :  { %v11775_v62 = vpop.permute.xlu0 %4343 }
 0xc91   :  { %6484 = vrot.lane.b32.xlu1 %v10687_v24, %s9223_s2 }
 0xc92   :  { %6370 = vrot.lane.b32.xlu0 %v10721_v60, %s9225_s28 }
 0xc93   :  { %v11781_v34 = vpop.permute.xlu1 %4281 }
 0xc94   :  { %v11783_v6 = vpop.permute.xlu0 %4425 }
 0xc95   :  { %6428 = vrot.lane.b32.xlu1 %v10727_v22, %s9224_s27 }
 0xc96   :  { %6368 = vrot.lane.b32.xlu0 %v10675_v38, %s9225_s28 }
 0xc97   :  { %v11789_v50 = vpop.permute.xlu1 %4293 }
 0xc98   :  { %15428 = vst [vmem:[#allocation60_spill] sm:$0xff] %v11789_v50  ;;  %v11791_v54 = vpop.permute.xlu0 %4285 }
 0xc99   :  { %6424 = vrot.lane.b32.xlu1 %v10741_v33, %s9224_s27 }
 0xc9a   :  { %6436 = vrot.lane.b32.xlu0 %v10733_v59, %s9224_s27 }
 0xc9b   :  { %v11797_v56 = vpop.permute.xlu1 %4351 }
 0xc9c   :  { %15429 = vst [vmem:[#allocation61_spill] sm:$0xff] %v11797_v56  ;;  %v4230_v57 = vpop.permute.xlu0 %4229 }
 0xc9d   :  { %6426 = vrot.lane.b32.xlu1 %v10679_v21, %s9224_s27 }
 0xc9e   :  { %6292 = vrot.lane.b32.xlu0 %v10741_v33, %s9226_s29 }
 0xc9f   :  { %v11803_v19 = vpop.permute.xlu1 %4289 }
 0xca0   :  { %15430 = vst [vmem:[#allocation62_spill] sm:$0xff] %v11803_v19  ;;  %v4222_v42 = vpop.permute.xlu0 %4221 }
 0xca1   :  { %6422 = vrot.lane.b32.xlu1 %v10687_v24, %s9224_s27 }
 0xca2   :  { %6374 = vrot.lane.b32.xlu0 %v10733_v59, %s9225_s28 }
 0xca3   :  { %v4226_v52 = vpop.permute.xlu1 %4225 }
 0xca4   :  { %v11826_v5 = vsel %vm2719_vm7, %v4226_v52, %v4230_v57  ;;  %v11830_v18 = vsel %vm2719_vm7, %v4222_v42, %v4226_v52  ;;  %v4164_v35 = vpop.permute.xlu0 %4163  ;;  %v4536_v52 = vmul.f32 %v4522_v49, %v11817_v16 }
 0xca5   :  { %15432 = vst [vmem:[#allocation64_spill] sm:$0xff] %v11826_v5  ;;  %15433 = vst [vmem:[#allocation65_spill] sm:$0xff] %v11830_v18  ;;  %v4539_v1 = vmul.f32 %v4518_v3, %v11830_v18  ;;  %6366 = vrot.lane.b32.xlu1 %v10727_v22, %s9225_s28  ;;  %v4540_v19 = vmul.f32 %v4522_v49, %v11826_v5  ;;  %v11852_v18 = vsel %vm2655_vm6, %v4162_v26, %v11734_v20 }
 0xca6   :  { %6290 = vrot.lane.b32.xlu0 %v10687_v24, %s9226_s29  ;;  %15435 = vst [vmem:[#allocation67_spill] sm:$0xff] %v11852_v18  ;;  %v4480_v5 = vrot.slane %v11822_v45, %v9432_v13  ;;  %v11864_v49 = vsel %vm2655_vm6, %v11751_v8, %v4162_v26  ;;  %v4498_v26 = vmul.f32 %v4484_v48, %v11852_v18 }
 0xca7   :  { %v11843_v56 = vpop.permute.xlu1 %4167  ;;  %5178 = vmatprep.subr.mxu0 %v4540_v19  ;;  %15437 = vst [vmem:[#allocation69_spill] sm:$0xff] %v11864_v49 }
 0xca8   :  { %v11859_v50 = vsel %vm2655_vm6, %v4164_v35, %v11843_v56  ;;  %v4160_v19 = vpop.permute.xlu0 %4159  ;;  %5179 = vmatpush1.msra.mxu0 %v4539_v1  ;;  %v4497_v41 = vmul.f32 %v4480_v5, %v11864_v49 }
 0xca9   :  { %15436 = vst [vmem:[#allocation68_spill] sm:$0xff] %v11859_v50  ;;  %v11868_v3 = vsel %vm2655_vm6, %v4160_v19, %v4164_v35  ;;  %6362 = vrot.lane.b32.xlu1 %v10741_v33, %s9225_s28  ;;  %5180 = vmatprep.subr.mxu0 %v4536_v52  ;;  %v4502_v16 = vmul.f32 %v4484_v48, %v11859_v50  ;;  %v11880_v35 = vld [vmem:[%s15126_s3 + $0x47] ss:$8 sm:$0xf] }
 0xcaa   :  { %15438 = vst [vmem:[#allocation70_spill] sm:$0xff] %v11868_v3  ;;  %v4501_v43 = vmul.f32 %v4480_v5, %v11868_v3  ;;  %6372 = vrot.lane.b32.xlu0 %v10693_v47, %s9225_s28  ;;  %5181 = vmatpush1.msra.mxu0 %v4535_v9  ;;  %v4526_v52 = vrot.slane %v8915_v10, %v9455_v28 }
 0xcab   :  { %v4420_v1 = vpop.permute.xlu1 %4419  ;;  %5182 = vmatprep.subr.mxu0 %v4502_v16  ;;  %v11888_v50 = vsel %vm2719_vm7, %v11728_v2, %v11759_v30  ;;  %v4530_v16 = vrot.slane %v8915_v10, %v9457_v29  ;;  %v11895_v48 = vsel %vm2719_vm7, %v11759_v30, %v11736_v51  ;;  %v4433_v51 = vsel %vm2919_vm4, %v11749_v15, %v11743_v31 }
 0xcac   :  { %v4234_v9 = vpop.permute.xlu0 %4233  ;;  %5183 = vmatpush1.msra.mxu0 %v4501_v43  ;;  %v4537_v30 = vmul.f32 %v4526_v52, %v11888_v50 }
 0xcad   :  { %v11899_v5 = vsel %vm2719_vm7, %v4230_v57, %v4234_v9  ;;  %v11903_v18 = vsel %vm2719_vm7, %v4234_v9, %v4222_v42  ;;  %6364 = vrot.lane.b32.xlu1 %v10679_v21, %s9225_s28  ;;  %5184 = vmatprep.subr.mxu0 %v4498_v26  ;;  %v4442_v57 = vrot.slane %v11880_v35, %v9432_v13 }
 0xcae   :  { %15439 = vst [vmem:[#allocation71_spill] sm:$0xff] %v11899_v5  ;;  %v4541_v10 = vmul.f32 %v4526_v52, %v11899_v5  ;;  %6230 = vrot.lane.b32.xlu0 %v10741_v33, %s9227_s30  ;;  %5185 = vmatpush1.msra.mxu0 %v4497_v41  ;;  %v4542_v43 = vmul.f32 %v4530_v16, %v11903_v18 }
 0xcaf   :  { %v11913_v2 = vpop.permute.xlu1 %4415  ;;  %v4446_v42 = vrot.slane %v11880_v35, %v9430_v12  ;;  %v4538_v9 = vmul.f32 %v4530_v16, %v11895_v48  ;;  %v4431_v5 = vsel %vm2919_vm4, %v11743_v31, %v11767_v36  ;;  %v4488_v16 = vrot.slane %v11822_v45, %v9455_v28 }
 0xcb0   :  { %v4434_v41 = vsel %vm2919_vm4, %v11913_v2, %v4420_v1  ;;  %5332 = vmatprep.subr.mxu1 %v4542_v43  ;;  %v4424_v26 = vpop.permute.xlu0 %4423  ;;  %v4459_v31 = vmul.f32 %v4442_v57, %v4433_v51 }
 0xcb1   :  { %v4463_v49 = vmul.f32 %v4442_v57, %v4434_v41  ;;  %v4432_v3 = vsel %vm2919_vm4, %v4420_v1, %v4424_v26  ;;  %5333 = vmatpush1.msra.mxu1 %v4541_v10  ;;  %6360 = vrot.lane.b32.xlu1 %v10687_v24, %s9225_s28  ;;  %v11944_v1 = vsel %vm2655_vm6, %v11734_v20, %v11757_v40  ;;  %v11949_v10 = vld [vmem:[%s15126_s3 + $0x45] ss:$8 sm:$0xf] }
 0xcb2   :  { %6242 = vrot.lane.b32.xlu0 %v10733_v59, %s9227_s30  ;;  %5334 = vmatprep.subr.mxu1 %v4538_v9  ;;  %v4464_v52 = vmul.f32 %v4446_v42, %v4432_v3  ;;  %v4460_v41 = vmul.f32 %v4446_v42, %v4431_v5  ;;  %v11957_v57 = vsel %vm2655_vm6, %v11757_v40, %v11751_v8 }
 0xcb3   :  { %5335 = vmatpush1.msra.mxu1 %v4537_v30  ;;  %v11938_v43 = vpop.permute.xlu1 %4349  ;;  %v4492_v30 = vrot.slane %v11822_v45, %v9457_v29  ;;  %v4376_v42 = vrot.slane %v11949_v10, %v9430_v12  ;;  %v4365_v9 = vsel %vm2847_vm5, %v11773_v27, %v11775_v62 }
 0xcb4   :  { %5186 = vmatprep.subr.mxu0 %v4464_v52  ;;  %v4172_v3 = vpop.permute.xlu0 %4171 }
 0xcb5   :  { %v11962_v20 = vsel %vm2655_vm6, %v11843_v56, %v4172_v3  ;;  %v11966_v51 = vsel %vm2655_vm6, %v4172_v3, %v4160_v19  ;;  %5187 = vmatpush1.msra.mxu0 %v4463_v49  ;;  %6434 = vrot.lane.b32.xlu1 %v10693_v47, %s9224_s27  ;;  %v4372_v56 = vrot.slane %v11949_v10, %v9432_v13 }
 0xcb6   :  { %v4503_v45 = vmul.f32 %v4488_v16, %v11962_v20  ;;  %6232 = vrot.lane.b32.xlu0 %v10679_v21, %s9227_s30  ;;  %5188 = vmatprep.subr.mxu0 %v4460_v41  ;;  %v4504_v8 = vmul.f32 %v4492_v30, %v11966_v51  ;;  %v4499_v19 = vmul.f32 %v4488_v16, %v11944_v1 }
 0xcb7   :  { %5189 = vmatpush1.msra.mxu0 %v4459_v31  ;;  %v11976_v40 = vpop.permute.xlu1 %4357  ;;  %v4500_v5 = vmul.f32 %v4492_v30, %v11957_v57  ;;  %v4363_v16 = vsel %vm2847_vm5, %v11775_v62, %v11765_v0  ;;  %v4450_v30 = vrot.slane %v11880_v35, %v9455_v28 }
 0xcb8   :  { %5190 = vmatprep.subr.mxu0 %v11628_v39  ;;  %5336 = vmatprep.subr.mxu1 %v4504_v8  ;;  %v4346_v49 = vpop.permute.xlu0 %4345  ;;  %v4435_v8 = vsel %vm2919_vm4, %v11783_v6, %v11749_v15 }
 0xcb9   :  { %v4364_v52 = vsel %vm2847_vm5, %v4346_v49, %v11938_v43  ;;  %v4366_v39 = vsel %vm2847_vm5, %v11976_v40, %v4346_v49  ;;  %5191 = vmatpush1.msra.mxu0 %v11623_v46  ;;  %5337 = vmatpush1.msra.mxu1 %v4503_v45  ;;  %v4389_v46 = vmul.f32 %v4372_v56, %v4365_v9 }
 0xcba   :  { %v4393_v31 = vmul.f32 %v4372_v56, %v4366_v39  ;;  %6296 = vrot.lane.b32.xlu1 %v10727_v22, %s9226_s29  ;;  %6168 = vrot.lane.b32.xlu0 %v10741_v33, %s9228_s5  ;;  %v4394_v3 = vmul.f32 %v4376_v42, %v4364_v52  ;;  %v4454_v45 = vrot.slane %v11880_v35, %v9457_v29  ;;  %v12052_v39 = vld [vmem:[%s15126_s3 + $0x44] ss:$8 sm:$0xf] }
 0xcbb   :  { %5192 = vmatprep.subr.mxu0 %v11567_v4  ;;  %5338 = vmatprep.subr.mxu1 %v4500_v5  ;;  %v12003_v41 = vpop.permute.xlu1 %4287  ;;  %v12017_v4 = vld [vmem:[%s15126_s3 + $0x44] ss:$8 sm:$0xf]  ;;  %v4429_v35 = vsel %vm2919_vm4, %v11767_v36, %v11783_v6 }
 0xcbc   :  { %5193 = vmatpush1.msra.mxu0 %v11575_v55  ;;  %5339 = vmatpush1.msra.mxu1 %v4499_v19  ;;  %v4428_v62 = vpop.permute.xlu0 %4427  ;;  %v4390_v19 = vmul.f32 %v4376_v42, %v4363_v16  ;;  %v4462_v36 = vmul.f32 %v4454_v45, %v4435_v8  ;;  %v4314_v5 = vrot.slane %v12017_v4, %v9430_v12  ;;  %v12085_v8 = vld [vmem:[%s15126_s3 + $0x43] ss:$8 sm:$0xf] }
 0xcbd   :  { %5194 = vmatprep.subr.mxu0 %v4394_v3  ;;  %v4430_v56 = vsel %vm2919_vm4, %v4424_v26, %v4428_v62  ;;  %v4436_v55 = vsel %vm2919_vm4, %v4428_v62, %v11913_v2  ;;  %v12037_v2 = vld [vmem:[%s15126_s3 + $0x60] ss:$8 sm:$0xf]  ;;  %v4461_v42 = vmul.f32 %v4450_v30, %v4429_v35  ;;  %v12064_v3 = vsel %vm2655_vm6, %v11672_v63, %v11680_v61 }
 0xcbe   :  { %v4465_v15 = vmul.f32 %v4450_v30, %v4430_v56  ;;  %5195 = vmatpush1.msra.mxu0 %v4393_v31  ;;  %6304 = vrot.lane.b32.xlu1 %v10733_v59, %s9226_s29  ;;  %v4466_v49 = vmul.f32 %v4454_v45, %v4436_v55  ;;  %v4916_v31 = vrot.slane %v12037_v2, %v9430_v12  ;;  %v12073_v30 = vld [vmem:[%s15126_s3 + $0x47] ss:$8 sm:$0xf] }
 0xcbf   :  { %6300 = vrot.lane.b32.xlu0 %v10721_v60, %s9226_s29  ;;  %5196 = vmatprep.subr.mxu0 %v4390_v19  ;;  %v12032_v26 = vpop.permute.xlu1 %4845  ;;  %15441 = vst [vmem:[#allocation73_spill] sm:$0xff] %v12064_v3  ;;  %v12080_v45 = vrot.slane %v12052_v39, %v9430_v12  ;;  %15443 = vst [vmem:[#allocation75_spill] sm:$0xff] %v12085_v8  ;;  %v12091_v56 = vsel %vm2655_vm6, %v11682_v44, %v11672_v63  ;;  %v15451_v59 = vld [vmem:[#allocation60_spill] sm:$0xff] }
 0xcc0   :  { %5197 = vmatpush1.msra.mxu0 %v4389_v46  ;;  %5340 = vmatprep.subr.mxu1 %v4466_v49  ;;  %v4284_v6 = vpop.permute.xlu0 %4283  ;;  %v12068_v46 = vrot.slane %v12037_v2, %v9432_v13  ;;  %15444 = vst [vmem:[#allocation76_spill] sm:$0xff] %v12091_v56  ;;  %v12109_v63 = vrot.slane %v12085_v8, %v9430_v12 }
 0xcc1   :  { %v12044_v9 = vsel %vm2783_vm3, %v4284_v6, %v12003_v41  ;;  %5341 = vmatpush1.msra.mxu1 %v4465_v15  ;;  %15442 = vst [vmem:[#allocation74_spill] sm:$0xff] %v12080_v45  ;;  %v12105_v55 = vmul.f32 %v12080_v45, %v11418_v14  ;;  %v12113_v19 = vrot.slane %v12073_v30, %v9432_v13 }
 0xcc2   :  { %15440 = vst [vmem:[#allocation72_spill] sm:$0xff] %v12044_v9  ;;  %6294 = vrot.lane.b32.xlu1 %v10679_v21, %s9226_s29  ;;  %5342 = vmatprep.subr.mxu1 %v4462_v36  ;;  %v4332_v52 = vmul.f32 %v4314_v5, %v12044_v9  ;;  %15447 = vst [vmem:[#allocation79_spill] sm:$0xff] %v12109_v63  ;;  %v12125_v14 = vrot.slane %v12073_v30, %v9430_v12  ;;  %v12157_v21 = vld [vmem:[%s15126_s3 + $0x43] ss:$8 sm:$0xf] }
 0xcc3   :  { %6166 = vrot.lane.b32.xlu0 %v10687_v24, %s9228_s5  ;;  %5343 = vmatpush1.msra.mxu1 %v4461_v42  ;;  %v12056_v16 = vpop.permute.xlu1 %4601  ;;  %15446 = vst [vmem:[#allocation78_spill] sm:$0xff] %v12105_v55  ;;  %v12129_v35 = vmul.f32 %v12068_v46, %v12091_v56  ;;  %v4310_v15 = vrot.slane %v12017_v4, %v9432_v13 }
 0xcc4   :  { %5198 = vmatprep.subr.mxu0 %v4332_v52  ;;  %5344 = vmatprep.subr.mxu1 %v11642_v32  ;;  %v12076_v62 = vpop.permute.xlu0 %4603  ;;  %v12097_v32 = vsel %vm2655_vm6, %v11688_v37, %v11692_v17  ;;  %v12146_v42 = vsel %vm2655_vm6, %v11700_v7, %v11688_v37  ;;  %v15450_v52 = vld [vmem:[#allocation55_spill] sm:$0xff]  ;;  %v12168_v37 = vsel %vm2783_vm3, %v15451_v59, %v11781_v34 }
 0xcc5   :  { %15445 = vst [vmem:[#allocation77_spill] sm:$0xff] %v12097_v32  ;;  %5345 = vmatpush1.msra.mxu1 %v11617_v25  ;;  %v12140_v36 = vmul.f32 %v4916_v31, %v12097_v32  ;;  %15452 = vst [vmem:[#allocation55_spill] sm:$0xff] %v12168_v37  ;;  %v4380_v55 = vrot.slane %v11949_v10, %v9455_v28  ;;  %v4327_v8 = vmul.f32 %v4310_v15, %v12168_v37  ;;  %v15457_v37 = vld [vmem:[#allocation65_spill] sm:$0xff] }
 0xcc6   :  { %6302 = vrot.lane.b32.xlu1 %v10693_v47, %s9226_s29  ;;  %5346 = vmatprep.subr.mxu1 %v11591_v58  ;;  %v12121_v58 = vmul.f32 %v4916_v31, %v12064_v3  ;;  %v12162_v31 = vld [vmem:[%s15126_s3 + $0x42] ss:$8 sm:$0xf] }
 0xcc7   :  { %6298 = vrot.lane.b32.xlu0 %v10675_v38, %s9226_s29  ;;  %5347 = vmatpush1.msra.mxu1 %v11563_v53  ;;  %v12118_v25 = vpop.permute.xlu1 %4781  ;;  %v12137_v53 = vsel %vm2783_vm3, %v11781_v34, %v11791_v54  ;;  %v12152_v38 = vsel %vm2919_vm4, %v15450_v52, %v11708_v23  ;;  %v15454_v3 = vld [vmem:[#allocation57_spill] sm:$0xff]  ;;  %v4186_v56 = vrot.slane %v12162_v31, %v9432_v13 }
 0xcc8   :  { %15448 = vst [vmem:[#allocation80_spill] sm:$0xff] %v12118_v25  ;;  %15449 = vst [vmem:[#allocation81_spill] sm:$0xff] %v12137_v53  ;;  %v4296_v49 = vpop.permute.xlu0 %4295  ;;  %v4866_v9 = vsel %vm2919_vm4, %v15454_v3, %v15450_v52  ;;  %v4252_v34 = vrot.slane %v12157_v21, %v9430_v12  ;;  %v4328_v45 = vmul.f32 %v4314_v5, %v12137_v53  ;;  %v15456_v23 = vld [vmem:[#allocation61_spill] sm:$0xff] }
 0xcc9   :  { %v12172_v32 = vsel %vm2783_vm3, %v4296_v49, %v4284_v6  ;;  %v4248_v6 = vrot.slane %v12157_v21, %v9432_v13  ;;  %v4359_v3 = vsel %vm2847_vm5, %v15456_v23, %v11773_v27  ;;  %v4318_v25 = vrot.slane %v12017_v4, %v9455_v28 }
 0xcca   :  { %15453 = vst [vmem:[#allocation60_spill] sm:$0xff] %v12172_v32  ;;  %v4331_v63 = vmul.f32 %v4310_v15, %v12172_v32  ;;  %6234 = vrot.lane.b32.xlu1 %v10727_v22, %s9227_s30  ;;  %v4190_v32 = vrot.slane %v12162_v31, %v9430_v12  ;;  %v4361_v5 = vsel %vm2847_vm5, %v11765_v0, %v15456_v23 }
 0xccb   :  { %6106 = vrot.lane.b32.xlu0 %v10741_v33, %s9229_s6  ;;  %v12191_v52 = vpop.permute.xlu1 %4789  ;;  %v4384_v33 = vrot.slane %v11949_v10, %v9457_v29  ;;  %v4269_v53 = vmul.f32 %v4248_v6, %v11903_v18  ;;  %v4265_v0 = vmul.f32 %v4248_v6, %v11895_v48  ;;  %v4391_v18 = vmul.f32 %v4380_v55, %v4361_v5  ;;  %v15463_v5 = vld [vmem:[#allocation69_spill] sm:$0xff] }
 0xccc   :  { %15455 = vst [vmem:[#allocation82_spill] sm:$0xff] %v12191_v52  ;;  %5199 = vmatpush1.msra.mxu0 %v4331_v63  ;;  %v4354_v7 = vpop.permute.xlu0 %4353  ;;  %v4270_v63 = vmul.f32 %v4252_v34, %v15457_v37 }
 0xccd   :  { %v4360_v15 = vsel %vm2847_vm5, %v4354_v7, %v11976_v40  ;;  %v4362_v27 = vsel %vm2847_vm5, %v11938_v43, %v4354_v7  ;;  %5200 = vmatprep.subr.mxu0 %v4328_v45  ;;  %v15458_v7 = vld [vmem:[#allocation66_spill] sm:$0xff]  ;;  %v4322_v40 = vrot.slane %v12017_v4, %v9457_v29  ;;  %v4392_v37 = vmul.f32 %v4384_v33, %v4359_v3  ;;  %v15461_v3 = vld [vmem:[#allocation59_spill] sm:$0xff] }
 0xcce   :  { %v4395_v52 = vmul.f32 %v4380_v55, %v4362_v27  ;;  %6228 = vrot.lane.b32.xlu1 %v10687_v24, %s9227_s30  ;;  %5201 = vmatpush1.msra.mxu0 %v4327_v8  ;;  %v4396_v10 = vmul.f32 %v4384_v33, %v4360_v15  ;;  %v4266_v43 = vmul.f32 %v4252_v34, %v15458_v7  ;;  %v15459_v45 = vld [vmem:[#allocation62_spill] sm:$0xff] }
 0xccf   :  { %6238 = vrot.lane.b32.xlu0 %v10721_v60, %s9227_s30  ;;  %5202 = vmatprep.subr.mxu0 %v4270_v63  ;;  %v12222_v23 = vpop.permute.xlu1 %4779  ;;  %v12231_v8 = vsel %vm2783_vm3, %v15459_v45, %v15451_v59  ;;  %v15460_v4 = vld [vmem:[#allocation70_spill] sm:$0xff]  ;;  %v4207_v59 = vmul.f32 %v4186_v56, %v11966_v51  ;;  %v4204_v15 = vmul.f32 %v4190_v32, %v15463_v5 }
 0xcd0   :  { %5203 = vmatpush1.msra.mxu0 %v4269_v53  ;;  %5348 = vmatprep.subr.mxu1 %v4396_v10  ;;  %v4292_v48 = vpop.permute.xlu0 %4291  ;;  %v4208_v55 = vmul.f32 %v4190_v32, %v15460_v4  ;;  %v4929_v27 = vmul.f32 %v12068_v46, %v12146_v42  ;;  %v4895_v63 = vmul.f32 %v12113_v19, %v4866_v9 }
 0xcd1   :  { %v12235_v6 = vsel %vm2783_vm3, %v4292_v48, %v4296_v49  ;;  %v12240_v34 = vsel %vm2783_vm3, %v12003_v41, %v4292_v48  ;;  %5204 = vmatprep.subr.mxu0 %v4266_v43  ;;  %5349 = vmatpush1.msra.mxu1 %v4395_v52  ;;  %v15462_v49 = vld [vmem:[#allocation58_spill] sm:$0xff]  ;;  %v12256_v52 = vsel %vm2783_vm3, %v11791_v54, %v15459_v45 }
 0xcd2   :  { %v4333_v53 = vmul.f32 %v4318_v25, %v12240_v34  ;;  %6240 = vrot.lane.b32.xlu1 %v10693_v47, %s9227_s30  ;;  %5205 = vmatpush1.msra.mxu0 %v4265_v0  ;;  %v4334_v33 = vmul.f32 %v4322_v40, %v12235_v6  ;;  %v4863_v41 = vsel %vm2919_vm4, %v15462_v49, %v15461_v3  ;;  %v12278_v43 = vld [vmem:[%s15126_s3 + $0x45] ss:$8 sm:$0xf] }
 0xcd3   :  { %5350 = vmatprep.subr.mxu1 %v4392_v37  ;;  %5206 = vmatprep.subr.mxu0 %v4208_v55  ;;  %v12258_v51 = vpop.permute.xlu1 %4787  ;;  %v4896_v0 = vmul.f32 %v12125_v14, %v12152_v38  ;;  %v4203_v54 = vmul.f32 %v4186_v56, %v11957_v57  ;;  %v4330_v7 = vmul.f32 %v4322_v40, %v12231_v8 }
 0xcd4   :  { %5351 = vmatpush1.msra.mxu1 %v4391_v18  ;;  %5207 = vmatpush1.msra.mxu0 %v4207_v59  ;;  %v12264_v10 = vpop.permute.xlu0 %4777  ;;  %v4260_v32 = vrot.slane %v12157_v21, %v9457_v29  ;;  %v4256_v46 = vrot.slane %v12157_v21, %v9455_v28  ;;  %v4329_v9 = vmul.f32 %v4318_v25, %v12256_v52  ;;  %v15464_v21 = vld [vmem:[#allocation71_spill] sm:$0xff]  ;;  %v15465_v18 = vld [vmem:[#allocation64_spill] sm:$0xff] }
 0xcd5   :  { %5352 = vmatprep.subr.mxu1 %v4334_v33  ;;  %5208 = vmatprep.subr.mxu0 %v4204_v15  ;;  %v4892_v38 = vmul.f32 %v12125_v14, %v4863_v41  ;;  %v4194_v57 = vrot.slane %v12162_v31, %v9455_v28  ;;  %v4198_v40 = vrot.slane %v12162_v31, %v9457_v29  ;;  %v15466_v59 = vld [vmem:[#allocation63_spill] sm:$0xff] }
 0xcd6   :  { %5353 = vmatpush1.msra.mxu1 %v4333_v53  ;;  %6172 = vrot.lane.b32.xlu1 %v10727_v22, %s9228_s5  ;;  %v4272_v25 = vmul.f32 %v4260_v32, %v15464_v21  ;;  %v4271_v45 = vmul.f32 %v4256_v46, %v15465_v18  ;;  %v4920_v48 = vrot.slane %v12037_v2, %v9455_v28  ;;  %v15473_v21 = vld [vmem:[#allocation33_spill] sm:$0xff] }
 0xcd7   :  { %5209 = vmatpush1.msra.mxu0 %v4203_v54  ;;  %5354 = vmatprep.subr.mxu1 %v4330_v7  ;;  %v12285_v56 = vpop.permute.xlu1 %4725  ;;  %v4924_v37 = vrot.slane %v12037_v2, %v9457_v29  ;;  %v12298_v4 = vrot.slane %v12278_v43, %v9432_v13  ;;  %v12302_v55 = vrot.slane %v12052_v39, %v9432_v13  ;;  %v15468_v54 = vld [vmem:[#allocation67_spill] sm:$0xff] }
 0xcd8   :  { %5210 = vmatprep.subr.mxu0 %v12121_v58  ;;  %5355 = vmatpush1.msra.mxu1 %v4329_v9  ;;  %v4860_v14 = vpop.permute.xlu0 %4859  ;;  %v4268_v31 = vmul.f32 %v4260_v32, %v11888_v50  ;;  %v4267_v58 = vmul.f32 %v4256_v46, %v15466_v59  ;;  %v4865_v2 = vsel %vm2919_vm4, %v12032_v26, %v15462_v49  ;;  %v15467_v49 = vld [vmem:[#allocation68_spill] sm:$0xff]  ;;  %v15469_v32 = vld [vmem:[#allocation54_spill] sm:$0xff] }
 0xcd9   :  { %5211 = vmatpush2.msra.mxu0 %v12129_v35  ;;  %5356 = vmatprep.subr.mxu1 %v4272_v25  ;;  %v12313_v53 = vrot.slane %v12073_v30, %v9455_v28  ;;  %v4210_v50 = vmul.f32 %v4198_v40, %v11962_v20  ;;  %v4808_v33 = vrot.slane %v12278_v43, %v9430_v12  ;;  %v15471_v46 = vld [vmem:[#allocation82_spill] sm:$0xff] }
 0xcda   :  { %5212 = vmatprep.subr.mxu0 %v12140_v36  ;;  %5357 = vmatpush1.msra.mxu1 %v4271_v45  ;;  %v4886_v41 = vrot.slane %v12073_v30, %v9457_v29  ;;  %v4209_v5 = vmul.f32 %v4194_v57, %v15467_v49  ;;  %v12328_v36 = vsel %vm2655_vm6, %v11692_v17, %v12056_v16  ;;  %v15477_v49 = vld [vmem:[#allocation37_spill] sm:$0xff] }
 0xcdb   :  { %5213 = vmatpush2.msra.mxu0 %v4929_v27  ;;  %5358 = vmatprep.subr.mxu1 %v4268_v31  ;;  %v12316_v35 = vpop.permute.xlu1 %4665  ;;  %v12334_v15 = vsel %vm2655_vm6, %v12076_v62, %v11682_v44  ;;  %v4891_v27 = vmul.f32 %v12113_v19, %v4865_v2  ;;  %v12341_v30 = vsel %vm2655_vm6, %v11680_v61, %v12076_v62  ;;  %v15470_v62 = vld [vmem:[#allocation80_spill] sm:$0xff] }
 0xcdc   :  { %5214 = vmatprep.subr.mxu0 %v4896_v0  ;;  %5359 = vmatpush1.msra.mxu1 %v4267_v58  ;;  %v4776_v20 = vpop.permute.xlu0 %4775  ;;  %v4206_v17 = vmul.f32 %v4198_v40, %v11944_v1  ;;  %v4205_v7 = vmul.f32 %v4194_v57, %v15468_v54  ;;  %v12349_v44 = vsel %vm2655_vm6, %v12056_v16, %v15469_v32  ;;  %v15474_v40 = vld [vmem:[#allocation56_spill] sm:$0xff] }
 0xcdd   :  { %5215 = vmatpush2.msra.mxu0 %v4895_v63  ;;  %5360 = vmatprep.subr.mxu1 %v4210_v50  ;;  %v12353_v19 = vrot.slane %v12278_v43, %v9455_v28  ;;  %v4931_v61 = vmul.f32 %v4920_v48, %v12328_v36  ;;  %v4796_v1 = vsel %vm2847_vm5, %v12264_v10, %v15470_v62  ;;  %v15476_v58 = vld [vmem:[#allocation36_spill] sm:$0xff] }
 0xcde   :  { %5216 = vmatprep.subr.mxu0 %v4892_v38  ;;  %5361 = vmatpush1.msra.mxu1 %v4209_v5  ;;  %v4936_v16 = vmul.f32 %v4924_v37, %v12334_v15  ;;  %v4935_v0 = vmul.f32 %v4920_v48, %v12341_v30  ;;  %v4798_v9 = vsel %vm2847_vm5, %v15471_v46, %v12264_v10  ;;  %v15472_v38 = vld [vmem:[#allocation57_spill] sm:$0xff]  ;;  %v15475_v48 = vld [vmem:[#allocation31_spill] sm:$0xff] }
 0xcdf   :  { %5217 = vmatpush2.msra.mxu0 %v4891_v27  ;;  %5362 = vmatprep.subr.mxu1 %v4206_v17  ;;  %v12360_v63 = vpop.permute.xlu1 %4663  ;;  %v4868_v57 = vsel %vm2919_vm4, %v4860_v14, %v15472_v38  ;;  %v4862_v18 = vsel %vm2919_vm4, %v15474_v40, %v4860_v14  ;;  %v4795_v45 = vsel %vm2847_vm5, %v4776_v20, %v12222_v23  ;;  %v15482_v38 = vld [vmem:[#allocation46_spill] sm:$0xff] }
 0xce0   :  { %5218 = vmatprep.subr.mxu0 %v15473_v21  ;;  %5363 = vmatpush1.msra.mxu1 %v4205_v7  ;;  %v4858_v25 = vpop.permute.xlu0 %4857  ;;  %v4932_v10 = vmul.f32 %v4924_v37, %v12349_v44  ;;  %v4797_v31 = vsel %vm2847_vm5, %v12258_v51, %v4776_v20  ;;  %v4826_v14 = vmul.f32 %v4808_v33, %v4796_v1  ;;  %v15478_v20 = vld [vmem:[#allocation40_spill] sm:$0xff]  ;;  %v15479_v7 = vld [vmem:[#allocation42_spill] sm:$0xff] }
 0xce1   :  { %5219 = vmatpush2.msra.mxu0 %v15475_v48  ;;  %5364 = vmatprep.subr.mxu1 %v4936_v16  ;;  %v4867_v59 = vsel %vm2919_vm4, %v4858_v25, %v12032_v26  ;;  %v4825_v2 = vmul.f32 %v12298_v4, %v4798_v9  ;;  %v4861_v50 = vsel %vm2919_vm4, %v15461_v3, %v4858_v25  ;;  %v15484_v25 = vld [vmem:[#allocation48_spill] sm:$0xff] }
 0xce2   :  { %5220 = vmatprep.subr.mxu0 %v15476_v58  ;;  %5365 = vmatpush2.msra.mxu1 %v4935_v0  ;;  %v4898_v5 = vmul.f32 %v4886_v41, %v4868_v57  ;;  %v12398_v26 = vsel %vm2783_vm3, %v12285_v56, %v15478_v20  ;;  %v4897_v27 = vmul.f32 %v12313_v53, %v4862_v18  ;;  %v15483_v57 = vld [vmem:[#allocation74_spill] sm:$0xff] }
 0xce3   :  { %5221 = vmatpush2.msra.mxu0 %v15477_v49  ;;  %5366 = vmatprep.subr.mxu1 %v4932_v10  ;;  %v12392_v37 = vpop.permute.xlu1 %6552  ;;  %v4822_v54 = vmul.f32 %v4808_v33, %v4795_v45  ;;  %v4821_v3 = vmul.f32 %v12298_v4, %v4797_v31  ;;  %v4894_v1 = vmul.f32 %v4886_v41, %v4867_v59  ;;  %v15480_v41 = vld [vmem:[#allocation75_spill] sm:$0xff]  ;;  %v15485_v18 = vld [vmem:[#allocation78_spill] sm:$0xff]  ;;  %v15486_v10 = vld [vmem:[#allocation52_spill] sm:$0xff] }
 0xce4   :  { %5222 = vmatprep.subr.mxu0 %v4826_v14  ;;  %5367 = vmatpush2.msra.mxu1 %v4931_v61  ;;  %v4728_v17 = vpop.permute.xlu0 %4727  ;;  %v4893_v16 = vmul.f32 %v12313_v53, %v4861_v50  ;;  %v4816_v33 = vrot.slane %v12278_v43, %v9457_v29  ;;  %v4750_v4 = vrot.slane %v12052_v39, %v9455_v28  ;;  %v12417_v61 = vld [vmem:[%s15126_s3 + $0x42] ss:$8 sm:$0xf] }
 0xce5   :  { %5223 = vmatpush2.msra.mxu0 %v4825_v2  ;;  %5368 = vmatprep.subr.mxu1 %v4898_v5  ;;  %v12405_v32 = vsel %vm2783_vm3, %v4728_v17, %v15479_v7  ;;  %v4680_v9 = vrot.slane %v15480_v41, %v9432_v13  ;;  %v4760_v21 = vmul.f32 %v15483_v57, %v15482_v38  ;;  %v15488_v2 = vld [vmem:[#allocation32_spill] sm:$0xff]  ;;  %v15489_v50 = vld [vmem:[#allocation49_spill] sm:$0xff]  ;;  %v15490_v49 = vld [vmem:[#allocation79_spill] sm:$0xff] }
 0xce6   :  { %v4763_v0 = vmul.f32 %v12302_v55, %v12405_v32  ;;  %5224 = vmatprep.subr.mxu0 %v4822_v54  ;;  %5369 = vmatpush2.msra.mxu1 %v4897_v27  ;;  %v4759_v43 = vmul.f32 %v12302_v55, %v12398_v26  ;;  %v12431_v40 = vsel %vm2719_vm7, %v12316_v35, %v15484_v25  ;;  %v15487_v55 = vld [vmem:[#allocation34_spill] sm:$0xff]  ;;  %v15495_v57 = vld [vmem:[#allocation76_spill] sm:$0xff]  ;;  %v15496_v25 = vld [vmem:[#allocation41_spill] sm:$0xff] }
 0xce7   :  { %5225 = vmatpush2.msra.mxu0 %v4821_v3  ;;  %5370 = vmatprep.subr.mxu1 %v4894_v1  ;;  %v12421_v53 = vpop.permute.xlu1 %6556  ;;  %v4622_v48 = vrot.slane %v12417_v61, %v9430_v12  ;;  %v12440_v31 = vsel %vm2719_vm7, %v12360_v63, %v15486_v10  ;;  %v4702_v5 = vmul.f32 %v15490_v49, %v15489_v50  ;;  %v15493_v1 = vld [vmem:[#allocation35_spill] sm:$0xff] }
 0xce8   :  { %15481 = vst [vmem:[#allocation61_spill] sm:$0xff] %v12421_v53  ;;  %5226 = vmatprep.subr.mxu0 %v15485_v18  ;;  %5371 = vmatpush2.msra.mxu1 %v4893_v16  ;;  %v4786_v45 = vpop.permute.xlu0 %4785  ;;  %v12455_v27 = vrot.slane %v15480_v41, %v9455_v28  ;;  %v4701_v54 = vmul.f32 %v4680_v9, %v12431_v40 }
 0xce9   :  { %5227 = vmatpush2.msra.mxu0 %v4763_v0  ;;  %5372 = vmatprep.subr.mxu1 %v15487_v55  ;;  %v4792_v59 = vsel %vm2847_vm5, %v4786_v45, %v15471_v46  ;;  %v4794_v58 = vsel %vm2847_vm5, %v15470_v62, %v4786_v45  ;;  %v4618_v46 = vrot.slane %v12417_v61, %v9432_v13  ;;  %v15491_v62 = vld [vmem:[#allocation38_spill] sm:$0xff]  ;;  %v15494_v0 = vld [vmem:[#allocation53_spill] sm:$0xff] }
 0xcea   :  { %v4827_v14 = vmul.f32 %v12353_v19, %v4794_v58  ;;  %5228 = vmatprep.subr.mxu0 %v4760_v21  ;;  %5373 = vmatpush2.msra.mxu1 %v15488_v2  ;;  %v4828_v20 = vmul.f32 %v4816_v33, %v4792_v59  ;;  %v4697_v7 = vmul.f32 %v4680_v9, %v12440_v31  ;;  %v12480_v45 = vld [vmem:[%s15126_s3 + $0x62] ss:$8 sm:$0xf] }
 0xceb   :  { %5229 = vmatpush2.msra.mxu0 %v4759_v43  ;;  %5374 = vmatprep.subr.mxu1 %v15491_v62  ;;  %v12461_v3 = vpop.permute.xlu1 %6548  ;;  %v4698_v38 = vmul.f32 %v15490_v49, %v15494_v0  ;;  %v4640_v21 = vmul.f32 %v4622_v48, %v15495_v57  ;;  %v4730_v18 = vsel %vm2783_vm3, %v15496_v25, %v4728_v17  ;;  %v15497_v59 = vld [vmem:[#allocation43_spill] sm:$0xff]  ;;  %v12523_v25 = vld [vmem:[#allocation4] sm:$0xff] }
 0xcec   :  { %15492 = vst [vmem:[#allocation65_spill] sm:$0xff] %v12461_v3  ;;  %5230 = vmatprep.subr.mxu0 %v4702_v5  ;;  %5375 = vmatpush2.msra.mxu1 %v15493_v1  ;;  %v4784_v16 = vpop.permute.xlu0 %4783  ;;  %v4754_v55 = vrot.slane %v12052_v39, %v9457_v29  ;;  %v4765_v58 = vmul.f32 %v4750_v4, %v15497_v59  ;;  %v15498_v2 = vld [vmem:[#allocation39_spill] sm:$0xff] }
 0xced   :  { %5231 = vmatpush2.msra.mxu0 %v4701_v54  ;;  %5376 = vmatprep.subr.mxu1 %v4828_v20  ;;  %v4791_v43 = vsel %vm2847_vm5, %v4784_v16, %v12258_v51  ;;  %v4793_v9 = vsel %vm2847_vm5, %v12222_v23, %v4784_v16  ;;  %v4639_v51 = vmul.f32 %v4618_v46, %v12334_v15  ;;  %v9179_v59 = vld [vmem:[%s15126_s3 + $0x61] ss:$8 sm:$0xf] }
 0xcee   :  { %v4823_v10 = vmul.f32 %v12353_v19, %v4793_v9  ;;  %5232 = vmatprep.subr.mxu0 %v4698_v38  ;;  %5377 = vmatpush2.msra.mxu1 %v4827_v14  ;;  %v4824_v17 = vmul.f32 %v4816_v33, %v4791_v43  ;;  %v4729_v23 = vsel %vm2783_vm3, %v15498_v2, %v12285_v56  ;;  %v15500_v56 = vld [vmem:[#allocation44_spill] sm:$0xff]  ;;  %v15506_v38 = vld [vmem:[#allocation81_spill] sm:$0xff] }
 0xcef   :  { %5233 = vmatpush2.msra.mxu0 %v4697_v7  ;;  %v12491_v50 = vpop.permute.xlu1 %6554  ;;  %v4636_v19 = vmul.f32 %v4622_v48, %v12146_v42  ;;  %v4766_v33 = vmul.f32 %v4754_v55, %v4730_v18  ;;  %v4560_v39 = vrot.slane %v12480_v45, %v9430_v12  ;;  %v4692_v14 = vrot.slane %v15480_v41, %v9457_v29  ;;  %v15501_v42 = vld [vmem:[#allocation45_spill] sm:$0xff]  ;;  %v15502_v41 = vld [vmem:[#allocation47_spill] sm:$0xff]  ;;  %v15503_v7 = vld [vmem:[#allocation72_spill] sm:$0xff] }
 0xcf0   :  { %15499 = vst [vmem:[#allocation66_spill] sm:$0xff] %v12491_v50  ;;  %5234 = vmatprep.subr.mxu0 %v4640_v21  ;;  %5378 = vmatprep.subr.mxu1 %v4824_v17  ;;  %v4556_v15 = vrot.slane %v12480_v45, %v9432_v13  ;;  %v4635_v49 = vmul.f32 %v4618_v46, %v12349_v44  ;;  %v15505_v46 = vld [vmem:[#allocation50_spill] sm:$0xff] }
 0xcf1   :  { %v4668_v5 = vsel %vm2719_vm7, %v15500_v56, %v12316_v35  ;;  %5235 = vmatpush2.msra.mxu0 %v4639_v51  ;;  %5379 = vmatpush2.msra.mxu1 %v4823_v10  ;;  %v4761_v48 = vmul.f32 %v4750_v4, %v15501_v42  ;;  %v4578_v20 = vmul.f32 %v4560_v39, %v12240_v34  ;;  %v9178_v35 = vld [vmem:[%s15126_s3 + $0x62] ss:$8 sm:$0xf]  ;;  %v6551_v10 = vpop.permute.xlu0 %6550 }
 0xcf2   :  { %5236 = vmatprep.subr.mxu0 %v4636_v19  ;;  %5380 = vmatprep.subr.mxu1 %v4766_v33  ;;  %v4762_v54 = vmul.f32 %v4754_v55, %v4729_v23  ;;  %v4703_v62 = vmul.f32 %v12455_v27, %v15502_v41  ;;  %v4577_v1 = vmul.f32 %v4556_v15, %v15503_v7  ;;  %v15508_v51 = vld [vmem:[#allocation51_spill] sm:$0xff]  ;;  %v5025_v33 = vld [vmem:[#allocation4 + $0x20] sm:$0xff] }
 0xcf3   :  { %5237 = vmatpush2.msra.mxu0 %v4635_v49  ;;  %5381 = vmatpush2.msra.mxu1 %v4765_v58  ;;  %v12510_v44 = vpop.permute.xlu1 %6546  ;;  %v5000_v4 = vrot.slane %v9178_v35, %v9457_v29  ;;  %v4667_v34 = vsel %vm2719_vm7, %v15505_v46, %v12360_v63  ;;  %v4574_v16 = vmul.f32 %v4560_v39, %v12256_v52  ;;  %v15509_v39 = vld [vmem:[#allocation73_spill] sm:$0xff] }
 0xcf4   :  { %15504 = vst [vmem:[#allocation62_spill] sm:$0xff] %v12510_v44  ;;  %5238 = vmatprep.subr.mxu0 %v4578_v20  ;;  %5382 = vmatprep.subr.mxu1 %v4762_v54  ;;  %v4704_v0 = vmul.f32 %v4692_v14, %v4668_v5  ;;  %v4573_v57 = vmul.f32 %v4556_v15, %v15506_v38  ;;  %v12543_v15 = vld [vmem:[#allocation4 + $0x18] sm:$0xff]  ;;  %v15511_v42 = vld [vmem:[#allocation77_spill] sm:$0xff] }
 0xcf5   :  { %v4996_v21 = vrot.slane %v9178_v35, %v9455_v28  ;;  %5239 = vmatpush2.msra.mxu0 %v4577_v1  ;;  %5383 = vmatpush2.msra.mxu1 %v4761_v48  ;;  %v4630_v43 = vrot.slane %v12417_v61, %v9457_v29  ;;  %v4626_v9 = vrot.slane %v12417_v61, %v9455_v28  ;;  %v6491_v54 = vpop.permute.xlu0 %6490 }
 0xcf6   :  { %5240 = vmatprep.subr.mxu0 %v4574_v16  ;;  %5384 = vmatprep.subr.mxu1 %v4704_v0  ;;  %v5012_v63 = vmul.f32 %v5000_v4, %v12405_v32  ;;  %v4700_v55 = vmul.f32 %v4692_v14, %v4667_v34  ;;  %v4962_v58 = vrot.slane %v9179_v59, %v9457_v29  ;;  %v15515_v0 = vmov 0.0  }
 0xcf7   :  { %v5011_v52 = vmul.f32 %v4996_v21, %v4730_v18  ;;  %5241 = vmatpush2.msra.mxu0 %v4573_v57  ;;  %5385 = vmatpush2.msra.mxu1 %v4703_v62  ;;  %v12530_v17 = vpop.permute.xlu1 %6494  ;;  %v4699_v61 = vmul.f32 %v12455_v27, %v15508_v51  ;;  %v4958_v2 = vrot.slane %v9179_v59, %v9455_v28  ;;  %v8952_v27 = vld [vmem:[%s15126_s3 + $0x41] ss:$8 sm:$0xf] }
 0xcf8   :  { %15507 = vst [vmem:[#allocation70_spill] sm:$0xff] %v12530_v17  ;;  %5243 = vmatmul.mubr.f32.vlgmr.msra.gmra.mxu0 %v12523_v25  ;;  %5433 = vmatprep.subr.mxu0 %v5012_v63  ;;  %v5008_v32 = vmul.f32 %v5000_v4, %v12398_v26  ;;  %v5007_v18 = vmul.f32 %v4996_v21, %v4729_v23  ;;  %v15514_v4 = vld [vmem:[#allocation55_spill] sm:$0xff] }
 0xcf9   :  { %5386 = vmatprep.subr.mxu1 %v4700_v55  ;;  %5434 = vmatpush1.msra.mxu0 %v5011_v52  ;;  %v4642_v19 = vmul.f32 %v4630_v43, %v12341_v30  ;;  %v4641_v14 = vmul.f32 %v4626_v9, %v15509_v39  ;;  %v4974_v26 = vmul.f32 %v4962_v58, %v12431_v40  ;;  %v9180_v57 = vld [vmem:[#allocation4 + $0x10] sm:$0xff] }
 0xcfa   :  { %5387 = vmatpush2.msra.mxu1 %v4699_v61  ;;  %5435 = vmatprep.subr.mxu0 %v5008_v32  ;;  %v4973_v49 = vmul.f32 %v4958_v2, %v4668_v5  ;;  %v4638_v30 = vmul.f32 %v4630_v43, %v12328_v36  ;;  %v4568_v56 = vrot.slane %v12480_v45, %v9457_v29  ;;  %v15512_v5 = vld [vmem:[#allocation60_spill] sm:$0xff]  ;;  %v9181_v61 = vld [vmem:[#allocation4 + $0x28] sm:$0xff] }
 0xcfb   :  { %5388 = vmatprep.subr.mxu1 %v4642_v19  ;;  %5436 = vmatpush1.msra.mxu0 %v5007_v18  ;;  %v12549_v23 = vpop.permute.xlu1 %6486  ;;  %v4637_v48 = vmul.f32 %v4626_v9, %v15511_v42  ;;  %v4564_v20 = vrot.slane %v12480_v45, %v9455_v28  ;;  %v4970_v40 = vmul.f32 %v4962_v58, %v12440_v31  ;;  %v8951_v31 = vld [vmem:[%s15126_s3 + $0x40] ss:$8 sm:$0xf]  ;;  %v6489_v9 = vpop.permute.xlu0 %6488 }
 0xcfc   :  { %15510 = vst [vmem:[#allocation59_spill] sm:$0xff] %v12549_v23  ;;  %5248 = vmatprep.mubr.f32.mxu0 %v5025_v33  ;;  %5389 = vmatpush2.msra.mxu1 %v4641_v14  ;;  %v4969_v41 = vmul.f32 %v4958_v2, %v4667_v34  ;;  %v4580_v62 = vmul.f32 %v4568_v56, %v15512_v5  ;;  %v5321_v19 = vpop.f32.mrf.mxu1 }
 0xcfd   :  { %5437 = vmatprep.subr.mxu0 %v4974_v26  ;;  %5249 = vmatmul.mubr.f32.gmra.mxu0 %v12543_v15  ;;  %v6579_v36 = vrot.slane %v8952_v27, %v9430_v12  ;;  %v4579_v7 = vmul.f32 %v4564_v20, %v12235_v6  ;;  %v6565_v45 = vsel %vm2239_vm2, %v12392_v37, %v12421_v53 }
 0xcfe   :  { %5390 = vmatprep.subr.mxu1 %v4638_v30  ;;  %5438 = vmatpush1.msra.mxu0 %v4973_v49  ;;  %v6575_v1 = vrot.slane %v8952_v27, %v9432_v13  ;;  %v6567_v6 = vsel %vm2239_vm2, %v12461_v3, %v12392_v37  ;;  %v4576_v46 = vmul.f32 %v4568_v56, %v15514_v4  ;;  %v5323_v14 = vpop.f32.mrf.mxu1 }
 0xcff   :  { %5391 = vmatpush2.msra.mxu1 %v4637_v48  ;;  %5439 = vmatprep.subr.mxu0 %v4970_v40  ;;  %v12570_v35 = vpop.permute.xlu1 %6492  ;;  %v4575_v34 = vmul.f32 %v4564_v20, %v12231_v8  ;;  %v6564_v16 = vsel %vm2239_vm2, %v6551_v10, %v12491_v50  ;;  %v6566_v38 = vsel %vm2239_vm2, %v12510_v44, %v6551_v10 }
 0xd00   :  { %15513 = vst [vmem:[#allocation58_spill] sm:$0xff] %v12570_v35  ;;  %5392 = vmatprep.subr.mxu1 %v4580_v62  ;;  %5440 = vmatpush1.msra.mxu0 %v4969_v41  ;;  %v6597_v37 = vmul.f32 %v6579_v36, %v6565_v45  ;;  %v6517_v21 = vrot.slane %v8951_v31, %v9430_v12  ;;  %v5327_v26 = vpop.f32.mrf.mxu1 }
 0xd01   :  { %5393 = vmatpush2.msra.mxu1 %v4579_v7  ;;  %5473 = vmatprep.mubr.f32.mxu0 %v15515_v0  ;;  %v6596_v43 = vmul.f32 %v6575_v1, %v6567_v6  ;;  %v6503_v8 = vsel %vm2175_vm11, %v6491_v54, %v12530_v17  ;;  %v6513_v63 = vrot.slane %v8951_v31, %v9432_v13 }
 0xd02   :  { %5394 = vmatprep.subr.mxu1 %v4576_v46  ;;  %8927 = vmatmul.mubr.msk.f32.vlgmr.msra.gmra.mxu0 %vm5171_vm10, %v9180_v57  ;;  %v6505_v10 = vsel %vm2175_vm11, %v12549_v23, %v6491_v54  ;;  %v6593_v59 = vmul.f32 %v6579_v36, %v6564_v16  ;;  %v6592_v58 = vmul.f32 %v6575_v1, %v6566_v38  ;;  %v5329_v42 = vpop.f32.mrf.mxu1 }
 0xd03   :  { %5395 = vmatpush2.msra.mxu1 %v4575_v34  ;;  %v12591_v52 = vpop.permute.xlu1 %6484  ;;  %5479 = vmatprep.mubr.f32.mxu0 %v15515_v0  ;;  %v6502_v51 = vsel %vm2175_vm11, %v6489_v9, %v12570_v35  ;;  %v6535_v2 = vmul.f32 %v6517_v21, %v6503_v8  ;;  %v6534_v32 = vmul.f32 %v6513_v63, %v6505_v10 }
 0xd04   :  { %15516 = vst [vmem:[#allocation69_spill] sm:$0xff] %v12591_v52  ;;  %5397 = vmatmul.mubr.f32.vlgmr.msra.gmra.mxu1 %v12523_v25  ;;  %6866 = vmatprep.subr.mxu1 %v6597_v37  ;;  %v6504_v55 = vsel %vm2175_vm11, %v12591_v52, %v6489_v9  ;;  %v6531_v18 = vmul.f32 %v6517_v21, %v6502_v51 }
 0xd05   :  { %6867 = vmatpush1.msra.mxu1 %v6596_v43  ;;  %5402 = vmatprep.mubr.f32.mxu1 %v5025_v33  ;;  %v6530_v25 = vmul.f32 %v6513_v63, %v6504_v55 }
 0xd06   :  { %6868 = vmatprep.subr.mxu1 %v6593_v59  ;;  %8928 = vmatmul.mubr.msk.f32.gmra.mxu0 %vm5171_vm10, %v9181_v61 }
 0xd07   :  { %6869 = vmatpush1.msra.mxu1 %v6592_v58 }
 0xd08   :  { %5403 = vmatmul.mubr.f32.gmra.mxu1 %v12543_v15  ;;  %6870 = vmatprep.subr.mxu1 %v6535_v2 }
 0xd09   :  { %6871 = vmatpush1.msra.mxu1 %v6534_v32  ;;  %6906 = vmatprep.mubr.f32.mxu1 %v15515_v0 }
 0xd0a   :  { %6872 = vmatprep.subr.mxu1 %v6531_v18  ;;  %v15518_v18 = vld [vmem:[#allocation24_spill] sm:$0xff] }
 0xd0b   :  { %6873 = vmatpush1.msra.mxu1 %v6530_v25  ;;  %v15517_v25 = vld [vmem:[#allocation29_spill] sm:$0xff] }
 0xdb8   :  { %v5244_v39 = vpop.f32.mrf.mxu0 }
 0xdb9   :  { %v12609_v56 = vadd.f32 %v5321_v19, %v5244_v39  ;;  %v12655_v19 = vpop.permute.xlu0 %6432  ;;  %v12657_v39 = vpop.permute.xlu1 %6428 }
 0xdba   :  { %v5246_v33 = vpop.f32.mrf.mxu0 }
 0xdbb   :  { %v12607_v49 = vadd.f32 %v5323_v14, %v5246_v33  ;;  %v5486_v5 = vmul.f32 %v12609_v56, %v12609_v56 }
 0xdbd   :  { %v5250_v27 = vpop.f32.mrf.mxu0  ;;  %v5487_v48 = vmul.f32 %v12607_v49, %v12607_v49  ;;  %v5494_v62 = vadd.f32 %v12607_v49, %v12609_v56  ;;  %v12659_v33 = vpop.permute.xlu0 %6430 }
 0xdbe   :  { %v12613_v20 = vadd.f32 %v5327_v26, %v5250_v27  ;;  %15519 = vst [vmem:[#allocation71_spill] sm:$0xff] %v12659_v33  ;;  %v12661_v14 = vpop.permute.xlu1 %6424 }
 0xdbf   :  { %v5252_v30 = vpop.f32.mrf.mxu0  ;;  %v5504_v1 = vadd.f32 %v5487_v48, %v5486_v5 }
 0xdc0   :  { %v12615_v54 = vadd.f32 %v5329_v42, %v5252_v30  ;;  %v5490_v46 = vmul.f32 %v12613_v20, %v12613_v20 }
 0xdc1   :  { %v12663_v27 = vpop.permute.xlu0 %6370 }
 0xdc2   :  { %v5475_v15 = vpop.f32.mrf.mxu0  ;;  %v5491_v34 = vmul.f32 %v12615_v54, %v12615_v54  ;;  %v5499_v16 = vadd.f32 %v12615_v54, %v12613_v20  ;;  %15520 = vst [vmem:[#allocation64_spill] sm:$0xff] %v12663_v27  ;;  %v12665_v26 = vpop.permute.xlu1 %6426 }
 0xdc3   :  { %15521 = vst [vmem:[#allocation63_spill] sm:$0xff] %v12665_v26 }
 0xdc4   :  { %v5398_v40 = vpop.f32.mrf.mxu1  ;;  %v5477_v41 = vpop.f32.mrf.mxu0  ;;  %v5509_v58 = vadd.f32 %v5491_v34, %v5490_v46 }
 0xdc5   :  { %v12621_v36 = vadd.f32 %v5475_v15, %v5398_v40  ;;  %v12667_v30 = vpop.permute.xlu0 %6368 }
 0xdc6   :  { %v5400_v7 = vpop.f32.mrf.mxu1  ;;  %v5481_v45 = vpop.f32.mrf.mxu0  ;;  %15522 = vst [vmem:[#allocation68_spill] sm:$0xff] %v12667_v30 }
 0xdc7   :  { %v5488_v31 = vmul.f32 %v12621_v36, %v12621_v36  ;;  %v5495_v6 = vadd.f32 %v5494_v62, %v12621_v36  ;;  %v12626_v4 = vadd.f32 %v5477_v41, %v5400_v7  ;;  %v12669_v42 = vpop.permute.xlu1 %6422 }
 0xdc8   :  { %v5404_v38 = vpop.f32.mrf.mxu1  ;;  %v5483_v57 = vpop.f32.mrf.mxu0  ;;  %15523 = vst [vmem:[#allocation67_spill] sm:$0xff] %v12669_v42 }
 0xdc9   :  { %v5489_v37 = vmul.f32 %v12626_v4, %v12626_v4  ;;  %v12636_v21 = vadd.f32 %v5481_v45, %v5404_v38  ;;  %v5496_v43 = vadd.f32 %v5495_v6, %v12626_v4  ;;  %v5505_v8 = vadd.f32 %v5504_v1, %v5488_v31  ;;  %v12671_v15 = vpop.permute.xlu0 %6436 }
 0xdca   :  { %v5406_v9 = vpop.f32.mrf.mxu1  ;;  %15524 = vst [vmem:[#allocation54_spill] sm:$0xff] %v12671_v15 }
 0xdcb   :  { %v5492_v63 = vmul.f32 %v12636_v21, %v12636_v21  ;;  %v5500_v10 = vadd.f32 %v5499_v16, %v12636_v21  ;;  %v12642_v55 = vadd.f32 %v5483_v57, %v5406_v9  ;;  %5497 = vadd.xlane.f32.xlu1 %v5496_v43  ;;  %v5506_v59 = vadd.f32 %v5505_v8, %v5489_v37  ;;  %v12673_v48 = vpop.permute.xlu1 %6366 }
 0xdcc   :  { %15525 = vst [vmem:[#allocation80_spill] sm:$0xff] %v12673_v48 }
 0xdcd   :  { %5507 = vadd.xlane.f32.xlu0 %v5506_v59  ;;  %v5493_v51 = vmul.f32 %v12642_v55, %v12642_v55  ;;  %v5501_v61 = vadd.f32 %v5500_v10, %v12642_v55  ;;  %v5510_v2 = vadd.f32 %v5509_v58, %v5492_v63  ;;  %v12675_v40 = vpop.permute.xlu0 %6292 }
 0xdce   :  { %15526 = vst [vmem:[#allocation82_spill] sm:$0xff] %v12675_v40 }
 0xdcf   :  { %v5511_v32 = vadd.f32 %v5510_v2, %v5493_v51  ;;  %v12677_v41 = vpop.permute.xlu1 %6362 }
 0xdd0   :  { %15527 = vst [vmem:[#allocation57_spill] sm:$0xff] %v12677_v41 }
 0xdd1   :  { %5502 = vadd.xlane.f32.xlu0 %v5501_v61  ;;  %v12679_v5 = vpop.permute.xlu0 %6374 }
 0xdd2   :  { %15528 = vst [vmem:[#allocation33_spill] sm:$0xff] %v12679_v5 }
 0xdd3   :  { %v12681_v62 = vpop.permute.xlu1 %6364 }
 0xdd4   :  { %15529 = vst [vmem:[#allocation56_spill] sm:$0xff] %v12681_v62 }
 0xdd5   :  { %5512 = vadd.xlane.f32.xlu0 %v5511_v32  ;;  %v12683_v7 = vpop.permute.xlu0 %6290 }
 0xdd6   :  { %15530 = vst [vmem:[#allocation31_spill] sm:$0xff] %v12683_v7 }
 0xdd7   :  { %v12685_v45 = vpop.permute.xlu1 %6360 }
 0xdd8   :  { %15531 = vst [vmem:[#allocation36_spill] sm:$0xff] %v12685_v45  ;;  %v13001_v45 = vld [vmem:[%s15126_s3 + $0x40] ss:$8 sm:$0xf] }
 0xdd9   :  { %v12687_v1 = vpop.permute.xlu0 %6372  ;;  %v6013_v30 = vrot.slane %v13001_v45, %v9430_v12  ;;  %v6009_v48 = vrot.slane %v13001_v45, %v9432_v13 }
 0xdda   :  { %15532 = vst [vmem:[#allocation37_spill] sm:$0xff] %v12687_v1 }
 0xddb   :  { %v12689_v31 = vpop.permute.xlu1 %6434 }
 0xddc   :  { %6180 = vrot.lane.b32.xlu1 %v15517_v25, %s9228_s5  ;;  %15533 = vst [vmem:[#allocation40_spill] sm:$0xff] %v12689_v31  ;;  %v15558_v31 = vld [vmem:[#allocation22_spill] sm:$0xff] }
 0xddd   :  { %v12691_v6 = vpop.permute.xlu0 %6230 }
 0xdde   :  { %15534 = vst [vmem:[#allocation42_spill] sm:$0xff] %v12691_v6 }
 0xddf   :  { %v12693_v46 = vpop.permute.xlu1 %6296 }
 0xde0   :  { %6170 = vrot.lane.b32.xlu1 %v15518_v18, %s9228_s5  ;;  %15535 = vst [vmem:[#allocation75_spill] sm:$0xff] %v12693_v46  ;;  %v15570_v46 = vld [vmem:[#allocation15_spill] sm:$0xff] }
 0xde1   :  { %v12695_v34 = vpop.permute.xlu0 %6242 }
 0xde2   :  { %15536 = vst [vmem:[#allocation46_spill] sm:$0xff] %v12695_v34 }
 0xde3   :  { %v12697_v16 = vpop.permute.xlu1 %6304 }
 0xde4   :  { %6178 = vrot.lane.b32.xlu1 %v10693_v47, %s9228_s5  ;;  %15537 = vst [vmem:[#allocation74_spill] sm:$0xff] %v12697_v16 }
 0xde5   :  { %v12699_v38 = vpop.permute.xlu0 %6232 }
 0xde6   :  { %15538 = vst [vmem:[#allocation48_spill] sm:$0xff] %v12699_v38 }
 0xde7   :  { %v12701_v57 = vpop.permute.xlu1 %6294 }
 0xde8   :  { %6110 = vrot.lane.b32.xlu1 %v10727_v22, %s9229_s6  ;;  %15539 = vst [vmem:[#allocation78_spill] sm:$0xff] %v12701_v57 }
 0xde9   :  { %v12703_v37 = vpop.permute.xlu0 %6168 }
 0xdea   :  { %15540 = vst [vmem:[#allocation52_spill] sm:$0xff] %v12703_v37 }
 0xdeb   :  { %v12705_v43 = vpop.permute.xlu1 %6302 }
 0xdec   :  { %15541 = vst [vmem:[#allocation34_spill] sm:$0xff] %v12705_v43  ;;  %v6614_v43 = vld [vmem:[#allocation4 + $0x58] sm:$0xff] }
 0xded   :  { %v12707_v8 = vpop.permute.xlu0 %6300 }
 0xdee   :  { %15542 = vst [vmem:[#allocation32_spill] sm:$0xff] %v12707_v8 }
 0xdef   :  { %v12709_v9 = vpop.permute.xlu1 %6234 }
 0xdf0   :  { %15543 = vst [vmem:[#allocation49_spill] sm:$0xff] %v12709_v9 }
 0xdf1   :  { %v12711_v63 = vpop.permute.xlu0 %6166 }
 0xdf2   :  { %15544 = vst [vmem:[#allocation79_spill] sm:$0xff] %v12711_v63 }
 0xdf3   :  { %v12713_v10 = vpop.permute.xlu1 %6228 }
 0xdf4   :  { %15545 = vst [vmem:[#allocation38_spill] sm:$0xff] %v12713_v10 }
 0xdf5   :  { %v12715_v59 = vpop.permute.xlu0 %6298 }
 0xdf6   :  { %15546 = vst [vmem:[#allocation35_spill] sm:$0xff] %v12715_v59 }
 0xdf7   :  { %v12717_v58 = vpop.permute.xlu1 %6240 }
 0xdf8   :  { %15547 = vst [vmem:[#allocation53_spill] sm:$0xff] %v12717_v58 }
 0xdf9   :  { %v12719_v51 = vpop.permute.xlu0 %6106 }
 0xdfa   :  { %15548 = vst [vmem:[#allocation76_spill] sm:$0xff] %v12719_v51 }
 0xdfb   :  { %v12721_v61 = vpop.permute.xlu1 %6172 }
 0xdfc   :  { %15549 = vst [vmem:[#allocation41_spill] sm:$0xff] %v12721_v61 }
 0xdfd   :  { %v12723_v2 = vpop.permute.xlu0 %6238 }
 0xdfe   :  { %15550 = vst [vmem:[#allocation43_spill] sm:$0xff] %v12723_v2 }
 0xe54   :  { %v5498_v32 = vpop.xlane.xlu1 %5497 }
 0xe55   :  { %v5514_v35 = vmul.f32 0.001953125, %v5498_v32 }
 0xe56   :  { %v5508_v52 = vpop.xlane.xlu0 %5507 }
 0xe57   :  { %v5518_v17 = vmul.f32 %v5514_v35, %v5514_v35  ;;  %v5516_v23 = vmul.f32 0.001953125, %v5508_v52  ;;  %v5524_v53 = vsub.f32 %v12609_v56, %v5514_v35  ;;  %v5525_v59 = vsub.f32 %v12607_v49, %v5514_v35 }
 0xe58   :  { %v5526_v8 = vsub.f32 %v12621_v36, %v5514_v35  ;;  %v5527_v52 = vsub.f32 %v12626_v4, %v5514_v35 }
 0xe59   :  { %v5520_v50 = vsub.f32 %v5516_v23, %v5518_v17 }
 0xe5a   :  { %v5503_v2 = vpop.xlane.xlu0 %5502 }
 0xe5b   :  { %v5522_v44 = vmax.f32 %v5520_v50, 0.0  ;;  %v12729_v49 = vmul.f32 0.001953125, %v5503_v2 }
 0xe5d   :  { %v5532_v3 = vadd.f32 1e-05, %v5522_v44 }
 0xe5e   :  { %v5513_v23 = vpop.xlane.xlu0 %5512 }
 0xe5f   :  { %9118 = vrsqrt.f32 %v5532_v3  ;;  %v5517_v56 = vmul.f32 0.001953125, %v5513_v23 }
 0xe6c   :  { %v9119_v51 = vpop.eup %9118 }
 0xe6d   :  { %v5538_v63 = vmul.f32 %v9119_v51, %v5526_v8  ;;  %v5537_v37 = vmul.f32 %v9119_v51, %v5525_v59  ;;  %v5536_v61 = vmul.f32 %v9119_v51, %v5524_v53  ;;  %v5539_v3 = vmul.f32 %v9119_v51, %v5527_v52 }
 0xe6e   :  { %v5519_v53 = vmul.f32 %v12729_v49, %v12729_v49 }
 0xe6f   :  { %v5554_v58 = vmin.f32 %v5538_v63, 0.0  ;;  %v5553_v32 = vmin.f32 %v5537_v37, 0.0  ;;  %v5552_v10 = vmin.f32 %v5536_v61, 0.0  ;;  %v5555_v36 = vmin.f32 %v5539_v3, 0.0 }
 0xe70   :  { %v5521_v8 = vsub.f32 %v5517_v56, %v5519_v53  ;;  %vm5546_vm3 = vcmp.gt.f32.partialorder %v5538_v63, 0.0  ;;  %vm5545_vm5 = vcmp.gt.f32.partialorder %v5537_v37, 0.0  ;;  %vm5544_vm7 = vcmp.gt.f32.partialorder %v5536_v61, 0.0 }
 0xe71   :  { %v5564_v17 = vmul.f32 1.442695, %v5554_v58  ;;  %v5562_v50 = vmul.f32 1.442695, %v5553_v32  ;;  %v5560_v44 = vmul.f32 1.442695, %v5552_v10  ;;  %v5530_v56 = vsub.f32 %v12636_v21, %v12729_v49 }
 0xe72   :  { %v5566_v59 = vmul.f32 1.442695, %v5555_v36  ;;  %v5523_v38 = vmax.f32 %v5521_v8, 0.0  ;;  %vm5547_vm6 = vcmp.gt.f32.partialorder %v5539_v3, 0.0  ;;  %v5528_v8 = vsub.f32 %v12613_v20, %v12729_v49 }
 0xe73   :  { %9120 = vpow2.f32 %v5564_v17  ;;  %v5531_v20 = vsub.f32 %v12642_v55, %v12729_v49 }
 0xe74   :  { %9122 = vpow2.f32 %v5562_v50  ;;  %v5533_v32 = vadd.f32 1e-05, %v5523_v38 }
 0xe75   :  { %9124 = vpow2.f32 %v5560_v44  ;;  %v5529_v44 = vsub.f32 %v12615_v54, %v12729_v49 }
 0xe76   :  { %9126 = vpow2.f32 %v5566_v59 }
 0xe77   :  { %9128 = vrsqrt.f32 %v5533_v32 }
 0xe80   :  { %v9121_v35 = vpop.eup %9120 }
 0xe81   :  { %v9123_v4 = vpop.eup %9122  ;;  %v8931_v58 = vadd.f32 -1.0, %v9121_v35 }
 0xe82   :  { %v9125_v10 = vpop.eup %9124  ;;  %v8930_v51 = vadd.f32 -1.0, %v9123_v4 }
 0xe83   :  { %v12733_v52 = vsel %vm5546_vm3, %v5538_v63, %v8931_v58  ;;  %v8929_v17 = vadd.f32 -1.0, %v9125_v10  ;;  %v9127_v38 = vpop.eup %9126  ;;  %vm15582_vm3 = vmmov %vm15581_vm1 }
 0xe84   :  { %5988 = vrot.lane.b32.xlu1 %v12733_v52, %s9223_s2  ;;  %v12737_v2 = vsel %vm5545_vm5, %v5537_v37, %v8930_v51  ;;  %v8932_v37 = vadd.f32 -1.0, %v9127_v38  ;;  %vm15583_vm5 = vmmov %vm15581_vm1 }
 0xe85   :  { %5984 = vrot.lane.b32.xlu0 %v12737_v2, %s9223_s2  ;;  %v12743_v50 = vsel %vm5544_vm7, %v5536_v61, %v8929_v17  ;;  %v9129_v61 = vpop.eup %9128  ;;  %vm15585_vm7 = vmmov %vm15581_vm1 }
 0xe86   :  { %v12755_v63 = vsel %vm5547_vm6, %v5539_v3, %v8932_v37  ;;  %v5541_v23 = vmul.f32 %v9129_v61, %v5529_v44  ;;  %v5542_v36 = vmul.f32 %v9129_v61, %v5530_v56  ;;  %v5540_v59 = vmul.f32 %v9129_v61, %v5528_v8 }
 0xe87   :  { %v5543_v58 = vmul.f32 %v9129_v61, %v5531_v20  ;;  %vm15596_vm6 = vcmp.lt.s32.totalorder %v9422_v11, 34 }
 0xe88   :  { %5926 = vrot.lane.b32.xlu1 %v12733_v52, %s9224_s27  ;;  %v5557_v3 = vmin.f32 %v5541_v23, 0.0  ;;  %v5558_v53 = vmin.f32 %v5542_v36, 0.0  ;;  %v5556_v35 = vmin.f32 %v5540_v59, 0.0  ;;  %vm5549_vm4 = vcmp.gt.f32.partialorder %v5541_v23, 0.0 }
 0xe89   :  { %5980 = vrot.lane.b32.xlu0 %v12743_v50, %s9223_s2  ;;  %v5559_v10 = vmin.f32 %v5543_v58, 0.0  ;;  %vm5550_vm8 = vcmp.gt.f32.partialorder %v5542_v36, 0.0  ;;  %vm5548_vm0 = vcmp.gt.f32.partialorder %v5540_v59, 0.0  ;;  %vm5551_vm9 = vcmp.gt.f32.partialorder %v5543_v58, 0.0 }
 0xe8a   :  { %v5570_v54 = vmul.f32 1.442695, %v5557_v3  ;;  %v5572_v21 = vmul.f32 1.442695, %v5558_v53  ;;  %v5568_v4 = vmul.f32 1.442695, %v5556_v35  ;;  %v12851_v53 = vpop.permute.xlu1 %6180 }
 0xe8b   :  { %v5574_v49 = vmul.f32 1.442695, %v5559_v10  ;;  %15551 = vst [vmem:[#allocation39_spill] sm:$0xff] %v12851_v53  ;;  %v6610_v53 = vld [vmem:[#allocation4 + $0x38] sm:$0xff] }
 0xe8c   :  { %5864 = vrot.lane.b32.xlu1 %v12733_v52, %s9225_s28  ;;  %9130 = vpow2.f32 %v5570_v54  ;;  %v6611_v54 = vld [vmem:[#allocation4 + $0x40] sm:$0xff]  ;;  %6829 = vmatprep.mubr.f32.mxu0 %v6610_v53 }
 0xe8d   :  { %5922 = vrot.lane.b32.xlu0 %v12737_v2, %s9224_s27  ;;  %9132 = vpow2.f32 %v5572_v21  ;;  %8953 = vmatmul.mubr.msk.f32.vlgmr.msra.gmra.mxu1 %vm5171_vm10, %v6611_v54 }
 0xe8e   :  { %9134 = vpow2.f32 %v5568_v4  ;;  %6912 = vmatprep.mubr.f32.mxu1 %v15515_v0  ;;  %v12861_v8 = vpop.permute.xlu1 %6170  ;;  %v15556_v0 = vld [vmem:[#allocation20_spill] sm:$0xff] }
 0xe8f   :  { %9136 = vpow2.f32 %v5574_v49  ;;  %15552 = vst [vmem:[#allocation44_spill] sm:$0xff] %v12861_v8 }
 0xe90   :  { %5856 = vrot.lane.b32.xlu1 %v12743_v50, %s9225_s28 }
 0xe91   :  { %5918 = vrot.lane.b32.xlu0 %v12743_v50, %s9224_s27  ;;  %8954 = vmatmul.mubr.msk.f32.gmra.mxu1 %vm5171_vm10, %v6614_v43 }
 0xe92   :  { %v12867_v21 = vpop.permute.xlu1 %6178  ;;  %6983 = vmatprep.mubr.f32.mxu1 %v6610_v53 }
 0xe93   :  { %15553 = vst [vmem:[#allocation45_spill] sm:$0xff] %v12867_v21  ;;  %v15557_v21 = vld [vmem:[#allocation19_spill] sm:$0xff] }
 0xe94   :  { %5930 = vrot.lane.b32.xlu1 %v12755_v63, %s9224_s27 }
 0xe95   :  { %5860 = vrot.lane.b32.xlu0 %v12737_v2, %s9225_s28 }
 0xe98   :  { %5790 = vrot.lane.b32.xlu1 %v12737_v2, %s9226_s29 }
 0xe99   :  { %5992 = vrot.lane.b32.xlu0 %v12755_v63, %s9223_s2  ;;  %v9131_v51 = vpop.eup %9130 }
 0xe9a   :  { %v8934_v55 = vadd.f32 -1.0, %v9131_v51  ;;  %v9133_v32 = vpop.eup %9132 }
 0xe9b   :  { %v8935_v38 = vadd.f32 -1.0, %v9133_v32  ;;  %v9135_v61 = vpop.eup %9134 }
 0xe9c   :  { %5798 = vrot.lane.b32.xlu1 %v12755_v63, %s9226_s29  ;;  %v12801_v17 = vsel %vm5549_vm4, %v5541_v23, %v8934_v55  ;;  %v8933_v44 = vadd.f32 -1.0, %v9135_v61  ;;  %v9137_v56 = vpop.eup %9136  ;;  %v15555_v61 = vld [vmem:[#allocation23_spill] sm:$0xff]  ;;  %vm15597_vm4 = vmmov %vm15596_vm6 }
 0xe9d   :  { %5786 = vrot.lane.b32.xlu0 %v12743_v50, %s9226_s29  ;;  %v12807_v37 = vsel %vm5550_vm8, %v5542_v36, %v8935_v38  ;;  %v8936_v3 = vadd.f32 -1.0, %v9137_v56  ;;  %vm15598_vm8 = vmmov %vm15597_vm4 }
 0xe9e   :  { %v12817_v23 = vsel %vm5548_vm0, %v5540_v59, %v8933_v44  ;;  %v12877_v59 = vpop.permute.xlu1 %6110  ;;  %vm15600_vm0 = vmmov %vm15597_vm4 }
 0xe9f   :  { %v12827_v36 = vsel %vm5551_vm9, %v5543_v58, %v8936_v3  ;;  %15554 = vst [vmem:[#allocation47_spill] sm:$0xff] %v12877_v59  ;;  %vm15617_vm9 = vmmov %vm15581_vm1 }
 0xea0   :  { %5724 = vrot.lane.b32.xlu1 %v12743_v50, %s9227_s30 }
 0xea1   :  { %5868 = vrot.lane.b32.xlu0 %v12755_v63, %s9225_s28 }
 0xea4   :  { %5736 = vrot.lane.b32.xlu1 %v12755_v63, %s9227_s30 }
 0xea5   :  { %5728 = vrot.lane.b32.xlu0 %v12737_v2, %s9227_s30 }
 0xea8   :  { %5666 = vrot.lane.b32.xlu1 %v12737_v2, %s9228_s5 }
 0xea9   :  { %5662 = vrot.lane.b32.xlu0 %v12743_v50, %s9228_s5 }
 0xeac   :  { %5674 = vrot.lane.b32.xlu1 %v12755_v63, %s9228_s5 }
 0xead   :  { %5794 = vrot.lane.b32.xlu0 %v12733_v52, %s9226_s29 }
 0xeb0   :  { %5604 = vrot.lane.b32.xlu1 %v12737_v2, %s9229_s6 }
 0xeb1   :  { %5600 = vrot.lane.b32.xlu0 %v12743_v50, %s9229_s6 }
 0xeb4   :  { %5612 = vrot.lane.b32.xlu1 %v12755_v63, %s9229_s6 }
 0xeb5   :  { %5732 = vrot.lane.b32.xlu0 %v12733_v52, %s9227_s30 }
 0xeb8   :  { %5986 = vrot.lane.b32.xlu1 %v12801_v17, %s9223_s2 }
 0xeb9   :  { %5670 = vrot.lane.b32.xlu0 %v12733_v52, %s9228_s5 }
 0xebc   :  { %5928 = vrot.lane.b32.xlu1 %v12807_v37, %s9224_s27 }
 0xebd   :  { %5608 = vrot.lane.b32.xlu0 %v12733_v52, %s9229_s6 }
 0xec0   :  { %5866 = vrot.lane.b32.xlu1 %v12807_v37, %s9225_s28 }
 0xec1   :  { %5990 = vrot.lane.b32.xlu0 %v12807_v37, %s9223_s2 }
 0xec4   :  { %5858 = vrot.lane.b32.xlu1 %v12817_v23, %s9225_s28 }
 0xec5   :  { %5982 = vrot.lane.b32.xlu0 %v12817_v23, %s9223_s2 }
 0xec8   :  { %5792 = vrot.lane.b32.xlu1 %v12801_v17, %s9226_s29 }
 0xec9   :  { %5924 = vrot.lane.b32.xlu0 %v12801_v17, %s9224_s27 }
 0xecc   :  { %5800 = vrot.lane.b32.xlu1 %v12827_v36, %s9226_s29 }
 0xecd   :  { %5920 = vrot.lane.b32.xlu0 %v12817_v23, %s9224_s27 }
 0xed0   :  { %5730 = vrot.lane.b32.xlu1 %v12801_v17, %s9227_s30 }
 0xed1   :  { %5862 = vrot.lane.b32.xlu0 %v12801_v17, %s9225_s28 }
 0xed4   :  { %5668 = vrot.lane.b32.xlu1 %v12801_v17, %s9228_s5 }
 0xed5   :  { %5994 = vrot.lane.b32.xlu0 %v12827_v36, %s9223_s2 }
 0xed8   :  { %5676 = vrot.lane.b32.xlu1 %v12827_v36, %s9228_s5 }
 0xed9   :  { %5932 = vrot.lane.b32.xlu0 %v12827_v36, %s9224_s27 }
 0xedc   :  { %5606 = vrot.lane.b32.xlu1 %v12801_v17, %s9229_s6 }
 0xedd   :  { %5788 = vrot.lane.b32.xlu0 %v12817_v23, %s9226_s29 }
 0xee0   :  { %5614 = vrot.lane.b32.xlu1 %v12827_v36, %s9229_s6 }
 0xee1   :  { %5870 = vrot.lane.b32.xlu0 %v12827_v36, %s9225_s28 }
 0xee4   :  { %6118 = vrot.lane.b32.xlu1 %v15517_v25, %s9229_s6 }
 0xee5   :  { %5726 = vrot.lane.b32.xlu0 %v12817_v23, %s9227_s30 }
 0xee8   :  { %6108 = vrot.lane.b32.xlu1 %v15518_v18, %s9229_s6  ;;  %v15561_v18 = vld [vmem:[#allocation16_spill] sm:$0xff] }
 0xee9   :  { %5738 = vrot.lane.b32.xlu0 %v12827_v36, %s9227_s30 }
 0xeec   :  { %6116 = vrot.lane.b32.xlu1 %v10693_v47, %s9229_s6 }
 0xeed   :  { %5664 = vrot.lane.b32.xlu0 %v12817_v23, %s9228_s5 }
 0xef0   :  { %6050 = vrot.lane.b32.xlu1 %v12733_v52, %s9230_s7 }
 0xef1   :  { %5796 = vrot.lane.b32.xlu0 %v12807_v37, %s9226_s29 }
 0xef4   :  { %6042 = vrot.lane.b32.xlu1 %v12743_v50, %s9230_s7 }
 0xef5   :  { %5602 = vrot.lane.b32.xlu0 %v12817_v23, %s9229_s6 }
 0xef6   :  { %v12883_v35 = vpop.permute.xlu1 %5988 }
 0xef7   :  { %v12885_v20 = vpop.permute.xlu0 %5984 }
 0xef8   :  { %6560 = vrot.lane.b32.xlu1 %v15517_v25, %s9230_s7 }
 0xef9   :  { %5734 = vrot.lane.b32.xlu0 %v12807_v37, %s9227_s30 }
 0xefa   :  { %v12891_v4 = vpop.permute.xlu1 %5926 }
 0xefb   :  { %v12893_v58 = vpop.permute.xlu0 %5980 }
 0xefc   :  { %6052 = vrot.lane.b32.xlu1 %v12807_v37, %s9230_s7  ;;  %v6000_v5 = vsel %vm2175_vm11, %v12893_v58, %v12885_v20 }
 0xefd   :  { %6104 = vrot.lane.b32.xlu0 %v10687_v24, %s9229_s6  ;;  %v6026_v42 = vmul.f32 %v6009_v48, %v6000_v5 }
 0xefe   :  { %v12899_v10 = vpop.permute.xlu1 %5864 }
 0xeff   :  { %v12901_v51 = vpop.permute.xlu0 %5922 }
 0xf00   :  { %6044 = vrot.lane.b32.xlu1 %v12817_v23, %s9230_s7 }
 0xf01   :  { %5672 = vrot.lane.b32.xlu0 %v12807_v37, %s9228_s5 }
 0xf02   :  { %v12907_v55 = vpop.permute.xlu1 %5856 }
 0xf03   :  { %v12909_v49 = vpop.permute.xlu0 %5918 }
 0xf04   :  { %6558 = vrot.lane.b32.xlu1 %v10693_v47, %s9230_s7 }
 0xf05   :  { %5610 = vrot.lane.b32.xlu0 %v12807_v37, %s9229_s6 }
 0xf06   :  { %v12915_v32 = vpop.permute.xlu1 %5930 }
 0xf07   :  { %v12917_v38 = vpop.permute.xlu0 %5860 }
 0xf08   :  { %6498 = vrot.lane.b32.xlu1 %v15517_v25, %s9223_s2 }
 0xf09   :  { %6236 = vrot.lane.b32.xlu0 %v15555_v61, %s9227_s30 }
 0xf0a   :  { %v12923_v44 = vpop.permute.xlu1 %5790 }
 0xf0b   :  { %v12925_v56 = vpop.permute.xlu0 %5992 }
 0xf0c   :  { %6496 = vrot.lane.b32.xlu1 %v10693_v47, %s9223_s2 }
 0xf0d   :  { %6176 = vrot.lane.b32.xlu0 %v10721_v60, %s9228_s5 }
 0xf0e   :  { %v12931_v3 = vpop.permute.xlu1 %5798 }
 0xf0f   :  { %v12933_v54 = vpop.permute.xlu0 %5786 }
 0xf10   :  { %8139 = vrot.lane.b32.xlu1 %v15556_v0, %s9222_s17 }
 0xf11   :  { %6046 = vrot.lane.b32.xlu0 %v12737_v2, %s9230_s7 }
 0xf12   :  { %v12939_v25 = vpop.permute.xlu1 %5724 }
 0xf13   :  { %v12941_v59 = vpop.permute.xlu0 %5868 }
 0xf14   :  { %8143 = vrot.lane.b32.xlu1 %v15557_v21, %s9222_s17 }
 0xf15   :  { %6174 = vrot.lane.b32.xlu0 %v15555_v61, %s9228_s5 }
 0xf16   :  { %v12947_v47 = vpop.permute.xlu1 %5736 }
 0xf17   :  { %v12949_v8 = vpop.permute.xlu0 %5728 }
 0xf18   :  { %8135 = vrot.lane.b32.xlu1 %v15558_v31, %s9222_s17 }
 0xf19   :  { %6114 = vrot.lane.b32.xlu0 %v10721_v60, %s9229_s6  ;;  %v15564_v60 = vld [vmem:[#allocation17_spill] sm:$0xff] }
 0xf1a   :  { %v12955_v24 = vpop.permute.xlu1 %5666 }
 0xf1b   :  { %15559 = vst [vmem:[#allocation72_spill] sm:$0xff] %v12955_v24  ;;  %v12957_v9 = vpop.permute.xlu0 %5662 }
 0xf1c   :  { %15560 = vst [vmem:[#allocation50_spill] sm:$0xff] %v12957_v9  ;;  %8141 = vrot.lane.b32.xlu1 %v15561_v18, %s9222_s17  ;;  %v6021_v9 = vrot.slane %v13001_v45, %v9457_v29 }
 0xf1d   :  { %6048 = vrot.lane.b32.xlu0 %v12801_v17, %s9230_s7 }
 0xf1e   :  { %v12964_v22 = vpop.permute.xlu1 %5674 }
 0xf1f   :  { %15562 = vst [vmem:[#allocation81_spill] sm:$0xff] %v12964_v22  ;;  %v12966_v7 = vpop.permute.xlu0 %5794 }
 0xf20   :  { %15563 = vst [vmem:[#allocation51_spill] sm:$0xff] %v12966_v7  ;;  %8133 = vrot.lane.b32.xlu1 %v15564_v60, %s9222_s17 }
 0xf21   :  { %6112 = vrot.lane.b32.xlu0 %v15555_v61, %s9229_s6 }
 0xf22   :  { %v12972_v57 = vpop.permute.xlu1 %5604 }
 0xf23   :  { %15565 = vst [vmem:[#allocation73_spill] sm:$0xff] %v12972_v57  ;;  %v12974_v16 = vpop.permute.xlu0 %5600 }
 0xf24   :  { %15566 = vst [vmem:[#allocation77_spill] sm:$0xff] %v12974_v16  ;;  %8081 = vrot.lane.b32.xlu1 %v15557_v21, %s9215_s26 }
 0xf25   :  { %6056 = vrot.lane.b32.xlu0 %v12827_v36, %s9230_s7 }
 0xf26   :  { %v12980_v43 = vpop.permute.xlu1 %5612 }
 0xf27   :  { %15567 = vst [vmem:[#allocation60_spill] sm:$0xff] %v12980_v43  ;;  %v12982_v53 = vpop.permute.xlu0 %5732 }
 0xf28   :  { %15568 = vst [vmem:[#allocation55_spill] sm:$0xff] %v12982_v53  ;;  %8073 = vrot.lane.b32.xlu1 %v15558_v31, %s9215_s26  ;;  %v5998_v53 = vsel %vm2175_vm11, %v12885_v20, %v12883_v35 }
 0xf29   :  { %6054 = vrot.lane.b32.xlu0 %v12755_v63, %s9230_s7  ;;  %v6027_v57 = vmul.f32 %v6013_v30, %v5998_v53 }
 0xf2a   :  { %v5987_v61 = vpop.permute.xlu1 %5986 }
 0xf2b   :  { %v12988_v40 = vpop.permute.xlu0 %5670 }
 0xf2c   :  { %15569 = vst [vmem:[#allocation83_spill] sm:$0xff] %v12988_v40  ;;  %8079 = vrot.lane.b32.xlu1 %v15561_v18, %s9215_s26 }
 0xf2d   :  { %8137 = vrot.lane.b32.xlu0 %v15570_v46, %s9222_s17 }
 0xf2e   :  { %v12994_v34 = vpop.permute.xlu1 %5928 }
 0xf2f   :  { %v12996_v6 = vpop.permute.xlu0 %5608 }
 0xf30   :  { %15571 = vst [vmem:[#allocation84_spill] sm:$0xff] %v12996_v6  ;;  %8071 = vrot.lane.b32.xlu1 %v15564_v60, %s9215_s26 }
 0xf31   :  { %8077 = vrot.lane.b32.xlu0 %v15556_v0, %s9215_s26 }
 0xf32   :  { %v13007_v40 = vpop.permute.xlu1 %5866 }
 0xf33   :  { %v13009_v62 = vpop.permute.xlu0 %5990 }
 0xf34   :  { %v5999_v6 = vsel %vm2175_vm11, %v5987_v61, %v13009_v62  ;;  %8015 = vrot.lane.b32.xlu1 %v15556_v0, %s9216_s8 }
 0xf35   :  { %8075 = vrot.lane.b32.xlu0 %v15570_v46, %s9215_s26  ;;  %v6031_v1 = vmul.f32 %v6013_v30, %v5999_v6  ;;  %v13035_v6 = vld [vmem:[%s15126_s3 + $0x27] ss:$8 sm:$0xf] }
 0xf36   :  { %v13020_v41 = vpop.permute.xlu1 %5858  ;;  %v5951_v26 = vrot.slane %v13035_v6, %v9430_v12  ;;  %v5947_v5 = vrot.slane %v13035_v6, %v9432_v13 }
 0xf37   :  { %6765 = vmatprep.subr.mxu0 %v6031_v1  ;;  %v5983_v27 = vpop.permute.xlu0 %5982 }
 0xf38   :  { %v6001_v43 = vsel %vm2175_vm11, %v5983_v27, %v5987_v61  ;;  %8011 = vrot.lane.b32.xlu1 %v15558_v31, %s9216_s8 }
 0xf39   :  { %v6030_v16 = vmul.f32 %v6009_v48, %v6001_v43  ;;  %8019 = vrot.lane.b32.xlu0 %v15557_v21, %s9216_s8  ;;  %v5936_v48 = vsel %vm2111_vm12, %v12901_v51, %v12891_v4 }
 0xf3a   :  { %v13043_v1 = vpop.permute.xlu1 %5792  ;;  %v5965_v33 = vmul.f32 %v5951_v26, %v5936_v48  ;;  %v5876_v48 = vsel %vm2047_vm13, %v12907_v55, %v12917_v38 }
 0xf3b   :  { %6766 = vmatpush1.msra.mxu0 %v6030_v16  ;;  %v5925_v20 = vpop.permute.xlu0 %5924 }
 0xf3c   :  { %v5937_v61 = vsel %vm2111_vm12, %v5925_v20, %v12994_v34  ;;  %6767 = vmatprep.subr.mxu0 %v6027_v57  ;;  %8013 = vrot.lane.b32.xlu1 %v15570_v46, %s9216_s8  ;;  %v5938_v57 = vsel %vm2111_vm12, %v12909_v49, %v12901_v51 }
 0xf3d   :  { %8017 = vrot.lane.b32.xlu0 %v15561_v18, %s9216_s8  ;;  %6768 = vmatpush1.msra.mxu0 %v6026_v42  ;;  %v5969_v43 = vmul.f32 %v5951_v26, %v5937_v61  ;;  %v13069_v42 = vld [vmem:[%s15126_s3 + $0x26] ss:$8 sm:$0xf]  ;;  %v5964_v7 = vmul.f32 %v5947_v5, %v5938_v57 }
 0xf3e   :  { %v13054_v30 = vpop.permute.xlu1 %5800  ;;  %v5885_v51 = vrot.slane %v13069_v42, %v9432_v13  ;;  %v5889_v22 = vrot.slane %v13069_v42, %v9430_v12 }
 0xf3f   :  { %6769 = vmatprep.subr.mxu0 %v5969_v43  ;;  %v5921_v16 = vpop.permute.xlu0 %5920 }
 0xf40   :  { %v5939_v53 = vsel %vm2111_vm12, %v5921_v16, %v5925_v20  ;;  %8009 = vrot.lane.b32.xlu1 %v15564_v60, %s9216_s8  ;;  %v5874_v20 = vsel %vm2047_vm13, %v12917_v38, %v12899_v10  ;;  %v5902_v24 = vmul.f32 %v5885_v51, %v5876_v48 }
 0xf41   :  { %v5968_v61 = vmul.f32 %v5947_v5, %v5939_v53  ;;  %7957 = vrot.lane.b32.xlu0 %v15557_v21, %s9217_s13  ;;  %v5903_v21 = vmul.f32 %v5889_v22, %v5874_v20 }
 0xf42   :  { %v13077_v43 = vpop.permute.xlu1 %5730 }
 0xf43   :  { %6770 = vmatpush1.msra.mxu0 %v5968_v61  ;;  %v5863_v15 = vpop.permute.xlu0 %5862 }
 0xf44   :  { %v5875_v53 = vsel %vm2047_vm13, %v5863_v15, %v13007_v40  ;;  %v5877_v26 = vsel %vm2047_vm13, %v13020_v41, %v5863_v15  ;;  %6771 = vmatprep.subr.mxu0 %v5965_v33  ;;  %7953 = vrot.lane.b32.xlu1 %v15556_v0, %s9217_s13  ;;  %v6017_v15 = vrot.slane %v13001_v45, %v9455_v28  ;;  %v15572_v45 = vld [vmem:[#allocation21_spill] sm:$0xff] }
 0xf45   :  { %v5906_v5 = vmul.f32 %v5885_v51, %v5877_v26  ;;  %7955 = vrot.lane.b32.xlu0 %v15561_v18, %s9217_s13  ;;  %6772 = vmatpush1.msra.mxu0 %v5964_v7  ;;  %v5907_v57 = vmul.f32 %v5889_v22, %v5875_v53  ;;  %v6002_v22 = vsel %vm2175_vm11, %v12925_v56, %v12893_v58 }
 0xf46   :  { %v13101_v61 = vpop.permute.xlu1 %5668  ;;  %v5934_v58 = vsel %vm2111_vm12, %v12891_v4, %v12915_v32 }
 0xf47   :  { %6773 = vmatprep.subr.mxu0 %v5907_v57  ;;  %v5995_v33 = vpop.permute.xlu0 %5994 }
 0xf48   :  { %v5997_v38 = vsel %vm2175_vm11, %v13009_v62, %v5995_v33  ;;  %v6003_v7 = vsel %vm2175_vm11, %v5995_v33, %v5983_v27  ;;  %6774 = vmatpush1.msra.mxu0 %v5906_v5  ;;  %7949 = vrot.lane.b32.xlu1 %v15558_v31, %s9217_s13  ;;  %v5955_v62 = vrot.slane %v13035_v6, %v9455_v28 }
 0xf49   :  { %v6032_v20 = vmul.f32 %v6017_v15, %v5997_v38  ;;  %8023 = vrot.lane.b32.xlu0 %v15572_v45, %s9216_s8  ;;  %6775 = vmatprep.subr.mxu0 %v5903_v21  ;;  %v6033_v51 = vmul.f32 %v6021_v9, %v6003_v7  ;;  %v5996_v27 = vsel %vm2175_vm11, %v12883_v35, %v12925_v56 }
 0xf4a   :  { %6776 = vmatpush1.msra.mxu0 %v5902_v24  ;;  %v13126_v53 = vpop.permute.xlu1 %5676  ;;  %v5940_v21 = vsel %vm2111_vm12, %v12915_v32, %v12909_v49  ;;  %v5959_v35 = vrot.slane %v13035_v6, %v9457_v29  ;;  %v13142_v24 = vld [vmem:[%s15126_s3 + $0x24] ss:$8 sm:$0xf]  ;;  %v6028_v49 = vmul.f32 %v6017_v15, %v5996_v27  ;;  %v5966_v48 = vmul.f32 %v5955_v62, %v5934_v58  ;;  %v13193_v58 = vld [vmem:[%s15126_s3 + $0x23] ss:$8 sm:$0xf] }
 0xf4b   :  { %6777 = vmatprep.subr.mxu0 %v12801_v17  ;;  %6919 = vmatprep.subr.mxu1 %v6033_v51  ;;  %v5933_v26 = vpop.permute.xlu0 %5932  ;;  %v6029_v17 = vmul.f32 %v6021_v9, %v6002_v22  ;;  %v5806_v5 = vsel %vm1975_vm14, %v12933_v54, %v12923_v44  ;;  %v5808_v15 = vsel %vm1975_vm14, %v12931_v3, %v12933_v54 }
 0xf4c   :  { %v5935_v4 = vsel %vm2111_vm12, %v12994_v34, %v5933_v26  ;;  %v5941_v56 = vsel %vm2111_vm12, %v5933_v26, %v5921_v16  ;;  %6778 = vmatpush1.msra.mxu0 %v12817_v23  ;;  %6920 = vmatpush1.msra.mxu1 %v6032_v20  ;;  %v5815_v23 = vrot.slane %v13142_v24, %v9432_v13 }
 0xf4d   :  { %v5970_v32 = vmul.f32 %v5955_v62, %v5935_v4  ;;  %7951 = vrot.lane.b32.xlu1 %v15570_v46, %s9217_s13  ;;  %7879 = vrot.lane.b32.xlu0 %v15558_v31, %s9218_s0  ;;  %v5971_v6 = vmul.f32 %v5959_v35, %v5941_v56  ;;  %v5819_v16 = vrot.slane %v13142_v24, %v9430_v12  ;;  %v15573_v4 = vld [vmem:[#allocation18_spill] sm:$0xff] }
 0xf4e   :  { %6779 = vmatprep.subr.mxu0 %v12737_v2  ;;  %6921 = vmatprep.subr.mxu1 %v6029_v17  ;;  %v13155_v34 = vpop.permute.xlu1 %5606  ;;  %v5893_v22 = vrot.slane %v13069_v42, %v9455_v28  ;;  %v5897_v54 = vrot.slane %v13069_v42, %v9457_v29  ;;  %v5832_v62 = vmul.f32 %v5815_v23, %v5808_v15  ;;  %v8950_v42 = vld [vmem:[%s15126_s3 + $0x27] ss:$8 sm:$0xf] }
 0xf4f   :  { %6780 = vmatpush1.msra.mxu0 %v12743_v50  ;;  %6922 = vmatpush1.msra.mxu1 %v6028_v49  ;;  %v5789_v9 = vpop.permute.xlu0 %5788  ;;  %v5967_v50 = vmul.f32 %v5959_v35, %v5940_v21  ;;  %v5833_v51 = vmul.f32 %v5819_v16, %v5806_v5  ;;  %v5878_v27 = vsel %vm2047_vm13, %v12941_v59, %v12907_v55 }
 0xf50   :  { %6923 = vmatprep.subr.mxu1 %v5971_v6  ;;  %v5807_v2 = vsel %vm1975_vm14, %v5789_v9, %v13043_v1  ;;  %v5809_v57 = vsel %vm1975_vm14, %v13054_v30, %v5789_v9  ;;  %v5872_v55 = vsel %vm2047_vm13, %v12899_v10, %v12941_v59  ;;  %v13218_v17 = vrot.slane %v8950_v42, %v9432_v13  ;;  %v8947_v6 = vld [vmem:[%s15126_s3 + $0x23] ss:$8 sm:$0xf] }
 0xf51   :  { %v5836_v33 = vmul.f32 %v5815_v23, %v5809_v57  ;;  %6924 = vmatpush1.msra.mxu1 %v5970_v32  ;;  %7947 = vrot.lane.b32.xlu1 %v15564_v60, %s9217_s13  ;;  %v5837_v38 = vmul.f32 %v5819_v16, %v5807_v2  ;;  %v5905_v10 = vmul.f32 %v5897_v54, %v5878_v27 }
 0xf52   :  { %7961 = vrot.lane.b32.xlu0 %v15572_v45, %s9217_s13  ;;  %6925 = vmatprep.subr.mxu1 %v5967_v50  ;;  %v13180_v7 = vpop.permute.xlu1 %5614  ;;  %v5757_v49 = vrot.slane %v13193_v58, %v9430_v12  ;;  %v13223_v32 = vrot.slane %v8950_v42, %v9455_v28  ;;  %v13232_v9 = vrot.slane %v8950_v42, %v9430_v12  ;;  %v8948_v50 = vld [vmem:[%s15126_s3 + $0x24] ss:$8 sm:$0xf] }
 0xf53   :  { %6926 = vmatpush1.msra.mxu1 %v5966_v48  ;;  %6781 = vmatprep.subr.mxu0 %v5837_v38  ;;  %v5871_v20 = vpop.permute.xlu0 %5870  ;;  %v5904_v48 = vmul.f32 %v5893_v22, %v5872_v55  ;;  %v13240_v2 = vrot.slane %v8950_v42, %v9457_v29  ;;  %v13274_v27 = vrot.slane %v8948_v50, %v9455_v28 }
 0xf54   :  { %v5873_v21 = vsel %vm2047_vm13, %v13007_v40, %v5871_v20  ;;  %v5879_v26 = vsel %vm2047_vm13, %v5871_v20, %v13020_v41  ;;  %6782 = vmatpush1.msra.mxu0 %v5836_v33  ;;  %v8949_v41 = vld [vmem:[%s15126_s3 + $0x26] ss:$8 sm:$0xf]  ;;  %v5753_v20 = vrot.slane %v13193_v58, %v9432_v13  ;;  %v13293_v55 = vrot.slane %v8948_v50, %v9430_v12 }
 0xf55   :  { %v5908_v35 = vmul.f32 %v5893_v22, %v5873_v21  ;;  %8021 = vrot.lane.b32.xlu1 %v15573_v4, %s9216_s8  ;;  %6783 = vmatprep.subr.mxu0 %v5833_v51  ;;  %v5909_v40 = vmul.f32 %v5897_v54, %v5879_v26  ;;  %v13235_v16 = vrot.slane %v8949_v41, %v9455_v28  ;;  %v13283_v26 = vld [vmem:[%s15126_s3 + $0x22] ss:$8 sm:$0xf] }
 0xf56   :  { %7877 = vrot.lane.b32.xlu0 %v15564_v60, %s9218_s0  ;;  %6784 = vmatpush1.msra.mxu0 %v5832_v62  ;;  %v13215_v56 = vpop.permute.xlu1 %6118  ;;  %v13243_v57 = vrot.slane %v8949_v41, %v9432_v13  ;;  %v13253_v33 = vrot.slane %v8949_v41, %v9430_v12  ;;  %v13256_v38 = vrot.slane %v8949_v41, %v9457_v29 }
 0xf57   :  { %6927 = vmatprep.subr.mxu1 %v5909_v40  ;;  %v5727_v59 = vpop.permute.xlu0 %5726  ;;  %v13259_v22 = vrot.slane %v8947_v6, %v9432_v13  ;;  %v5744_v51 = vsel %vm1911_vm15, %v12939_v25, %v12949_v8  ;;  %v13271_v62 = vrot.slane %v8948_v50, %v9432_v13  ;;  %15575 = vst [vmem:[#allocation86_spill] sm:$0xff] %v13274_v27 }
 0xf58   :  { %v5745_v23 = vsel %vm1911_vm15, %v5727_v59, %v13077_v43  ;;  %6928 = vmatpush1.msra.mxu1 %v5908_v35  ;;  %v5746_v21 = vsel %vm1911_vm15, %v12947_v47, %v12939_v25  ;;  %v13296_v25 = vrot.slane %v8948_v50, %v9457_v29  ;;  %v6441_v35 = vsel %vm2111_vm12, %v12657_v39, %v12655_v19 }
 0xf59   :  { %7883 = vrot.lane.b32.xlu1 %v15556_v0, %s9218_s0  ;;  %6929 = vmatprep.subr.mxu1 %v5905_v10  ;;  %v5775_v5 = vmul.f32 %v5757_v49, %v5745_v23  ;;  %v13303_v40 = vrot.slane %v8947_v6, %v9455_v28  ;;  %v6443_v41 = vsel %vm2111_vm12, %v12661_v14, %v12657_v39 }
 0xf5a   :  { %7959 = vrot.lane.b32.xlu0 %v15573_v4, %s9217_s13  ;;  %6930 = vmatpush1.msra.mxu1 %v5904_v48  ;;  %v13250_v15 = vpop.permute.xlu1 %6108  ;;  %15576 = vst [vmem:[#allocation87_spill] sm:$0xff] %v13296_v25  ;;  %v5770_v10 = vmul.f32 %v5753_v20, %v5746_v21  ;;  %v5691_v48 = vrot.slane %v13283_v26, %v9432_v13  ;;  %v15584_v21 = vld [vmem:[#allocation81_spill] sm:$0xff] }
 0xf5b   :  { %15574 = vst [vmem:[#allocation85_spill] sm:$0xff] %v13250_v15  ;;  %6785 = vmatprep.subr.mxu0 %v5775_v5  ;;  %6931 = vmatprep.subr.mxu1 %v12827_v36  ;;  %v13268_v54 = vpop.permute.xlu0 %5738  ;;  %15577 = vst [vmem:[#allocation88_spill] sm:$0xff] %v13303_v40  ;;  %v15580_v5 = vld [vmem:[#allocation50_spill] sm:$0xff]  ;;  %v13343_v25 = vmul.f32 %v13218_v17, %v6443_v41 }
 0xf5c   :  { %v5747_v36 = vsel %vm1911_vm15, %v13268_v54, %v5727_v59  ;;  %6932 = vmatpush1.msra.mxu1 %v12807_v37  ;;  %v5771_v37 = vmul.f32 %v5757_v49, %v5744_v51  ;;  %v13317_v59 = vld [vmem:[%s15126_s3 + $0x22] ss:$8 sm:$0xf]  ;;  %v13334_v51 = vrot.slane %v8947_v6, %v9430_v12 }
 0xf5d   :  { %v5774_v42 = vmul.f32 %v5753_v20, %v5747_v36  ;;  %7891 = vrot.lane.b32.xlu1 %v15572_v45, %s9218_s0  ;;  %6933 = vmatprep.subr.mxu1 %v12755_v63  ;;  %v15579_v49 = vld [vmem:[#allocation72_spill] sm:$0xff]  ;;  %v5684_v36 = vsel %vm15585_vm7, %v15584_v21, %v15580_v5  ;;  %vm15626_vm7 = vmmov %vm15600_vm0 }
 0xf5e   :  { %7817 = vrot.lane.b32.xlu0 %v15558_v31, %s9219_s14  ;;  %6934 = vmatpush1.msra.mxu1 %v12733_v52  ;;  %v13308_v63 = vpop.permute.xlu1 %6116  ;;  %v5695_v52 = vrot.slane %v13283_v26, %v9430_v12  ;;  %v5682_v50 = vsel %vm15581_vm1, %v15580_v5, %v15579_v49  ;;  %v13354_v5 = vrot.slane %v13317_v59, %v9430_v12 }
 0xf5f   :  { %15578 = vst [vmem:[#allocation89_spill] sm:$0xff] %v13308_v63  ;;  %6786 = vmatpush1.msra.mxu0 %v5774_v42  ;;  %v5665_v23 = vpop.permute.xlu0 %5664  ;;  %v5708_v27 = vmul.f32 %v5691_v48, %v5684_v36  ;;  %v15589_v63 = vld [vmem:[#allocation51_spill] sm:$0xff] }
 0xf60   :  { %v5683_v39 = vsel %vm15582_vm3, %v5665_v23, %v13101_v61  ;;  %v5685_v20 = vsel %vm15583_vm5, %v13126_v53, %v5665_v23  ;;  %6787 = vmatprep.subr.mxu0 %v5771_v37  ;;  %v13350_v23 = vmul.f32 %v13232_v9, %v6441_v35  ;;  %v5827_v35 = vrot.slane %v13142_v24, %v9457_v29  ;;  %vm15621_vm3 = vmmov %vm15581_vm1 }
 0xf61   :  { %v5712_v42 = vmul.f32 %v5691_v48, %v5685_v20  ;;  %7881 = vrot.lane.b32.xlu1 %v15570_v46, %s9218_s0  ;;  %6788 = vmatpush1.msra.mxu0 %v5770_v10  ;;  %v5713_v40 = vmul.f32 %v5695_v52, %v5683_v39  ;;  %v13357_v20 = vrot.slane %v8947_v6, %v9457_v29  ;;  %v15588_v10 = vld [vmem:[#allocation54_spill] sm:$0xff]  ;;  %vm15625_vm5 = vmmov %vm15600_vm0 }
 0xf62   :  { %7829 = vrot.lane.b32.xlu0 %v15572_v45, %s9219_s14  ;;  %v13347_v37 = vpop.permute.xlu1 %6050  ;;  %v6439_v41 = vsel %vm2111_vm12, %v12655_v19, %v15588_v10  ;;  %v5823_v39 = vrot.slane %v13142_v24, %v9455_v28  ;;  %v5802_v6 = vsel %vm1975_vm14, %v15589_v63, %v12931_v3  ;;  %v5804_v24 = vsel %vm1975_vm14, %v12923_v44, %v15589_v63  ;;  %v15593_v63 = vld [vmem:[#allocation67_spill] sm:$0xff] }
 0xf63   :  { %15586 = vst [vmem:[#allocation72_spill] sm:$0xff] %v13347_v37  ;;  %15587 = vst [vmem:[#allocation50_spill] sm:$0xff] %v13357_v20  ;;  %6789 = vmatprep.subr.mxu0 %v5713_v40  ;;  %v5797_v45 = vpop.permute.xlu0 %5796  ;;  %v5709_v37 = vmul.f32 %v5695_v52, %v5682_v50  ;;  %v13374_v20 = vld [vmem:[%s15126_s3 + $0x21] ss:$8 sm:$0xf]  ;;  %v13393_v52 = vmul.f32 %v13223_v32, %v6439_v41 }
 0xf64   :  { %v5803_v19 = vsel %vm1975_vm14, %v5797_v45, %v13054_v30  ;;  %v5805_v40 = vsel %vm1975_vm14, %v13043_v1, %v5797_v45  ;;  %6790 = vmatpush1.msra.mxu0 %v5712_v42  ;;  %v6445_v30 = vsel %vm2111_vm12, %v15588_v10, %v12661_v14  ;;  %v15590_v1 = vld [vmem:[#allocation71_spill] sm:$0xff]  ;;  %v5629_v14 = vrot.slane %v13374_v20, %v9432_v13 }
 0xf65   :  { %v5838_v3 = vmul.f32 %v5823_v39, %v5805_v40  ;;  %7889 = vrot.lane.b32.xlu1 %v15573_v4, %s9218_s0  ;;  %6791 = vmatprep.subr.mxu0 %v5709_v37  ;;  %v5839_v48 = vmul.f32 %v5827_v35, %v5803_v19  ;;  %v15591_v45 = vld [vmem:[#allocation63_spill] sm:$0xff]  ;;  %v5835_v37 = vmul.f32 %v5827_v35, %v5802_v6  ;;  %v15594_v19 = vld [vmem:[#allocation73_spill] sm:$0xff]  ;;  %v15599_v35 = vld [vmem:[#allocation60_spill] sm:$0xff] }
 0xf66   :  { %v6440_v50 = vsel %vm2111_vm12, %v15591_v45, %v15590_v1  ;;  %7819 = vrot.lane.b32.xlu0 %v15570_v46, %s9219_s14  ;;  %6792 = vmatpush1.msra.mxu0 %v5708_v27  ;;  %v13401_v44 = vpop.permute.xlu1 %6042  ;;  %v6442_v36 = vsel %vm2111_vm12, %v15593_v63, %v15591_v45  ;;  %v5633_v10 = vrot.slane %v13374_v20, %v9430_v12  ;;  %v15595_v40 = vld [vmem:[#allocation77_spill] sm:$0xff] }
 0xf67   :  { %15592 = vst [vmem:[#allocation81_spill] sm:$0xff] %v13401_v44  ;;  %6935 = vmatprep.subr.mxu1 %v5839_v48  ;;  %v5603_v42 = vpop.permute.xlu0 %5602  ;;  %v5834_v41 = vmul.f32 %v5823_v39, %v5804_v24  ;;  %v5620_v27 = vsel %vm15596_vm6, %v15595_v40, %v15594_v19  ;;  %v5622_v6 = vsel %vm15600_vm0, %v15599_v35, %v15595_v40  ;;  %v15602_v40 = vld [vmem:[#allocation33_spill] sm:$0xff]  ;;  %vm15630_vm6 = vmmov %vm15600_vm0 }
 0xf68   :  { %v5621_v46 = vsel %vm15597_vm4, %v5603_v42, %v13155_v34  ;;  %v5623_v45 = vsel %vm15598_vm8, %v13180_v7, %v5603_v42  ;;  %6936 = vmatpush1.msra.mxu1 %v5838_v3  ;;  %v6468_v48 = vmul.f32 %v13218_v17, %v6442_v36  ;;  %v6469_v3 = vmul.f32 %v13232_v9, %v6440_v50  ;;  %vm15633_vm4 = vmmov %vm15600_vm0 }
 0xf69   :  { %v5650_v39 = vmul.f32 %v5629_v14, %v5623_v45  ;;  %7821 = vrot.lane.b32.xlu1 %v15556_v0, %s9219_s14  ;;  %6937 = vmatprep.subr.mxu1 %v5835_v37  ;;  %v5651_v24 = vmul.f32 %v5633_v10, %v5621_v46  ;;  %v13434_v42 = vmul.f32 %v13240_v2, %v6445_v30  ;;  %v15603_v45 = vld [vmem:[#allocation64_spill] sm:$0xff]  ;;  %vm15643_vm8 = vmmov %vm15581_vm1 }
 0xf6a   :  { %7755 = vrot.lane.b32.xlu0 %v15558_v31, %s9220_s15  ;;  %6938 = vmatpush1.msra.mxu1 %v5834_v41  ;;  %v13430_v44 = vpop.permute.xlu1 %6560  ;;  %v6377_v15 = vsel %vm2047_vm13, %v15603_v45, %v15602_v40  ;;  %v5761_v46 = vrot.slane %v13193_v58, %v9455_v28  ;;  %v5647_v36 = vmul.f32 %v5633_v10, %v5620_v27  ;;  %v15604_v41 = vld [vmem:[#allocation80_spill] sm:$0xff]  ;;  %v15605_v10 = vld [vmem:[#allocation55_spill] sm:$0xff]  ;;  %vm15646_vm0 = vmmov %vm15581_vm1 }
 0xf6b   :  { %15601 = vst [vmem:[#allocation54_spill] sm:$0xff] %v13430_v44  ;;  %6793 = vmatprep.subr.mxu0 %v5651_v24  ;;  %v5735_v17 = vpop.permute.xlu0 %5734  ;;  %v5765_v37 = vrot.slane %v13193_v58, %v9457_v29  ;;  %v6379_v9 = vsel %vm2047_vm13, %v15604_v41, %v15603_v45  ;;  %v5646_v30 = vmul.f32 %v5629_v14, %v5622_v6  ;;  %v15606_v6 = vld [vmem:[#allocation57_spill] sm:$0xff] }
 0xf6c   :  { %v5741_v50 = vsel %vm1911_vm15, %v5735_v17, %v13268_v54  ;;  %v5743_v44 = vsel %vm1911_vm15, %v13077_v43, %v5735_v17  ;;  %6794 = vmatpush1.msra.mxu0 %v5650_v39  ;;  %v5740_v58 = vsel %vm1911_vm15, %v15605_v10, %v12947_v47  ;;  %v6381_v54 = vsel %vm2047_vm13, %v15606_v6, %v15604_v41  ;;  %v15609_v45 = vld [vmem:[#allocation37_spill] sm:$0xff]  ;;  %v15610_v17 = vld [vmem:[#allocation68_spill] sm:$0xff] }
 0xf6d   :  { %v5776_v27 = vmul.f32 %v5761_v46, %v5743_v44  ;;  %7815 = vrot.lane.b32.xlu1 %v15564_v60, %s9219_s14  ;;  %6795 = vmatprep.subr.mxu0 %v5647_v36  ;;  %v5777_v14 = vmul.f32 %v5765_v37, %v5741_v50  ;;  %v6383_v43 = vsel %vm2047_vm13, %v15602_v40, %v15606_v6  ;;  %v15607_v44 = vld [vmem:[#allocation19_spill] sm:$0xff]  ;;  %v15611_v40 = vld [vmem:[#allocation56_spill] sm:$0xff] }
 0xf6e   :  { %v5742_v47 = vsel %vm1911_vm15, %v12949_v8, %v15605_v10  ;;  %7887 = vrot.lane.b32.xlu0 %v15607_v44, %s9218_s0  ;;  %6796 = vmatpush1.msra.mxu0 %v5646_v30  ;;  %v13474_v39 = vpop.permute.xlu1 %6052  ;;  %v13477_v24 = vmul.f32 %v13235_v16, %v6377_v15  ;;  %v6376_v36 = vsel %vm2047_vm13, %v15610_v17, %v15609_v45  ;;  %v15612_v30 = vld [vmem:[#allocation36_spill] sm:$0xff] }
 0xf6f   :  { %15608 = vst [vmem:[#allocation51_spill] sm:$0xff] %v13474_v39  ;;  %v6378_v41 = vsel %vm2047_vm13, %v15611_v40, %v15610_v17  ;;  %6797 = vmatprep.subr.mxu0 %v13350_v23  ;;  %6939 = vmatprep.subr.mxu1 %v5777_v14  ;;  %v13488_v8 = vpop.permute.xlu0 %6104  ;;  %v6380_v15 = vsel %vm2047_vm13, %v15612_v30, %v15611_v40  ;;  %v15618_v17 = vld [vmem:[#allocation75_spill] sm:$0xff] }
 0xf70   :  { %6798 = vmatpush2.msra.mxu0 %v13343_v25  ;;  %6940 = vmatpush1.msra.mxu1 %v5776_v27  ;;  %v5773_v50 = vmul.f32 %v5765_v37, %v5740_v58  ;;  %v6411_v10 = vmul.f32 %v13253_v33, %v6379_v9  ;;  %v6410_v6 = vmul.f32 %v13243_v57, %v6381_v54  ;;  %v15613_v27 = vld [vmem:[#allocation42_spill] sm:$0xff] }
 0xf71   :  { %v5772_v39 = vmul.f32 %v5761_v46, %v5742_v47  ;;  %7827 = vrot.lane.b32.xlu1 %v15573_v4, %s9219_s14  ;;  %6799 = vmatprep.subr.mxu0 %v6469_v3  ;;  %v13500_v23 = vmul.f32 %v13256_v38, %v6383_v43  ;;  %v13503_v14 = vmul.f32 %v13235_v16, %v6376_v36  ;;  %v15614_v54 = vld [vmem:[#allocation46_spill] sm:$0xff]  ;;  %v15615_v47 = vld [vmem:[#allocation83_spill] sm:$0xff] }
 0xf72   :  { %v6382_v25 = vsel %vm2047_vm13, %v15609_v45, %v15612_v30  ;;  %7753 = vrot.lane.b32.xlu0 %v15564_v60, %s9220_s15  ;;  %6941 = vmatprep.subr.mxu1 %v5773_v50  ;;  %v13511_v46 = vpop.permute.xlu1 %6044  ;;  %v6407_v37 = vmul.f32 %v13253_v33, %v6378_v41  ;;  %v6406_v3 = vmul.f32 %v13243_v57, %v6380_v15  ;;  %vm15616_vm13 = vmmov %vm15581_vm1 }
 0xf73   :  { %v5699_v9 = vrot.slane %v13283_v26, %v9455_v28  ;;  %6800 = vmatpush2.msra.mxu0 %v6468_v48  ;;  %6942 = vmatpush1.msra.mxu1 %v5772_v39  ;;  %v5673_v16 = vpop.permute.xlu0 %5672  ;;  %v5703_v58 = vrot.slane %v13283_v26, %v9457_v29  ;;  %v6251_v43 = vsel %vm1911_vm15, %v15614_v54, %v15613_v27 }
 0xf74   :  { %v5678_v33 = vsel %vm15616_vm13, %v15615_v47, %v15584_v21  ;;  %6801 = vmatprep.subr.mxu0 %v6411_v10  ;;  %v5679_v57 = vsel %vm15617_vm9, %v5673_v16, %v13126_v53  ;;  %v5681_v48 = vsel %vm15581_vm1, %v13101_v61, %v5673_v16  ;;  %v13536_v45 = vmul.f32 %v13256_v38, %v6382_v25  ;;  %v15619_v21 = vld [vmem:[#allocation82_spill] sm:$0xff]  ;;  %v15624_v25 = vld [vmem:[#allocation28_spill] sm:$0xff]  ;;  %vm15648_vm13 = vmmov %vm15646_vm0 }
 0xf75   :  { %v5714_v26 = vmul.f32 %v5699_v9, %v5681_v48  ;;  %6802 = vmatpush2.msra.mxu0 %v6410_v6  ;;  %7759 = vrot.lane.b32.xlu1 %v15556_v0, %s9220_s15  ;;  %v5715_v39 = vmul.f32 %v5703_v58, %v5679_v57  ;;  %v6311_v36 = vsel %vm1975_vm14, %v15619_v21, %v15618_v17  ;;  %v15620_v53 = vld [vmem:[#allocation74_spill] sm:$0xff]  ;;  %v15623_v6 = vld [vmem:[#allocation31_spill] sm:$0xff]  ;;  %v15629_v48 = vld [vmem:[#allocation84_spill] sm:$0xff] }
 0xf76   :  { %v6313_v40 = vsel %vm1975_vm14, %v15620_v53, %v15619_v21  ;;  %v5680_v61 = vsel %vm15621_vm3, %v15579_v49, %v15615_v47  ;;  %7885 = vrot.lane.b32.xlu0 %v15561_v18, %s9218_s0  ;;  %6803 = vmatprep.subr.mxu0 %v6407_v37  ;;  %v13552_v38 = vpop.permute.xlu1 %6558  ;;  %v5637_v41 = vrot.slane %v13374_v20, %v9455_v28  ;;  %v15622_v10 = vld [vmem:[#allocation78_spill] sm:$0xff]  ;;  %v15632_v21 = vld [vmem:[#allocation49_spill] sm:$0xff]  ;;  %vm15651_vm9 = vmmov %vm15633_vm4 }
 0xf77   :  { %6804 = vmatpush2.msra.mxu0 %v6406_v3  ;;  %6943 = vmatprep.subr.mxu1 %v5715_v39  ;;  %v5611_v30 = vpop.permute.xlu0 %5610  ;;  %v5711_v15 = vmul.f32 %v5703_v58, %v5678_v33  ;;  %v5641_v50 = vrot.slane %v13374_v20, %v9457_v29  ;;  %v6310_v49 = vsel %vm1975_vm14, %v15623_v6, %v15622_v10  ;;  %v15627_v47 = vld [vmem:[#allocation30_spill] sm:$0xff] }
 0xf78   :  { %6805 = vmatprep.subr.mxu0 %v15624_v25  ;;  %v5617_v37 = vsel %vm15625_vm5, %v5611_v30, %v13180_v7  ;;  %v5619_v3 = vsel %vm15626_vm7, %v13155_v34, %v5611_v30  ;;  %6944 = vmatpush1.msra.mxu1 %v5714_v26  ;;  %v5710_v16 = vmul.f32 %v5699_v9, %v5680_v61  ;;  %v15628_v33 = vld [vmem:[#allocation34_spill] sm:$0xff]  ;;  %v15631_v34 = vld [vmem:[#allocation24_spill] sm:$0xff]  ;;  %v15634_v30 = vld [vmem:[#allocation25_spill] sm:$0xff] }
 0xf79   :  { %v5652_v58 = vmul.f32 %v5637_v41, %v5619_v3  ;;  %6806 = vmatpush2.msra.mxu0 %v15627_v47  ;;  %6945 = vmatprep.subr.mxu1 %v5711_v15  ;;  %v5653_v20 = vmul.f32 %v5641_v50, %v5617_v37  ;;  %v6312_v57 = vsel %vm1975_vm14, %v15628_v33, %v15623_v6  ;;  %v15635_v6 = vld [vmem:[#allocation40_spill] sm:$0xff]  ;;  %v15637_v37 = vld [vmem:[#allocation38_spill] sm:$0xff]  ;;  %vm15680_vm7 = vmmov %vm15646_vm0 }
 0xf7a   :  { %v5616_v7 = vsel %vm15630_vm6, %v15629_v48, %v15599_v35  ;;  %7693 = vrot.lane.b32.xlu0 %v15558_v31, %s9221_s16  ;;  %6807 = vmatprep.subr.mxu0 %v15631_v34  ;;  %v13581_v9 = vpop.permute.xlu1 %6498  ;;  %v6341_v26 = vmul.f32 %v13293_v55, %v6311_v36  ;;  %v6340_v39 = vmul.f32 %v13271_v62, %v6313_v40  ;;  %v15636_v25 = vld [vmem:[#allocation48_spill] sm:$0xff]  ;;  %vm15682_vm6 = vmmov %vm15646_vm0 }
 0xf7b   :  { %v6249_v61 = vsel %vm1911_vm15, %v15613_v27, %v15632_v21  ;;  %v5618_v35 = vsel %vm15633_vm4, %v15594_v19, %v15629_v48  ;;  %6808 = vmatpush2.msra.mxu0 %v15634_v30  ;;  %6946 = vmatpush1.msra.mxu1 %v5710_v16  ;;  %v13594_v15 = vpop.permute.xlu0 %6236  ;;  %v6438_v36 = vsel %vm2111_vm12, %v15590_v1, %v15635_v6  ;;  %v15638_v1 = vld [vmem:[#allocation53_spill] sm:$0xff] }
 0xf7c   :  { %v6444_v27 = vsel %vm2111_vm12, %v15635_v6, %v15593_v63  ;;  %6809 = vmatprep.subr.mxu0 %v6341_v26  ;;  %6947 = vmatprep.subr.mxu1 %v5653_v20  ;;  %v6337_v40 = vmul.f32 %v13293_v55, %v6310_v49  ;;  %v6336_v19 = vmul.f32 %v13271_v62, %v6312_v57  ;;  %v15639_v20 = vld [vmem:[#allocation41_spill] sm:$0xff]  ;;  %v15640_v57 = vld [vmem:[#allocation52_spill] sm:$0xff]  ;;  %vm15641_vm12 = vmmov %vm15581_vm1 }
 0xf7d   :  { %v6248_v3 = vsel %vm1911_vm15, %v15637_v37, %v15636_v25  ;;  %6810 = vmatpush2.msra.mxu0 %v6340_v39  ;;  %6948 = vmatpush1.msra.mxu1 %v5652_v58  ;;  %v5649_v16 = vmul.f32 %v5641_v50, %v5616_v7  ;;  %v6250_v47 = vsel %vm1911_vm15, %v15638_v1, %v15637_v37  ;;  %v15647_v6 = vld [vmem:[#allocation45_spill] sm:$0xff]  ;;  %v15650_v37 = vld [vmem:[#allocation76_spill] sm:$0xff]  ;;  %vm15653_vm1 = vmmov %vm15633_vm4 }
 0xf7e   :  { %v5648_v63 = vmul.f32 %v5637_v41, %v5618_v35  ;;  %7825 = vrot.lane.b32.xlu0 %v15607_v44, %s9219_s14  ;;  %6811 = vmatprep.subr.mxu0 %v6337_v40  ;;  %v13616_v55 = vpop.permute.xlu1 %6496  ;;  %v6279_v62 = vmul.f32 %v13334_v51, %v6249_v61  ;;  %v6278_v49 = vmul.f32 %v13259_v22, %v6251_v43  ;;  %v13629_v41 = vld [vmem:[%s15126_s3 + $0x21] ss:$8 sm:$0xf]  ;;  %vm15655_vm3 = vmmov %vm15653_vm1 }
 0xf7f   :  { %v6187_v50 = vsel %vm15641_vm12, %v15640_v57, %v15639_v20  ;;  %v6195_v58 = vrot.slane %v13317_v59, %v9432_v13  ;;  %6949 = vmatprep.subr.mxu1 %v5649_v16  ;;  %6812 = vmatpush2.msra.mxu0 %v6336_v19  ;;  %v13631_v48 = vpop.permute.xlu0 %6176  ;;  %v6470_v7 = vmul.f32 %v13223_v32, %v6438_v36  ;;  %v15642_v43 = vld [vmem:[#allocation39_spill] sm:$0xff]  ;;  %v15644_v61 = vld [vmem:[#allocation44_spill] sm:$0xff]  ;;  %vm15658_vm5 = vmmov %vm15653_vm1 }
 0xf80   :  { %v6189_v34 = vsel %vm15643_vm8, %v15642_v43, %v15640_v57  ;;  %6950 = vmatpush1.msra.mxu1 %v5648_v63  ;;  %6813 = vmatprep.subr.mxu0 %v6279_v62  ;;  %v6275_v26 = vmul.f32 %v13334_v51, %v6248_v3  ;;  %v6274_v39 = vmul.f32 %v13259_v22, %v6250_v47  ;;  %v15645_v35 = vld [vmem:[#allocation79_spill] sm:$0xff]  ;;  %v15652_v3 = vld [vmem:[#allocation32_spill] sm:$0xff]  ;;  %v15654_v57 = vld [vmem:[#allocation85_spill] sm:$0xff] }
 0xf81   :  { %v6186_v30 = vsel %vm15646_vm0, %v15645_v35, %v15644_v61  ;;  %6951 = vmatprep.subr.mxu1 %v13434_v42  ;;  %6814 = vmatpush2.msra.mxu0 %v6278_v49  ;;  %v6471_v32 = vmul.f32 %v13240_v2, %v6444_v27  ;;  %v6188_v36 = vsel %vm15648_vm13, %v15647_v6, %v15645_v35  ;;  %v15649_v42 = vld [vmem:[#allocation47_spill] sm:$0xff]  ;;  %v15661_v35 = vld [vmem:[#allocation86_spill] sm:$0xff]  ;;  %vm15683_vm4 = vmmov %vm15653_vm1 }
 0xf82   :  { %6952 = vmatpush2.msra.mxu1 %v13393_v52  ;;  %6815 = vmatprep.subr.mxu0 %v6275_v26  ;;  %v13651_v51 = vpop.permute.xlu1 %8139  ;;  %v6217_v22 = vmul.f32 %v13354_v5, %v6187_v50  ;;  %v6137_v40 = vrot.slane %v13629_v41, %v9430_v12  ;;  %v6216_v19 = vmul.f32 %v6195_v58, %v6189_v34  ;;  %v15656_v50 = vld [vmem:[#allocation35_spill] sm:$0xff]  ;;  %vm15685_vm12 = vmmov %vm15653_vm1 }
 0xf83   :  { %v6125_v2 = vsel %vm15651_vm9, %v15650_v37, %v15649_v42  ;;  %v6133_v27 = vrot.slane %v13629_v41, %v9432_v13  ;;  %6953 = vmatprep.subr.mxu1 %v6471_v32  ;;  %6816 = vmatpush2.msra.mxu0 %v6274_v39  ;;  %v13662_v52 = vpop.permute.xlu0 %6046  ;;  %v6307_v16 = vsel %vm1975_vm14, %v15652_v3, %v15620_v53  ;;  %v15660_v26 = vld [vmem:[#allocation43_spill] sm:$0xff]  ;;  %vm15686_vm8 = vmmov %vm15653_vm1 }
 0xf84   :  { %v6127_v47 = vsel %vm15653_vm1, %v13215_v56, %v15650_v37  ;;  %6954 = vmatpush2.msra.mxu1 %v6470_v7  ;;  %6817 = vmatprep.subr.mxu0 %v6217_v22  ;;  %v6213_v63 = vmul.f32 %v13354_v5, %v6186_v30  ;;  %v6309_v62 = vsel %vm1975_vm14, %v15618_v17, %v15652_v3  ;;  %v15657_v5 = vld [vmem:[#allocation89_spill] sm:$0xff] }
 0xf85   :  { %v6212_v49 = vmul.f32 %v6195_v58, %v6188_v36  ;;  %v6124_v53 = vsel %vm15655_vm3, %v13488_v8, %v15654_v57  ;;  %6955 = vmatprep.subr.mxu1 %v13500_v23  ;;  %6818 = vmatpush2.msra.mxu0 %v6216_v19  ;;  %v6306_v7 = vsel %vm1975_vm14, %v15656_v50, %v15628_v33  ;;  %v15662_v36 = vld [vmem:[#allocation29_spill] sm:$0xff]  ;;  %v15664_v19 = vld [vmem:[#allocation88_spill] sm:$0xff] }
 0xf86   :  { %v6126_v34 = vsel %vm15658_vm5, %v15657_v5, %v13488_v8  ;;  %6956 = vmatpush2.msra.mxu1 %v13477_v24  ;;  %6819 = vmatprep.subr.mxu0 %v6213_v63  ;;  %v13691_v17 = vpop.permute.xlu1 %8143  ;;  %v6155_v58 = vmul.f32 %v6137_v40, %v6125_v2  ;;  %v6308_v23 = vsel %vm1975_vm14, %v15622_v10, %v15656_v50  ;;  %v15665_v2 = vld [vmem:[#allocation27_spill] sm:$0xff]  ;;  %v15668_v63 = vld [vmem:[#allocation50_spill] sm:$0xff]  ;;  %v15670_v50 = vld [vmem:[#allocation61_spill] sm:$0xff] }
 0xf87   :  { %15659 = vst [vmem:[#allocation71_spill] sm:$0xff] %v13691_v17  ;;  %v6247_v33 = vsel %vm1911_vm15, %v15632_v21, %v15660_v26  ;;  %v6154_v39 = vmul.f32 %v6133_v27, %v6127_v47  ;;  %6957 = vmatprep.subr.mxu1 %v13536_v45  ;;  %6820 = vmatpush2.msra.mxu0 %v6212_v49  ;;  %v13702_v8 = vpop.permute.xlu0 %6174  ;;  %v15663_v21 = vld [vmem:[#allocation87_spill] sm:$0xff]  ;;  %vm15674_vm14 = vmmov %vm15646_vm0 }
 0xf88   :  { %v6245_v24 = vsel %vm1911_vm15, %v15660_v26, %v15614_v54  ;;  %6958 = vmatpush2.msra.mxu1 %v13503_v14  ;;  %6821 = vmatprep.subr.mxu0 %v6155_v58  ;;  %v6151_v10 = vmul.f32 %v6137_v40, %v6124_v53  ;;  %v6342_v30 = vmul.f32 %v15661_v35, %v6309_v62  ;;  %v8944_v54 = vld [vmem:[%s15126_s3 + $0x41] ss:$8 sm:$0xf] }
 0xf89   :  { %v6150_v32 = vmul.f32 %v6133_v27, %v6126_v34  ;;  %6959 = vmatprep.subr.mxu1 %v15662_v36  ;;  %6822 = vmatpush2.msra.mxu0 %v6154_v39  ;;  %v6343_v45 = vmul.f32 %v15663_v21, %v6307_v16  ;;  %v6338_v22 = vmul.f32 %v15661_v35, %v6308_v23  ;;  %v9182_v27 = vld [vmem:[%s15126_s3 + $0x41] ss:$8 sm:$0xf]  ;;  %v9183_v34 = vld [vmem:[%s15126_s3 + $0x40] ss:$8 sm:$0xf] }
 0xf8a   :  { %v6280_v37 = vmul.f32 %v15664_v19, %v6247_v33  ;;  %6960 = vmatpush2.msra.mxu1 %v15665_v2  ;;  %6823 = vmatprep.subr.mxu0 %v6151_v10  ;;  %v13718_v14 = vpop.permute.xlu1 %8135  ;;  %v6339_v40 = vmul.f32 %v15663_v21, %v6306_v7  ;;  %v13725_v3 = vrot.slane %v9182_v27, %v9455_v28  ;;  %v15667_v16 = vld [vmem:[#allocation26_spill] sm:$0xff]  ;;  %v15671_v26 = vld [vmem:[#allocation23_spill] sm:$0xff]  ;;  %v15673_v2 = vld [vmem:[#allocation65_spill] sm:$0xff] }
 0xf8b   :  { %15666 = vst [vmem:[#allocation63_spill] sm:$0xff] %v13718_v14  ;;  %6961 = vmatprep.subr.mxu1 %v15667_v16  ;;  %6824 = vmatpush2.msra.mxu0 %v6150_v32  ;;  %v6115_v47 = vpop.permute.xlu0 %6114  ;;  %v6281_v62 = vmul.f32 %v15668_v63, %v6245_v24  ;;  %v6587_v49 = vrot.slane %v9182_v27, %v9457_v29  ;;  %v15669_v53 = vld [vmem:[#allocation54_spill] sm:$0xff] }
 0xf8c   :  { %v6563_v7 = vsel %vm2239_vm2, %v15670_v50, %v15669_v53  ;;  %v13738_v58 = vrot.slane %v9183_v34, %v9455_v28  ;;  %v6244_v23 = vsel %vm1911_vm15, %v13594_v15, %v15638_v1  ;;  %6962 = vmatpush2.msra.mxu1 %v15671_v26  ;;  %v13746_v33 = vrot.slane %v9183_v34, %v9457_v29  ;;  %v15675_v50 = vld [vmem:[#allocation72_spill] sm:$0xff] }
 0xf8d   :  { %v6203_v39 = vrot.slane %v13317_v59, %v9455_v28  ;;  %v6071_v24 = vrot.slane %v8944_v54, %v9432_v13  ;;  %6963 = vmatprep.subr.mxu1 %v6343_v45  ;;  %v6075_v10 = vrot.slane %v8944_v54, %v9430_v12  ;;  %v6207_v35 = vrot.slane %v13317_v59, %v9457_v29 }
 0xf8e   :  { %v13756_v32 = vrot.slane %v13629_v41, %v9455_v28  ;;  %6964 = vmatpush2.msra.mxu1 %v6342_v30  ;;  %v13758_v1 = vpop.permute.xlu1 %8141  ;;  %v13762_v36 = vrot.slane %v13629_v41, %v9457_v29  ;;  %v13765_v21 = vrot.slane %v8944_v54, %v9455_v28  ;;  %v13768_v45 = vrot.slane %v8944_v54, %v9457_v29 }
 0xf8f   :  { %15672 = vst [vmem:[#allocation67_spill] sm:$0xff] %v13758_v1  ;;  %v6569_v59 = vsel %vm2239_vm2, %v15669_v53, %v15673_v2  ;;  %v6598_v27 = vmul.f32 %v13725_v3, %v6563_v7  ;;  %v6246_v30 = vsel %vm1911_vm15, %v15636_v25, %v13594_v15  ;;  %6965 = vmatprep.subr.mxu1 %v6339_v40  ;;  %v6049_v41 = vpop.permute.xlu0 %6048  ;;  %v15676_v7 = vld [vmem:[#allocation51_spill] sm:$0xff]  ;;  %vm15677_vm15 = vmmov %vm15646_vm0 }
 0xf90   :  { %v6277_v16 = vmul.f32 %v15668_v63, %v6244_v23  ;;  %v6183_v54 = vsel %vm15674_vm14, %v13631_v48, %v15642_v43  ;;  %v6060_v53 = vsel %vm2239_vm2, %v13662_v52, %v15675_v50  ;;  %6966 = vmatpush2.msra.mxu1 %v6338_v22  ;;  %v6061_v34 = vsel %vm2239_vm2, %v6049_v41, %v15676_v7  ;;  %v15678_v43 = vld [vmem:[#allocation81_spill] sm:$0xff]  ;;  %v15679_v23 = vld [vmem:[#allocation62_spill] sm:$0xff]  ;;  %vm15689_vm0 = vmmov %vm15653_vm1 }
 0xf91   :  { %v6063_v15 = vsel %vm2239_vm2, %v13511_v46, %v6049_v41  ;;  %v6185_v25 = vsel %vm15677_vm15, %v15639_v20, %v13631_v48  ;;  %v6062_v40 = vsel %vm2239_vm2, %v15678_v43, %v13662_v52  ;;  %6967 = vmatprep.subr.mxu1 %v6281_v62  ;;  %v6093_v63 = vmul.f32 %v6075_v10, %v6061_v34 }
 0xf92   :  { %v6092_v22 = vmul.f32 %v6071_v24, %v6063_v15  ;;  %v6568_v26 = vsel %vm2239_vm2, %v13552_v38, %v15679_v23  ;;  %v6276_v2 = vmul.f32 %v15664_v19, %v6246_v30  ;;  %v6182_v20 = vsel %vm15680_vm7, %v13702_v8, %v15647_v6  ;;  %6968 = vmatpush2.msra.mxu1 %v6280_v37  ;;  %v13811_v48 = vpop.permute.xlu1 %8133  ;;  %v13820_v37 = vld [vmem:[#allocation4 + $0x30] sm:$0xff]  ;;  %v15690_v23 = vld [vmem:[#allocation70_spill] sm:$0xff] }
 0xf93   :  { %15681 = vst [vmem:[#allocation73_spill] sm:$0xff] %v13811_v48  ;;  %v6599_v41 = vmul.f32 %v6587_v49, %v6569_v59  ;;  %v6184_v52 = vsel %vm15682_vm6, %v15644_v61, %v13702_v8  ;;  %6969 = vmatprep.subr.mxu1 %v6277_v16  ;;  %6825 = vmatprep.subr.mxu0 %v6093_v63  ;;  %v6113_v34 = vpop.permute.xlu0 %6112  ;;  %v15684_v59 = vld [vmem:[#allocation66_spill] sm:$0xff]  ;;  %vm15700_vm1 = vcmp.lt.s32.totalorder %v9422_v11, 112 }
 0xf94   :  { %v6219_v62 = vmul.f32 %v6207_v35, %v6183_v54  ;;  %v6089_v15 = vmul.f32 %v6075_v10, %v6060_v53  ;;  %v6218_v19 = vmul.f32 %v6203_v39, %v6185_v25  ;;  %v6088_v30 = vmul.f32 %v6071_v24, %v6062_v40  ;;  %6970 = vmatpush2.msra.mxu1 %v6276_v2  ;;  %v15688_v53 = vld [vmem:[#allocation59_spill] sm:$0xff]  ;;  %vm15701_vm3 = vmmov %vm15700_vm1 }
 0xf95   :  { %v6121_v6 = vsel %vm15683_vm4, %v6115_v47, %v13215_v56  ;;  %6826 = vmatpush2.msra.mxu0 %v6092_v22  ;;  %v6562_v61 = vsel %vm2239_vm2, %v15684_v59, %v13552_v38  ;;  %v6123_v8 = vsel %vm15685_vm12, %v15649_v42, %v6115_v47  ;;  %v6215_v24 = vmul.f32 %v6207_v35, %v6182_v20  ;;  %v6613_v25 = vld [vmem:[#allocation4 + $0x50] sm:$0xff]  ;;  %v15691_v20 = vld [vmem:[#allocation69_spill] sm:$0xff]  ;;  %vm15703_vm5 = vmmov %vm15700_vm1 }
 0xf96   :  { %6971 = vmatprep.subr.mxu1 %v6219_v62  ;;  %6827 = vmatprep.subr.mxu0 %v6089_v15  ;;  %v6214_v10 = vmul.f32 %v6203_v39, %v6184_v52  ;;  %v6120_v56 = vsel %vm15686_vm8, %v6113_v34, %v15657_v5  ;;  %v13832_v16 = vpop.permute.xlu1 %8081  ;;  %v6595_v54 = vmul.f32 %v6587_v49, %v6568_v26  ;;  %v8978_v39 = vld [vmem:[%s15126_s3 + $0x20] ss:$8 sm:$0xf]  ;;  %vm15704_vm14 = vmmov %vm15700_vm1 }
 0xf97   :  { %6972 = vmatpush2.msra.mxu1 %v6218_v19  ;;  %6828 = vmatpush2.msra.mxu0 %v6088_v30  ;;  %15687 = vst [vmem:[#allocation77_spill] sm:$0xff] %v13832_v16  ;;  %v6507_v38 = vsel %vm2175_vm11, %v13581_v9, %v15688_v53  ;;  %v6122_v42 = vsel %vm15689_vm0, %v15654_v57, %v6113_v34  ;;  %v6057_v5 = vpop.permute.xlu0 %6056  ;;  %v9184_v53 = vld [vmem:[#allocation4 + $0x40] sm:$0xff] }
 0xf98   :  { %6973 = vmatprep.subr.mxu1 %v6215_v24  ;;  %6830 = vmatmul.mubr.f32.vlgmr.msra.gmra.mxu0 %v13820_v37  ;;  %v6157_v47 = vmul.f32 %v13762_v36, %v6121_v6  ;;  %v6156_v49 = vmul.f32 %v13756_v32, %v6123_v8  ;;  %v6059_v35 = vsel %vm2239_vm2, %v15676_v7, %v6057_v5 }
 0xf99   :  { %6974 = vmatpush2.msra.mxu1 %v6214_v10  ;;  %7020 = vmatprep.subr.mxu0 %v6599_v41  ;;  %v6065_v57 = vsel %vm2239_vm2, %v6057_v5, %v13511_v46  ;;  %v6594_v40 = vmul.f32 %v13725_v3, %v6562_v61  ;;  %v6153_v22 = vmul.f32 %v13762_v36, %v6120_v56  ;;  %v6612_v46 = vld [vmem:[#allocation4 + $0x48] sm:$0xff] }
 0xf9a   :  { %6975 = vmatprep.subr.mxu1 %v6157_v47  ;;  %7021 = vmatpush1.msra.mxu0 %v6598_v27  ;;  %v6095_v63 = vmul.f32 %v13768_v45, %v6065_v57  ;;  %v6501_v26 = vsel %vm2175_vm11, %v15690_v23, %v13581_v9  ;;  %v6152_v7 = vmul.f32 %v13756_v32, %v6122_v42  ;;  %v13866_v36 = vpop.permute.xlu1 %8073  ;;  %v15693_v32 = vld [vmem:[#allocation58_spill] sm:$0xff]  ;;  %v6908_v23 = vpop.f32.mrf.mxu1 }
 0xf9b   :  { %v6094_v2 = vmul.f32 %v13765_v21, %v6059_v35  ;;  %6976 = vmatpush2.msra.mxu1 %v6156_v49  ;;  %7022 = vmatprep.subr.mxu0 %v6595_v54  ;;  %v6506_v3 = vsel %vm2175_vm11, %v13616_v55, %v15691_v20  ;;  %15692 = vst [vmem:[#allocation60_spill] sm:$0xff] %v13866_v36  ;;  %v6055_v41 = vpop.permute.xlu0 %6054  ;;  %v9185_v35 = vld [vmem:[#allocation4 + $0x58] sm:$0xff] }
 0xf9c   :  { %6977 = vmatprep.subr.mxu1 %v6153_v22  ;;  %6835 = vmatprep.mubr.f32.mxu0 %v6613_v25  ;;  %v6537_v27 = vmul.f32 %v13746_v33, %v6507_v38  ;;  %v8166_v9 = vrot.slane %v8978_v39, %v9430_v12  ;;  %v6500_v52 = vsel %vm2175_vm11, %v15693_v32, %v13616_v55  ;;  %v8977_v55 = vld [vmem:[%s15126_s3 + $0x7] ss:$8 sm:$0xf]  ;;  %vm15694_vm11 = vcmp.lt.s32.totalorder %v9422_v11, 111 }
 0xf9d   :  { %6978 = vmatpush2.msra.mxu1 %v6152_v7  ;;  %7023 = vmatpush1.msra.mxu0 %v6594_v40  ;;  %v6058_v62 = vsel %vm2239_vm2, %v15675_v50, %v6055_v41  ;;  %v6064_v34 = vsel %vm2239_vm2, %v6055_v41, %v15678_v43  ;;  %v6536_v15 = vmul.f32 %v13738_v58, %v6501_v26  ;;  %vm15695_vm2 = vmmov %vm15694_vm11 }
 0xf9e   :  { %6836 = vmatmul.mubr.f32.gmra.mxu0 %v6612_v46  ;;  %6979 = vmatprep.subr.mxu1 %v6095_v63  ;;  %v6090_v19 = vmul.f32 %v13765_v21, %v6058_v62  ;;  %v6091_v30 = vmul.f32 %v13768_v45, %v6064_v34  ;;  %v8152_v50 = vsel %vm15694_vm11, %v13651_v51, %v13691_v17  ;;  %v15696_v45 = vmov 0.0   ;;  %vm15697_vm13 = vmmov %vm15695_vm2  ;;  %v13905_v24 = vpop.permute.xlu1 %8079 }
 0xf9f   :  { %v8162_v6 = vrot.slane %v8978_v39, %v9432_v13  ;;  %7024 = vmatprep.subr.mxu0 %v6537_v27  ;;  %6980 = vmatpush2.msra.mxu1 %v6094_v2  ;;  %v6533_v43 = vmul.f32 %v13746_v33, %v6506_v3  ;;  %v6532_v59 = vmul.f32 %v13738_v58, %v6500_v52  ;;  %v8138_v61 = vpop.permute.xlu0 %8137  ;;  %vm15698_vm9 = vmmov %vm15695_vm2  ;;  %v6910_v2 = vpop.f32.mrf.mxu1 }
 0xfa0   :  { %v8154_v21 = vsel %vm15695_vm2, %v13718_v14, %v13651_v51  ;;  %7025 = vmatpush1.msra.mxu0 %v6536_v15  ;;  %7060 = vmatprep.mubr.f32.mxu0 %v15696_v45  ;;  %v8151_v8 = vsel %vm15697_vm13, %v8138_v61, %v13758_v1  ;;  %v8153_v33 = vsel %vm15698_vm9, %v13811_v48, %v8138_v61  ;;  %vm15744_vm2 = vcmp.lt.s32.totalorder %v9422_v11, 127 }
 0xfa1   :  { %7026 = vmatprep.subr.mxu0 %v6533_v43  ;;  %6981 = vmatprep.subr.mxu1 %v6091_v30  ;;  %v8100_v58 = vrot.slane %v8977_v55, %v9432_v13  ;;  %15699 = vst [vmem:[#allocation33_spill] sm:$0xff] %v13905_v24  ;;  %v8184_v51 = vmul.f32 %v8166_v9, %v8152_v50  ;;  %vm15745_vm13 = vmmov %vm15744_vm2  ;;  %vm15746_vm9 = vcmp.lt.s32.totalorder %v9422_v11, 15 }
 0xfa2   :  { %7027 = vmatpush1.msra.mxu0 %v6532_v59  ;;  %6982 = vmatpush2.msra.mxu1 %v6090_v19  ;;  %v8180_v10 = vmul.f32 %v8166_v9, %v8151_v8  ;;  %v8104_v56 = vrot.slane %v8977_v55, %v9430_v12  ;;  %v8183_v54 = vmul.f32 %v8162_v6, %v8154_v21 }
 0xfa3   :  { %8955 = vmatmul.mubr.msk.f32.vlgmr.msra.gmra.mxu0 %vm5171_vm10, %v9184_v53  ;;  %v8179_v38 = vmul.f32 %v8162_v6, %v8153_v33  ;;  %6984 = vmatmul.mubr.f32.vlgmr.msra.gmra.mxu1 %v13820_v37  ;;  %v8078_v42 = vpop.permute.xlu0 %8077  ;;  %v13918_v37 = vpop.permute.xlu1 %8071 }
 0xfa4   :  { %8453 = vmatprep.subr.mxu1 %v8184_v51  ;;  %6989 = vmatprep.mubr.f32.mxu1 %v6613_v25  ;;  %v8090_v47 = vsel %vm15700_vm1, %v8078_v42, %v13832_v16  ;;  %v8092_v5 = vsel %vm15701_vm3, %v13866_v36, %v8078_v42  ;;  %15702 = vst [vmem:[#allocation64_spill] sm:$0xff] %v13918_v37  ;;  %vm15747_vm1 = vcmp.lt.s32.totalorder %v9422_v11, 1 }
 0xfa5   :  { %8454 = vmatpush1.msra.mxu1 %v8183_v54  ;;  %7066 = vmatprep.mubr.f32.mxu0 %v15696_v45  ;;  %v8121_v39 = vmul.f32 %v8100_v58, %v8092_v5  ;;  %v8122_v49 = vmul.f32 %v8104_v56, %v8090_v47  ;;  %vm15748_vm3 = vmmov %vm15747_vm1 }
 0xfa6   :  { %8455 = vmatprep.subr.mxu1 %v8180_v10 }
 0xfa7   :  { %8456 = vmatpush1.msra.mxu1 %v8179_v38  ;;  %8956 = vmatmul.mubr.msk.f32.gmra.mxu0 %vm5171_vm10, %v9185_v35  ;;  %v8076_v57 = vpop.permute.xlu0 %8075 }
 0xfa8   :  { %6990 = vmatmul.mubr.f32.gmra.mxu1 %v6612_v46  ;;  %8457 = vmatprep.subr.mxu1 %v8122_v49  ;;  %v8089_v25 = vsel %vm15703_vm5, %v8076_v57, %v13905_v24  ;;  %v8091_v40 = vsel %vm15704_vm14, %v13918_v37, %v8076_v57  ;;  %v6914_v46 = vpop.f32.mrf.mxu1  ;;  %vm15753_vm5 = vmmov %vm15746_vm9 }
 0xfa9   :  { %8458 = vmatpush1.msra.mxu1 %v8121_v39  ;;  %8493 = vmatprep.mubr.f32.mxu1 %v15696_v45  ;;  %v8117_v22 = vmul.f32 %v8100_v58, %v8091_v40  ;;  %v8118_v63 = vmul.f32 %v8104_v56, %v8089_v25  ;;  %vm15755_vm14 = vmmov %vm15753_vm5 }
 0xfaa   :  { %v6916_v9 = vpop.f32.mrf.mxu1 }
 0xfab   :  { %8459 = vmatprep.subr.mxu1 %v8118_v63 }
 0xfac   :  { %8460 = vmatpush1.msra.mxu1 %v8117_v22 }
0x1058   :  { %v6831_v26 = vpop.f32.mrf.mxu0 }
0x1059   :  { %v13929_v27 = vadd.f32 %v6908_v23, %v6831_v26  ;;  %v15705_v23 = vld [vmem:[#allocation21_spill] sm:$0xff]  ;;  %v15706_v26 = vld [vmem:[#allocation15_spill] sm:$0xff] }
0x105a   :  { %v6833_v7 = vpop.f32.mrf.mxu0 }
0x105b   :  { %v13927_v20 = vadd.f32 %v6910_v2, %v6833_v7  ;;  %v7073_v15 = vmul.f32 %v13929_v27, %v13929_v27  ;;  %v13975_v7 = vpop.permute.xlu0 %8019  ;;  %v13977_v2 = vpop.permute.xlu1 %8015 }
0x105d   :  { %v7074_v32 = vmul.f32 %v13927_v20, %v13927_v20  ;;  %v7081_v19 = vadd.f32 %v13927_v20, %v13929_v27 }
0x105e   :  { %v6837_v3 = vpop.f32.mrf.mxu0 }
0x105f   :  { %v13933_v52 = vadd.f32 %v6914_v46, %v6837_v3  ;;  %v7091_v43 = vadd.f32 %v7074_v32, %v7073_v15  ;;  %v13979_v46 = vpop.permute.xlu0 %8017  ;;  %v13981_v3 = vpop.permute.xlu1 %8011 }
0x1060   :  { %v6839_v41 = vpop.f32.mrf.mxu0  ;;  %15707 = vst [vmem:[#allocation80_spill] sm:$0xff] %v13979_v46  ;;  %15708 = vst [vmem:[#allocation55_spill] sm:$0xff] %v13981_v3 }
0x1061   :  { %v13939_v30 = vadd.f32 %v6916_v9, %v6839_v41  ;;  %v7077_v8 = vmul.f32 %v13933_v52, %v13933_v52 }
0x1063   :  { %v7062_v62 = vpop.f32.mrf.mxu0  ;;  %v6985_v34 = vpop.f32.mrf.mxu1  ;;  %v7078_v58 = vmul.f32 %v13939_v30, %v13939_v30  ;;  %v7086_v53 = vadd.f32 %v13939_v30, %v13933_v52 }
0x1064   :  { %v13941_v55 = vadd.f32 %v7062_v62, %v6985_v34  ;;  %v13983_v41 = vpop.permute.xlu0 %7957  ;;  %v13985_v9 = vpop.permute.xlu1 %8013 }
0x1065   :  { %v7064_v50 = vpop.f32.mrf.mxu0  ;;  %v6987_v6 = vpop.f32.mrf.mxu1  ;;  %v7096_v57 = vadd.f32 %v7078_v58, %v7077_v8  ;;  %15709 = vst [vmem:[#allocation57_spill] sm:$0xff] %v13983_v41  ;;  %15710 = vst [vmem:[#allocation37_spill] sm:$0xff] %v13985_v9 }
0x1066   :  { %v7075_v59 = vmul.f32 %v13941_v55, %v13941_v55  ;;  %v7082_v21 = vadd.f32 %v7081_v19, %v13941_v55  ;;  %v13946_v61 = vadd.f32 %v7064_v50, %v6987_v6 }
0x1067   :  { %v7068_v33 = vpop.f32.mrf.mxu0 }
0x1068   :  { %v7076_v51 = vmul.f32 %v13946_v61, %v13946_v61  ;;  %v6991_v10 = vpop.f32.mrf.mxu1  ;;  %v7083_v56 = vadd.f32 %v7082_v21, %v13946_v61  ;;  %v7092_v54 = vadd.f32 %v7091_v43, %v7075_v59  ;;  %v13987_v32 = vpop.permute.xlu0 %7955 }
0x1069   :  { %v13957_v38 = vadd.f32 %v7068_v33, %v6991_v10  ;;  %v7070_v42 = vpop.f32.mrf.mxu0  ;;  %15711 = vst [vmem:[#allocation68_spill] sm:$0xff] %v13987_v32  ;;  %v13989_v62 = vpop.permute.xlu1 %8009 }
0x106a   :  { %v6993_v47 = vpop.f32.mrf.mxu1  ;;  %7084 = vadd.xlane.f32.xlu1 %v7083_v56  ;;  %v7093_v5 = vadd.f32 %v7092_v54, %v7076_v51  ;;  %15712 = vst [vmem:[#allocation56_spill] sm:$0xff] %v13989_v62 }
0x106b   :  { %v7079_v39 = vmul.f32 %v13957_v38, %v13957_v38  ;;  %v7087_v49 = vadd.f32 %v7086_v53, %v13957_v38  ;;  %v13962_v35 = vadd.f32 %v7070_v42, %v6993_v47 }
0x106c   :  { %7094 = vadd.xlane.f32.xlu0 %v7093_v5  ;;  %v13991_v34 = vpop.permute.xlu0 %8023 }
0x106d   :  { %v7080_v25 = vmul.f32 %v13962_v35, %v13962_v35  ;;  %v7088_v40 = vadd.f32 %v7087_v49, %v13962_v35  ;;  %v7097_v22 = vadd.f32 %v7096_v57, %v7079_v39  ;;  %15713 = vst [vmem:[#allocation36_spill] sm:$0xff] %v13991_v34  ;;  %v13993_v15 = vpop.permute.xlu1 %7953 }
0x106e   :  { %15714 = vst [vmem:[#allocation42_spill] sm:$0xff] %v13993_v15 }
0x106f   :  { %v7098_v63 = vadd.f32 %v7097_v22, %v7080_v25 }
0x1070   :  { %7089 = vadd.xlane.f32.xlu0 %v7088_v40  ;;  %v13995_v19 = vpop.permute.xlu0 %7879 }
0x1071   :  { %15715 = vst [vmem:[#allocation46_spill] sm:$0xff] %v13995_v19  ;;  %v13997_v50 = vpop.permute.xlu1 %7949 }
0x1072   :  { %15716 = vst [vmem:[#allocation83_spill] sm:$0xff] %v13997_v50 }
0x1074   :  { %7099 = vadd.xlane.f32.xlu0 %v7098_v63  ;;  %v13999_v6 = vpop.permute.xlu0 %7961 }
0x1075   :  { %15717 = vst [vmem:[#allocation75_spill] sm:$0xff] %v13999_v6  ;;  %v14001_v43 = vpop.permute.xlu1 %7951 }
0x1076   :  { %15718 = vst [vmem:[#allocation82_spill] sm:$0xff] %v14001_v43 }
0x1078   :  { %v14003_v59 = vpop.permute.xlu0 %7877 }
0x1079   :  { %15719 = vst [vmem:[#allocation74_spill] sm:$0xff] %v14003_v59  ;;  %v14005_v21 = vpop.permute.xlu1 %7947 }
0x107a   :  { %15720 = vst [vmem:[#allocation78_spill] sm:$0xff] %v14005_v21 }
0x107b   :  { %7767 = vrot.lane.b32.xlu1 %v15705_v23, %s9220_s15 }
0x107c   :  { %v14007_v8 = vpop.permute.xlu0 %7959 }
0x107d   :  { %15721 = vst [vmem:[#allocation31_spill] sm:$0xff] %v14007_v8  ;;  %v14009_v33 = vpop.permute.xlu1 %8021  ;;  %v8201_v8 = vld [vmem:[#allocation4 + $0x88] sm:$0xff] }
0x107e   :  { %15722 = vst [vmem:[#allocation28_spill] sm:$0xff] %v14009_v33 }
0x107f   :  { %7757 = vrot.lane.b32.xlu1 %v15706_v26, %s9220_s15 }
0x1080   :  { %v14011_v58 = vpop.permute.xlu0 %7817 }
0x1081   :  { %15723 = vst [vmem:[#allocation30_spill] sm:$0xff] %v14011_v58  ;;  %v14013_v51 = vpop.permute.xlu1 %7883 }
0x1082   :  { %15724 = vst [vmem:[#allocation34_spill] sm:$0xff] %v14013_v51 }
0x1083   :  { %7765 = vrot.lane.b32.xlu1 %v15573_v4, %s9220_s15 }
0x1084   :  { %v14015_v10 = vpop.permute.xlu0 %7829 }
0x1085   :  { %15725 = vst [vmem:[#allocation84_spill] sm:$0xff] %v14015_v10  ;;  %v14017_v56 = vpop.permute.xlu1 %7891 }
0x1086   :  { %15726 = vst [vmem:[#allocation24_spill] sm:$0xff] %v14017_v56 }
0x1087   :  { %7697 = vrot.lane.b32.xlu1 %v15556_v0, %s9221_s16 }
0x1088   :  { %v14019_v54 = vpop.permute.xlu0 %7819 }
0x1089   :  { %15727 = vst [vmem:[#allocation49_spill] sm:$0xff] %v14019_v54  ;;  %v14021_v53 = vpop.permute.xlu1 %7881 }
0x108a   :  { %15728 = vst [vmem:[#allocation25_spill] sm:$0xff] %v14021_v53 }
0x108c   :  { %v14023_v42 = vpop.permute.xlu0 %7755 }
0x108d   :  { %15729 = vst [vmem:[#allocation40_spill] sm:$0xff] %v14023_v42  ;;  %v14025_v47 = vpop.permute.xlu1 %7889 }
0x108e   :  { %15730 = vst [vmem:[#allocation48_spill] sm:$0xff] %v14025_v47 }
0x1090   :  { %v14027_v5 = vpop.permute.xlu0 %7887 }
0x1091   :  { %15731 = vst [vmem:[#allocation38_spill] sm:$0xff] %v14027_v5  ;;  %v14029_v39 = vpop.permute.xlu1 %7821 }
0x1092   :  { %15732 = vst [vmem:[#allocation53_spill] sm:$0xff] %v14029_v39 }
0x1094   :  { %v14031_v49 = vpop.permute.xlu0 %7753 }
0x1095   :  { %15733 = vst [vmem:[#allocation41_spill] sm:$0xff] %v14031_v49  ;;  %v14033_v57 = vpop.permute.xlu1 %7815 }
0x1096   :  { %15734 = vst [vmem:[#allocation52_spill] sm:$0xff] %v14033_v57 }
0x1098   :  { %v14035_v25 = vpop.permute.xlu0 %7885 }
0x1099   :  { %15735 = vst [vmem:[#allocation39_spill] sm:$0xff] %v14035_v25  ;;  %v14037_v40 = vpop.permute.xlu1 %7827 }
0x109a   :  { %15736 = vst [vmem:[#allocation44_spill] sm:$0xff] %v14037_v40 }
0x109c   :  { %v14039_v22 = vpop.permute.xlu0 %7693 }
0x109d   :  { %15737 = vst [vmem:[#allocation79_spill] sm:$0xff] %v14039_v22  ;;  %v14041_v63 = vpop.permute.xlu1 %7759 }
0x109e   :  { %15738 = vst [vmem:[#allocation45_spill] sm:$0xff] %v14041_v63 }
0x10a0   :  { %v14043_v24 = vpop.permute.xlu0 %7825 }
0x10a1   :  { %15739 = vst [vmem:[#allocation47_spill] sm:$0xff] %v14043_v24 }
0x10f3   :  { %v7085_v37 = vpop.xlane.xlu1 %7084 }
0x10f4   :  { %v7101_v16 = vmul.f32 0.001953125, %v7085_v37 }
0x10f5   :  { %v7095_v36 = vpop.xlane.xlu0 %7094 }
0x10f6   :  { %v7105_v1 = vmul.f32 %v7101_v16, %v7101_v16  ;;  %v7103_v48 = vmul.f32 0.001953125, %v7095_v36  ;;  %v7111_v5 = vsub.f32 %v13929_v27, %v7101_v16  ;;  %v7112_v25 = vsub.f32 %v13927_v20, %v7101_v16 }
0x10f7   :  { %v7113_v42 = vsub.f32 %v13941_v55, %v7101_v16  ;;  %v7114_v36 = vsub.f32 %v13946_v61, %v7101_v16 }
0x10f8   :  { %v7107_v14 = vsub.f32 %v7103_v48, %v7105_v1 }
0x10f9   :  { %v7090_v24 = vpop.xlane.xlu0 %7089 }
0x10fa   :  { %v7109_v17 = vmax.f32 %v7107_v14, 0.0  ;;  %v14049_v20 = vmul.f32 0.001953125, %v7090_v24 }
0x10fc   :  { %v7119_v49 = vadd.f32 1e-05, %v7109_v17 }
0x10fd   :  { %v7100_v27 = vpop.xlane.xlu0 %7099 }
0x10fe   :  { %9138 = vrsqrt.f32 %v7119_v49  ;;  %v7104_v55 = vmul.f32 0.001953125, %v7100_v27 }
0x110b   :  { %v9139_v22 = vpop.eup %9138 }
0x110c   :  { %v7125_v40 = vmul.f32 %v9139_v22, %v7113_v42  ;;  %v7124_v63 = vmul.f32 %v9139_v22, %v7112_v25  ;;  %v7123_v57 = vmul.f32 %v9139_v22, %v7111_v5  ;;  %v7126_v48 = vmul.f32 %v9139_v22, %v7114_v36 }
0x110d   :  { %v7106_v5 = vmul.f32 %v14049_v20, %v14049_v20 }
0x110e   :  { %v7141_v54 = vmin.f32 %v7125_v40, 0.0  ;;  %v7140_v37 = vmin.f32 %v7124_v63, 0.0  ;;  %v7139_v10 = vmin.f32 %v7123_v57, 0.0  ;;  %v7142_v42 = vmin.f32 %v7126_v48, 0.0 }
0x110f   :  { %v7108_v49 = vsub.f32 %v7104_v55, %v7106_v5  ;;  %vm7133_vm15 = vcmp.gt.f32.partialorder %v7125_v40, 0.0  ;;  %vm7132_vm7 = vcmp.gt.f32.partialorder %v7124_v63, 0.0  ;;  %vm7131_vm6 = vcmp.gt.f32.partialorder %v7123_v57, 0.0 }
0x1110   :  { %v7151_v1 = vmul.f32 1.442695, %v7141_v54  ;;  %v7149_v14 = vmul.f32 1.442695, %v7140_v37  ;;  %v7147_v17 = vmul.f32 1.442695, %v7139_v10  ;;  %v7117_v55 = vsub.f32 %v13957_v38, %v14049_v20 }
0x1111   :  { %v7153_v25 = vmul.f32 1.442695, %v7142_v42  ;;  %v7110_v58 = vmax.f32 %v7108_v49, 0.0  ;;  %vm7134_vm4 = vcmp.gt.f32.partialorder %v7126_v48, 0.0  ;;  %v7115_v49 = vsub.f32 %v13933_v52, %v14049_v20 }
0x1112   :  { %9140 = vpow2.f32 %v7151_v1  ;;  %v7118_v52 = vsub.f32 %v13962_v35, %v14049_v20 }
0x1113   :  { %9142 = vpow2.f32 %v7149_v14  ;;  %v7120_v37 = vadd.f32 1e-05, %v7110_v58 }
0x1114   :  { %9144 = vpow2.f32 %v7147_v17  ;;  %v7116_v17 = vsub.f32 %v13939_v30, %v14049_v20 }
0x1115   :  { %9146 = vpow2.f32 %v7153_v25 }
0x1116   :  { %9148 = vrsqrt.f32 %v7120_v37 }
0x111f   :  { %v9141_v16 = vpop.eup %9140 }
0x1120   :  { %v9143_v61 = vpop.eup %9142  ;;  %v8959_v54 = vadd.f32 -1.0, %v9141_v16 }
0x1121   :  { %v9145_v10 = vpop.eup %9144  ;;  %v8958_v22 = vadd.f32 -1.0, %v9143_v61 }
0x1122   :  { %v14053_v36 = vsel %vm7133_vm15, %v7125_v40, %v8959_v54  ;;  %v8957_v1 = vadd.f32 -1.0, %v9145_v10  ;;  %v9147_v58 = vpop.eup %9146  ;;  %vm15757_vm15 = vcmp.lt.s32.totalorder %v9422_v11, 16 }
0x1123   :  { %7575 = vrot.lane.b32.xlu1 %v14053_v36, %s9215_s26  ;;  %v14057_v24 = vsel %vm7132_vm7, %v7124_v63, %v8958_v22  ;;  %v8960_v40 = vadd.f32 -1.0, %v9147_v58  ;;  %v9149_v63 = vpop.eup %9148  ;;  %vm15759_vm7 = vmmov %vm15757_vm15 }
0x1124   :  { %7571 = vrot.lane.b32.xlu0 %v14057_v24, %s9215_s26  ;;  %v14063_v14 = vsel %vm7131_vm6, %v7123_v57, %v8957_v1  ;;  %v7128_v27 = vmul.f32 %v9149_v63, %v7116_v17  ;;  %v7129_v42 = vmul.f32 %v9149_v63, %v7117_v55  ;;  %v7127_v25 = vmul.f32 %v9149_v63, %v7115_v49 }
0x1125   :  { %v14075_v57 = vsel %vm7134_vm4, %v7126_v48, %v8960_v40  ;;  %v7130_v54 = vmul.f32 %v9149_v63, %v7118_v52  ;;  %vm15761_vm6 = vcmp.lt.s32.totalorder %v9422_v11, 17 }
0x1126   :  { %v7144_v48 = vmin.f32 %v7128_v27, 0.0  ;;  %v7145_v5 = vmin.f32 %v7129_v42, 0.0  ;;  %v7143_v16 = vmin.f32 %v7127_v25, 0.0  ;;  %vm7136_vm12 = vcmp.gt.f32.partialorder %v7128_v27, 0.0  ;;  %vm15763_vm4 = vmmov %vm15761_vm6 }
0x1127   :  { %7513 = vrot.lane.b32.xlu1 %v14053_v36, %s9216_s8  ;;  %v7146_v10 = vmin.f32 %v7130_v54, 0.0  ;;  %vm7137_vm8 = vcmp.gt.f32.partialorder %v7129_v42, 0.0  ;;  %vm7135_vm0 = vcmp.gt.f32.partialorder %v7127_v25, 0.0  ;;  %vm7138_vm11 = vcmp.gt.f32.partialorder %v7130_v54, 0.0 }
0x1128   :  { %7567 = vrot.lane.b32.xlu0 %v14063_v14, %s9215_s26  ;;  %v7157_v30 = vmul.f32 1.442695, %v7144_v48  ;;  %v7159_v38 = vmul.f32 1.442695, %v7145_v5  ;;  %v7155_v61 = vmul.f32 1.442695, %v7143_v16  ;;  %v14171_v5 = vpop.permute.xlu1 %7767 }
0x1129   :  { %v7161_v20 = vmul.f32 1.442695, %v7146_v10  ;;  %15740 = vst [vmem:[#allocation76_spill] sm:$0xff] %v14171_v5 }
0x112a   :  { %9150 = vpow2.f32 %v7157_v30  ;;  %v8198_v30 = vld [vmem:[#allocation4 + $0x70] sm:$0xff] }
0x112b   :  { %7451 = vrot.lane.b32.xlu1 %v14053_v36, %s9217_s13  ;;  %9152 = vpow2.f32 %v7159_v38  ;;  %8979 = vmatmul.mubr.msk.f32.vlgmr.msra.gmra.mxu1 %vm5171_vm10, %v8198_v30 }
0x112c   :  { %7509 = vrot.lane.b32.xlu0 %v14057_v24, %s9216_s8  ;;  %9154 = vpow2.f32 %v7155_v61  ;;  %8499 = vmatprep.mubr.f32.mxu1 %v15696_v45  ;;  %v14181_v49 = vpop.permute.xlu1 %7757 }
0x112d   :  { %9156 = vpow2.f32 %v7161_v20  ;;  %15741 = vst [vmem:[#allocation32_spill] sm:$0xff] %v14181_v49 }
0x112f   :  { %7443 = vrot.lane.b32.xlu1 %v14063_v14, %s9217_s13  ;;  %8980 = vmatmul.mubr.msk.f32.gmra.mxu1 %vm5171_vm10, %v8201_v8 }
0x1130   :  { %7505 = vrot.lane.b32.xlu0 %v14063_v14, %s9216_s8  ;;  %v14187_v38 = vpop.permute.xlu1 %7765 }
0x1131   :  { %15742 = vst [vmem:[#allocation85_spill] sm:$0xff] %v14187_v38  ;;  %v8197_v38 = vld [vmem:[#allocation4 + $0x68] sm:$0xff] }
0x1132   :  { %8416 = vmatprep.mubr.f32.mxu0 %v8197_v38  ;;  %8570 = vmatprep.mubr.f32.mxu1 %v8197_v38 }
0x1133   :  { %7517 = vrot.lane.b32.xlu1 %v14075_v57, %s9216_s8 }
0x1134   :  { %7447 = vrot.lane.b32.xlu0 %v14057_v24, %s9217_s13 }
0x1137   :  { %7377 = vrot.lane.b32.xlu1 %v14057_v24, %s9218_s0  ;;  %v9151_v22 = vpop.eup %9150 }
0x1138   :  { %7579 = vrot.lane.b32.xlu0 %v14075_v57, %s9215_s26  ;;  %v8962_v35 = vadd.f32 -1.0, %v9151_v22  ;;  %v9153_v37 = vpop.eup %9152 }
0x1139   :  { %v8963_v58 = vadd.f32 -1.0, %v9153_v37  ;;  %v9155_v63 = vpop.eup %9154 }
0x113a   :  { %v14121_v1 = vsel %vm7136_vm12, %v7128_v27, %v8962_v35  ;;  %v8961_v17 = vadd.f32 -1.0, %v9155_v63  ;;  %v9157_v55 = vpop.eup %9156  ;;  %vm15765_vm12 = vcmp.lt.s32.totalorder %v9422_v11, 112 }
0x113b   :  { %7385 = vrot.lane.b32.xlu1 %v14075_v57, %s9218_s0  ;;  %v14127_v40 = vsel %vm7137_vm8, %v7129_v42, %v8963_v58  ;;  %v8964_v48 = vadd.f32 -1.0, %v9157_v55  ;;  %vm15766_vm8 = vmmov %vm15765_vm12 }
0x113c   :  { %7373 = vrot.lane.b32.xlu0 %v14063_v14, %s9218_s0  ;;  %v14137_v27 = vsel %vm7135_vm0, %v7127_v25, %v8961_v17  ;;  %v14197_v25 = vpop.permute.xlu1 %7697  ;;  %vm15767_vm0 = vmmov %vm15766_vm8 }
0x113d   :  { %v14147_v42 = vsel %vm7138_vm11, %v7130_v54, %v8964_v48  ;;  %15743 = vst [vmem:[#allocation35_spill] sm:$0xff] %v14197_v25  ;;  %vm15768_vm11 = vmmov %vm15767_vm0 }
0x113f   :  { %7311 = vrot.lane.b32.xlu1 %v14063_v14, %s9219_s14 }
0x1140   :  { %7455 = vrot.lane.b32.xlu0 %v14075_v57, %s9217_s13 }
0x1143   :  { %7323 = vrot.lane.b32.xlu1 %v14075_v57, %s9219_s14 }
0x1144   :  { %7315 = vrot.lane.b32.xlu0 %v14057_v24, %s9219_s14 }
0x1147   :  { %7253 = vrot.lane.b32.xlu1 %v14057_v24, %s9220_s15 }
0x1148   :  { %7249 = vrot.lane.b32.xlu0 %v14063_v14, %s9220_s15 }
0x114b   :  { %7261 = vrot.lane.b32.xlu1 %v14075_v57, %s9220_s15 }
0x114c   :  { %7381 = vrot.lane.b32.xlu0 %v14053_v36, %s9218_s0 }
0x114f   :  { %7191 = vrot.lane.b32.xlu1 %v14057_v24, %s9221_s16 }
0x1150   :  { %7187 = vrot.lane.b32.xlu0 %v14063_v14, %s9221_s16 }
0x1153   :  { %7199 = vrot.lane.b32.xlu1 %v14075_v57, %s9221_s16 }
0x1154   :  { %7319 = vrot.lane.b32.xlu0 %v14053_v36, %s9219_s14 }
0x1157   :  { %7573 = vrot.lane.b32.xlu1 %v14121_v1, %s9215_s26 }
0x1158   :  { %7257 = vrot.lane.b32.xlu0 %v14053_v36, %s9220_s15 }
0x115b   :  { %7515 = vrot.lane.b32.xlu1 %v14127_v40, %s9216_s8 }
0x115c   :  { %7195 = vrot.lane.b32.xlu0 %v14053_v36, %s9221_s16 }
0x115f   :  { %7453 = vrot.lane.b32.xlu1 %v14127_v40, %s9217_s13 }
0x1160   :  { %7577 = vrot.lane.b32.xlu0 %v14127_v40, %s9215_s26 }
0x1163   :  { %7445 = vrot.lane.b32.xlu1 %v14137_v27, %s9217_s13 }
0x1164   :  { %7569 = vrot.lane.b32.xlu0 %v14137_v27, %s9215_s26 }
0x1167   :  { %7379 = vrot.lane.b32.xlu1 %v14121_v1, %s9218_s0 }
0x1168   :  { %7511 = vrot.lane.b32.xlu0 %v14121_v1, %s9216_s8 }
0x116b   :  { %7387 = vrot.lane.b32.xlu1 %v14147_v42, %s9218_s0 }
0x116c   :  { %7507 = vrot.lane.b32.xlu0 %v14137_v27, %s9216_s8 }
0x116f   :  { %7317 = vrot.lane.b32.xlu1 %v14121_v1, %s9219_s14 }
0x1170   :  { %7449 = vrot.lane.b32.xlu0 %v14121_v1, %s9217_s13 }
0x1173   :  { %7255 = vrot.lane.b32.xlu1 %v14121_v1, %s9220_s15 }
0x1174   :  { %7581 = vrot.lane.b32.xlu0 %v14147_v42, %s9215_s26 }
0x1177   :  { %7263 = vrot.lane.b32.xlu1 %v14147_v42, %s9220_s15 }
0x1178   :  { %7519 = vrot.lane.b32.xlu0 %v14147_v42, %s9216_s8 }
0x117b   :  { %7193 = vrot.lane.b32.xlu1 %v14121_v1, %s9221_s16 }
0x117c   :  { %7375 = vrot.lane.b32.xlu0 %v14137_v27, %s9218_s0 }
0x117f   :  { %7201 = vrot.lane.b32.xlu1 %v14147_v42, %s9221_s16 }
0x1180   :  { %7457 = vrot.lane.b32.xlu0 %v14147_v42, %s9217_s13 }
0x1183   :  { %7705 = vrot.lane.b32.xlu1 %v15705_v23, %s9221_s16 }
0x1184   :  { %7313 = vrot.lane.b32.xlu0 %v14137_v27, %s9219_s14 }
0x1187   :  { %7695 = vrot.lane.b32.xlu1 %v15706_v26, %s9221_s16 }
0x1188   :  { %7325 = vrot.lane.b32.xlu0 %v14147_v42, %s9219_s14 }
0x118b   :  { %7703 = vrot.lane.b32.xlu1 %v15573_v4, %s9221_s16 }
0x118c   :  { %7251 = vrot.lane.b32.xlu0 %v14137_v27, %s9220_s15 }
0x118f   :  { %7637 = vrot.lane.b32.xlu1 %v14053_v36, %s9222_s17 }
0x1190   :  { %7383 = vrot.lane.b32.xlu0 %v14127_v40, %s9218_s0 }
0x1193   :  { %7629 = vrot.lane.b32.xlu1 %v14063_v14, %s9222_s17 }
0x1194   :  { %7189 = vrot.lane.b32.xlu0 %v14137_v27, %s9221_s16 }
0x1195   :  { %v14203_v16 = vpop.permute.xlu1 %7575 }
0x1196   :  { %v14205_v52 = vpop.permute.xlu0 %7571 }
0x1197   :  { %8147 = vrot.lane.b32.xlu1 %v15705_v23, %s9222_s17 }
0x1198   :  { %7321 = vrot.lane.b32.xlu0 %v14127_v40, %s9219_s14 }
0x1199   :  { %v14211_v61 = vpop.permute.xlu1 %7513 }
0x119a   :  { %v14213_v54 = vpop.permute.xlu0 %7567 }
0x119b   :  { %7639 = vrot.lane.b32.xlu1 %v14127_v40, %s9222_s17 }
0x119c   :  { %7691 = vrot.lane.b32.xlu0 %v15564_v60, %s9221_s16 }
0x119d   :  { %v14219_v10 = vpop.permute.xlu1 %7451 }
0x119e   :  { %v14221_v22 = vpop.permute.xlu0 %7509 }
0x119f   :  { %7631 = vrot.lane.b32.xlu1 %v14137_v27, %s9222_s17 }
0x11a0   :  { %7259 = vrot.lane.b32.xlu0 %v14127_v40, %s9220_s15 }
0x11a1   :  { %v14227_v35 = vpop.permute.xlu1 %7443 }
0x11a2   :  { %v14229_v20 = vpop.permute.xlu0 %7505 }
0x11a3   :  { %8145 = vrot.lane.b32.xlu1 %v15573_v4, %s9222_s17 }
0x11a4   :  { %7197 = vrot.lane.b32.xlu0 %v14127_v40, %s9221_s16 }
0x11a5   :  { %v14235_v37 = vpop.permute.xlu1 %7517 }
0x11a6   :  { %v14237_v58 = vpop.permute.xlu0 %7447 }
0x11a7   :  { %8085 = vrot.lane.b32.xlu1 %v15705_v23, %s9215_s26 }
0x11a8   :  { %7823 = vrot.lane.b32.xlu0 %v15561_v18, %s9219_s14 }
0x11a9   :  { %v14243_v63 = vpop.permute.xlu1 %7377 }
0x11aa   :  { %v14245_v17 = vpop.permute.xlu0 %7579 }
0x11ab   :  { %8083 = vrot.lane.b32.xlu1 %v15573_v4, %s9215_s26 }
0x11ac   :  { %7763 = vrot.lane.b32.xlu0 %v15607_v44, %s9220_s15 }
0x11ad   :  { %v14251_v55 = vpop.permute.xlu1 %7385 }
0x11ae   :  { %v14253_v48 = vpop.permute.xlu0 %7373 }
0x11b0   :  { %7633 = vrot.lane.b32.xlu0 %v14057_v24, %s9222_s17 }
0x11b1   :  { %v14257_v30 = vpop.permute.xlu1 %7311 }
0x11b2   :  { %v7456_v45 = vpop.permute.xlu0 %7455 }
0x11b3   :  { %v14262_v23 = vsel %vm15744_vm2, %v14219_v10, %v7456_v45  ;;  %v14267_v4 = vsel %vm15745_vm13, %v7456_v45, %v14227_v35  ;;  %vm15769_vm2 = vcmp.lt.s32.totalorder %v9422_v11, 113 }
0x11b4   :  { %7761 = vrot.lane.b32.xlu0 %v15561_v18, %s9220_s15  ;;  %vm15770_vm13 = vmmov %vm15769_vm2 }
0x11b5   :  { %v14271_v25 = vpop.permute.xlu1 %7323 }
0x11b6   :  { %v7316_v49 = vpop.permute.xlu0 %7315 }
0x11b7   :  { %v14276_v5 = vsel %vm15746_vm9, %v14257_v30, %v7316_v49  ;;  %vm15771_vm9 = vmmov %vm15769_vm2 }
0x11b8   :  { %7701 = vrot.lane.b32.xlu0 %v15607_v44, %s9221_s16 }
0x11b9   :  { %v14280_v39 = vpop.permute.xlu1 %7253 }
0x11ba   :  { %v14282_v45 = vpop.permute.xlu0 %7249 }
0x11bc   :  { %7635 = vrot.lane.b32.xlu0 %v14121_v1, %s9222_s17 }
0x11bd   :  { %v14287_v60 = vpop.permute.xlu1 %7261 }
0x11be   :  { %v7382_v47 = vpop.permute.xlu0 %7381 }
0x11bf   :  { %v14292_v26 = vsel %vm15747_vm1, %v7382_v47, %v14251_v55  ;;  %v14297_v44 = vsel %vm15748_vm3, %v14243_v63, %v7382_v47  ;;  %vm15772_vm1 = vmmov %vm15769_vm2  ;;  %vm15773_vm3 = vcmp.lt.s32.totalorder %v9422_v11, 127 }
0x11c0   :  { %15749 = vst [vmem:[#allocation89_spill] sm:$0xff] %v14297_v44  ;;  %7699 = vrot.lane.b32.xlu0 %v15561_v18, %s9221_s16 }
0x11c1   :  { %v14301_v31 = vpop.permute.xlu1 %7191 }
0x11c2   :  { %15750 = vst [vmem:[#allocation43_spill] sm:$0xff] %v14301_v31  ;;  %v14303_v8 = vpop.permute.xlu0 %7187 }
0x11c3   :  { %15751 = vst [vmem:[#allocation86_spill] sm:$0xff] %v14303_v8 }
0x11c4   :  { %7643 = vrot.lane.b32.xlu0 %v14147_v42, %s9222_s17 }
0x11c5   :  { %v14307_v38 = vpop.permute.xlu1 %7199 }
0x11c6   :  { %15752 = vst [vmem:[#allocation29_spill] sm:$0xff] %v14307_v38  ;;  %v7320_v59 = vpop.permute.xlu0 %7319 }
0x11c7   :  { %v14312_v53 = vsel %vm15753_vm5, %v7320_v59, %v14271_v25  ;;  %v14316_v47 = vsel %vm15755_vm14, %v7316_v49, %v7320_v59  ;;  %v8970_v59 = vld [vmem:[%s15126_s3 + $0x7] ss:$8 sm:$0xf]  ;;  %vm15774_vm5 = vmmov %vm15773_vm3 }
0x11c8   :  { %15754 = vst [vmem:[#allocation87_spill] sm:$0xff] %v14312_v53  ;;  %15756 = vst [vmem:[#allocation88_spill] sm:$0xff] %v14316_v47  ;;  %7641 = vrot.lane.b32.xlu0 %v14075_v57, %s9222_s17  ;;  %v7596_v53 = vrot.slane %v8970_v59, %v9432_v13  ;;  %v7608_v8 = vrot.slane %v8970_v59, %v9457_v29 }
0x11c9   :  { %v7574_v18 = vpop.permute.xlu1 %7573  ;;  %vm15775_vm14 = vmmov %vm15773_vm3 }
0x11ca   :  { %v7258_v0 = vpop.permute.xlu0 %7257 }
0x11cb   :  { %v14323_v56 = vsel %vm15757_vm15, %v7258_v0, %v14287_v60  ;;  %v14328_v33 = vsel %vm15759_vm7, %v14280_v39, %v7258_v0  ;;  %v7600_v0 = vrot.slane %v8970_v59, %v9430_v12  ;;  %vm15776_vm15 = vmmov %vm15773_vm3 }
0x11cc   :  { %15758 = vst [vmem:[#allocation27_spill] sm:$0xff] %v14323_v56  ;;  %15760 = vst [vmem:[#allocation26_spill] sm:$0xff] %v14328_v33 }
0x11cd   :  { %v14330_v19 = vpop.permute.xlu1 %7515  ;;  %vm15777_vm7 = vmmov %vm15767_vm0 }
0x11ce   :  { %v7196_v51 = vpop.permute.xlu0 %7195 }
0x11cf   :  { %v14338_v49 = vsel %vm15761_vm6, %v7196_v51, %v14307_v38  ;;  %v14343_v56 = vsel %vm15763_vm4, %v14301_v31, %v7196_v51  ;;  %v7461_v38 = vsel %vm15773_vm3, %v14237_v58, %v14219_v10  ;;  %vm15778_vm6 = vmmov %vm15767_vm0 }
0x11d0   :  { %15762 = vst [vmem:[#allocation50_spill] sm:$0xff] %v14338_v49  ;;  %15764 = vst [vmem:[#allocation54_spill] sm:$0xff] %v14343_v56  ;;  %v7585_v49 = vsel %vm15766_vm8, %v14205_v52, %v14203_v16  ;;  %v7587_v56 = vsel %vm15767_vm0, %v14213_v54, %v14205_v52 }
0x11d1   :  { %v14345_v6 = vpop.permute.xlu1 %7453  ;;  %v7614_v50 = vmul.f32 %v7600_v0, %v7585_v49  ;;  %v7613_v41 = vmul.f32 %v7596_v53, %v7587_v56  ;;  %vm15779_vm4 = vmmov %vm15767_vm0 }
0x11d2   :  { %v7578_v33 = vpop.permute.xlu0 %7577  ;;  %vm15781_vm8 = vmmov %vm15772_vm1 }
0x11d3   :  { %v7586_v21 = vsel %vm15765_vm12, %v7574_v18, %v7578_v33  ;;  %vm15780_vm12 = vmmov %vm15767_vm0 }
0x11d4   :  { %v7618_v34 = vmul.f32 %v7600_v0, %v7586_v21  ;;  %v8969_v21 = vld [vmem:[%s15126_s3 + $0x6] ss:$8 sm:$0xf]  ;;  %vm15782_vm0 = vmmov %vm15772_vm1 }
0x11d5   :  { %v14350_v47 = vpop.permute.xlu1 %7445 }
0x11d6   :  { %8352 = vmatprep.subr.mxu0 %v7618_v34  ;;  %v7570_v51 = vpop.permute.xlu0 %7569  ;;  %v7538_v34 = vrot.slane %v8969_v21, %v9430_v12 }
0x11d7   :  { %v7588_v43 = vsel %vm15768_vm11, %v7570_v51, %v7574_v18  ;;  %v7523_v18 = vsel %vm15770_vm13, %v14221_v22, %v14211_v61  ;;  %vm15783_vm11 = vmmov %vm15782_vm0  ;;  %vm15785_vm13 = vcmp.lt.s32.totalorder %v9422_v11, 1 }
0x11d8   :  { %v7617_v32 = vmul.f32 %v7596_v53, %v7588_v43  ;;  %v7534_v43 = vrot.slane %v8969_v21, %v9432_v13  ;;  %v7552_v49 = vmul.f32 %v7538_v34, %v7523_v18  ;;  %v7463_v18 = vsel %vm15776_vm15, %v14227_v35, %v14237_v58 }
0x11d9   :  { %v14366_v15 = vpop.permute.xlu1 %7379  ;;  %vm15790_vm15 = vcmp.lt.s32.totalorder %v9422_v11, 15 }
0x11da   :  { %8353 = vmatpush1.msra.mxu0 %v7617_v32  ;;  %v7512_v62 = vpop.permute.xlu0 %7511  ;;  %v7525_v32 = vsel %vm15771_vm9, %v14229_v20, %v14221_v22  ;;  %vm15786_vm9 = vmmov %vm15785_vm13 }
0x11db   :  { %v7524_v52 = vsel %vm15769_vm2, %v7512_v62, %v14330_v19  ;;  %8354 = vmatprep.subr.mxu0 %v7614_v50  ;;  %vm15784_vm2 = vmmov %vm15782_vm0 }
0x11dc   :  { %v7556_v9 = vmul.f32 %v7538_v34, %v7524_v52  ;;  %8355 = vmatpush1.msra.mxu0 %v7613_v41  ;;  %v14386_v41 = vld [vmem:[%s15126_s3 + $0x5] ss:$8 sm:$0xf]  ;;  %v7551_v52 = vmul.f32 %v7534_v43, %v7525_v32 }
0x11dd   :  { %v14372_v46 = vpop.permute.xlu1 %7387  ;;  %v7476_v3 = vrot.slane %v14386_v41, %v9430_v12 }
0x11de   :  { %8356 = vmatprep.subr.mxu0 %v7556_v9  ;;  %v7508_v56 = vpop.permute.xlu0 %7507  ;;  %v7472_v9 = vrot.slane %v14386_v41, %v9432_v13 }
0x11df   :  { %v7526_v50 = vsel %vm15772_vm1, %v7508_v56, %v7512_v62  ;;  %v7490_v10 = vmul.f32 %v7476_v3, %v7461_v38  ;;  %vm15787_vm1 = vmmov %vm15786_vm9 }
0x11e0   :  { %v7555_v53 = vmul.f32 %v7534_v43, %v7526_v50  ;;  %v7489_v44 = vmul.f32 %v7472_v9, %v7463_v18  ;;  %vm15788_vm3 = vmmov %vm15787_vm1 }
0x11e1   :  { %v14390_v0 = vpop.permute.xlu1 %7317 }
0x11e2   :  { %8357 = vmatpush1.msra.mxu0 %v7555_v53  ;;  %v7450_v22 = vpop.permute.xlu0 %7449  ;;  %v7604_v53 = vrot.slane %v8970_v59, %v9455_v28 }
0x11e3   :  { %v7462_v62 = vsel %vm15774_vm5, %v7450_v22, %v14345_v6  ;;  %v7464_v34 = vsel %vm15775_vm14, %v14350_v47, %v7450_v22  ;;  %8358 = vmatprep.subr.mxu0 %v7552_v49  ;;  %v7589_v49 = vsel %vm15777_vm7, %v14245_v17, %v14213_v54  ;;  %v7546_v54 = vrot.slane %v8969_v21, %v9457_v29  ;;  %vm15789_vm14 = vmmov %vm15774_vm5 }
0x11e4   :  { %v7493_v43 = vmul.f32 %v7472_v9, %v7464_v34  ;;  %v7494_v32 = vmul.f32 %v7476_v3, %v7462_v62  ;;  %8359 = vmatpush1.msra.mxu0 %v7551_v52  ;;  %v7583_v3 = vsel %vm15780_vm12, %v14203_v16, %v14245_v17  ;;  %v7542_v52 = vrot.slane %v8969_v21, %v9455_v28  ;;  %vm15791_vm7 = vmmov %vm15790_vm15 }
0x11e5   :  { %v14410_v50 = vpop.permute.xlu1 %7255  ;;  %v7615_v17 = vmul.f32 %v7604_v53, %v7583_v3  ;;  %v7395_v34 = vsel %vm15788_vm3, %v14251_v55, %v14253_v48 }
0x11e6   :  { %8360 = vmatprep.subr.mxu0 %v7494_v32  ;;  %v7582_v31 = vpop.permute.xlu0 %7581 }
0x11e7   :  { %v7584_v35 = vsel %vm15778_vm6, %v7578_v33, %v7582_v31  ;;  %v7590_v58 = vsel %vm15779_vm4, %v7582_v31, %v7570_v51  ;;  %8361 = vmatpush1.msra.mxu0 %v7493_v43  ;;  %v7527_v31 = vsel %vm15781_vm8, %v14235_v37, %v14229_v20  ;;  %v7616_v33 = vmul.f32 %v7608_v8, %v7589_v49  ;;  %v14438_v51 = vld [vmem:[%s15126_s3 + $0x3] ss:$8 sm:$0xf]  ;;  %vm15792_vm6 = vmmov %vm15791_vm7 }
0x11e8   :  { %v7619_v38 = vmul.f32 %v7604_v53, %v7584_v35  ;;  %v7620_v59 = vmul.f32 %v7608_v8, %v7590_v58  ;;  %8362 = vmatprep.subr.mxu0 %v7490_v10  ;;  %v7484_v10 = vrot.slane %v14386_v41, %v9457_v29  ;;  %v14479_v35 = vld [vmem:[%s15126_s3 + $0x2] ss:$8 sm:$0xf]  ;;  %vm15793_vm4 = vcmp.lt.s32.totalorder %v9422_v11, 16 }
0x11e9   :  { %8363 = vmatpush1.msra.mxu0 %v7489_v44  ;;  %v14427_v9 = vpop.permute.xlu1 %7263  ;;  %vm15794_vm12 = vmmov %vm15793_vm4 }
0x11ea   :  { %8364 = vmatprep.subr.mxu0 %v14121_v1  ;;  %8506 = vmatprep.subr.mxu1 %v7620_v59  ;;  %v7520_v16 = vpop.permute.xlu0 %7519  ;;  %v7521_v1 = vsel %vm15784_vm2, %v14211_v61, %v14235_v37  ;;  %v7344_v59 = vrot.slane %v14479_v35, %v9430_v12  ;;  %vm15795_vm8 = vmmov %vm15793_vm4 }
0x11eb   :  { %v7522_v44 = vsel %vm15782_vm0, %v14330_v19, %v7520_v16  ;;  %v7528_v21 = vsel %vm15783_vm11, %v7520_v16, %v7508_v56  ;;  %8365 = vmatpush1.msra.mxu0 %v14137_v27  ;;  %8507 = vmatpush1.msra.mxu1 %v7619_v38  ;;  %v7554_v19 = vmul.f32 %v7546_v54, %v7527_v31  ;;  %v14510_v16 = vld [vmem:[%s15126_s3 + $0x1] ss:$8 sm:$0xf]  ;;  %vm15796_vm0 = vmmov %vm15793_vm4 }
0x11ec   :  { %v7557_v20 = vmul.f32 %v7542_v52, %v7522_v44  ;;  %v7558_v8 = vmul.f32 %v7546_v54, %v7528_v21  ;;  %8366 = vmatprep.subr.mxu0 %v14057_v24  ;;  %8508 = vmatprep.subr.mxu1 %v7616_v33  ;;  %v7402_v56 = vrot.slane %v14438_v51, %v9432_v13  ;;  %vm15797_vm11 = vmmov %vm15787_vm1 }
0x11ed   :  { %8367 = vmatpush1.msra.mxu0 %v14063_v14  ;;  %8509 = vmatpush1.msra.mxu1 %v7615_v17  ;;  %v7406_v27 = vrot.slane %v14438_v51, %v9430_v12  ;;  %v14456_v22 = vpop.permute.xlu1 %7193  ;;  %v7553_v61 = vmul.f32 %v7542_v52, %v7521_v1  ;;  %v7393_v24 = vsel %vm15785_vm13, %v14253_v48, %v14243_v63  ;;  %vm15798_vm2 = vmmov %vm15787_vm1  ;;  %vm15799_vm13 = vcmp.lt.s32.totalorder %v9422_v11, 113 }
0x11ee   :  { %8510 = vmatprep.subr.mxu1 %v7558_v8  ;;  %v7376_v62 = vpop.permute.xlu0 %7375  ;;  %v7480_v63 = vrot.slane %v14386_v41, %v9455_v28  ;;  %v7419_v49 = vmul.f32 %v7402_v56, %v7395_v34  ;;  %v7492_v38 = vmul.f32 %v7484_v10, %v14267_v4  ;;  %v7340_v31 = vrot.slane %v14479_v35, %v9432_v13 }
0x11ef   :  { %v7394_v14 = vsel %vm15786_vm9, %v7376_v62, %v14366_v15  ;;  %v7396_v37 = vsel %vm15787_vm1, %v14372_v46, %v7376_v62  ;;  %8511 = vmatpush1.msra.mxu1 %v7557_v20  ;;  %v7420_v32 = vmul.f32 %v7406_v27, %v7393_v24  ;;  %v7282_v21 = vrot.slane %v14510_v16, %v9430_v12  ;;  %v8975_v20 = vld [vmem:[%s15126_s3 + $0x5] ss:$8 sm:$0xf] }
0x11f0   :  { %v7423_v18 = vmul.f32 %v7402_v56, %v7396_v37  ;;  %v7424_v43 = vmul.f32 %v7406_v27, %v7394_v14  ;;  %8512 = vmatprep.subr.mxu1 %v7554_v19  ;;  %v7278_v1 = vrot.slane %v14510_v16, %v9432_v13  ;;  %v7271_v8 = vsel %vm15796_vm0, %v14287_v60, %v14282_v45  ;;  %v8974_v60 = vld [vmem:[%s15126_s3 + $0x3] ss:$8 sm:$0xf] }
0x11f1   :  { %8513 = vmatpush1.msra.mxu1 %v7553_v61  ;;  %v14487_v58 = vpop.permute.xlu1 %7201  ;;  %v14549_v62 = vrot.slane %v8975_v20, %v9432_v13  ;;  %v7410_v37 = vrot.slane %v14438_v51, %v9455_v28  ;;  %v7414_v34 = vrot.slane %v14438_v51, %v9457_v29  ;;  %v14584_v51 = vrot.slane %v8975_v20, %v9455_v28 }
0x11f2   :  { %8368 = vmatprep.subr.mxu0 %v7424_v43  ;;  %v7458_v53 = vpop.permute.xlu0 %7457  ;;  %v7295_v43 = vmul.f32 %v7278_v1, %v7271_v8  ;;  %vm15803_vm9 = vcmp.lt.s32.totalorder %v9422_v11, 17  ;;  %v14642_v8 = vrot.slane %v8974_v60, %v9455_v28 }
0x11f3   :  { %v7460_v55 = vsel %vm15774_vm5, %v14345_v6, %v7458_v53  ;;  %v7466_v48 = vsel %vm15789_vm14, %v7458_v53, %v14350_v47  ;;  %8369 = vmatpush1.msra.mxu0 %v7423_v18  ;;  %v7491_v6 = vmul.f32 %v7480_v63, %v14262_v23  ;;  %v7333_v23 = vsel %vm15791_vm7, %v14271_v25, %v14257_v30  ;;  %v8976_v25 = vld [vmem:[%s15126_s3 + $0x6] ss:$8 sm:$0xf]  ;;  %vm15804_vm1 = vmmov %vm15803_vm9 }
0x11f4   :  { %v7495_v41 = vmul.f32 %v7480_v63, %v7460_v55  ;;  %v7496_v3 = vmul.f32 %v7484_v10, %v7466_v48  ;;  %8370 = vmatprep.subr.mxu0 %v7420_v32  ;;  %v7357_v30 = vmul.f32 %v7340_v31, %v7333_v23  ;;  %v14546_v27 = vrot.slane %v8976_v25, %v9432_v13  ;;  %v14572_v32 = vld [vmem:[%s15126_s3] ss:$8 sm:$0xf]  ;;  %vm15805_vm3 = vmmov %vm15804_vm1 }
0x11f5   :  { %8371 = vmatpush1.msra.mxu0 %v7419_v49  ;;  %v14498_v33 = vpop.permute.xlu1 %7705  ;;  %v14552_v61 = vrot.slane %v8976_v25, %v9430_v12  ;;  %v14555_v24 = vrot.slane %v8976_v25, %v9455_v28  ;;  %v14581_v53 = vrot.slane %v8975_v20, %v9430_v12  ;;  %v14587_v48 = vrot.slane %v8976_v25, %v9457_v29  ;;  %v15800_v23 = vld [vmem:[#allocation89_spill] sm:$0xff]  ;;  %vm15807_vm5 = vmmov %vm15804_vm1 }
0x11f6   :  { %8514 = vmatprep.subr.mxu1 %v7496_v3  ;;  %v7314_v52 = vpop.permute.xlu0 %7313  ;;  %v14600_v3 = vrot.slane %v8975_v20, %v9457_v29  ;;  %vm15809_vm14 = vmmov %vm15799_vm13 }
0x11f7   :  { %v7332_v47 = vsel %vm15790_vm15, %v7314_v52, %v14390_v0  ;;  %8515 = vmatpush1.msra.mxu1 %v7495_v41  ;;  %v14590_v41 = vrot.slane %v8974_v60, %v9430_v12  ;;  %vm15812_vm15 = vmmov %vm15799_vm13 }
0x11f8   :  { %v7362_v54 = vmul.f32 %v7344_v59, %v7332_v47  ;;  %8516 = vmatprep.subr.mxu1 %v7492_v38  ;;  %v8028_v38 = vsel %vm15799_vm13, %v13977_v2, %v13975_v7  ;;  %v7216_v47 = vrot.slane %v14572_v32, %v9432_v13  ;;  %vm15813_vm7 = vmmov %vm15792_vm6 }
0x11f9   :  { %8517 = vmatpush1.msra.mxu1 %v7491_v6  ;;  %v14543_v19 = vpop.permute.xlu1 %7695  ;;  %v7220_v6 = vrot.slane %v14572_v32, %v9430_v12 }
0x11fa   :  { %8372 = vmatprep.subr.mxu0 %v7362_v54  ;;  %8518 = vmatprep.subr.mxu1 %v14147_v42  ;;  %v14501_v4 = vpop.permute.xlu0 %7325  ;;  %v7358_v42 = vmul.f32 %v7344_v59, %v14276_v5  ;;  %v14609_v59 = vld [vmem:[%s15126_s3 + $0x1] ss:$8 sm:$0xf] }
0x11fb   :  { %v7334_v17 = vsel %vm15792_vm6, %v14501_v4, %v7314_v52  ;;  %8519 = vmatpush1.msra.mxu1 %v14127_v40  ;;  %v7422_v52 = vmul.f32 %v7414_v34, %v14292_v26 }
0x11fc   :  { %v7361_v44 = vmul.f32 %v7340_v31, %v7334_v17  ;;  %8520 = vmatprep.subr.mxu1 %v14075_v57  ;;  %v7269_v57 = vsel %vm15793_vm4, %v14282_v45, %v14280_v39  ;;  %v14563_v45 = vld [vmem:[%s15126_s3 + $0x2] ss:$8 sm:$0xf]  ;;  %v7421_v17 = vmul.f32 %v7410_v37, %v15800_v23  ;;  %vm15815_vm4 = vmmov %vm15799_vm13 }
0x11fd   :  { %8521 = vmatpush1.msra.mxu1 %v14053_v36  ;;  %v7296_v14 = vmul.f32 %v7282_v21, %v7269_v57  ;;  %v14616_v54 = vpop.permute.xlu1 %7703  ;;  %vm15830_vm13 = vmmov %vm15815_vm4 }
0x11fe   :  { %8373 = vmatpush1.msra.mxu0 %v7361_v44  ;;  %v7252_v40 = vpop.permute.xlu0 %7251  ;;  %v15801_v44 = vld [vmem:[#allocation43_spill] sm:$0xff] }
0x11ff   :  { %v7270_v36 = vsel %vm15794_vm12, %v7252_v40, %v14410_v50  ;;  %v7272_v5 = vsel %vm15795_vm8, %v14427_v9, %v7252_v40  ;;  %8374 = vmatprep.subr.mxu0 %v7358_v42  ;;  %v15802_v42 = vld [vmem:[#allocation86_spill] sm:$0xff]  ;;  %vm15818_vm12 = vcmp.lt.s32.totalorder %v9422_v11, 127 }
0x1200   :  { %v7299_v39 = vmul.f32 %v7278_v1, %v7272_v5  ;;  %v7300_v56 = vmul.f32 %v7282_v21, %v7270_v36  ;;  %8375 = vmatpush1.msra.mxu0 %v7357_v30  ;;  %v7207_v25 = vsel %vm15803_vm9, %v15802_v42, %v15801_v44  ;;  %v14631_v21 = vrot.slane %v14563_v45, %v9430_v12  ;;  %v15806_v1 = vld [vmem:[#allocation29_spill] sm:$0xff]  ;;  %v15808_v5 = vld [vmem:[#allocation55_spill] sm:$0xff]  ;;  %vm15820_vm8 = vmmov %vm15818_vm12 }
0x1201   :  { %v7209_v40 = vsel %vm15807_vm5, %v15806_v1, %v15802_v42  ;;  %v8030_v20 = vsel %vm15809_vm14, %v15808_v5, %v13977_v2  ;;  %v14683_v42 = vrot.slane %v14563_v45, %v9455_v28  ;;  %vm15823_vm0 = vmmov %vm15820_vm8  ;;  %vm15837_vm5 = vcmp.lt.s32.totalorder %v9422_v11, 16 }
0x1202   :  { %8376 = vmatprep.subr.mxu0 %v7300_v56  ;;  %v7384_v18 = vpop.permute.xlu0 %7383  ;;  %v14649_v56 = vrot.slane %v8974_v60, %v9457_v29  ;;  %vm15832_vm9 = vmmov %vm15823_vm0 }
0x1203   :  { %v7390_v63 = vsel %vm15797_vm11, %v7384_v18, %v14372_v46  ;;  %v7392_v10 = vsel %vm15798_vm2, %v14366_v15, %v7384_v18  ;;  %8377 = vmatpush1.msra.mxu0 %v7299_v39  ;;  %v14593_v46 = vrot.slane %v8974_v60, %v9432_v13  ;;  %v14597_v15 = vrot.slane %v14563_v45, %v9432_v13  ;;  %vm15827_vm11 = vmmov %vm15815_vm4 }
0x1204   :  { %v7425_v49 = vmul.f32 %v7410_v37, %v7392_v10  ;;  %v7426_v55 = vmul.f32 %v7414_v34, %v7390_v63  ;;  %8378 = vmatprep.subr.mxu0 %v7296_v14  ;;  %v14646_v39 = vrot.slane %v14609_v59, %v9430_v12  ;;  %v7234_v14 = vmul.f32 %v7220_v6, %v7207_v25  ;;  %v15811_v63 = vld [vmem:[#allocation37_spill] sm:$0xff]  ;;  %vm15829_vm2 = vmmov %vm15823_vm0 }
0x1205   :  { %8379 = vmatpush1.msra.mxu0 %v7295_v43  ;;  %v7348_v37 = vrot.slane %v14479_v35, %v9455_v28  ;;  %v7352_v34 = vrot.slane %v14479_v35, %v9457_v29  ;;  %v8060_v18 = vmul.f32 %v14552_v61, %v8028_v38  ;;  %v15810_v43 = vld [vmem:[#allocation80_spill] sm:$0xff]  ;;  %v14687_v25 = vrot.slane %v14563_v45, %v9457_v29  ;;  %vm15838_vm14 = vmmov %vm15837_vm5 }
0x1206   :  { %8522 = vmatprep.subr.mxu1 %v7426_v55  ;;  %v7190_v31 = vpop.permute.xlu0 %7189  ;;  %v8027_v10 = vsel %vm15812_vm15, %v15811_v63, %v15810_v43  ;;  %v15814_v35 = vld [vmem:[#allocation56_spill] sm:$0xff]  ;;  %vm15840_vm15 = vmmov %vm15815_vm4 }
0x1207   :  { %v7208_v26 = vsel %vm15804_vm1, %v7190_v31, %v14456_v22  ;;  %v7210_v30 = vsel %vm15805_vm3, %v14487_v58, %v7190_v31  ;;  %8523 = vmatpush1.msra.mxu1 %v7425_v49  ;;  %v7233_v49 = vmul.f32 %v7216_v47, %v7209_v40  ;;  %v8029_v38 = vsel %vm15815_vm4, %v15814_v35, %v15811_v63  ;;  %v15824_v40 = vld [vmem:[#allocation87_spill] sm:$0xff]  ;;  %vm15833_vm1 = vmmov %vm15823_vm0 }
0x1208   :  { %v7237_v57 = vmul.f32 %v7216_v47, %v7210_v30  ;;  %v7238_v36 = vmul.f32 %v7220_v6, %v7208_v26  ;;  %8524 = vmatprep.subr.mxu1 %v7422_v52  ;;  %v15816_v52 = vld [vmem:[#allocation57_spill] sm:$0xff]  ;;  %v15817_v6 = vld [vmem:[#allocation42_spill] sm:$0xff]  ;;  %v14674_v47 = vpop.permute.xlu1 %7637  ;;  %v15821_v26 = vld [vmem:[#allocation68_spill] sm:$0xff]  ;;  %vm15836_vm3 = vcmp.lt.s32.totalorder %v9422_v11, 1 }
0x1209   :  { %8525 = vmatpush1.msra.mxu1 %v7421_v17  ;;  %v7966_v31 = vsel %vm15818_vm12, %v15817_v6, %v15816_v52  ;;  %v15822_v30 = vld [vmem:[#allocation82_spill] sm:$0xff]  ;;  %vm15849_vm12 = vcmp.lt.s32.totalorder %v9422_v11, 17 }
0x120a   :  { %8380 = vmatprep.subr.mxu0 %v7238_v36  ;;  %v7322_v2 = vpop.permute.xlu0 %7321  ;;  %v7965_v1 = vsel %vm15823_vm0, %v15822_v30, %v15821_v26  ;;  %v7998_v45 = vmul.f32 %v14581_v53, %v7966_v31  ;;  %vm15855_vm0 = vmmov %vm15836_vm3 }
0x120b   :  { %v7328_v60 = vsel %vm15813_vm7, %v7322_v2, %v14501_v4  ;;  %v7330_v55 = vsel %vm15792_vm6, %v14390_v0, %v7322_v2  ;;  %8381 = vmatpush1.msra.mxu0 %v7237_v57  ;;  %v8059_v4 = vmul.f32 %v14546_v27, %v8030_v20  ;;  %v15819_v0 = vld [vmem:[#allocation83_spill] sm:$0xff]  ;;  %v7360_v57 = vmul.f32 %v7352_v34, %v15824_v40  ;;  %v15825_v2 = vld [vmem:[#allocation88_spill] sm:$0xff]  ;;  %vm15841_vm7 = vmmov %vm15815_vm4 }
0x120c   :  { %v7363_v23 = vmul.f32 %v7348_v37, %v7330_v55  ;;  %v7364_v17 = vmul.f32 %v7352_v34, %v7328_v60  ;;  %8382 = vmatprep.subr.mxu0 %v7234_v14  ;;  %v7968_v44 = vsel %vm15820_vm8, %v15819_v0, %v15817_v6  ;;  %v8056_v20 = vmul.f32 %v14552_v61, %v8027_v10  ;;  %v15826_v60 = vld [vmem:[#allocation36_spill] sm:$0xff]  ;;  %v15835_v6 = vld [vmem:[#allocation46_spill] sm:$0xff]  ;;  %vm15843_vm6 = vmmov %vm15836_vm3 }
0x120d   :  { %8383 = vmatpush1.msra.mxu0 %v7233_v49  ;;  %v8055_v14 = vmul.f32 %v14546_v27, %v8029_v38  ;;  %v7359_v63 = vmul.f32 %v7348_v37, %v15825_v2  ;;  %v7997_v49 = vmul.f32 %v14549_v62, %v7968_v44  ;;  %v8026_v34 = vsel %vm15827_vm11, %v13975_v7, %v15826_v60  ;;  %v15831_v37 = vld [vmem:[#allocation75_spill] sm:$0xff]  ;;  %v15834_v38 = vld [vmem:[#allocation34_spill] sm:$0xff]  ;;  %vm15847_vm4 = vmmov %vm15836_vm3 }
0x120e   :  { %8384 = vmatprep.subr.mxu0 %v8060_v18  ;;  %8526 = vmatprep.subr.mxu1 %v7364_v17  ;;  %v14694_v36 = vpop.permute.xlu0 %7691  ;;  %v15828_v18 = vld [vmem:[#allocation78_spill] sm:$0xff]  ;;  %v8032_v27 = vsel %vm15830_vm13, %v15826_v60, %v15808_v5  ;;  %v7964_v10 = vsel %vm15832_vm9, %v15816_v52, %v15831_v37  ;;  %v7994_v7 = vmul.f32 %v14581_v53, %v7965_v1  ;;  %vm15850_vm8 = vmmov %vm15849_vm12 }
0x120f   :  { %8385 = vmatpush2.msra.mxu0 %v8059_v4  ;;  %8527 = vmatpush1.msra.mxu1 %v7363_v23  ;;  %v7967_v61 = vsel %vm15829_vm2, %v15828_v18, %v15822_v30  ;;  %v7970_v55 = vsel %vm15833_vm1, %v15831_v37, %v15819_v0  ;;  %v7898_v31 = vsel %vm15836_vm3, %v15835_v6, %v15834_v38  ;;  %v14730_v23 = vpop.permute.xlu1 %7629  ;;  %v15846_v60 = vld [vmem:[#allocation74_spill] sm:$0xff]  ;;  %vm15858_vm11 = vmmov %vm15833_vm1  ;;  %vm15861_vm2 = vcmp.lt.s32.totalorder %v9422_v11, 15 }
0x1210   :  { %8386 = vmatprep.subr.mxu0 %v8056_v20  ;;  %8528 = vmatprep.subr.mxu1 %v7360_v57  ;;  %v7286_v5 = vrot.slane %v14510_v16, %v9455_v28  ;;  %v7290_v52 = vrot.slane %v14510_v16, %v9457_v29  ;;  %v14733_v17 = vmul.f32 %v14555_v24, %v8026_v34  ;;  %v15839_v57 = vld [vmem:[#allocation28_spill] sm:$0xff]  ;;  %vm15862_vm13 = vmmov %vm15833_vm1 }
0x1211   :  { %8387 = vmatpush2.msra.mxu0 %v8055_v14  ;;  %8529 = vmatpush1.msra.mxu1 %v7359_v63  ;;  %v7993_v4 = vmul.f32 %v14549_v62, %v7967_v61  ;;  %v14743_v16 = vmul.f32 %v14584_v51, %v7964_v10  ;;  %v8062_v40 = vmul.f32 %v14587_v48, %v8032_v27  ;;  %v15842_v14 = vld [vmem:[#allocation24_spill] sm:$0xff]  ;;  %v15848_v61 = vld [vmem:[#allocation27_spill] sm:$0xff]  ;;  %vm15864_vm9 = vmmov %vm15861_vm2 }
0x1212   :  { %8388 = vmatprep.subr.mxu0 %v7998_v45  ;;  %v7260_v53 = vpop.permute.xlu0 %7259  ;;  %v8025_v62 = vsel %vm15840_vm15, %v15810_v43, %v15839_v57  ;;  %v14756_v20 = vmul.f32 %v14600_v3, %v7970_v55  ;;  %v7900_v2 = vsel %vm15843_vm6, %v15842_v14, %v15835_v6  ;;  %v7224_v63 = vrot.slane %v14572_v32, %v9455_v28  ;;  %v15844_v45 = vld [vmem:[#allocation20_spill] sm:$0xff]  ;;  %vm15868_vm1 = vmmov %vm15861_vm2 }
0x1213   :  { %v7266_v0 = vsel %vm15837_vm5, %v7260_v53, %v14427_v9  ;;  %v7268_v44 = vsel %vm15838_vm14, %v14410_v50, %v7260_v53  ;;  %8389 = vmatpush2.msra.mxu0 %v7997_v49  ;;  %v8031_v9 = vsel %vm15841_vm7, %v15839_v57, %v15814_v35  ;;  %v7928_v50 = vmul.f32 %v14590_v41, %v7898_v31  ;;  %v15845_v49 = vld [vmem:[#allocation25_spill] sm:$0xff]  ;;  %v14780_v6 = vpop.permute.xlu1 %8147  ;;  %vm15871_vm3 = vmmov %vm15868_vm1 }
0x1214   :  { %v7301_v30 = vmul.f32 %v7286_v5, %v7268_v44  ;;  %v7302_v1 = vmul.f32 %v7290_v52, %v7266_v0  ;;  %8390 = vmatprep.subr.mxu0 %v7994_v7  ;;  %v7228_v43 = vrot.slane %v14572_v32, %v9457_v29  ;;  %v7897_v34 = vsel %vm15847_vm4, %v15846_v60, %v15845_v49  ;;  %v15851_v32 = vld [vmem:[#allocation22_spill] sm:$0xff]  ;;  %v15854_v0 = vld [vmem:[#allocation48_spill] sm:$0xff]  ;;  %v15859_v57 = vld [vmem:[#allocation53_spill] sm:$0xff] }
0x1215   :  { %8391 = vmatpush2.msra.mxu0 %v7993_v4  ;;  %v7298_v27 = vmul.f32 %v7290_v52, %v15848_v61  ;;  %v15852_v7 = vld [vmem:[#allocation26_spill] sm:$0xff]  ;;  %v15853_v4 = vld [vmem:[#allocation15_spill] sm:$0xff]  ;;  %v8057_v52 = vmul.f32 %v14555_v24, %v8025_v62  ;;  %v8058_v44 = vmul.f32 %v14587_v48, %v8031_v9  ;;  %v7924_v9 = vmul.f32 %v14590_v41, %v7897_v34  ;;  %v15870_v34 = vld [vmem:[#allocation44_spill] sm:$0xff] }
0x1216   :  { %8392 = vmatprep.subr.mxu0 %v15844_v45  ;;  %8530 = vmatprep.subr.mxu1 %v7302_v1  ;;  %v7198_v35 = vpop.permute.xlu0 %7197  ;;  %v7297_v55 = vmul.f32 %v7286_v5, %v15852_v7  ;;  %v15857_v5 = vld [vmem:[#allocation31_spill] sm:$0xff]  ;;  %v15860_v45 = vld [vmem:[#allocation30_spill] sm:$0xff]  ;;  %v15872_v7 = vld [vmem:[#allocation45_spill] sm:$0xff] }
0x1217   :  { %v7204_v37 = vsel %vm15849_vm12, %v7198_v35, %v14487_v58  ;;  %v7206_v10 = vsel %vm15850_vm8, %v14456_v22, %v7198_v35  ;;  %8393 = vmatpush2.msra.mxu0 %v15851_v32  ;;  %8531 = vmatpush1.msra.mxu1 %v7301_v30  ;;  %v7899_v58 = vsel %vm15855_vm0, %v15854_v0, %v15846_v60  ;;  %v15856_v22 = vld [vmem:[#allocation17_spill] sm:$0xff]  ;;  %v15865_v35 = vld [vmem:[#allocation50_spill] sm:$0xff]  ;;  %vm15875_vm14 = vmmov %vm15837_vm5 }
0x1218   :  { %v7239_v31 = vmul.f32 %v7224_v63, %v7206_v10  ;;  %v7240_v53 = vmul.f32 %v7228_v43, %v7204_v37  ;;  %8394 = vmatprep.subr.mxu0 %v15853_v4  ;;  %8532 = vmatprep.subr.mxu1 %v7298_v27  ;;  %v7963_v1 = vsel %vm15858_vm11, %v15821_v26, %v15857_v5  ;;  %v15863_v26 = vld [vmem:[#allocation84_spill] sm:$0xff]  ;;  %v15869_v10 = vld [vmem:[#allocation54_spill] sm:$0xff]  ;;  %vm15877_vm15 = vmmov %vm15855_vm0 }
0x1219   :  { %8395 = vmatpush2.msra.mxu0 %v15856_v22  ;;  %v7927_v30 = vmul.f32 %v14593_v46, %v7900_v2  ;;  %v7836_v24 = vsel %vm15861_vm2, %v15860_v45, %v15859_v57  ;;  %8533 = vmatpush1.msra.mxu1 %v7297_v55  ;;  %v7969_v48 = vsel %vm15862_vm13, %v15857_v5, %v15828_v18  ;;  %v15867_v27 = vld [vmem:[#allocation52_spill] sm:$0xff]  ;;  %vm15880_vm7 = vmmov %vm15837_vm5 }
0x121a   :  { %8396 = vmatprep.subr.mxu0 %v7928_v50  ;;  %v14799_v62 = vpop.permute.xlu0 %7823  ;;  %v7838_v2 = vsel %vm15864_vm9, %v15863_v26, %v15860_v45  ;;  %v7236_v60 = vmul.f32 %v7228_v43, %v15865_v35  ;;  %8534 = vmatprep.subr.mxu1 %v7240_v53  ;;  %v7923_v61 = vmul.f32 %v14593_v46, %v7899_v58  ;;  %v15866_v50 = vld [vmem:[#allocation49_spill] sm:$0xff]  ;;  %v15873_v55 = vld [vmem:[#allocation40_spill] sm:$0xff]  ;;  %v14835_v53 = vpop.permute.xlu1 %7639  ;;  %vm15882_vm6 = vmmov %vm15837_vm5 }
0x121b   :  { %v7835_v37 = vsel %vm15868_vm1, %v15867_v27, %v15866_v50  ;;  %v7235_v32 = vmul.f32 %v7224_v63, %v15869_v10  ;;  %8397 = vmatpush2.msra.mxu0 %v7927_v30  ;;  %8535 = vmatpush1.msra.mxu1 %v7239_v31  ;;  %v7995_v41 = vmul.f32 %v14584_v51, %v7963_v1  ;;  %v14833_v51 = vld [vmem:[%s15126_s3] ss:$8 sm:$0xf]  ;;  %vm15885_vm4 = vmmov %vm15850_vm8 }
0x121c   :  { %v7866_v18 = vmul.f32 %v14631_v21, %v7836_v24  ;;  %v7837_v43 = vsel %vm15871_vm3, %v15870_v34, %v15867_v27  ;;  %8398 = vmatprep.subr.mxu0 %v7924_v9  ;;  %8536 = vmatprep.subr.mxu1 %v7236_v60  ;;  %v7865_v46 = vmul.f32 %v14597_v15, %v7838_v2  ;;  %v15874_v22 = vld [vmem:[#allocation76_spill] sm:$0xff]  ;;  %v15876_v30 = vld [vmem:[#allocation38_spill] sm:$0xff]  ;;  %v15879_v2 = vld [vmem:[#allocation41_spill] sm:$0xff] }
0x121d   :  { %v7774_v63 = vsel %vm15837_vm5, %v15873_v55, %v15872_v7  ;;  %v7782_v31 = vrot.slane %v14609_v59, %v9432_v13  ;;  %8399 = vmatpush2.msra.mxu0 %v7923_v61  ;;  %8537 = vmatpush1.msra.mxu1 %v7235_v32  ;;  %v7862_v58 = vmul.f32 %v14631_v21, %v7835_v37  ;;  %v15878_v9 = vld [vmem:[#allocation32_spill] sm:$0xff]  ;;  %v15884_v60 = vld [vmem:[#allocation79_spill] sm:$0xff]  ;;  %vm15886_vm12 = vmmov %vm15855_vm0 }
0x121e   :  { %v14837_v4 = vpop.permute.xlu0 %7763  ;;  %v7776_v5 = vsel %vm15875_vm14, %v15874_v22, %v15873_v55  ;;  %8400 = vmatprep.subr.mxu0 %v7866_v18  ;;  %8538 = vmatprep.subr.mxu1 %v8062_v40  ;;  %v7996_v1 = vmul.f32 %v14600_v3, %v7969_v48  ;;  %v7894_v45 = vsel %vm15877_vm15, %v15876_v30, %v15842_v14  ;;  %v15881_v40 = vld [vmem:[#allocation85_spill] sm:$0xff]  ;;  %v15883_v48 = vld [vmem:[#allocation35_spill] sm:$0xff]  ;;  %vm15887_vm8 = vmmov %vm15885_vm4  ;;  %vm15901_vm14 = vcmp.lt.s32.totalorder %v9422_v11, 111 }
0x121f   :  { %v7861_v24 = vmul.f32 %v14597_v15, %v7837_v43  ;;  %v7773_v21 = vsel %vm15880_vm7, %v15879_v2, %v15878_v9  ;;  %8401 = vmatpush2.msra.mxu0 %v7865_v46  ;;  %8539 = vmatpush2.msra.mxu1 %v14733_v17  ;;  %v7804_v35 = vmul.f32 %v14646_v39, %v7774_v63  ;;  %v15888_v32 = vld [vmem:[#allocation39_spill] sm:$0xff]  ;;  %vm15889_vm11 = vmmov %vm15885_vm4 }
0x1220   :  { %v7775_v3 = vsel %vm15882_vm6, %v15881_v40, %v15879_v2  ;;  %v7724_v14 = vrot.slane %v14833_v51, %v9430_v12  ;;  %8402 = vmatprep.subr.mxu0 %v7862_v58  ;;  %8540 = vmatprep.subr.mxu1 %v8058_v44  ;;  %v7803_v15 = vmul.f32 %v7782_v31, %v7776_v5  ;;  %vm15890_vm2 = vmmov %vm15855_vm0  ;;  %v15892_v46 = vld [vmem:[#allocation47_spill] sm:$0xff]  ;;  %v15896_v2 = vld [vmem:[#allocation18_spill] sm:$0xff] }
0x1221   :  { %v7712_v61 = vsel %vm15885_vm4, %v15884_v60, %v15883_v48  ;;  %v7720_v17 = vrot.slane %v14833_v51, %v9432_v13  ;;  %8403 = vmatpush2.msra.mxu0 %v7861_v24  ;;  %8541 = vmatpush2.msra.mxu1 %v8057_v52  ;;  %v7896_v37 = vsel %vm15886_vm12, %v15834_v38, %v15876_v30  ;;  %vm15891_vm13 = vmmov %vm15885_vm4 }
0x1222   :  { %v14868_v27 = vpop.permute.xlu0 %7633  ;;  %v7800_v44 = vmul.f32 %v14646_v39, %v7773_v21  ;;  %v7714_v10 = vsel %vm15887_vm8, %v14498_v33, %v15884_v60  ;;  %8404 = vmatprep.subr.mxu0 %v7804_v35  ;;  %8542 = vmatprep.subr.mxu1 %v14756_v20  ;;  %v7893_v52 = vsel %vm15855_vm0, %v15888_v32, %v15854_v0  ;;  %v14888_v39 = vpop.permute.xlu1 %7631  ;;  %vm15893_vm9 = vmmov %vm15868_vm1 }
0x1223   :  { %v7799_v18 = vmul.f32 %v7782_v31, %v7775_v3  ;;  %v7711_v38 = vsel %vm15889_vm11, %v14694_v36, %v14543_v19  ;;  %8405 = vmatpush2.msra.mxu0 %v7803_v15  ;;  %8543 = vmatpush2.msra.mxu1 %v14743_v16  ;;  %v7895_v20 = vsel %vm15890_vm2, %v15845_v49, %v15888_v32  ;;  %vm15898_vm3 = vmmov %vm15868_vm1 }
0x1224   :  { %v7742_v43 = vmul.f32 %v7724_v14, %v7712_v61  ;;  %v7713_v0 = vsel %vm15891_vm13, %v14616_v54, %v14694_v36  ;;  %8406 = vmatprep.subr.mxu0 %v7800_v44  ;;  %8544 = vmatprep.subr.mxu1 %v7996_v1  ;;  %v7832_v55 = vsel %vm15893_vm9, %v15892_v46, %v15863_v26  ;;  %v15894_v36 = vld [vmem:[#allocation21_spill] sm:$0xff]  ;;  %v15895_v26 = vld [vmem:[#allocation19_spill] sm:$0xff]  ;;  %vm15899_vm5 = vmmov %vm15868_vm1  ;;  %vm15913_vm9 = vcmp.lt.s32.totalorder %v9422_v11, 17 }
0x1225   :  { %v7834_v16 = vsel %vm15868_vm1, %v15859_v57, %v15892_v46  ;;  %v7741_v63 = vmul.f32 %v7720_v17, %v7714_v10  ;;  %8407 = vmatpush2.msra.mxu0 %v7799_v18  ;;  %8545 = vmatpush2.msra.mxu1 %v7995_v41  ;;  %v7929_v31 = vmul.f32 %v14642_v8, %v7896_v37  ;;  %v8971_v41 = vld [vmem:[%s15126_s3 + $0x20] ss:$8 sm:$0xf]  ;;  %vm15903_vm15 = vmmov %vm15901_vm14 }
0x1226   :  { %v7762_v49 = vpop.permute.xlu0 %7761  ;;  %v7738_v58 = vmul.f32 %v7724_v14, %v7711_v38  ;;  %8408 = vmatprep.subr.mxu0 %v7742_v43  ;;  %8546 = vmatprep.subr.mxu1 %v15894_v36  ;;  %v7925_v5 = vmul.f32 %v14642_v8, %v7895_v20  ;;  %v7737_v1 = vmul.f32 %v7720_v17, %v7713_v0  ;;  %v9186_v8 = vld [vmem:[%s15126_s3 + $0x20] ss:$8 sm:$0xf]  ;;  %v8146_v3 = vpop.permute.xlu1 %8145  ;;  %v9187_v14 = vld [vmem:[%s15126_s3 + $0x7] ss:$8 sm:$0xf]  ;;  %vm15904_vm7 = vmmov %vm15882_vm6 }
0x1227   :  { %8409 = vmatpush2.msra.mxu0 %v7741_v63  ;;  %8547 = vmatpush2.msra.mxu1 %v15895_v26  ;;  %v7930_v30 = vmul.f32 %v14649_v56, %v7894_v45  ;;  %v7867_v57 = vmul.f32 %v14683_v42, %v7834_v16  ;;  %v7868_v24 = vmul.f32 %v14687_v25, %v7832_v55  ;;  %vm15905_vm4 = vmmov %vm15901_vm14  ;;  %v15910_v16 = vld [vmem:[#allocation73_spill] sm:$0xff] }
0x1228   :  { %8410 = vmatprep.subr.mxu0 %v7738_v58  ;;  %8548 = vmatprep.subr.mxu1 %v15896_v2  ;;  %v7926_v21 = vmul.f32 %v14649_v56, %v7893_v52  ;;  %v14923_v35 = vrot.slane %v9186_v8, %v9455_v28  ;;  %v14926_v45 = vrot.slane %v9186_v8, %v9457_v29  ;;  %v15897_v56 = vld [vmem:[#allocation16_spill] sm:$0xff]  ;;  %vm15906_vm12 = vmmov %vm15905_vm4 }
0x1229   :  { %v14932_v15 = vrot.slane %v9187_v14, %v9455_v28  ;;  %8411 = vmatpush2.msra.mxu0 %v7737_v1  ;;  %8549 = vmatpush2.msra.mxu1 %v15897_v56  ;;  %v14936_v61 = vrot.slane %v9187_v14, %v9457_v29  ;;  %v7831_v17 = vsel %vm15898_vm3, %v14799_v62, %v15870_v34  ;;  %v15900_v34 = vld [vmem:[#allocation71_spill] sm:$0xff]  ;;  %vm15907_vm8 = vmmov %vm15905_vm4  ;;  %v15919_v8 = vld [vmem:[#allocation60_spill] sm:$0xff] }
0x122a   :  { %v7702_v60 = vpop.permute.xlu0 %7701  ;;  %v7833_v37 = vsel %vm15899_vm5, %v15866_v50, %v14799_v62  ;;  %v7790_v44 = vrot.slane %v14609_v59, %v9455_v28  ;;  %8550 = vmatprep.subr.mxu1 %v7930_v30  ;;  %v7794_v10 = vrot.slane %v14609_v59, %v9457_v29  ;;  %v7658_v32 = vrot.slane %v8971_v41, %v9432_v13  ;;  %vm15908_vm0 = vmmov %vm15905_vm4 }
0x122b   :  { %v7662_v52 = vrot.slane %v8971_v41, %v9430_v12  ;;  %v14954_v18 = vrot.slane %v14833_v51, %v9455_v28  ;;  %8551 = vmatpush2.msra.mxu1 %v7929_v31  ;;  %v8150_v62 = vsel %vm15901_vm14, %v15900_v34, %v14780_v6  ;;  %v7732_v50 = vrot.slane %v14833_v51, %v9457_v29  ;;  %v15902_v12 = vld [vmem:[#allocation63_spill] sm:$0xff]  ;;  %vm15909_vm11 = vmmov %vm15882_vm6  ;;  %v15925_v34 = vld [vmem:[#allocation64_spill] sm:$0xff] }
0x122c   :  { %8552 = vmatprep.subr.mxu1 %v7926_v21  ;;  %v14963_v59 = vrot.slane %v8971_v41, %v9455_v28  ;;  %v14966_v13 = vrot.slane %v8971_v41, %v9457_v29  ;;  %v8156_v38 = vsel %vm15903_vm15, %v14780_v6, %v15902_v12  ;;  %v7863_v20 = vmul.f32 %v14683_v42, %v7833_v37  ;;  %vm15911_vm2 = vmmov %vm15908_vm0  ;;  %v15923_v37 = vld [vmem:[#allocation77_spill] sm:$0xff] }
0x122d   :  { %v7864_v43 = vmul.f32 %v14687_v25, %v7831_v17  ;;  %v7770_v51 = vsel %vm15904_vm7, %v14837_v4, %v15874_v22  ;;  %8553 = vmatpush2.msra.mxu1 %v7925_v5  ;;  %v7772_v29 = vsel %vm15882_vm6, %v15872_v7, %v14837_v4  ;;  %v7647_v6 = vsel %vm15905_vm4, %v14868_v27, %v14674_v47  ;;  %v8086_v22 = vpop.permute.xlu1 %8085  ;;  %vm15912_vm13 = vmmov %vm15882_vm6  ;;  %v8200_v17 = vld [vmem:[#allocation4 + $0x80] sm:$0xff] }
0x122e   :  { %v7636_v28 = vpop.permute.xlu0 %7635  ;;  %8554 = vmatprep.subr.mxu1 %v7868_v24  ;;  %v7649_v7 = vsel %vm15908_vm0, %v14730_v23, %v14868_v27  ;;  %v7769_v4 = vsel %vm15909_vm11, %v7762_v49, %v15881_v40  ;;  %v8185_v55 = vmul.f32 %v14923_v35, %v8150_v62  ;;  %v8155_v63 = vsel %vm15911_vm2, %v8146_v3, %v15910_v16  ;;  %vm15914_vm1 = vmmov %vm15913_vm9  ;;  %v15927_v12 = vld [vmem:[#allocation33_spill] sm:$0xff] }
0x122f   :  { %v7648_v42 = vsel %vm15906_vm12, %v7636_v28, %v14835_v53  ;;  %v7650_v25 = vsel %vm15907_vm8, %v14888_v39, %v7636_v28  ;;  %8555 = vmatpush2.msra.mxu1 %v7867_v57  ;;  %v7806_v31 = vmul.f32 %v7794_v10, %v7770_v51  ;;  %v7771_v58 = vsel %vm15912_vm13, %v15878_v9, %v7762_v49  ;;  %v8196_v57 = vld [vmem:[#allocation4 + $0x60] sm:$0xff]  ;;  %vm15915_vm3 = vmmov %vm15914_vm1 }
0x1230   :  { %v7679_v0 = vmul.f32 %v7658_v32, %v7650_v25  ;;  %v7680_v46 = vmul.f32 %v7662_v52, %v7648_v42  ;;  %8556 = vmatprep.subr.mxu1 %v7864_v43  ;;  %v7805_v27 = vmul.f32 %v7790_v44, %v7772_v29  ;;  %v7676_v36 = vmul.f32 %v7662_v52, %v7647_v6  ;;  %vm15917_vm5 = vmmov %vm15908_vm0 }
0x1231   :  { %v7708_v40 = vsel %vm15913_vm9, %v7702_v60, %v14498_v33  ;;  %8557 = vmatpush2.msra.mxu1 %v7863_v20  ;;  %v7675_v1 = vmul.f32 %v7658_v32, %v7649_v7  ;;  %v7802_v26 = vmul.f32 %v7794_v10, %v7769_v4  ;;  %v7710_v30 = vsel %vm15914_vm1, %v15883_v48, %v7702_v60  ;;  %v15916_v33 = vld [vmem:[#allocation67_spill] sm:$0xff]  ;;  %vm15918_vm14 = vmmov %vm15914_vm1 }
0x1232   :  { %8412 = vmatprep.subr.mxu0 %v7680_v46  ;;  %v7700_v5 = vpop.permute.xlu0 %7699  ;;  %8558 = vmatprep.subr.mxu1 %v7806_v31  ;;  %v8186_v9 = vmul.f32 %v14926_v45, %v8156_v38  ;;  %v7801_v49 = vmul.f32 %v7790_v44, %v7771_v58  ;;  %v8149_v41 = vsel %vm15917_vm5, %v15916_v33, %v8146_v3  ;;  %vm15920_vm15 = vcmp.lt.s32.totalorder %v9422_v11, 112  ;;  %vm15921_vm7 = vmmov %vm15908_vm0  ;;  %v9189_v11 = vld [vmem:[#allocation4 + $0x88] sm:$0xff] }
0x1233   :  { %8413 = vmatpush2.msra.mxu0 %v7679_v0  ;;  %v7707_v24 = vsel %vm15915_vm3, %v7700_v5, %v14616_v54  ;;  %8559 = vmatpush2.msra.mxu1 %v7805_v27  ;;  %v7744_v2 = vmul.f32 %v7732_v50, %v7708_v40  ;;  %v7709_v48 = vsel %vm15918_vm14, %v14543_v19, %v7700_v5  ;;  %v8084_v54 = vpop.permute.xlu1 %8083  ;;  %vm15922_vm6 = vmmov %vm15908_vm0  ;;  %v15930_v42 = vmov 0.0  }
0x1234   :  { %8414 = vmatprep.subr.mxu0 %v7676_v36  ;;  %8560 = vmatprep.subr.mxu1 %v7802_v26  ;;  %v8182_v21 = vmul.f32 %v14926_v45, %v8155_v63  ;;  %v8094_v14 = vsel %vm15920_vm15, %v8086_v22, %v15919_v8  ;;  %v7743_v56 = vmul.f32 %v14954_v18, %v7710_v30  ;;  %vm15924_vm4 = vmmov %vm15920_vm15 }
0x1235   :  { %8415 = vmatpush2.msra.mxu0 %v7675_v1  ;;  %8561 = vmatpush2.msra.mxu1 %v7801_v49  ;;  %v7740_v3 = vmul.f32 %v7732_v50, %v7707_v24  ;;  %v8088_v44 = vsel %vm15924_vm4, %v15923_v37, %v8086_v22  ;;  %v7739_v10 = vmul.f32 %v14954_v18, %v7709_v48  ;;  %vm15926_vm12 = vmmov %vm15924_vm4 }
0x1236   :  { %8417 = vmatmul.mubr.f32.vlgmr.msra.gmra.mxu0 %v8196_v57  ;;  %v7644_v60 = vpop.permute.xlu0 %7643  ;;  %8562 = vmatprep.subr.mxu1 %v7744_v2  ;;  %v8181_v52 = vmul.f32 %v14923_v35, %v8149_v41  ;;  %v8124_v50 = vmul.f32 %v14936_v61, %v8094_v14  ;;  %vm15928_vm8 = vmmov %vm15924_vm4  ;;  %v8123_v35 = vmul.f32 %v14932_v15, %v8088_v44 }
0x1237   :  { %8607 = vmatprep.subr.mxu0 %v8186_v9  ;;  %v7646_v19 = vsel %vm15921_vm7, %v14835_v53, %v7644_v60  ;;  %v7652_v45 = vsel %vm15922_vm6, %v7644_v60, %v14888_v39  ;;  %8563 = vmatpush2.msra.mxu1 %v7743_v56  ;;  %v8093_v53 = vsel %vm15926_vm12, %v8084_v54, %v15925_v34  ;;  %v8199_v39 = vld [vmem:[#allocation4 + $0x78] sm:$0xff]  ;;  %vm15929_vm11 = vmmov %vm15908_vm0 }
0x1238   :  { %v7682_v32 = vmul.f32 %v14966_v13, %v7652_v45  ;;  %8608 = vmatpush1.msra.mxu0 %v8185_v55  ;;  %v7681_v62 = vmul.f32 %v14963_v59, %v7646_v19  ;;  %8564 = vmatprep.subr.mxu1 %v7740_v3  ;;  %v8087_v18 = vsel %vm15928_vm8, %v15927_v12, %v8084_v54 }
0x1239   :  { %8609 = vmatprep.subr.mxu0 %v8182_v21  ;;  %8422 = vmatprep.mubr.f32.mxu0 %v8200_v17  ;;  %v8120_v51 = vmul.f32 %v14936_v61, %v8093_v53  ;;  %v8119_v6 = vmul.f32 %v14932_v15, %v8087_v18 }
0x123a   :  { %8565 = vmatpush2.msra.mxu1 %v7739_v10  ;;  %v7642_v38 = vpop.permute.xlu0 %7641  ;;  %8610 = vmatpush1.msra.mxu0 %v8181_v52 }
0x123b   :  { %8566 = vmatprep.subr.mxu1 %v7682_v32  ;;  %v7645_v20 = vsel %vm15908_vm0, %v14674_v47, %v7642_v38  ;;  %v7651_v43 = vsel %vm15929_vm11, %v7642_v38, %v14730_v23  ;;  %8423 = vmatmul.mubr.f32.gmra.mxu0 %v8199_v39  ;;  %v9188_v47 = vld [vmem:[#allocation4 + $0x70] sm:$0xff]  ;;  %v8495_v23 = vpop.f32.mrf.mxu1 }
0x123c   :  { %8611 = vmatprep.subr.mxu0 %v8124_v50  ;;  %v7677_v28 = vmul.f32 %v14963_v59, %v7645_v20  ;;  %v7678_v29 = vmul.f32 %v14966_v13, %v7651_v43  ;;  %8567 = vmatpush2.msra.mxu1 %v7681_v62 }
0x123d   :  { %8612 = vmatpush1.msra.mxu0 %v8123_v35  ;;  %8647 = vmatprep.mubr.f32.mxu0 %v15930_v42  ;;  %v8497_v61 = vpop.f32.mrf.mxu1 }
0x123e   :  { %8613 = vmatprep.subr.mxu0 %v8120_v51  ;;  %8568 = vmatprep.subr.mxu1 %v7678_v29 }
0x123f   :  { %8614 = vmatpush1.msra.mxu0 %v8119_v6  ;;  %8569 = vmatpush2.msra.mxu1 %v7677_v28  ;;  %v8501_v13 = vpop.f32.mrf.mxu1 }
0x1240   :  { %8981 = vmatmul.mubr.msk.f32.vlgmr.msra.gmra.mxu0 %vm5171_vm10, %v9188_v47  ;;  %8571 = vmatmul.mubr.f32.vlgmr.msra.gmra.mxu1 %v8196_v57 }
0x1241   :  { %8653 = vmatprep.mubr.f32.mxu0 %v15930_v42  ;;  %8576 = vmatprep.mubr.f32.mxu1 %v8200_v17  ;;  %v8503_v4 = vpop.f32.mrf.mxu1 }
0x1244   :  { %8982 = vmatmul.mubr.msk.f32.gmra.mxu0 %vm5171_vm10, %v9189_v11  ;;  %8577 = vmatmul.mubr.f32.gmra.mxu1 %v8199_v39 }
0x12f6   :  { %v8418_v15 = vpop.f32.mrf.mxu0 }
0x12f7   :  { %v15064_v7 = vadd.f32 %v8495_v23, %v8418_v15 }
0x12f8   :  { %v8420_v59 = vpop.f32.mrf.mxu0 }
0x12f9   :  { %v15062_v25 = vadd.f32 %v8497_v61, %v8420_v59  ;;  %v8660_v31 = vmul.f32 %v15064_v7, %v15064_v7 }
0x12fb   :  { %v8424_v22 = vpop.f32.mrf.mxu0  ;;  %v8661_v46 = vmul.f32 %v15062_v25, %v15062_v25  ;;  %v8668_v27 = vadd.f32 %v15062_v25, %v15064_v7 }
0x12fc   :  { %v15068_v55 = vadd.f32 %v8501_v13, %v8424_v22 }
0x12fd   :  { %v8426_v0 = vpop.f32.mrf.mxu0  ;;  %v8678_v5 = vadd.f32 %v8661_v46, %v8660_v31 }
0x12fe   :  { %v15070_v16 = vadd.f32 %v8503_v4, %v8426_v0  ;;  %v8664_v1 = vmul.f32 %v15068_v55, %v15068_v55 }
0x1300   :  { %v8649_v63 = vpop.f32.mrf.mxu0  ;;  %v8572_v58 = vpop.f32.mrf.mxu1  ;;  %v8665_v30 = vmul.f32 %v15070_v16, %v15070_v16  ;;  %v8673_v33 = vadd.f32 %v15070_v16, %v15068_v55 }
0x1301   :  { %v8650_v36 = vadd.f32 %v8649_v63, %v8572_v58 }
0x1302   :  { %v8651_v40 = vpop.f32.mrf.mxu0  ;;  %v8574_v26 = vpop.f32.mrf.mxu1  ;;  %v8683_v56 = vadd.f32 %v8665_v30, %v8664_v1 }
0x1303   :  { %v8662_v57 = vmul.f32 %v8650_v36, %v8650_v36  ;;  %v8669_v9 = vadd.f32 %v8668_v27, %v8650_v36  ;;  %v8652_v49 = vadd.f32 %v8651_v40, %v8574_v26 }
0x1304   :  { %v8655_v24 = vpop.f32.mrf.mxu0  ;;  %v8578_v41 = vpop.f32.mrf.mxu1 }
0x1305   :  { %v8663_v2 = vmul.f32 %v8652_v49, %v8652_v49  ;;  %v8656_v48 = vadd.f32 %v8655_v24, %v8578_v41  ;;  %v8670_v8 = vadd.f32 %v8669_v9, %v8652_v49  ;;  %v8679_v14 = vadd.f32 %v8678_v5, %v8662_v57 }
0x1306   :  { %v8657_v21 = vpop.f32.mrf.mxu0  ;;  %v8580_v54 = vpop.f32.mrf.mxu1 }
0x1307   :  { %v8666_v60 = vmul.f32 %v8656_v48, %v8656_v48  ;;  %v8674_v3 = vadd.f32 %v8673_v33, %v8656_v48  ;;  %v8658_v19 = vadd.f32 %v8657_v21, %v8580_v54  ;;  %8671 = vadd.xlane.f32.xlu0 %v8670_v8  ;;  %v8680_v17 = vadd.f32 %v8679_v14, %v8663_v2 }
0x1309   :  { %v8667_v45 = vmul.f32 %v8658_v19, %v8658_v19  ;;  %v8675_v37 = vadd.f32 %v8674_v3, %v8658_v19  ;;  %v8684_v44 = vadd.f32 %v8683_v56, %v8666_v60 }
0x130b   :  { %8681 = vadd.xlane.f32.xlu0 %v8680_v17  ;;  %8676 = vadd.xlane.f32.xlu1 %v8675_v37  ;;  %v8685_v10 = vadd.f32 %v8684_v44, %v8667_v45  ;;  %v15931_v37 = vld [vmem:[#allocation9_spill] sm:$0xff] }
0x130f   :  { %8686 = vadd.xlane.f32.xlu0 %v8685_v10 }
0x1390   :  { %v8672_v32 = vpop.xlane.xlu0 %8671 }
0x1391   :  { %v8688_v52 = vmul.f32 0.001953125, %v8672_v32 }
0x1393   :  { %v8692_v62 = vmul.f32 %v8688_v52, %v8688_v52  ;;  %v8698_v6 = vsub.f32 %v15064_v7, %v8688_v52  ;;  %v8699_v42 = vsub.f32 %v15062_v25, %v8688_v52  ;;  %v8700_v47 = vsub.f32 %v8650_v36, %v8688_v52 }
0x1394   :  { %v8682_v34 = vpop.xlane.xlu0 %8681  ;;  %v8677_v53 = vpop.xlane.xlu1 %8676  ;;  %v8701_v11 = vsub.f32 %v8652_v49, %v8688_v52  ;;  %v15932_v52 = vld [vmem:[#allocation7_spill] sm:$0xff] }
0x1395   :  { %v8690_v39 = vmul.f32 0.001953125, %v8682_v34  ;;  %v8689_v50 = vmul.f32 0.001953125, %v8677_v53 }
0x1397   :  { %v8694_v12 = vsub.f32 %v8690_v39, %v8692_v62  ;;  %v8693_v35 = vmul.f32 %v8689_v50, %v8689_v50  ;;  %v8702_v22 = vsub.f32 %v15068_v55, %v8689_v50  ;;  %v8703_v4 = vsub.f32 %v15070_v16, %v8689_v50 }
0x1398   :  { %v8687_v18 = vpop.xlane.xlu0 %8686  ;;  %v8704_v0 = vsub.f32 %v8656_v48, %v8689_v50  ;;  %v8705_v46 = vsub.f32 %v8658_v19, %v8689_v50  ;;  %v15933_v50 = vld [vmem:[#allocation8_spill] sm:$0xff] }
0x1399   :  { %v8696_v38 = vmax.f32 %v8694_v12, 0.0  ;;  %v8691_v20 = vmul.f32 0.001953125, %v8687_v18 }
0x139b   :  { %v8706_v43 = vadd.f32 1e-05, %v8696_v38  ;;  %v8695_v51 = vsub.f32 %v8691_v20, %v8693_v35  ;;  %v15934_v35 = vld [vmem:[#allocation10_spill] sm:$0xff] }
0x139d   :  { %9158 = vrsqrt.f32 %v8706_v43  ;;  %v8697_v28 = vmax.f32 %v8695_v51, 0.0 }
0x139f   :  { %v8707_v29 = vadd.f32 1e-05, %v8697_v28 }
0x13a1   :  { %9160 = vrsqrt.f32 %v8707_v29 }
0x13aa   :  { %v9159_v23 = vpop.eup %9158 }
0x13ab   :  { %v8710_v15 = vmul.f32 %v9159_v23, %v8698_v6  ;;  %v8711_v61 = vmul.f32 %v9159_v23, %v8699_v42  ;;  %v8712_v59 = vmul.f32 %v9159_v23, %v8700_v47  ;;  %v8713_v13 = vmul.f32 %v9159_v23, %v8701_v11  ;;  %v15935_v6 = vld [vmem:[#allocation14_spill] sm:$0xff]  ;;  %v15936_v11 = vld [vmem:[#allocation12_spill] sm:$0xff] }
0x13ad   :  { %v8726_v31 = vmin.f32 %v8710_v15, 0.0  ;;  %v8727_v58 = vmin.f32 %v8711_v61, 0.0  ;;  %v8728_v27 = vmin.f32 %v8712_v59, 0.0  ;;  %v8729_v7 = vmin.f32 %v8713_v13, 0.0 }
0x13ae   :  { %v9161_v63 = vpop.eup %9160  ;;  %vm8718_vm10 = vcmp.gt.f32.partialorder %v8710_v15, 0.0  ;;  %vm8719_vm2 = vcmp.gt.f32.partialorder %v8711_v61, 0.0  ;;  %vm8720_vm13 = vcmp.gt.f32.partialorder %v8712_v59, 0.0  ;;  %vm8721_vm9 = vcmp.gt.f32.partialorder %v8713_v13, 0.0 }
0x13af   :  { %v8714_v40 = vmul.f32 %v9161_v63, %v8702_v22  ;;  %v8715_v25 = vmul.f32 %v9161_v63, %v8703_v4  ;;  %v8716_v36 = vmul.f32 %v9161_v63, %v8704_v0  ;;  %v15086_v5 = vmul.f32 %v9161_v63, %v8705_v46 }
0x13b0   :  { %v8734_v1 = vmul.f32 1.442695, %v8726_v31  ;;  %v8736_v26 = vmul.f32 1.442695, %v8727_v58  ;;  %v8738_v30 = vmul.f32 1.442695, %v8728_v27 }
0x13b1   :  { %v8740_v57 = vmul.f32 1.442695, %v8729_v7  ;;  %v8730_v55 = vmin.f32 %v8714_v40, 0.0  ;;  %v8731_v9 = vmin.f32 %v8715_v25, 0.0  ;;  %v8732_v16 = vmin.f32 %v8716_v36, 0.0 }
0x13b2   :  { %9162 = vpow2.f32 %v8734_v1  ;;  %v8733_v49 = vmin.f32 %v15086_v5, 0.0  ;;  %vm8722_vm1 = vcmp.gt.f32.partialorder %v8714_v40, 0.0  ;;  %vm8723_vm3 = vcmp.gt.f32.partialorder %v8715_v25, 0.0 }
0x13b3   :  { %9164 = vpow2.f32 %v8736_v26  ;;  %v8742_v24 = vmul.f32 1.442695, %v8730_v55  ;;  %v8744_v33 = vmul.f32 1.442695, %v8731_v9  ;;  %v8746_v41 = vmul.f32 1.442695, %v8732_v16 }
0x13b4   :  { %9166 = vpow2.f32 %v8738_v30  ;;  %v8748_v2 = vmul.f32 1.442695, %v8733_v49  ;;  %vm8724_vm5 = vcmp.gt.f32.partialorder %v8716_v36, 0.0  ;;  %vm8725_vm14 = vcmp.gt.f32.partialorder %v15086_v5, 0.0 }
0x13b5   :  { %9168 = vpow2.f32 %v8740_v57 }
0x13b6   :  { %9170 = vpow2.f32 %v8742_v24 }
0x13b7   :  { %9172 = vpow2.f32 %v8744_v33 }
0x13b8   :  { %9174 = vpow2.f32 %v8746_v41 }
0x13b9   :  { %9176 = vpow2.f32 %v8748_v2 }
0x13bf   :  { %v9163_v48 = vpop.eup %9162 }
0x13c0   :  { %v9165_v21 = vpop.eup %9164  ;;  %v8983_v8 = vadd.f32 -1.0, %v9163_v48 }
0x13c1   :  { %v9167_v14 = vpop.eup %9166  ;;  %v8984_v54 = vadd.f32 -1.0, %v9165_v21 }
0x13c2   :  { %v9169_v56 = vpop.eup %9168  ;;  %v8985_v60 = vadd.f32 -1.0, %v9167_v14  ;;  %v8758_v3 = vsel %vm8718_vm10, %v8710_v15, %v8983_v8 }
0x13c3   :  { %v9171_v19 = vpop.eup %9170  ;;  %v8986_v45 = vadd.f32 -1.0, %v9169_v56  ;;  %v8759_v17 = vsel %vm8719_vm2, %v8711_v61, %v8984_v54  ;;  %v8774_v44 = vadd.f32 %v8758_v3, %v15931_v37  ;;  %v15937_v61 = vld [vmem:[#allocation11_spill] sm:$0xff] }
0x13c4   :  { %v9173_v10 = vpop.eup %9172  ;;  %v8760_v32 = vsel %vm8720_vm13, %v8712_v59, %v8985_v60  ;;  %v8775_v34 = vadd.f32 %v8759_v17, %v15932_v52  ;;  %v8987_v53 = vadd.f32 -1.0, %v9171_v19 }
0x13c5   :  { %v9175_v62 = vpop.eup %9174  ;;  %v8761_v39 = vsel %vm8721_vm9, %v8713_v13, %v8986_v45  ;;  %v8776_v12 = vadd.f32 %v8760_v32, %v15933_v50  ;;  %8782 = vst [vmem:[%s15127_s4] sm:$0xff] %v8774_v44  ;;  %v8988_v18 = vadd.f32 -1.0, %v9173_v10  ;;  %v15938_v13 = vld [vmem:[#allocation13_spill] sm:$0xff] }
0x13c6   :  { %v9177_v38 = vpop.eup %9176  ;;  %v8777_v20 = vadd.f32 %v8761_v39, %v15934_v35  ;;  %8783 = vst [vmem:[%s15127_s4 + $0x8] sm:$0xff] %v8775_v34  ;;  %v8989_v43 = vadd.f32 -1.0, %v9175_v62  ;;  %v8762_v51 = vsel %vm8722_vm1, %v8714_v40, %v8987_v53 }
0x13c7   :  { %8784 = vst [vmem:[%s15127_s4 + $0x10] sm:$0xff] %v8776_v12  ;;  %v8990_v28 = vadd.f32 -1.0, %v9177_v38  ;;  %v8763_v29 = vsel %vm8723_vm3, %v8715_v25, %v8988_v18  ;;  %v8778_v42 = vadd.f32 %v8762_v51, %v15935_v6 }
0x13c8   :  { %8785 = vst [vmem:[%s15127_s4 + $0x18] sm:$0xff] %v8777_v20  ;;  %v8764_v47 = vsel %vm8724_vm5, %v8716_v36, %v8989_v43  ;;  %v8779_v23 = vadd.f32 %v8763_v29, %v15936_v11 }
0x13c9   :  { %v8765_v15 = vsel %vm8725_vm14, %v15086_v5, %v8990_v28  ;;  %v8780_v59 = vadd.f32 %v8764_v47, %v15937_v61  ;;  %8786 = vst [vmem:[%s15127_s4 + $0x20] sm:$0xff] %v8778_v42 }
0x13ca   :  { %v8781_v22 = vadd.f32 %v8765_v15, %v15938_v13  ;;  %8787 = vst [vmem:[%s15127_s4 + $0x28] sm:$0xff] %v8779_v23 }
0x13cb   :  { %8788 = vst [vmem:[%s15127_s4 + $0x30] sm:$0xff] %v8780_v59 }
0x13cc   :  { %8789 = vst [vmem:[%s15127_s4 + $0x38] sm:$0xff] %v8781_v22 }
0x13cd   :  { %8794 = vsyncpa [#allocation5], 1 }

</bundles_post_ra>
